<compile_context>
chip_gen: v7x
topology: tpu7x:2x2x1
jax: 0.10.0
libtpu: 0.0.40
codegen_flags: <defaults>
</compile_context>

<pallas_src>
import functools

import jax
import jax.numpy as jnp
from jax import lax
from jax.experimental import pallas as pl
from jax.experimental.pallas import tpu as pltpu

NEG = float(jnp.finfo(jnp.float32).min)


# ----------------------- in-kernel building blocks --------------------------
# These helpers are traced inside the single Pallas kernel body; all operands
# are VMEM-resident values (already read from their Refs).

def _layer_norm(x, g, b, eps=1e-5):
    x = x.astype(jnp.float32)
    mu = jnp.mean(x, axis=-1, keepdims=True)
    var = jnp.mean((x - mu) ** 2, axis=-1, keepdims=True)
    return (x - mu) * lax.rsqrt(var + eps) * g + b


def _dense(x, w, b, act=None):
    # x: [B, T, K]; w: [K, N]; b: [1, N]
    B, T, K = x.shape
    N = w.shape[-1]
    y = jnp.dot(x.reshape(B * T, K), w, preferred_element_type=jnp.float32) + b
    if act == "gelu":
        # TODO(synk): PyTorch nn.GELU default is exact erf-GELU; tanh
        # approximation used here for robust Mosaic lowering (~1e-3 rel diff).
        y = jax.nn.gelu(y, approximate=True)
    return y.reshape(B, T, N)


def _mha(xq, xkv, bias, ap, num_heads, cross):
    """Fused multi-head attention. xq:[B,Sq,D]; xkv:[B,Sk,D];
    bias broadcastable to [B,Sq,Sk] (additive, float32)."""
    B, Sq, D = xq.shape
    Sk = xkv.shape[1]
    Dh = D // num_heads
    scale = Dh ** -0.5

    wqkv = ap["wqkv"][...]      # [D, 3D]
    bqkv = ap["bqkv"][...]      # [1, 3D]
    wo = ap["wo"][...]          # [D, D]
    bo = ap["bo"][...]          # [1, D]

    if cross:
        q = (jnp.dot(xq.reshape(B * Sq, D), wqkv[:, :D],
                     preferred_element_type=jnp.float32)
             + bqkv[:, :D]).reshape(B, Sq, D)
        kv = (jnp.dot(xkv.reshape(B * Sk, D), wqkv[:, D:],
                      preferred_element_type=jnp.float32) + bqkv[:, D:])
        k = kv[:, :D].reshape(B, Sk, D)
        v = kv[:, D:].reshape(B, Sk, D)
    else:
        qkv = (jnp.dot(xq.reshape(B * Sq, D), wqkv,
                       preferred_element_type=jnp.float32) + bqkv)
        q = qkv[:, :D].reshape(B, Sq, D)
        k = qkv[:, D:2 * D].reshape(B, Sk, D)
        v = qkv[:, 2 * D:].reshape(B, Sk, D)

    # Per-head attention; head merge + output projection fused as an
    # accumulation over row-blocks of Wo (no concat / 4-D transpose needed).
    acc = jnp.zeros((B * Sq, D), jnp.float32)
    for h in range(num_heads):
        sl = slice(h * Dh, (h + 1) * Dh)
        s = jnp.einsum('bqd,bkd->bqk', q[:, :, sl] * scale, k[:, :, sl],
                       preferred_element_type=jnp.float32)
        s = s + bias
        s = s - jnp.max(s, axis=-1, keepdims=True)
        pw = jnp.exp(s)
        pw = pw * pl.reciprocal(jnp.sum(pw, axis=-1, keepdims=True), approx=True)
        ctx = jnp.einsum('bqk,bkd->bqd', pw, v[:, :, sl],
                         preferred_element_type=jnp.float32)
        acc = acc + jnp.dot(ctx.reshape(B * Sq, Dh), wo[sl, :],
                            preferred_element_type=jnp.float32)
    return (acc + bo).reshape(B, Sq, D)


def _ffn(x, mp):
    h = _dense(x, mp["w1"][...], mp["b1"][...], act="gelu")
    return _dense(h, mp["w2"][...], mp["b2"][...])


def _self_layer(x, bias, lp, H):
    a = _mha(x, x, bias, lp["attn"], H, cross=False)
    x = _layer_norm(x + a, lp["attn_ln"]["g"][...], lp["attn_ln"]["b"][...])
    m = _ffn(x, lp["mlp"])
    return _layer_norm(x + m, lp["last_ln"]["g"][...], lp["last_ln"]["b"][...])


def _causal_layer(x, bias, lp, H):
    a = _mha(x, x, bias, lp["attn"], H, cross=False)
    return _layer_norm(x + a, lp["attn_ln"]["g"][...], lp["attn_ln"]["b"][...])


def _merge_layer(y, x_kv, bias, lp, H):
    a = _mha(y, x_kv, bias, lp["attn"], H, cross=True)
    e = _layer_norm(y + a, lp["attn_ln"]["g"][...], lp["attn_ln"]["b"][...])
    m = _ffn(e, lp["mlp"])
    return _layer_norm(e + m, lp["last_ln"]["g"][...], lp["last_ln"]["b"][...])


# ------------------------------ fused kernel --------------------------------

def _make_kernel(treedef, cfg, T):
    H = cfg["attention_heads"]
    self_x = cfg.get("self_attn_x", True)

    def kernel(*refs):
        x_ref, y_ref, mask_ref = refs[0], refs[1], refs[2]
        out_ref = refs[-1]
        p = jax.tree_util.tree_unflatten(treedef, refs[3:-1])

        x = x_ref[...]            # [B, T, J]
        y = y_ref[...]            # [B, T, J]
        mask = mask_ref[...]      # [B, T]

        # CoordinateMapping.
        # TODO(synk): CoordinateMapping definition not provided in the
        # reference; implemented as two independent Linear(J -> d_model) maps.
        x_embed = _dense(x, p["coord_x"]["w"][...], p["coord_x"]["b"][...])
        y_embed = _dense(y, p["coord_y"]["w"][...], p["coord_y"]["b"][...])

        sca = p["sca"]
        self_pos = sca["self_pos"][...][:T][None]       # [1, T, D]
        causal_pos = sca["causal_pos"][...][:T][None]   # [1, T, D]
        if self_x:
            self_embed = x_embed + self_pos
            causal_embed = y_embed + causal_pos
        else:
            self_embed = y_embed + self_pos
            causal_embed = x_embed + causal_pos

        self_embed = _layer_norm(self_embed,
                                 sca["first_self_norm"]["g"][...],
                                 sca["first_self_norm"]["b"][...])
        causal_embed = _layer_norm(causal_embed,
                                   sca["first_causal_norm"]["g"][...],
                                   sca["first_causal_norm"]["b"][...])

        # Additive attention biases built in-kernel from the [B, T] mask.
        pad_keep = mask[:, None, :] > 0.5                       # [B, 1, T]
        pad_bias = jnp.where(pad_keep, 0.0, NEG)                # [B, 1, T]
        row = lax.broadcasted_iota(jnp.int32, (T, T), 0)
        col = lax.broadcasted_iota(jnp.int32, (T, T), 1)
        causal_keep = jnp.logical_and((col <= row)[None, :, :], pad_keep)
        causal_bias = jnp.where(causal_keep, 0.0, NEG)          # [B, T, T]

        self_map = self_embed
        for lp in sca["self_layers"]:
            self_map = _self_layer(self_map, pad_bias, lp, H)

        causal_map = causal_embed
        for lp, mp in zip(sca["causal_layers"], sca["merge_layers"]):
            causal_map = _causal_layer(causal_map, causal_bias, lp, H)
            causal_map = _merge_layer(causal_map, self_map, pad_bias, mp, H)

        # ResidualNetwork head.
        # TODO(synk): ResidualNetwork definition not provided in the reference;
        # implemented as residual MLP blocks on d_model, returning outputs.
        hidden = causal_map
        for bp in p["residual"]:
            h = _dense(hidden, bp["w1"][...], bp["b1"][...], act="gelu")
            h = _dense(h, bp["w2"][...], bp["b2"][...])
            hidden = _layer_norm(hidden + h, bp["g"][...], bp["b"][...])

        out_ref[...] = hidden.astype(out_ref.dtype)

    return kernel


def keypoint_module_forward(params, keypoints, attention_mask, cfg):
    B, T, J, _ = keypoints.shape
    D = cfg["d_model"]
    x = keypoints[..., 0]     # [B, T, J]
    y = keypoints[..., 1]     # [B, T, J]
    leaves, treedef = jax.tree_util.tree_flatten(params)
    kernel = _make_kernel(treedef, cfg, T)
    return pl.pallas_call(
        kernel,
        out_shape=jax.ShapeDtypeStruct((B, T, D), jnp.float32),
        compiler_params=pltpu.CompilerParams(vmem_limit_bytes=32 * 1024 * 1024),
    )(x, y, attention_mask.astype(jnp.float32), *leaves)


# ------------------------------- parameters ---------------------------------

def init_params(cfg, num_joints, seed=0):
    keys = iter(jax.random.split(jax.random.PRNGKey(seed), 512))

    def lin(i, o):
        return {"w": 0.02 * jax.random.normal(next(keys), (i, o), jnp.float32),
                "b": jnp.zeros((1, o), jnp.float32)}

    def ln(d):
        return {"g": jnp.ones((1, d), jnp.float32),
                "b": jnp.zeros((1, d), jnp.float32)}

    D, F = cfg["d_model"], cfg["ff_dim"]

    def attn():
        # Q, K, V fused into a single [D, 3D] projection.
        return {"wqkv": 0.02 * jax.random.normal(next(keys), (D, 3 * D), jnp.float32),
                "bqkv": jnp.zeros((1, 3 * D), jnp.float32),
                "wo": 0.02 * jax.random.normal(next(keys), (D, D), jnp.float32),
                "bo": jnp.zeros((1, D), jnp.float32)}

    def mlp():
        f1, f2 = lin(D, F), lin(F, D)
        return {"w1": f1["w"], "b1": f1["b"], "w2": f2["w"], "b2": f2["b"]}

    def res_block():
        f1, f2 = lin(D, D), lin(D, D)
        n = ln(D)
        return {"w1": f1["w"], "b1": f1["b"], "w2": f2["w"], "b2": f2["b"],
                "g": n["g"], "b": n["b"]}

    return {
        "coord_x": lin(num_joints, D),
        "coord_y": lin(num_joints, D),
        "sca": {
            "self_pos": 0.02 * jax.random.normal(
                next(keys), (cfg["max_position_embeddings"], D), jnp.float32),
            "causal_pos": 0.02 * jax.random.normal(
                next(keys), (cfg["max_position_embeddings"], D), jnp.float32),
            "first_self_norm": ln(D),
            "first_causal_norm": ln(D),
            "self_layers": [
                {"attn": attn(), "attn_ln": ln(D), "mlp": mlp(), "last_ln": ln(D)}
                for _ in range(cfg["attn_layers"])],
            "causal_layers": [
                {"attn": attn(), "attn_ln": ln(D)}
                for _ in range(cfg["attn_layers"])],
            "merge_layers": [
                {"attn": attn(), "attn_ln": ln(D), "mlp": mlp(), "last_ln": ln(D)}
                for _ in range(cfg["attn_layers"])],
        },
        "residual": [res_block() for _ in range(cfg["residual_blocks"])],
    }


# ---------------------------------- main -------------------------------------

if __name__ == "__main__":
    cfg = dict(
        d_model=32,
        attention_heads=4,
        attention_dropout=0.0,
        ff_dim=64,
        dropout=0.0,
        attn_layers=2,
        max_position_embeddings=16,
        residual_blocks=2,
        self_attn_x=True,
    )
    joint_idx = (0, 1, 2, 3)          # J = 4
    num_frame = 8                     # T = 8 (sequence length)
    batch = 2

    params = init_params(cfg, len(joint_idx), seed=0)

    key = jax.random.PRNGKey(0)
    keypoints = jax.random.normal(
        key, (batch, num_frame, len(joint_idx), 2), jnp.float32)
    attention_mask = jnp.ones((batch, num_frame), jnp.float32)

    fwd = jax.jit(functools.partial(keypoint_module_forward, cfg=cfg))
    out = fwd(params, keypoints, attention_mask)
    jax.block_until_ready(out)

    assert out.shape == (batch, num_frame, cfg["d_model"]), out.shape
    assert bool(jnp.all(jnp.isfinite(out)))
    print("KERNEL_OK")
</pallas_src>

<mosaic_0001>
module attributes {stable_mosaic.version = 11 : i64} {
  func.func @kernel(%arg0: memref<2x8x4xf32, #tpu.memory_space<vmem>>, %arg1: memref<2x8x4xf32, #tpu.memory_space<vmem>>, %arg2: memref<2x8xf32, #tpu.memory_space<vmem>>, %arg3: memref<1x32xf32, #tpu.memory_space<vmem>>, %arg4: memref<4x32xf32, #tpu.memory_space<vmem>>, %arg5: memref<1x32xf32, #tpu.memory_space<vmem>>, %arg6: memref<4x32xf32, #tpu.memory_space<vmem>>, %arg7: memref<1x32xf32, #tpu.memory_space<vmem>>, %arg8: memref<1x32xf32, #tpu.memory_space<vmem>>, %arg9: memref<1x32xf32, #tpu.memory_space<vmem>>, %arg10: memref<1x32xf32, #tpu.memory_space<vmem>>, %arg11: memref<32x32xf32, #tpu.memory_space<vmem>>, %arg12: memref<32x32xf32, #tpu.memory_space<vmem>>, %arg13: memref<1x32xf32, #tpu.memory_space<vmem>>, %arg14: memref<1x32xf32, #tpu.memory_space<vmem>>, %arg15: memref<1x32xf32, #tpu.memory_space<vmem>>, %arg16: memref<1x32xf32, #tpu.memory_space<vmem>>, %arg17: memref<32x32xf32, #tpu.memory_space<vmem>>, %arg18: memref<32x32xf32, #tpu.memory_space<vmem>>, %arg19: memref<1x32xf32, #tpu.memory_space<vmem>>, %arg20: memref<1x96xf32, #tpu.memory_space<vmem>>, %arg21: memref<32x32xf32, #tpu.memory_space<vmem>>, %arg22: memref<32x96xf32, #tpu.memory_space<vmem>>, %arg23: memref<1x32xf32, #tpu.memory_space<vmem>>, %arg24: memref<1x32xf32, #tpu.memory_space<vmem>>, %arg25: memref<1x32xf32, #tpu.memory_space<vmem>>, %arg26: memref<1x96xf32, #tpu.memory_space<vmem>>, %arg27: memref<32x32xf32, #tpu.memory_space<vmem>>, %arg28: memref<32x96xf32, #tpu.memory_space<vmem>>, %arg29: memref<1x32xf32, #tpu.memory_space<vmem>>, %arg30: memref<1x32xf32, #tpu.memory_space<vmem>>, %arg31: memref<16x32xf32, #tpu.memory_space<vmem>>, %arg32: memref<1x32xf32, #tpu.memory_space<vmem>>, %arg33: memref<1x32xf32, #tpu.memory_space<vmem>>, %arg34: memref<1x32xf32, #tpu.memory_space<vmem>>, %arg35: memref<1x32xf32, #tpu.memory_space<vmem>>, %arg36: memref<1x32xf32, #tpu.memory_space<vmem>>, %arg37: memref<1x96xf32, #tpu.memory_space<vmem>>, %arg38: memref<32x32xf32, #tpu.memory_space<vmem>>, %arg39: memref<32x96xf32, #tpu.memory_space<vmem>>, %arg40: memref<1x32xf32, #tpu.memory_space<vmem>>, %arg41: memref<1x32xf32, #tpu.memory_space<vmem>>, %arg42: memref<1x32xf32, #tpu.memory_space<vmem>>, %arg43: memref<1x32xf32, #tpu.memory_space<vmem>>, %arg44: memref<1x64xf32, #tpu.memory_space<vmem>>, %arg45: memref<1x32xf32, #tpu.memory_space<vmem>>, %arg46: memref<32x64xf32, #tpu.memory_space<vmem>>, %arg47: memref<64x32xf32, #tpu.memory_space<vmem>>, %arg48: memref<1x32xf32, #tpu.memory_space<vmem>>, %arg49: memref<1x96xf32, #tpu.memory_space<vmem>>, %arg50: memref<32x32xf32, #tpu.memory_space<vmem>>, %arg51: memref<32x96xf32, #tpu.memory_space<vmem>>, %arg52: memref<1x32xf32, #tpu.memory_space<vmem>>, %arg53: memref<1x32xf32, #tpu.memory_space<vmem>>, %arg54: memref<1x32xf32, #tpu.memory_space<vmem>>, %arg55: memref<1x32xf32, #tpu.memory_space<vmem>>, %arg56: memref<1x64xf32, #tpu.memory_space<vmem>>, %arg57: memref<1x32xf32, #tpu.memory_space<vmem>>, %arg58: memref<32x64xf32, #tpu.memory_space<vmem>>, %arg59: memref<64x32xf32, #tpu.memory_space<vmem>>, %arg60: memref<1x32xf32, #tpu.memory_space<vmem>>, %arg61: memref<1x96xf32, #tpu.memory_space<vmem>>, %arg62: memref<32x32xf32, #tpu.memory_space<vmem>>, %arg63: memref<32x96xf32, #tpu.memory_space<vmem>>, %arg64: memref<1x32xf32, #tpu.memory_space<vmem>>, %arg65: memref<1x32xf32, #tpu.memory_space<vmem>>, %arg66: memref<1x32xf32, #tpu.memory_space<vmem>>, %arg67: memref<1x32xf32, #tpu.memory_space<vmem>>, %arg68: memref<1x64xf32, #tpu.memory_space<vmem>>, %arg69: memref<1x32xf32, #tpu.memory_space<vmem>>, %arg70: memref<32x64xf32, #tpu.memory_space<vmem>>, %arg71: memref<64x32xf32, #tpu.memory_space<vmem>>, %arg72: memref<1x32xf32, #tpu.memory_space<vmem>>, %arg73: memref<1x96xf32, #tpu.memory_space<vmem>>, %arg74: memref<32x32xf32, #tpu.memory_space<vmem>>, %arg75: memref<32x96xf32, #tpu.memory_space<vmem>>, %arg76: memref<1x32xf32, #tpu.memory_space<vmem>>, %arg77: memref<1x32xf32, #tpu.memory_space<vmem>>, %arg78: memref<1x32xf32, #tpu.memory_space<vmem>>, %arg79: memref<1x32xf32, #tpu.memory_space<vmem>>, %arg80: memref<1x64xf32, #tpu.memory_space<vmem>>, %arg81: memref<1x32xf32, #tpu.memory_space<vmem>>, %arg82: memref<32x64xf32, #tpu.memory_space<vmem>>, %arg83: memref<64x32xf32, #tpu.memory_space<vmem>>, %arg84: memref<16x32xf32, #tpu.memory_space<vmem>>, %arg85: memref<2x8x32xf32, #tpu.memory_space<vmem>>) attributes {dimension_semantics = [], scalar_prefetch = 0 : i64, scratch_operands = 0 : i64, tpu.core_type = #tpu.core_type<tc>} {
    %c0 = arith.constant 0 : index
    %c0_0 = arith.constant 0 : index
    %c0_1 = arith.constant 0 : index
    %0 = vector.load %arg0[%c0, %c0_0, %c0_1] : memref<2x8x4xf32, #tpu.memory_space<vmem>>, vector<2x8x4xf32>
    %c0_2 = arith.constant 0 : index
    %c0_3 = arith.constant 0 : index
    %c0_4 = arith.constant 0 : index
    %1 = vector.load %arg1[%c0_2, %c0_3, %c0_4] : memref<2x8x4xf32, #tpu.memory_space<vmem>>, vector<2x8x4xf32>
    %c0_5 = arith.constant 0 : index
    %c0_6 = arith.constant 0 : index
    %2 = vector.load %arg2[%c0_5, %c0_6] : memref<2x8xf32, #tpu.memory_space<vmem>>, vector<2x8xf32>
    %c0_7 = arith.constant 0 : index
    %c0_8 = arith.constant 0 : index
    %3 = vector.load %arg4[%c0_7, %c0_8] : memref<4x32xf32, #tpu.memory_space<vmem>>, vector<4x32xf32>
    %c0_9 = arith.constant 0 : index
    %c0_10 = arith.constant 0 : index
    %4 = vector.load %arg3[%c0_9, %c0_10] : memref<1x32xf32, #tpu.memory_space<vmem>>, vector<1x32xf32>
    %5 = vector.shape_cast %0 : vector<2x8x4xf32> to vector<16x4xf32>
    %cst = arith.constant dense<0.000000e+00> : vector<16x32xf32>
    %6 = tpu.matmul %5, %3, %cst {dimension_numbers = #tpu.dot_dimension_numbers<[1], [0], [0], [1], [0, 0, 1, 1], [], []>} : vector<16x4xf32>, vector<4x32xf32>, vector<16x32xf32> -> vector<16x32xf32>
    %7 = vector.broadcast %4 : vector<1x32xf32> to vector<16x32xf32>
    %8 = arith.addf %6, %7 : vector<16x32xf32>
    %9 = vector.shape_cast %8 : vector<16x32xf32> to vector<2x8x32xf32>
    %c0_11 = arith.constant 0 : index
    %c0_12 = arith.constant 0 : index
    %10 = vector.load %arg6[%c0_11, %c0_12] : memref<4x32xf32, #tpu.memory_space<vmem>>, vector<4x32xf32>
    %c0_13 = arith.constant 0 : index
    %c0_14 = arith.constant 0 : index
    %11 = vector.load %arg5[%c0_13, %c0_14] : memref<1x32xf32, #tpu.memory_space<vmem>>, vector<1x32xf32>
    %12 = vector.shape_cast %1 : vector<2x8x4xf32> to vector<16x4xf32>
    %cst_15 = arith.constant dense<0.000000e+00> : vector<16x32xf32>
    %13 = tpu.matmul %12, %10, %cst_15 {dimension_numbers = #tpu.dot_dimension_numbers<[1], [0], [0], [1], [0, 0, 1, 1], [], []>} : vector<16x4xf32>, vector<4x32xf32>, vector<16x32xf32> -> vector<16x32xf32>
    %14 = vector.broadcast %11 : vector<1x32xf32> to vector<16x32xf32>
    %15 = arith.addf %13, %14 : vector<16x32xf32>
    %16 = vector.shape_cast %15 : vector<16x32xf32> to vector<2x8x32xf32>
    %c0_16 = arith.constant 0 : index
    %c0_17 = arith.constant 0 : index
    %17 = vector.load %arg84[%c0_16, %c0_17] : memref<16x32xf32, #tpu.memory_space<vmem>>, vector<16x32xf32>
    %18 = vector.extract_strided_slice %17 {offsets = [0, 0], sizes = [8, 32], strides = [1, 1]} : vector<16x32xf32> to vector<8x32xf32>
    %19 = vector.shape_cast %18 : vector<8x32xf32> to vector<1x8x32xf32>
    %c0_18 = arith.constant 0 : index
    %c0_19 = arith.constant 0 : index
    %20 = vector.load %arg31[%c0_18, %c0_19] : memref<16x32xf32, #tpu.memory_space<vmem>>, vector<16x32xf32>
    %21 = vector.extract_strided_slice %20 {offsets = [0, 0], sizes = [8, 32], strides = [1, 1]} : vector<16x32xf32> to vector<8x32xf32>
    %22 = vector.shape_cast %21 : vector<8x32xf32> to vector<1x8x32xf32>
    %23 = vector.broadcast %19 : vector<1x8x32xf32> to vector<2x8x32xf32>
    %24 = arith.addf %9, %23 : vector<2x8x32xf32>
    %25 = vector.broadcast %22 : vector<1x8x32xf32> to vector<2x8x32xf32>
    %26 = arith.addf %16, %25 : vector<2x8x32xf32>
    %c0_20 = arith.constant 0 : index
    %c0_21 = arith.constant 0 : index
    %27 = vector.load %arg35[%c0_20, %c0_21] : memref<1x32xf32, #tpu.memory_space<vmem>>, vector<1x32xf32>
    %c0_22 = arith.constant 0 : index
    %c0_23 = arith.constant 0 : index
    %28 = vector.load %arg34[%c0_22, %c0_23] : memref<1x32xf32, #tpu.memory_space<vmem>>, vector<1x32xf32>
    %cst_24 = arith.constant dense<0.000000e+00> : vector<2x8xf32>
    %29 = vector.multi_reduction <add>, %24, %cst_24 [2] : vector<2x8x32xf32> to vector<2x8xf32>
    %30 = vector.shape_cast %29 : vector<2x8xf32> to vector<2x8x1xf32>
    %cst_25 = arith.constant 3.200000e+01 : f32
    %31 = vector.broadcast %cst_25 : f32 to vector<2x8x1xf32>
    %32 = arith.divf %30, %31 : vector<2x8x1xf32>
    %33 = vector.broadcast %32 : vector<2x8x1xf32> to vector<2x8x32xf32>
    %34 = arith.subf %24, %33 : vector<2x8x32xf32>
    %35 = arith.mulf %34, %34 : vector<2x8x32xf32>
    %cst_26 = arith.constant dense<0.000000e+00> : vector<2x8xf32>
    %36 = vector.multi_reduction <add>, %35, %cst_26 [2] : vector<2x8x32xf32> to vector<2x8xf32>
    %37 = vector.shape_cast %36 : vector<2x8xf32> to vector<2x8x1xf32>
    %cst_27 = arith.constant 3.200000e+01 : f32
    %38 = vector.broadcast %cst_27 : f32 to vector<2x8x1xf32>
    %39 = arith.divf %37, %38 : vector<2x8x1xf32>
    %40 = vector.broadcast %32 : vector<2x8x1xf32> to vector<2x8x32xf32>
    %41 = arith.subf %24, %40 : vector<2x8x32xf32>
    %cst_28 = arith.constant 9.99999974E-6 : f32
    %42 = vector.broadcast %cst_28 : f32 to vector<2x8x1xf32>
    %43 = arith.addf %39, %42 : vector<2x8x1xf32>
    %44 = math.rsqrt %43 : vector<2x8x1xf32>
    %45 = vector.broadcast %44 : vector<2x8x1xf32> to vector<2x8x32xf32>
    %46 = arith.mulf %41, %45 : vector<2x8x32xf32>
    %47 = vector.shape_cast %27 : vector<1x32xf32> to vector<1x1x32xf32>
    %48 = vector.broadcast %47 : vector<1x1x32xf32> to vector<2x8x32xf32>
    %49 = arith.mulf %46, %48 : vector<2x8x32xf32>
    %50 = vector.shape_cast %28 : vector<1x32xf32> to vector<1x1x32xf32>
    %51 = vector.broadcast %50 : vector<1x1x32xf32> to vector<2x8x32xf32>
    %52 = arith.addf %49, %51 : vector<2x8x32xf32>
    %c0_29 = arith.constant 0 : index
    %c0_30 = arith.constant 0 : index
    %53 = vector.load %arg33[%c0_29, %c0_30] : memref<1x32xf32, #tpu.memory_space<vmem>>, vector<1x32xf32>
    %c0_31 = arith.constant 0 : index
    %c0_32 = arith.constant 0 : index
    %54 = vector.load %arg32[%c0_31, %c0_32] : memref<1x32xf32, #tpu.memory_space<vmem>>, vector<1x32xf32>
    %cst_33 = arith.constant dense<0.000000e+00> : vector<2x8xf32>
    %55 = vector.multi_reduction <add>, %26, %cst_33 [2] : vector<2x8x32xf32> to vector<2x8xf32>
    %56 = vector.shape_cast %55 : vector<2x8xf32> to vector<2x8x1xf32>
    %cst_34 = arith.constant 3.200000e+01 : f32
    %57 = vector.broadcast %cst_34 : f32 to vector<2x8x1xf32>
    %58 = arith.divf %56, %57 : vector<2x8x1xf32>
    %59 = vector.broadcast %58 : vector<2x8x1xf32> to vector<2x8x32xf32>
    %60 = arith.subf %26, %59 : vector<2x8x32xf32>
    %61 = arith.mulf %60, %60 : vector<2x8x32xf32>
    %cst_35 = arith.constant dense<0.000000e+00> : vector<2x8xf32>
    %62 = vector.multi_reduction <add>, %61, %cst_35 [2] : vector<2x8x32xf32> to vector<2x8xf32>
    %63 = vector.shape_cast %62 : vector<2x8xf32> to vector<2x8x1xf32>
    %cst_36 = arith.constant 3.200000e+01 : f32
    %64 = vector.broadcast %cst_36 : f32 to vector<2x8x1xf32>
    %65 = arith.divf %63, %64 : vector<2x8x1xf32>
    %66 = vector.broadcast %58 : vector<2x8x1xf32> to vector<2x8x32xf32>
    %67 = arith.subf %26, %66 : vector<2x8x32xf32>
    %cst_37 = arith.constant 9.99999974E-6 : f32
    %68 = vector.broadcast %cst_37 : f32 to vector<2x8x1xf32>
    %69 = arith.addf %65, %68 : vector<2x8x1xf32>
    %70 = math.rsqrt %69 : vector<2x8x1xf32>
    %71 = vector.broadcast %70 : vector<2x8x1xf32> to vector<2x8x32xf32>
    %72 = arith.mulf %67, %71 : vector<2x8x32xf32>
    %73 = vector.shape_cast %53 : vector<1x32xf32> to vector<1x1x32xf32>
    %74 = vector.broadcast %73 : vector<1x1x32xf32> to vector<2x8x32xf32>
    %75 = arith.mulf %72, %74 : vector<2x8x32xf32>
    %76 = vector.shape_cast %54 : vector<1x32xf32> to vector<1x1x32xf32>
    %77 = vector.broadcast %76 : vector<1x1x32xf32> to vector<2x8x32xf32>
    %78 = arith.addf %75, %77 : vector<2x8x32xf32>
    %79 = vector.shape_cast %2 : vector<2x8xf32> to vector<2x1x8xf32>
    %cst_38 = arith.constant 5.000000e-01 : f32
    %80 = vector.broadcast %cst_38 : f32 to vector<2x1x8xf32>
    %81 = arith.cmpf ogt, %79, %80 : vector<2x1x8xf32>
    %cst_39 = arith.constant 0.000000e+00 : f32
    %cst_40 = arith.constant -3.40282347E+38 : f32
    %82 = vector.broadcast %cst_39 : f32 to vector<2x1x8xf32>
    %83 = vector.broadcast %cst_40 : f32 to vector<2x1x8xf32>
    %84 = arith.select %81, %82, %83 : vector<2x1x8xi1>, vector<2x1x8xf32>
    %85 = tpu.iota {dimensions = array<i32: 0>} : vector<8x8xi32>
    %86 = tpu.iota {dimensions = array<i32: 1>} : vector<8x8xi32>
    %87 = arith.cmpi sle, %86, %85 : vector<8x8xi32>
    %88 = vector.shape_cast %87 : vector<8x8xi1> to vector<1x8x8xi1>
    %89 = vector.broadcast %88 : vector<1x8x8xi1> to vector<2x8x8xi1>
    %90 = vector.broadcast %81 : vector<2x1x8xi1> to vector<2x8x8xi1>
    %91 = arith.andi %89, %90 : vector<2x8x8xi1>
    %cst_41 = arith.constant 0.000000e+00 : f32
    %cst_42 = arith.constant -3.40282347E+38 : f32
    %92 = vector.broadcast %cst_41 : f32 to vector<2x8x8xf32>
    %93 = vector.broadcast %cst_42 : f32 to vector<2x8x8xf32>
    %94 = arith.select %91, %92, %93 : vector<2x8x8xi1>, vector<2x8x8xf32>
    %c0_43 = arith.constant 0 : index
    %c0_44 = arith.constant 0 : index
    %95 = vector.load %arg63[%c0_43, %c0_44] : memref<32x96xf32, #tpu.memory_space<vmem>>, vector<32x96xf32>
    %c0_45 = arith.constant 0 : index
    %c0_46 = arith.constant 0 : index
    %96 = vector.load %arg61[%c0_45, %c0_46] : memref<1x96xf32, #tpu.memory_space<vmem>>, vector<1x96xf32>
    %c0_47 = arith.constant 0 : index
    %c0_48 = arith.constant 0 : index
    %97 = vector.load %arg62[%c0_47, %c0_48] : memref<32x32xf32, #tpu.memory_space<vmem>>, vector<32x32xf32>
    %c0_49 = arith.constant 0 : index
    %c0_50 = arith.constant 0 : index
    %98 = vector.load %arg60[%c0_49, %c0_50] : memref<1x32xf32, #tpu.memory_space<vmem>>, vector<1x32xf32>
    %99 = vector.shape_cast %52 : vector<2x8x32xf32> to vector<16x32xf32>
    %cst_51 = arith.constant dense<0.000000e+00> : vector<16x96xf32>
    %100 = tpu.matmul %99, %95, %cst_51 {dimension_numbers = #tpu.dot_dimension_numbers<[1], [0], [0], [1], [0, 0, 1, 1], [], []>} : vector<16x32xf32>, vector<32x96xf32>, vector<16x96xf32> -> vector<16x96xf32>
    %101 = vector.broadcast %96 : vector<1x96xf32> to vector<16x96xf32>
    %102 = arith.addf %100, %101 : vector<16x96xf32>
    %103 = vector.extract_strided_slice %102 {offsets = [0, 0], sizes = [16, 32], strides = [1, 1]} : vector<16x96xf32> to vector<16x32xf32>
    %104 = vector.shape_cast %103 : vector<16x32xf32> to vector<2x8x32xf32>
    %105 = vector.extract_strided_slice %102 {offsets = [0, 32], sizes = [16, 32], strides = [1, 1]} : vector<16x96xf32> to vector<16x32xf32>
    %106 = vector.shape_cast %105 : vector<16x32xf32> to vector<2x8x32xf32>
    %107 = vector.extract_strided_slice %102 {offsets = [0, 64], sizes = [16, 32], strides = [1, 1]} : vector<16x96xf32> to vector<16x32xf32>
    %108 = vector.shape_cast %107 : vector<16x32xf32> to vector<2x8x32xf32>
    %cst_52 = arith.constant 0.000000e+00 : f32
    %109 = vector.broadcast %cst_52 : f32 to vector<16x32xf32>
    %110 = vector.extract_strided_slice %104 {offsets = [0, 0, 0], sizes = [2, 8, 8], strides = [1, 1, 1]} : vector<2x8x32xf32> to vector<2x8x8xf32>
    %cst_53 = arith.constant 0.353553385 : f32
    %111 = vector.broadcast %cst_53 : f32 to vector<2x8x8xf32>
    %112 = arith.mulf %110, %111 : vector<2x8x8xf32>
    %113 = vector.extract_strided_slice %106 {offsets = [0, 0, 0], sizes = [2, 8, 8], strides = [1, 1, 1]} : vector<2x8x32xf32> to vector<2x8x8xf32>
    "tpu.trace_start"() <{level = 10 : i32, message = "bqd,bkd->bqk"}> : () -> ()
    %cst_54 = arith.constant dense<0.000000e+00> : vector<2x8x8xf32>
    %114 = tpu.matmul %112, %113, %cst_54 {dimension_numbers = #tpu.dot_dimension_numbers<[2], [2], [1], [1], [0, 0, 0, 1, 1, 1], [0], [0]>} : vector<2x8x8xf32>, vector<2x8x8xf32>, vector<2x8x8xf32> -> vector<2x8x8xf32>
    "tpu.trace_stop"() : () -> ()
    %115 = vector.broadcast %84 : vector<2x1x8xf32> to vector<2x8x8xf32>
    %116 = arith.addf %114, %115 : vector<2x8x8xf32>
    %cst_55 = arith.constant dense<0xFF800000> : vector<2x8xf32>
    %117 = vector.multi_reduction <maximumf>, %116, %cst_55 [2] : vector<2x8x8xf32> to vector<2x8xf32>
    %118 = vector.shape_cast %117 : vector<2x8xf32> to vector<2x8x1xf32>
    %119 = vector.broadcast %118 : vector<2x8x1xf32> to vector<2x8x8xf32>
    %120 = arith.subf %116, %119 : vector<2x8x8xf32>
    %121 = math.exp %120 : vector<2x8x8xf32>
    %cst_56 = arith.constant dense<0.000000e+00> : vector<2x8xf32>
    %122 = vector.multi_reduction <add>, %121, %cst_56 [2] : vector<2x8x8xf32> to vector<2x8xf32>
    %123 = vector.shape_cast %122 : vector<2x8xf32> to vector<2x8x1xf32>
    %124 = tpu.reciprocal %123 {approx = true} : vector<2x8x1xf32> -> vector<2x8x1xf32>
    %125 = vector.broadcast %124 : vector<2x8x1xf32> to vector<2x8x8xf32>
    %126 = arith.mulf %121, %125 : vector<2x8x8xf32>
    %127 = vector.extract_strided_slice %108 {offsets = [0, 0, 0], sizes = [2, 8, 8], strides = [1, 1, 1]} : vector<2x8x32xf32> to vector<2x8x8xf32>
    "tpu.trace_start"() <{level = 10 : i32, message = "bqk,bkd->bqd"}> : () -> ()
    %cst_57 = arith.constant dense<0.000000e+00> : vector<2x8x8xf32>
    %128 = tpu.matmul %126, %127, %cst_57 {dimension_numbers = #tpu.dot_dimension_numbers<[2], [1], [1], [2], [0, 0, 0, 1, 1, 2], [0], [0]>} : vector<2x8x8xf32>, vector<2x8x8xf32>, vector<2x8x8xf32> -> vector<2x8x8xf32>
    "tpu.trace_stop"() : () -> ()
    %129 = vector.shape_cast %128 : vector<2x8x8xf32> to vector<16x8xf32>
    %130 = vector.extract_strided_slice %97 {offsets = [0, 0], sizes = [8, 32], strides = [1, 1]} : vector<32x32xf32> to vector<8x32xf32>
    %cst_58 = arith.constant dense<0.000000e+00> : vector<16x32xf32>
    %131 = tpu.matmul %129, %130, %cst_58 {dimension_numbers = #tpu.dot_dimension_numbers<[1], [0], [0], [1], [0, 0, 1, 1], [], []>} : vector<16x8xf32>, vector<8x32xf32>, vector<16x32xf32> -> vector<16x32xf32>
    %132 = arith.addf %109, %131 : vector<16x32xf32>
    %133 = vector.extract_strided_slice %104 {offsets = [0, 0, 8], sizes = [2, 8, 8], strides = [1, 1, 1]} : vector<2x8x32xf32> to vector<2x8x8xf32>
    %cst_59 = arith.constant 0.353553385 : f32
    %134 = vector.broadcast %cst_59 : f32 to vector<2x8x8xf32>
    %135 = arith.mulf %133, %134 : vector<2x8x8xf32>
    %136 = vector.extract_strided_slice %106 {offsets = [0, 0, 8], sizes = [2, 8, 8], strides = [1, 1, 1]} : vector<2x8x32xf32> to vector<2x8x8xf32>
    "tpu.trace_start"() <{level = 10 : i32, message = "bqd,bkd->bqk"}> : () -> ()
    %cst_60 = arith.constant dense<0.000000e+00> : vector<2x8x8xf32>
    %137 = tpu.matmul %135, %136, %cst_60 {dimension_numbers = #tpu.dot_dimension_numbers<[2], [2], [1], [1], [0, 0, 0, 1, 1, 1], [0], [0]>} : vector<2x8x8xf32>, vector<2x8x8xf32>, vector<2x8x8xf32> -> vector<2x8x8xf32>
    "tpu.trace_stop"() : () -> ()
    %138 = vector.broadcast %84 : vector<2x1x8xf32> to vector<2x8x8xf32>
    %139 = arith.addf %137, %138 : vector<2x8x8xf32>
    %cst_61 = arith.constant dense<0xFF800000> : vector<2x8xf32>
    %140 = vector.multi_reduction <maximumf>, %139, %cst_61 [2] : vector<2x8x8xf32> to vector<2x8xf32>
    %141 = vector.shape_cast %140 : vector<2x8xf32> to vector<2x8x1xf32>
    %142 = vector.broadcast %141 : vector<2x8x1xf32> to vector<2x8x8xf32>
    %143 = arith.subf %139, %142 : vector<2x8x8xf32>
    %144 = math.exp %143 : vector<2x8x8xf32>
    %cst_62 = arith.constant dense<0.000000e+00> : vector<2x8xf32>
    %145 = vector.multi_reduction <add>, %144, %cst_62 [2] : vector<2x8x8xf32> to vector<2x8xf32>
    %146 = vector.shape_cast %145 : vector<2x8xf32> to vector<2x8x1xf32>
    %147 = tpu.reciprocal %146 {approx = true} : vector<2x8x1xf32> -> vector<2x8x1xf32>
    %148 = vector.broadcast %147 : vector<2x8x1xf32> to vector<2x8x8xf32>
    %149 = arith.mulf %144, %148 : vector<2x8x8xf32>
    %150 = vector.extract_strided_slice %108 {offsets = [0, 0, 8], sizes = [2, 8, 8], strides = [1, 1, 1]} : vector<2x8x32xf32> to vector<2x8x8xf32>
    "tpu.trace_start"() <{level = 10 : i32, message = "bqk,bkd->bqd"}> : () -> ()
    %cst_63 = arith.constant dense<0.000000e+00> : vector<2x8x8xf32>
    %151 = tpu.matmul %149, %150, %cst_63 {dimension_numbers = #tpu.dot_dimension_numbers<[2], [1], [1], [2], [0, 0, 0, 1, 1, 2], [0], [0]>} : vector<2x8x8xf32>, vector<2x8x8xf32>, vector<2x8x8xf32> -> vector<2x8x8xf32>
    "tpu.trace_stop"() : () -> ()
    %152 = vector.shape_cast %151 : vector<2x8x8xf32> to vector<16x8xf32>
    %153 = vector.extract_strided_slice %97 {offsets = [8, 0], sizes = [8, 32], strides = [1, 1]} : vector<32x32xf32> to vector<8x32xf32>
    %cst_64 = arith.constant dense<0.000000e+00> : vector<16x32xf32>
    %154 = tpu.matmul %152, %153, %cst_64 {dimension_numbers = #tpu.dot_dimension_numbers<[1], [0], [0], [1], [0, 0, 1, 1], [], []>} : vector<16x8xf32>, vector<8x32xf32>, vector<16x32xf32> -> vector<16x32xf32>
    %155 = arith.addf %132, %154 : vector<16x32xf32>
    %156 = vector.extract_strided_slice %104 {offsets = [0, 0, 16], sizes = [2, 8, 8], strides = [1, 1, 1]} : vector<2x8x32xf32> to vector<2x8x8xf32>
    %cst_65 = arith.constant 0.353553385 : f32
    %157 = vector.broadcast %cst_65 : f32 to vector<2x8x8xf32>
    %158 = arith.mulf %156, %157 : vector<2x8x8xf32>
    %159 = vector.extract_strided_slice %106 {offsets = [0, 0, 16], sizes = [2, 8, 8], strides = [1, 1, 1]} : vector<2x8x32xf32> to vector<2x8x8xf32>
    "tpu.trace_start"() <{level = 10 : i32, message = "bqd,bkd->bqk"}> : () -> ()
    %cst_66 = arith.constant dense<0.000000e+00> : vector<2x8x8xf32>
    %160 = tpu.matmul %158, %159, %cst_66 {dimension_numbers = #tpu.dot_dimension_numbers<[2], [2], [1], [1], [0, 0, 0, 1, 1, 1], [0], [0]>} : vector<2x8x8xf32>, vector<2x8x8xf32>, vector<2x8x8xf32> -> vector<2x8x8xf32>
    "tpu.trace_stop"() : () -> ()
    %161 = vector.broadcast %84 : vector<2x1x8xf32> to vector<2x8x8xf32>
    %162 = arith.addf %160, %161 : vector<2x8x8xf32>
    %cst_67 = arith.constant dense<0xFF800000> : vector<2x8xf32>
    %163 = vector.multi_reduction <maximumf>, %162, %cst_67 [2] : vector<2x8x8xf32> to vector<2x8xf32>
    %164 = vector.shape_cast %163 : vector<2x8xf32> to vector<2x8x1xf32>
    %165 = vector.broadcast %164 : vector<2x8x1xf32> to vector<2x8x8xf32>
    %166 = arith.subf %162, %165 : vector<2x8x8xf32>
    %167 = math.exp %166 : vector<2x8x8xf32>
    %cst_68 = arith.constant dense<0.000000e+00> : vector<2x8xf32>
    %168 = vector.multi_reduction <add>, %167, %cst_68 [2] : vector<2x8x8xf32> to vector<2x8xf32>
    %169 = vector.shape_cast %168 : vector<2x8xf32> to vector<2x8x1xf32>
    %170 = tpu.reciprocal %169 {approx = true} : vector<2x8x1xf32> -> vector<2x8x1xf32>
    %171 = vector.broadcast %170 : vector<2x8x1xf32> to vector<2x8x8xf32>
    %172 = arith.mulf %167, %171 : vector<2x8x8xf32>
    %173 = vector.extract_strided_slice %108 {offsets = [0, 0, 16], sizes = [2, 8, 8], strides = [1, 1, 1]} : vector<2x8x32xf32> to vector<2x8x8xf32>
    "tpu.trace_start"() <{level = 10 : i32, message = "bqk,bkd->bqd"}> : () -> ()
    %cst_69 = arith.constant dense<0.000000e+00> : vector<2x8x8xf32>
    %174 = tpu.matmul %172, %173, %cst_69 {dimension_numbers = #tpu.dot_dimension_numbers<[2], [1], [1], [2], [0, 0, 0, 1, 1, 2], [0], [0]>} : vector<2x8x8xf32>, vector<2x8x8xf32>, vector<2x8x8xf32> -> vector<2x8x8xf32>
    "tpu.trace_stop"() : () -> ()
    %175 = vector.shape_cast %174 : vector<2x8x8xf32> to vector<16x8xf32>
    %176 = vector.extract_strided_slice %97 {offsets = [16, 0], sizes = [8, 32], strides = [1, 1]} : vector<32x32xf32> to vector<8x32xf32>
    %cst_70 = arith.constant dense<0.000000e+00> : vector<16x32xf32>
    %177 = tpu.matmul %175, %176, %cst_70 {dimension_numbers = #tpu.dot_dimension_numbers<[1], [0], [0], [1], [0, 0, 1, 1], [], []>} : vector<16x8xf32>, vector<8x32xf32>, vector<16x32xf32> -> vector<16x32xf32>
    %178 = arith.addf %155, %177 : vector<16x32xf32>
    %179 = vector.extract_strided_slice %104 {offsets = [0, 0, 24], sizes = [2, 8, 8], strides = [1, 1, 1]} : vector<2x8x32xf32> to vector<2x8x8xf32>
    %cst_71 = arith.constant 0.353553385 : f32
    %180 = vector.broadcast %cst_71 : f32 to vector<2x8x8xf32>
    %181 = arith.mulf %179, %180 : vector<2x8x8xf32>
    %182 = vector.extract_strided_slice %106 {offsets = [0, 0, 24], sizes = [2, 8, 8], strides = [1, 1, 1]} : vector<2x8x32xf32> to vector<2x8x8xf32>
    "tpu.trace_start"() <{level = 10 : i32, message = "bqd,bkd->bqk"}> : () -> ()
    %cst_72 = arith.constant dense<0.000000e+00> : vector<2x8x8xf32>
    %183 = tpu.matmul %181, %182, %cst_72 {dimension_numbers = #tpu.dot_dimension_numbers<[2], [2], [1], [1], [0, 0, 0, 1, 1, 1], [0], [0]>} : vector<2x8x8xf32>, vector<2x8x8xf32>, vector<2x8x8xf32> -> vector<2x8x8xf32>
    "tpu.trace_stop"() : () -> ()
    %184 = vector.broadcast %84 : vector<2x1x8xf32> to vector<2x8x8xf32>
    %185 = arith.addf %183, %184 : vector<2x8x8xf32>
    %cst_73 = arith.constant dense<0xFF800000> : vector<2x8xf32>
    %186 = vector.multi_reduction <maximumf>, %185, %cst_73 [2] : vector<2x8x8xf32> to vector<2x8xf32>
    %187 = vector.shape_cast %186 : vector<2x8xf32> to vector<2x8x1xf32>
    %188 = vector.broadcast %187 : vector<2x8x1xf32> to vector<2x8x8xf32>
    %189 = arith.subf %185, %188 : vector<2x8x8xf32>
    %190 = math.exp %189 : vector<2x8x8xf32>
    %cst_74 = arith.constant dense<0.000000e+00> : vector<2x8xf32>
    %191 = vector.multi_reduction <add>, %190, %cst_74 [2] : vector<2x8x8xf32> to vector<2x8xf32>
    %192 = vector.shape_cast %191 : vector<2x8xf32> to vector<2x8x1xf32>
    %193 = tpu.reciprocal %192 {approx = true} : vector<2x8x1xf32> -> vector<2x8x1xf32>
    %194 = vector.broadcast %193 : vector<2x8x1xf32> to vector<2x8x8xf32>
    %195 = arith.mulf %190, %194 : vector<2x8x8xf32>
    %196 = vector.extract_strided_slice %108 {offsets = [0, 0, 24], sizes = [2, 8, 8], strides = [1, 1, 1]} : vector<2x8x32xf32> to vector<2x8x8xf32>
    "tpu.trace_start"() <{level = 10 : i32, message = "bqk,bkd->bqd"}> : () -> ()
    %cst_75 = arith.constant dense<0.000000e+00> : vector<2x8x8xf32>
    %197 = tpu.matmul %195, %196, %cst_75 {dimension_numbers = #tpu.dot_dimension_numbers<[2], [1], [1], [2], [0, 0, 0, 1, 1, 2], [0], [0]>} : vector<2x8x8xf32>, vector<2x8x8xf32>, vector<2x8x8xf32> -> vector<2x8x8xf32>
    "tpu.trace_stop"() : () -> ()
    %198 = vector.shape_cast %197 : vector<2x8x8xf32> to vector<16x8xf32>
    %199 = vector.extract_strided_slice %97 {offsets = [24, 0], sizes = [8, 32], strides = [1, 1]} : vector<32x32xf32> to vector<8x32xf32>
    %cst_76 = arith.constant dense<0.000000e+00> : vector<16x32xf32>
    %200 = tpu.matmul %198, %199, %cst_76 {dimension_numbers = #tpu.dot_dimension_numbers<[1], [0], [0], [1], [0, 0, 1, 1], [], []>} : vector<16x8xf32>, vector<8x32xf32>, vector<16x32xf32> -> vector<16x32xf32>
    %201 = arith.addf %178, %200 : vector<16x32xf32>
    %202 = vector.broadcast %98 : vector<1x32xf32> to vector<16x32xf32>
    %203 = arith.addf %201, %202 : vector<16x32xf32>
    %204 = vector.shape_cast %203 : vector<16x32xf32> to vector<2x8x32xf32>
    %205 = arith.addf %52, %204 : vector<2x8x32xf32>
    %c0_77 = arith.constant 0 : index
    %c0_78 = arith.constant 0 : index
    %206 = vector.load %arg65[%c0_77, %c0_78] : memref<1x32xf32, #tpu.memory_space<vmem>>, vector<1x32xf32>
    %c0_79 = arith.constant 0 : index
    %c0_80 = arith.constant 0 : index
    %207 = vector.load %arg64[%c0_79, %c0_80] : memref<1x32xf32, #tpu.memory_space<vmem>>, vector<1x32xf32>
    %cst_81 = arith.constant dense<0.000000e+00> : vector<2x8xf32>
    %208 = vector.multi_reduction <add>, %205, %cst_81 [2] : vector<2x8x32xf32> to vector<2x8xf32>
    %209 = vector.shape_cast %208 : vector<2x8xf32> to vector<2x8x1xf32>
    %cst_82 = arith.constant 3.200000e+01 : f32
    %210 = vector.broadcast %cst_82 : f32 to vector<2x8x1xf32>
    %211 = arith.divf %209, %210 : vector<2x8x1xf32>
    %212 = vector.broadcast %211 : vector<2x8x1xf32> to vector<2x8x32xf32>
    %213 = arith.subf %205, %212 : vector<2x8x32xf32>
    %214 = arith.mulf %213, %213 : vector<2x8x32xf32>
    %cst_83 = arith.constant dense<0.000000e+00> : vector<2x8xf32>
    %215 = vector.multi_reduction <add>, %214, %cst_83 [2] : vector<2x8x32xf32> to vector<2x8xf32>
    %216 = vector.shape_cast %215 : vector<2x8xf32> to vector<2x8x1xf32>
    %cst_84 = arith.constant 3.200000e+01 : f32
    %217 = vector.broadcast %cst_84 : f32 to vector<2x8x1xf32>
    %218 = arith.divf %216, %217 : vector<2x8x1xf32>
    %219 = vector.broadcast %211 : vector<2x8x1xf32> to vector<2x8x32xf32>
    %220 = arith.subf %205, %219 : vector<2x8x32xf32>
    %cst_85 = arith.constant 9.99999974E-6 : f32
    %221 = vector.broadcast %cst_85 : f32 to vector<2x8x1xf32>
    %222 = arith.addf %218, %221 : vector<2x8x1xf32>
    %223 = math.rsqrt %222 : vector<2x8x1xf32>
    %224 = vector.broadcast %223 : vector<2x8x1xf32> to vector<2x8x32xf32>
    %225 = arith.mulf %220, %224 : vector<2x8x32xf32>
    %226 = vector.shape_cast %206 : vector<1x32xf32> to vector<1x1x32xf32>
    %227 = vector.broadcast %226 : vector<1x1x32xf32> to vector<2x8x32xf32>
    %228 = arith.mulf %225, %227 : vector<2x8x32xf32>
    %229 = vector.shape_cast %207 : vector<1x32xf32> to vector<1x1x32xf32>
    %230 = vector.broadcast %229 : vector<1x1x32xf32> to vector<2x8x32xf32>
    %231 = arith.addf %228, %230 : vector<2x8x32xf32>
    %c0_86 = arith.constant 0 : index
    %c0_87 = arith.constant 0 : index
    %232 = vector.load %arg70[%c0_86, %c0_87] : memref<32x64xf32, #tpu.memory_space<vmem>>, vector<32x64xf32>
    %c0_88 = arith.constant 0 : index
    %c0_89 = arith.constant 0 : index
    %233 = vector.load %arg68[%c0_88, %c0_89] : memref<1x64xf32, #tpu.memory_space<vmem>>, vector<1x64xf32>
    %234 = vector.shape_cast %231 : vector<2x8x32xf32> to vector<16x32xf32>
    %cst_90 = arith.constant dense<0.000000e+00> : vector<16x64xf32>
    %235 = tpu.matmul %234, %232, %cst_90 {dimension_numbers = #tpu.dot_dimension_numbers<[1], [0], [0], [1], [0, 0, 1, 1], [], []>} : vector<16x32xf32>, vector<32x64xf32>, vector<16x64xf32> -> vector<16x64xf32>
    %236 = vector.broadcast %233 : vector<1x64xf32> to vector<16x64xf32>
    %237 = arith.addf %235, %236 : vector<16x64xf32>
    %238 = arith.mulf %237, %237 : vector<16x64xf32>
    %239 = arith.mulf %237, %238 : vector<16x64xf32>
    %cst_91 = arith.constant 4.471500e-02 : f32
    %240 = vector.broadcast %cst_91 : f32 to vector<16x64xf32>
    %241 = arith.mulf %240, %239 : vector<16x64xf32>
    %242 = arith.addf %237, %241 : vector<16x64xf32>
    %cst_92 = arith.constant 0.797884583 : f32
    %243 = vector.broadcast %cst_92 : f32 to vector<16x64xf32>
    %244 = arith.mulf %243, %242 : vector<16x64xf32>
    %245 = math.tanh %244 : vector<16x64xf32>
    %cst_93 = arith.constant 1.000000e+00 : f32
    %246 = vector.broadcast %cst_93 : f32 to vector<16x64xf32>
    %247 = arith.addf %246, %245 : vector<16x64xf32>
    %cst_94 = arith.constant 5.000000e-01 : f32
    %248 = vector.broadcast %cst_94 : f32 to vector<16x64xf32>
    %249 = arith.mulf %248, %247 : vector<16x64xf32>
    %250 = arith.mulf %237, %249 : vector<16x64xf32>
    %251 = vector.shape_cast %250 : vector<16x64xf32> to vector<2x8x64xf32>
    %c0_95 = arith.constant 0 : index
    %c0_96 = arith.constant 0 : index
    %252 = vector.load %arg71[%c0_95, %c0_96] : memref<64x32xf32, #tpu.memory_space<vmem>>, vector<64x32xf32>
    %c0_97 = arith.constant 0 : index
    %c0_98 = arith.constant 0 : index
    %253 = vector.load %arg69[%c0_97, %c0_98] : memref<1x32xf32, #tpu.memory_space<vmem>>, vector<1x32xf32>
    %254 = vector.shape_cast %251 : vector<2x8x64xf32> to vector<16x64xf32>
    %cst_99 = arith.constant dense<0.000000e+00> : vector<16x32xf32>
    %255 = tpu.matmul %254, %252, %cst_99 {dimension_numbers = #tpu.dot_dimension_numbers<[1], [0], [0], [1], [0, 0, 1, 1], [], []>} : vector<16x64xf32>, vector<64x32xf32>, vector<16x32xf32> -> vector<16x32xf32>
    %256 = vector.broadcast %253 : vector<1x32xf32> to vector<16x32xf32>
    %257 = arith.addf %255, %256 : vector<16x32xf32>
    %258 = vector.shape_cast %257 : vector<16x32xf32> to vector<2x8x32xf32>
    %259 = arith.addf %231, %258 : vector<2x8x32xf32>
    %c0_100 = arith.constant 0 : index
    %c0_101 = arith.constant 0 : index
    %260 = vector.load %arg67[%c0_100, %c0_101] : memref<1x32xf32, #tpu.memory_space<vmem>>, vector<1x32xf32>
    %c0_102 = arith.constant 0 : index
    %c0_103 = arith.constant 0 : index
    %261 = vector.load %arg66[%c0_102, %c0_103] : memref<1x32xf32, #tpu.memory_space<vmem>>, vector<1x32xf32>
    %cst_104 = arith.constant dense<0.000000e+00> : vector<2x8xf32>
    %262 = vector.multi_reduction <add>, %259, %cst_104 [2] : vector<2x8x32xf32> to vector<2x8xf32>
    %263 = vector.shape_cast %262 : vector<2x8xf32> to vector<2x8x1xf32>
    %cst_105 = arith.constant 3.200000e+01 : f32
    %264 = vector.broadcast %cst_105 : f32 to vector<2x8x1xf32>
    %265 = arith.divf %263, %264 : vector<2x8x1xf32>
    %266 = vector.broadcast %265 : vector<2x8x1xf32> to vector<2x8x32xf32>
    %267 = arith.subf %259, %266 : vector<2x8x32xf32>
    %268 = arith.mulf %267, %267 : vector<2x8x32xf32>
    %cst_106 = arith.constant dense<0.000000e+00> : vector<2x8xf32>
    %269 = vector.multi_reduction <add>, %268, %cst_106 [2] : vector<2x8x32xf32> to vector<2x8xf32>
    %270 = vector.shape_cast %269 : vector<2x8xf32> to vector<2x8x1xf32>
    %cst_107 = arith.constant 3.200000e+01 : f32
    %271 = vector.broadcast %cst_107 : f32 to vector<2x8x1xf32>
    %272 = arith.divf %270, %271 : vector<2x8x1xf32>
    %273 = vector.broadcast %265 : vector<2x8x1xf32> to vector<2x8x32xf32>
    %274 = arith.subf %259, %273 : vector<2x8x32xf32>
    %cst_108 = arith.constant 9.99999974E-6 : f32
    %275 = vector.broadcast %cst_108 : f32 to vector<2x8x1xf32>
    %276 = arith.addf %272, %275 : vector<2x8x1xf32>
    %277 = math.rsqrt %276 : vector<2x8x1xf32>
    %278 = vector.broadcast %277 : vector<2x8x1xf32> to vector<2x8x32xf32>
    %279 = arith.mulf %274, %278 : vector<2x8x32xf32>
    %280 = vector.shape_cast %260 : vector<1x32xf32> to vector<1x1x32xf32>
    %281 = vector.broadcast %280 : vector<1x1x32xf32> to vector<2x8x32xf32>
    %282 = arith.mulf %279, %281 : vector<2x8x32xf32>
    %283 = vector.shape_cast %261 : vector<1x32xf32> to vector<1x1x32xf32>
    %284 = vector.broadcast %283 : vector<1x1x32xf32> to vector<2x8x32xf32>
    %285 = arith.addf %282, %284 : vector<2x8x32xf32>
    %c0_109 = arith.constant 0 : index
    %c0_110 = arith.constant 0 : index
    %286 = vector.load %arg75[%c0_109, %c0_110] : memref<32x96xf32, #tpu.memory_space<vmem>>, vector<32x96xf32>
    %c0_111 = arith.constant 0 : index
    %c0_112 = arith.constant 0 : index
    %287 = vector.load %arg73[%c0_111, %c0_112] : memref<1x96xf32, #tpu.memory_space<vmem>>, vector<1x96xf32>
    %c0_113 = arith.constant 0 : index
    %c0_114 = arith.constant 0 : index
    %288 = vector.load %arg74[%c0_113, %c0_114] : memref<32x32xf32, #tpu.memory_space<vmem>>, vector<32x32xf32>
    %c0_115 = arith.constant 0 : index
    %c0_116 = arith.constant 0 : index
    %289 = vector.load %arg72[%c0_115, %c0_116] : memref<1x32xf32, #tpu.memory_space<vmem>>, vector<1x32xf32>
    %290 = vector.shape_cast %285 : vector<2x8x32xf32> to vector<16x32xf32>
    %cst_117 = arith.constant dense<0.000000e+00> : vector<16x96xf32>
    %291 = tpu.matmul %290, %286, %cst_117 {dimension_numbers = #tpu.dot_dimension_numbers<[1], [0], [0], [1], [0, 0, 1, 1], [], []>} : vector<16x32xf32>, vector<32x96xf32>, vector<16x96xf32> -> vector<16x96xf32>
    %292 = vector.broadcast %287 : vector<1x96xf32> to vector<16x96xf32>
    %293 = arith.addf %291, %292 : vector<16x96xf32>
    %294 = vector.extract_strided_slice %293 {offsets = [0, 0], sizes = [16, 32], strides = [1, 1]} : vector<16x96xf32> to vector<16x32xf32>
    %295 = vector.shape_cast %294 : vector<16x32xf32> to vector<2x8x32xf32>
    %296 = vector.extract_strided_slice %293 {offsets = [0, 32], sizes = [16, 32], strides = [1, 1]} : vector<16x96xf32> to vector<16x32xf32>
    %297 = vector.shape_cast %296 : vector<16x32xf32> to vector<2x8x32xf32>
    %298 = vector.extract_strided_slice %293 {offsets = [0, 64], sizes = [16, 32], strides = [1, 1]} : vector<16x96xf32> to vector<16x32xf32>
    %299 = vector.shape_cast %298 : vector<16x32xf32> to vector<2x8x32xf32>
    %cst_118 = arith.constant 0.000000e+00 : f32
    %300 = vector.broadcast %cst_118 : f32 to vector<16x32xf32>
    %301 = vector.extract_strided_slice %295 {offsets = [0, 0, 0], sizes = [2, 8, 8], strides = [1, 1, 1]} : vector<2x8x32xf32> to vector<2x8x8xf32>
    %cst_119 = arith.constant 0.353553385 : f32
    %302 = vector.broadcast %cst_119 : f32 to vector<2x8x8xf32>
    %303 = arith.mulf %301, %302 : vector<2x8x8xf32>
    %304 = vector.extract_strided_slice %297 {offsets = [0, 0, 0], sizes = [2, 8, 8], strides = [1, 1, 1]} : vector<2x8x32xf32> to vector<2x8x8xf32>
    "tpu.trace_start"() <{level = 10 : i32, message = "bqd,bkd->bqk"}> : () -> ()
    %cst_120 = arith.constant dense<0.000000e+00> : vector<2x8x8xf32>
    %305 = tpu.matmul %303, %304, %cst_120 {dimension_numbers = #tpu.dot_dimension_numbers<[2], [2], [1], [1], [0, 0, 0, 1, 1, 1], [0], [0]>} : vector<2x8x8xf32>, vector<2x8x8xf32>, vector<2x8x8xf32> -> vector<2x8x8xf32>
    "tpu.trace_stop"() : () -> ()
    %306 = vector.broadcast %84 : vector<2x1x8xf32> to vector<2x8x8xf32>
    %307 = arith.addf %305, %306 : vector<2x8x8xf32>
    %cst_121 = arith.constant dense<0xFF800000> : vector<2x8xf32>
    %308 = vector.multi_reduction <maximumf>, %307, %cst_121 [2] : vector<2x8x8xf32> to vector<2x8xf32>
    %309 = vector.shape_cast %308 : vector<2x8xf32> to vector<2x8x1xf32>
    %310 = vector.broadcast %309 : vector<2x8x1xf32> to vector<2x8x8xf32>
    %311 = arith.subf %307, %310 : vector<2x8x8xf32>
    %312 = math.exp %311 : vector<2x8x8xf32>
    %cst_122 = arith.constant dense<0.000000e+00> : vector<2x8xf32>
    %313 = vector.multi_reduction <add>, %312, %cst_122 [2] : vector<2x8x8xf32> to vector<2x8xf32>
    %314 = vector.shape_cast %313 : vector<2x8xf32> to vector<2x8x1xf32>
    %315 = tpu.reciprocal %314 {approx = true} : vector<2x8x1xf32> -> vector<2x8x1xf32>
    %316 = vector.broadcast %315 : vector<2x8x1xf32> to vector<2x8x8xf32>
    %317 = arith.mulf %312, %316 : vector<2x8x8xf32>
    %318 = vector.extract_strided_slice %299 {offsets = [0, 0, 0], sizes = [2, 8, 8], strides = [1, 1, 1]} : vector<2x8x32xf32> to vector<2x8x8xf32>
    "tpu.trace_start"() <{level = 10 : i32, message = "bqk,bkd->bqd"}> : () -> ()
    %cst_123 = arith.constant dense<0.000000e+00> : vector<2x8x8xf32>
    %319 = tpu.matmul %317, %318, %cst_123 {dimension_numbers = #tpu.dot_dimension_numbers<[2], [1], [1], [2], [0, 0, 0, 1, 1, 2], [0], [0]>} : vector<2x8x8xf32>, vector<2x8x8xf32>, vector<2x8x8xf32> -> vector<2x8x8xf32>
    "tpu.trace_stop"() : () -> ()
    %320 = vector.shape_cast %319 : vector<2x8x8xf32> to vector<16x8xf32>
    %321 = vector.extract_strided_slice %288 {offsets = [0, 0], sizes = [8, 32], strides = [1, 1]} : vector<32x32xf32> to vector<8x32xf32>
    %cst_124 = arith.constant dense<0.000000e+00> : vector<16x32xf32>
    %322 = tpu.matmul %320, %321, %cst_124 {dimension_numbers = #tpu.dot_dimension_numbers<[1], [0], [0], [1], [0, 0, 1, 1], [], []>} : vector<16x8xf32>, vector<8x32xf32>, vector<16x32xf32> -> vector<16x32xf32>
    %323 = arith.addf %300, %322 : vector<16x32xf32>
    %324 = vector.extract_strided_slice %295 {offsets = [0, 0, 8], sizes = [2, 8, 8], strides = [1, 1, 1]} : vector<2x8x32xf32> to vector<2x8x8xf32>
    %cst_125 = arith.constant 0.353553385 : f32
    %325 = vector.broadcast %cst_125 : f32 to vector<2x8x8xf32>
    %326 = arith.mulf %324, %325 : vector<2x8x8xf32>
    %327 = vector.extract_strided_slice %297 {offsets = [0, 0, 8], sizes = [2, 8, 8], strides = [1, 1, 1]} : vector<2x8x32xf32> to vector<2x8x8xf32>
    "tpu.trace_start"() <{level = 10 : i32, message = "bqd,bkd->bqk"}> : () -> ()
    %cst_126 = arith.constant dense<0.000000e+00> : vector<2x8x8xf32>
    %328 = tpu.matmul %326, %327, %cst_126 {dimension_numbers = #tpu.dot_dimension_numbers<[2], [2], [1], [1], [0, 0, 0, 1, 1, 1], [0], [0]>} : vector<2x8x8xf32>, vector<2x8x8xf32>, vector<2x8x8xf32> -> vector<2x8x8xf32>
    "tpu.trace_stop"() : () -> ()
    %329 = vector.broadcast %84 : vector<2x1x8xf32> to vector<2x8x8xf32>
    %330 = arith.addf %328, %329 : vector<2x8x8xf32>
    %cst_127 = arith.constant dense<0xFF800000> : vector<2x8xf32>
    %331 = vector.multi_reduction <maximumf>, %330, %cst_127 [2] : vector<2x8x8xf32> to vector<2x8xf32>
    %332 = vector.shape_cast %331 : vector<2x8xf32> to vector<2x8x1xf32>
    %333 = vector.broadcast %332 : vector<2x8x1xf32> to vector<2x8x8xf32>
    %334 = arith.subf %330, %333 : vector<2x8x8xf32>
    %335 = math.exp %334 : vector<2x8x8xf32>
    %cst_128 = arith.constant dense<0.000000e+00> : vector<2x8xf32>
    %336 = vector.multi_reduction <add>, %335, %cst_128 [2] : vector<2x8x8xf32> to vector<2x8xf32>
    %337 = vector.shape_cast %336 : vector<2x8xf32> to vector<2x8x1xf32>
    %338 = tpu.reciprocal %337 {approx = true} : vector<2x8x1xf32> -> vector<2x8x1xf32>
    %339 = vector.broadcast %338 : vector<2x8x1xf32> to vector<2x8x8xf32>
    %340 = arith.mulf %335, %339 : vector<2x8x8xf32>
    %341 = vector.extract_strided_slice %299 {offsets = [0, 0, 8], sizes = [2, 8, 8], strides = [1, 1, 1]} : vector<2x8x32xf32> to vector<2x8x8xf32>
    "tpu.trace_start"() <{level = 10 : i32, message = "bqk,bkd->bqd"}> : () -> ()
    %cst_129 = arith.constant dense<0.000000e+00> : vector<2x8x8xf32>
    %342 = tpu.matmul %340, %341, %cst_129 {dimension_numbers = #tpu.dot_dimension_numbers<[2], [1], [1], [2], [0, 0, 0, 1, 1, 2], [0], [0]>} : vector<2x8x8xf32>, vector<2x8x8xf32>, vector<2x8x8xf32> -> vector<2x8x8xf32>
    "tpu.trace_stop"() : () -> ()
    %343 = vector.shape_cast %342 : vector<2x8x8xf32> to vector<16x8xf32>
    %344 = vector.extract_strided_slice %288 {offsets = [8, 0], sizes = [8, 32], strides = [1, 1]} : vector<32x32xf32> to vector<8x32xf32>
    %cst_130 = arith.constant dense<0.000000e+00> : vector<16x32xf32>
    %345 = tpu.matmul %343, %344, %cst_130 {dimension_numbers = #tpu.dot_dimension_numbers<[1], [0], [0], [1], [0, 0, 1, 1], [], []>} : vector<16x8xf32>, vector<8x32xf32>, vector<16x32xf32> -> vector<16x32xf32>
    %346 = arith.addf %323, %345 : vector<16x32xf32>
    %347 = vector.extract_strided_slice %295 {offsets = [0, 0, 16], sizes = [2, 8, 8], strides = [1, 1, 1]} : vector<2x8x32xf32> to vector<2x8x8xf32>
    %cst_131 = arith.constant 0.353553385 : f32
    %348 = vector.broadcast %cst_131 : f32 to vector<2x8x8xf32>
    %349 = arith.mulf %347, %348 : vector<2x8x8xf32>
    %350 = vector.extract_strided_slice %297 {offsets = [0, 0, 16], sizes = [2, 8, 8], strides = [1, 1, 1]} : vector<2x8x32xf32> to vector<2x8x8xf32>
    "tpu.trace_start"() <{level = 10 : i32, message = "bqd,bkd->bqk"}> : () -> ()
    %cst_132 = arith.constant dense<0.000000e+00> : vector<2x8x8xf32>
    %351 = tpu.matmul %349, %350, %cst_132 {dimension_numbers = #tpu.dot_dimension_numbers<[2], [2], [1], [1], [0, 0, 0, 1, 1, 1], [0], [0]>} : vector<2x8x8xf32>, vector<2x8x8xf32>, vector<2x8x8xf32> -> vector<2x8x8xf32>
    "tpu.trace_stop"() : () -> ()
    %352 = vector.broadcast %84 : vector<2x1x8xf32> to vector<2x8x8xf32>
    %353 = arith.addf %351, %352 : vector<2x8x8xf32>
    %cst_133 = arith.constant dense<0xFF800000> : vector<2x8xf32>
    %354 = vector.multi_reduction <maximumf>, %353, %cst_133 [2] : vector<2x8x8xf32> to vector<2x8xf32>
    %355 = vector.shape_cast %354 : vector<2x8xf32> to vector<2x8x1xf32>
    %356 = vector.broadcast %355 : vector<2x8x1xf32> to vector<2x8x8xf32>
    %357 = arith.subf %353, %356 : vector<2x8x8xf32>
    %358 = math.exp %357 : vector<2x8x8xf32>
    %cst_134 = arith.constant dense<0.000000e+00> : vector<2x8xf32>
    %359 = vector.multi_reduction <add>, %358, %cst_134 [2] : vector<2x8x8xf32> to vector<2x8xf32>
    %360 = vector.shape_cast %359 : vector<2x8xf32> to vector<2x8x1xf32>
    %361 = tpu.reciprocal %360 {approx = true} : vector<2x8x1xf32> -> vector<2x8x1xf32>
    %362 = vector.broadcast %361 : vector<2x8x1xf32> to vector<2x8x8xf32>
    %363 = arith.mulf %358, %362 : vector<2x8x8xf32>
    %364 = vector.extract_strided_slice %299 {offsets = [0, 0, 16], sizes = [2, 8, 8], strides = [1, 1, 1]} : vector<2x8x32xf32> to vector<2x8x8xf32>
    "tpu.trace_start"() <{level = 10 : i32, message = "bqk,bkd->bqd"}> : () -> ()
    %cst_135 = arith.constant dense<0.000000e+00> : vector<2x8x8xf32>
    %365 = tpu.matmul %363, %364, %cst_135 {dimension_numbers = #tpu.dot_dimension_numbers<[2], [1], [1], [2], [0, 0, 0, 1, 1, 2], [0], [0]>} : vector<2x8x8xf32>, vector<2x8x8xf32>, vector<2x8x8xf32> -> vector<2x8x8xf32>
    "tpu.trace_stop"() : () -> ()
    %366 = vector.shape_cast %365 : vector<2x8x8xf32> to vector<16x8xf32>
    %367 = vector.extract_strided_slice %288 {offsets = [16, 0], sizes = [8, 32], strides = [1, 1]} : vector<32x32xf32> to vector<8x32xf32>
    %cst_136 = arith.constant dense<0.000000e+00> : vector<16x32xf32>
    %368 = tpu.matmul %366, %367, %cst_136 {dimension_numbers = #tpu.dot_dimension_numbers<[1], [0], [0], [1], [0, 0, 1, 1], [], []>} : vector<16x8xf32>, vector<8x32xf32>, vector<16x32xf32> -> vector<16x32xf32>
    %369 = arith.addf %346, %368 : vector<16x32xf32>
    %370 = vector.extract_strided_slice %295 {offsets = [0, 0, 24], sizes = [2, 8, 8], strides = [1, 1, 1]} : vector<2x8x32xf32> to vector<2x8x8xf32>
    %cst_137 = arith.constant 0.353553385 : f32
    %371 = vector.broadcast %cst_137 : f32 to vector<2x8x8xf32>
    %372 = arith.mulf %370, %371 : vector<2x8x8xf32>
    %373 = vector.extract_strided_slice %297 {offsets = [0, 0, 24], sizes = [2, 8, 8], strides = [1, 1, 1]} : vector<2x8x32xf32> to vector<2x8x8xf32>
    "tpu.trace_start"() <{level = 10 : i32, message = "bqd,bkd->bqk"}> : () -> ()
    %cst_138 = arith.constant dense<0.000000e+00> : vector<2x8x8xf32>
    %374 = tpu.matmul %372, %373, %cst_138 {dimension_numbers = #tpu.dot_dimension_numbers<[2], [2], [1], [1], [0, 0, 0, 1, 1, 1], [0], [0]>} : vector<2x8x8xf32>, vector<2x8x8xf32>, vector<2x8x8xf32> -> vector<2x8x8xf32>
    "tpu.trace_stop"() : () -> ()
    %375 = vector.broadcast %84 : vector<2x1x8xf32> to vector<2x8x8xf32>
    %376 = arith.addf %374, %375 : vector<2x8x8xf32>
    %cst_139 = arith.constant dense<0xFF800000> : vector<2x8xf32>
    %377 = vector.multi_reduction <maximumf>, %376, %cst_139 [2] : vector<2x8x8xf32> to vector<2x8xf32>
    %378 = vector.shape_cast %377 : vector<2x8xf32> to vector<2x8x1xf32>
    %379 = vector.broadcast %378 : vector<2x8x1xf32> to vector<2x8x8xf32>
    %380 = arith.subf %376, %379 : vector<2x8x8xf32>
    %381 = math.exp %380 : vector<2x8x8xf32>
    %cst_140 = arith.constant dense<0.000000e+00> : vector<2x8xf32>
    %382 = vector.multi_reduction <add>, %381, %cst_140 [2] : vector<2x8x8xf32> to vector<2x8xf32>
    %383 = vector.shape_cast %382 : vector<2x8xf32> to vector<2x8x1xf32>
    %384 = tpu.reciprocal %383 {approx = true} : vector<2x8x1xf32> -> vector<2x8x1xf32>
    %385 = vector.broadcast %384 : vector<2x8x1xf32> to vector<2x8x8xf32>
    %386 = arith.mulf %381, %385 : vector<2x8x8xf32>
    %387 = vector.extract_strided_slice %299 {offsets = [0, 0, 24], sizes = [2, 8, 8], strides = [1, 1, 1]} : vector<2x8x32xf32> to vector<2x8x8xf32>
    "tpu.trace_start"() <{level = 10 : i32, message = "bqk,bkd->bqd"}> : () -> ()
    %cst_141 = arith.constant dense<0.000000e+00> : vector<2x8x8xf32>
    %388 = tpu.matmul %386, %387, %cst_141 {dimension_numbers = #tpu.dot_dimension_numbers<[2], [1], [1], [2], [0, 0, 0, 1, 1, 2], [0], [0]>} : vector<2x8x8xf32>, vector<2x8x8xf32>, vector<2x8x8xf32> -> vector<2x8x8xf32>
    "tpu.trace_stop"() : () -> ()
    %389 = vector.shape_cast %388 : vector<2x8x8xf32> to vector<16x8xf32>
    %390 = vector.extract_strided_slice %288 {offsets = [24, 0], sizes = [8, 32], strides = [1, 1]} : vector<32x32xf32> to vector<8x32xf32>
    %cst_142 = arith.constant dense<0.000000e+00> : vector<16x32xf32>
    %391 = tpu.matmul %389, %390, %cst_142 {dimension_numbers = #tpu.dot_dimension_numbers<[1], [0], [0], [1], [0, 0, 1, 1], [], []>} : vector<16x8xf32>, vector<8x32xf32>, vector<16x32xf32> -> vector<16x32xf32>
    %392 = arith.addf %369, %391 : vector<16x32xf32>
    %393 = vector.broadcast %289 : vector<1x32xf32> to vector<16x32xf32>
    %394 = arith.addf %392, %393 : vector<16x32xf32>
    %395 = vector.shape_cast %394 : vector<16x32xf32> to vector<2x8x32xf32>
    %396 = arith.addf %285, %395 : vector<2x8x32xf32>
    %c0_143 = arith.constant 0 : index
    %c0_144 = arith.constant 0 : index
    %397 = vector.load %arg77[%c0_143, %c0_144] : memref<1x32xf32, #tpu.memory_space<vmem>>, vector<1x32xf32>
    %c0_145 = arith.constant 0 : index
    %c0_146 = arith.constant 0 : index
    %398 = vector.load %arg76[%c0_145, %c0_146] : memref<1x32xf32, #tpu.memory_space<vmem>>, vector<1x32xf32>
    %cst_147 = arith.constant dense<0.000000e+00> : vector<2x8xf32>
    %399 = vector.multi_reduction <add>, %396, %cst_147 [2] : vector<2x8x32xf32> to vector<2x8xf32>
    %400 = vector.shape_cast %399 : vector<2x8xf32> to vector<2x8x1xf32>
    %cst_148 = arith.constant 3.200000e+01 : f32
    %401 = vector.broadcast %cst_148 : f32 to vector<2x8x1xf32>
    %402 = arith.divf %400, %401 : vector<2x8x1xf32>
    %403 = vector.broadcast %402 : vector<2x8x1xf32> to vector<2x8x32xf32>
    %404 = arith.subf %396, %403 : vector<2x8x32xf32>
    %405 = arith.mulf %404, %404 : vector<2x8x32xf32>
    %cst_149 = arith.constant dense<0.000000e+00> : vector<2x8xf32>
    %406 = vector.multi_reduction <add>, %405, %cst_149 [2] : vector<2x8x32xf32> to vector<2x8xf32>
    %407 = vector.shape_cast %406 : vector<2x8xf32> to vector<2x8x1xf32>
    %cst_150 = arith.constant 3.200000e+01 : f32
    %408 = vector.broadcast %cst_150 : f32 to vector<2x8x1xf32>
    %409 = arith.divf %407, %408 : vector<2x8x1xf32>
    %410 = vector.broadcast %402 : vector<2x8x1xf32> to vector<2x8x32xf32>
    %411 = arith.subf %396, %410 : vector<2x8x32xf32>
    %cst_151 = arith.constant 9.99999974E-6 : f32
    %412 = vector.broadcast %cst_151 : f32 to vector<2x8x1xf32>
    %413 = arith.addf %409, %412 : vector<2x8x1xf32>
    %414 = math.rsqrt %413 : vector<2x8x1xf32>
    %415 = vector.broadcast %414 : vector<2x8x1xf32> to vector<2x8x32xf32>
    %416 = arith.mulf %411, %415 : vector<2x8x32xf32>
    %417 = vector.shape_cast %397 : vector<1x32xf32> to vector<1x1x32xf32>
    %418 = vector.broadcast %417 : vector<1x1x32xf32> to vector<2x8x32xf32>
    %419 = arith.mulf %416, %418 : vector<2x8x32xf32>
    %420 = vector.shape_cast %398 : vector<1x32xf32> to vector<1x1x32xf32>
    %421 = vector.broadcast %420 : vector<1x1x32xf32> to vector<2x8x32xf32>
    %422 = arith.addf %419, %421 : vector<2x8x32xf32>
    %c0_152 = arith.constant 0 : index
    %c0_153 = arith.constant 0 : index
    %423 = vector.load %arg82[%c0_152, %c0_153] : memref<32x64xf32, #tpu.memory_space<vmem>>, vector<32x64xf32>
    %c0_154 = arith.constant 0 : index
    %c0_155 = arith.constant 0 : index
    %424 = vector.load %arg80[%c0_154, %c0_155] : memref<1x64xf32, #tpu.memory_space<vmem>>, vector<1x64xf32>
    %425 = vector.shape_cast %422 : vector<2x8x32xf32> to vector<16x32xf32>
    %cst_156 = arith.constant dense<0.000000e+00> : vector<16x64xf32>
    %426 = tpu.matmul %425, %423, %cst_156 {dimension_numbers = #tpu.dot_dimension_numbers<[1], [0], [0], [1], [0, 0, 1, 1], [], []>} : vector<16x32xf32>, vector<32x64xf32>, vector<16x64xf32> -> vector<16x64xf32>
    %427 = vector.broadcast %424 : vector<1x64xf32> to vector<16x64xf32>
    %428 = arith.addf %426, %427 : vector<16x64xf32>
    %429 = arith.mulf %428, %428 : vector<16x64xf32>
    %430 = arith.mulf %428, %429 : vector<16x64xf32>
    %cst_157 = arith.constant 4.471500e-02 : f32
    %431 = vector.broadcast %cst_157 : f32 to vector<16x64xf32>
    %432 = arith.mulf %431, %430 : vector<16x64xf32>
    %433 = arith.addf %428, %432 : vector<16x64xf32>
    %cst_158 = arith.constant 0.797884583 : f32
    %434 = vector.broadcast %cst_158 : f32 to vector<16x64xf32>
    %435 = arith.mulf %434, %433 : vector<16x64xf32>
    %436 = math.tanh %435 : vector<16x64xf32>
    %cst_159 = arith.constant 1.000000e+00 : f32
    %437 = vector.broadcast %cst_159 : f32 to vector<16x64xf32>
    %438 = arith.addf %437, %436 : vector<16x64xf32>
    %cst_160 = arith.constant 5.000000e-01 : f32
    %439 = vector.broadcast %cst_160 : f32 to vector<16x64xf32>
    %440 = arith.mulf %439, %438 : vector<16x64xf32>
    %441 = arith.mulf %428, %440 : vector<16x64xf32>
    %442 = vector.shape_cast %441 : vector<16x64xf32> to vector<2x8x64xf32>
    %c0_161 = arith.constant 0 : index
    %c0_162 = arith.constant 0 : index
    %443 = vector.load %arg83[%c0_161, %c0_162] : memref<64x32xf32, #tpu.memory_space<vmem>>, vector<64x32xf32>
    %c0_163 = arith.constant 0 : index
    %c0_164 = arith.constant 0 : index
    %444 = vector.load %arg81[%c0_163, %c0_164] : memref<1x32xf32, #tpu.memory_space<vmem>>, vector<1x32xf32>
    %445 = vector.shape_cast %442 : vector<2x8x64xf32> to vector<16x64xf32>
    %cst_165 = arith.constant dense<0.000000e+00> : vector<16x32xf32>
    %446 = tpu.matmul %445, %443, %cst_165 {dimension_numbers = #tpu.dot_dimension_numbers<[1], [0], [0], [1], [0, 0, 1, 1], [], []>} : vector<16x64xf32>, vector<64x32xf32>, vector<16x32xf32> -> vector<16x32xf32>
    %447 = vector.broadcast %444 : vector<1x32xf32> to vector<16x32xf32>
    %448 = arith.addf %446, %447 : vector<16x32xf32>
    %449 = vector.shape_cast %448 : vector<16x32xf32> to vector<2x8x32xf32>
    %450 = arith.addf %422, %449 : vector<2x8x32xf32>
    %c0_166 = arith.constant 0 : index
    %c0_167 = arith.constant 0 : index
    %451 = vector.load %arg79[%c0_166, %c0_167] : memref<1x32xf32, #tpu.memory_space<vmem>>, vector<1x32xf32>
    %c0_168 = arith.constant 0 : index
    %c0_169 = arith.constant 0 : index
    %452 = vector.load %arg78[%c0_168, %c0_169] : memref<1x32xf32, #tpu.memory_space<vmem>>, vector<1x32xf32>
    %cst_170 = arith.constant dense<0.000000e+00> : vector<2x8xf32>
    %453 = vector.multi_reduction <add>, %450, %cst_170 [2] : vector<2x8x32xf32> to vector<2x8xf32>
    %454 = vector.shape_cast %453 : vector<2x8xf32> to vector<2x8x1xf32>
    %cst_171 = arith.constant 3.200000e+01 : f32
    %455 = vector.broadcast %cst_171 : f32 to vector<2x8x1xf32>
    %456 = arith.divf %454, %455 : vector<2x8x1xf32>
    %457 = vector.broadcast %456 : vector<2x8x1xf32> to vector<2x8x32xf32>
    %458 = arith.subf %450, %457 : vector<2x8x32xf32>
    %459 = arith.mulf %458, %458 : vector<2x8x32xf32>
    %cst_172 = arith.constant dense<0.000000e+00> : vector<2x8xf32>
    %460 = vector.multi_reduction <add>, %459, %cst_172 [2] : vector<2x8x32xf32> to vector<2x8xf32>
    %461 = vector.shape_cast %460 : vector<2x8xf32> to vector<2x8x1xf32>
    %cst_173 = arith.constant 3.200000e+01 : f32
    %462 = vector.broadcast %cst_173 : f32 to vector<2x8x1xf32>
    %463 = arith.divf %461, %462 : vector<2x8x1xf32>
    %464 = vector.broadcast %456 : vector<2x8x1xf32> to vector<2x8x32xf32>
    %465 = arith.subf %450, %464 : vector<2x8x32xf32>
    %cst_174 = arith.constant 9.99999974E-6 : f32
    %466 = vector.broadcast %cst_174 : f32 to vector<2x8x1xf32>
    %467 = arith.addf %463, %466 : vector<2x8x1xf32>
    %468 = math.rsqrt %467 : vector<2x8x1xf32>
    %469 = vector.broadcast %468 : vector<2x8x1xf32> to vector<2x8x32xf32>
    %470 = arith.mulf %465, %469 : vector<2x8x32xf32>
    %471 = vector.shape_cast %451 : vector<1x32xf32> to vector<1x1x32xf32>
    %472 = vector.broadcast %471 : vector<1x1x32xf32> to vector<2x8x32xf32>
    %473 = arith.mulf %470, %472 : vector<2x8x32xf32>
    %474 = vector.shape_cast %452 : vector<1x32xf32> to vector<1x1x32xf32>
    %475 = vector.broadcast %474 : vector<1x1x32xf32> to vector<2x8x32xf32>
    %476 = arith.addf %473, %475 : vector<2x8x32xf32>
    %c0_175 = arith.constant 0 : index
    %c0_176 = arith.constant 0 : index
    %477 = vector.load %arg22[%c0_175, %c0_176] : memref<32x96xf32, #tpu.memory_space<vmem>>, vector<32x96xf32>
    %c0_177 = arith.constant 0 : index
    %c0_178 = arith.constant 0 : index
    %478 = vector.load %arg20[%c0_177, %c0_178] : memref<1x96xf32, #tpu.memory_space<vmem>>, vector<1x96xf32>
    %c0_179 = arith.constant 0 : index
    %c0_180 = arith.constant 0 : index
    %479 = vector.load %arg21[%c0_179, %c0_180] : memref<32x32xf32, #tpu.memory_space<vmem>>, vector<32x32xf32>
    %c0_181 = arith.constant 0 : index
    %c0_182 = arith.constant 0 : index
    %480 = vector.load %arg19[%c0_181, %c0_182] : memref<1x32xf32, #tpu.memory_space<vmem>>, vector<1x32xf32>
    %481 = vector.shape_cast %78 : vector<2x8x32xf32> to vector<16x32xf32>
    %cst_183 = arith.constant dense<0.000000e+00> : vector<16x96xf32>
    %482 = tpu.matmul %481, %477, %cst_183 {dimension_numbers = #tpu.dot_dimension_numbers<[1], [0], [0], [1], [0, 0, 1, 1], [], []>} : vector<16x32xf32>, vector<32x96xf32>, vector<16x96xf32> -> vector<16x96xf32>
    %483 = vector.broadcast %478 : vector<1x96xf32> to vector<16x96xf32>
    %484 = arith.addf %482, %483 : vector<16x96xf32>
    %485 = vector.extract_strided_slice %484 {offsets = [0, 0], sizes = [16, 32], strides = [1, 1]} : vector<16x96xf32> to vector<16x32xf32>
    %486 = vector.shape_cast %485 : vector<16x32xf32> to vector<2x8x32xf32>
    %487 = vector.extract_strided_slice %484 {offsets = [0, 32], sizes = [16, 32], strides = [1, 1]} : vector<16x96xf32> to vector<16x32xf32>
    %488 = vector.shape_cast %487 : vector<16x32xf32> to vector<2x8x32xf32>
    %489 = vector.extract_strided_slice %484 {offsets = [0, 64], sizes = [16, 32], strides = [1, 1]} : vector<16x96xf32> to vector<16x32xf32>
    %490 = vector.shape_cast %489 : vector<16x32xf32> to vector<2x8x32xf32>
    %cst_184 = arith.constant 0.000000e+00 : f32
    %491 = vector.broadcast %cst_184 : f32 to vector<16x32xf32>
    %492 = vector.extract_strided_slice %486 {offsets = [0, 0, 0], sizes = [2, 8, 8], strides = [1, 1, 1]} : vector<2x8x32xf32> to vector<2x8x8xf32>
    %cst_185 = arith.constant 0.353553385 : f32
    %493 = vector.broadcast %cst_185 : f32 to vector<2x8x8xf32>
    %494 = arith.mulf %492, %493 : vector<2x8x8xf32>
    %495 = vector.extract_strided_slice %488 {offsets = [0, 0, 0], sizes = [2, 8, 8], strides = [1, 1, 1]} : vector<2x8x32xf32> to vector<2x8x8xf32>
    "tpu.trace_start"() <{level = 10 : i32, message = "bqd,bkd->bqk"}> : () -> ()
    %cst_186 = arith.constant dense<0.000000e+00> : vector<2x8x8xf32>
    %496 = tpu.matmul %494, %495, %cst_186 {dimension_numbers = #tpu.dot_dimension_numbers<[2], [2], [1], [1], [0, 0, 0, 1, 1, 1], [0], [0]>} : vector<2x8x8xf32>, vector<2x8x8xf32>, vector<2x8x8xf32> -> vector<2x8x8xf32>
    "tpu.trace_stop"() : () -> ()
    %497 = arith.addf %496, %94 : vector<2x8x8xf32>
    %cst_187 = arith.constant dense<0xFF800000> : vector<2x8xf32>
    %498 = vector.multi_reduction <maximumf>, %497, %cst_187 [2] : vector<2x8x8xf32> to vector<2x8xf32>
    %499 = vector.shape_cast %498 : vector<2x8xf32> to vector<2x8x1xf32>
    %500 = vector.broadcast %499 : vector<2x8x1xf32> to vector<2x8x8xf32>
    %501 = arith.subf %497, %500 : vector<2x8x8xf32>
    %502 = math.exp %501 : vector<2x8x8xf32>
    %cst_188 = arith.constant dense<0.000000e+00> : vector<2x8xf32>
    %503 = vector.multi_reduction <add>, %502, %cst_188 [2] : vector<2x8x8xf32> to vector<2x8xf32>
    %504 = vector.shape_cast %503 : vector<2x8xf32> to vector<2x8x1xf32>
    %505 = tpu.reciprocal %504 {approx = true} : vector<2x8x1xf32> -> vector<2x8x1xf32>
    %506 = vector.broadcast %505 : vector<2x8x1xf32> to vector<2x8x8xf32>
    %507 = arith.mulf %502, %506 : vector<2x8x8xf32>
    %508 = vector.extract_strided_slice %490 {offsets = [0, 0, 0], sizes = [2, 8, 8], strides = [1, 1, 1]} : vector<2x8x32xf32> to vector<2x8x8xf32>
    "tpu.trace_start"() <{level = 10 : i32, message = "bqk,bkd->bqd"}> : () -> ()
    %cst_189 = arith.constant dense<0.000000e+00> : vector<2x8x8xf32>
    %509 = tpu.matmul %507, %508, %cst_189 {dimension_numbers = #tpu.dot_dimension_numbers<[2], [1], [1], [2], [0, 0, 0, 1, 1, 2], [0], [0]>} : vector<2x8x8xf32>, vector<2x8x8xf32>, vector<2x8x8xf32> -> vector<2x8x8xf32>
    "tpu.trace_stop"() : () -> ()
    %510 = vector.shape_cast %509 : vector<2x8x8xf32> to vector<16x8xf32>
    %511 = vector.extract_strided_slice %479 {offsets = [0, 0], sizes = [8, 32], strides = [1, 1]} : vector<32x32xf32> to vector<8x32xf32>
    %cst_190 = arith.constant dense<0.000000e+00> : vector<16x32xf32>
    %512 = tpu.matmul %510, %511, %cst_190 {dimension_numbers = #tpu.dot_dimension_numbers<[1], [0], [0], [1], [0, 0, 1, 1], [], []>} : vector<16x8xf32>, vector<8x32xf32>, vector<16x32xf32> -> vector<16x32xf32>
    %513 = arith.addf %491, %512 : vector<16x32xf32>
    %514 = vector.extract_strided_slice %486 {offsets = [0, 0, 8], sizes = [2, 8, 8], strides = [1, 1, 1]} : vector<2x8x32xf32> to vector<2x8x8xf32>
    %cst_191 = arith.constant 0.353553385 : f32
    %515 = vector.broadcast %cst_191 : f32 to vector<2x8x8xf32>
    %516 = arith.mulf %514, %515 : vector<2x8x8xf32>
    %517 = vector.extract_strided_slice %488 {offsets = [0, 0, 8], sizes = [2, 8, 8], strides = [1, 1, 1]} : vector<2x8x32xf32> to vector<2x8x8xf32>
    "tpu.trace_start"() <{level = 10 : i32, message = "bqd,bkd->bqk"}> : () -> ()
    %cst_192 = arith.constant dense<0.000000e+00> : vector<2x8x8xf32>
    %518 = tpu.matmul %516, %517, %cst_192 {dimension_numbers = #tpu.dot_dimension_numbers<[2], [2], [1], [1], [0, 0, 0, 1, 1, 1], [0], [0]>} : vector<2x8x8xf32>, vector<2x8x8xf32>, vector<2x8x8xf32> -> vector<2x8x8xf32>
    "tpu.trace_stop"() : () -> ()
    %519 = arith.addf %518, %94 : vector<2x8x8xf32>
    %cst_193 = arith.constant dense<0xFF800000> : vector<2x8xf32>
    %520 = vector.multi_reduction <maximumf>, %519, %cst_193 [2] : vector<2x8x8xf32> to vector<2x8xf32>
    %521 = vector.shape_cast %520 : vector<2x8xf32> to vector<2x8x1xf32>
    %522 = vector.broadcast %521 : vector<2x8x1xf32> to vector<2x8x8xf32>
    %523 = arith.subf %519, %522 : vector<2x8x8xf32>
    %524 = math.exp %523 : vector<2x8x8xf32>
    %cst_194 = arith.constant dense<0.000000e+00> : vector<2x8xf32>
    %525 = vector.multi_reduction <add>, %524, %cst_194 [2] : vector<2x8x8xf32> to vector<2x8xf32>
    %526 = vector.shape_cast %525 : vector<2x8xf32> to vector<2x8x1xf32>
    %527 = tpu.reciprocal %526 {approx = true} : vector<2x8x1xf32> -> vector<2x8x1xf32>
    %528 = vector.broadcast %527 : vector<2x8x1xf32> to vector<2x8x8xf32>
    %529 = arith.mulf %524, %528 : vector<2x8x8xf32>
    %530 = vector.extract_strided_slice %490 {offsets = [0, 0, 8], sizes = [2, 8, 8], strides = [1, 1, 1]} : vector<2x8x32xf32> to vector<2x8x8xf32>
    "tpu.trace_start"() <{level = 10 : i32, message = "bqk,bkd->bqd"}> : () -> ()
    %cst_195 = arith.constant dense<0.000000e+00> : vector<2x8x8xf32>
    %531 = tpu.matmul %529, %530, %cst_195 {dimension_numbers = #tpu.dot_dimension_numbers<[2], [1], [1], [2], [0, 0, 0, 1, 1, 2], [0], [0]>} : vector<2x8x8xf32>, vector<2x8x8xf32>, vector<2x8x8xf32> -> vector<2x8x8xf32>
    "tpu.trace_stop"() : () -> ()
    %532 = vector.shape_cast %531 : vector<2x8x8xf32> to vector<16x8xf32>
    %533 = vector.extract_strided_slice %479 {offsets = [8, 0], sizes = [8, 32], strides = [1, 1]} : vector<32x32xf32> to vector<8x32xf32>
    %cst_196 = arith.constant dense<0.000000e+00> : vector<16x32xf32>
    %534 = tpu.matmul %532, %533, %cst_196 {dimension_numbers = #tpu.dot_dimension_numbers<[1], [0], [0], [1], [0, 0, 1, 1], [], []>} : vector<16x8xf32>, vector<8x32xf32>, vector<16x32xf32> -> vector<16x32xf32>
    %535 = arith.addf %513, %534 : vector<16x32xf32>
    %536 = vector.extract_strided_slice %486 {offsets = [0, 0, 16], sizes = [2, 8, 8], strides = [1, 1, 1]} : vector<2x8x32xf32> to vector<2x8x8xf32>
    %cst_197 = arith.constant 0.353553385 : f32
    %537 = vector.broadcast %cst_197 : f32 to vector<2x8x8xf32>
    %538 = arith.mulf %536, %537 : vector<2x8x8xf32>
    %539 = vector.extract_strided_slice %488 {offsets = [0, 0, 16], sizes = [2, 8, 8], strides = [1, 1, 1]} : vector<2x8x32xf32> to vector<2x8x8xf32>
    "tpu.trace_start"() <{level = 10 : i32, message = "bqd,bkd->bqk"}> : () -> ()
    %cst_198 = arith.constant dense<0.000000e+00> : vector<2x8x8xf32>
    %540 = tpu.matmul %538, %539, %cst_198 {dimension_numbers = #tpu.dot_dimension_numbers<[2], [2], [1], [1], [0, 0, 0, 1, 1, 1], [0], [0]>} : vector<2x8x8xf32>, vector<2x8x8xf32>, vector<2x8x8xf32> -> vector<2x8x8xf32>
    "tpu.trace_stop"() : () -> ()
    %541 = arith.addf %540, %94 : vector<2x8x8xf32>
    %cst_199 = arith.constant dense<0xFF800000> : vector<2x8xf32>
    %542 = vector.multi_reduction <maximumf>, %541, %cst_199 [2] : vector<2x8x8xf32> to vector<2x8xf32>
    %543 = vector.shape_cast %542 : vector<2x8xf32> to vector<2x8x1xf32>
    %544 = vector.broadcast %543 : vector<2x8x1xf32> to vector<2x8x8xf32>
    %545 = arith.subf %541, %544 : vector<2x8x8xf32>
    %546 = math.exp %545 : vector<2x8x8xf32>
    %cst_200 = arith.constant dense<0.000000e+00> : vector<2x8xf32>
    %547 = vector.multi_reduction <add>, %546, %cst_200 [2] : vector<2x8x8xf32> to vector<2x8xf32>
    %548 = vector.shape_cast %547 : vector<2x8xf32> to vector<2x8x1xf32>
    %549 = tpu.reciprocal %548 {approx = true} : vector<2x8x1xf32> -> vector<2x8x1xf32>
    %550 = vector.broadcast %549 : vector<2x8x1xf32> to vector<2x8x8xf32>
    %551 = arith.mulf %546, %550 : vector<2x8x8xf32>
    %552 = vector.extract_strided_slice %490 {offsets = [0, 0, 16], sizes = [2, 8, 8], strides = [1, 1, 1]} : vector<2x8x32xf32> to vector<2x8x8xf32>
    "tpu.trace_start"() <{level = 10 : i32, message = "bqk,bkd->bqd"}> : () -> ()
    %cst_201 = arith.constant dense<0.000000e+00> : vector<2x8x8xf32>
    %553 = tpu.matmul %551, %552, %cst_201 {dimension_numbers = #tpu.dot_dimension_numbers<[2], [1], [1], [2], [0, 0, 0, 1, 1, 2], [0], [0]>} : vector<2x8x8xf32>, vector<2x8x8xf32>, vector<2x8x8xf32> -> vector<2x8x8xf32>
    "tpu.trace_stop"() : () -> ()
    %554 = vector.shape_cast %553 : vector<2x8x8xf32> to vector<16x8xf32>
    %555 = vector.extract_strided_slice %479 {offsets = [16, 0], sizes = [8, 32], strides = [1, 1]} : vector<32x32xf32> to vector<8x32xf32>
    %cst_202 = arith.constant dense<0.000000e+00> : vector<16x32xf32>
    %556 = tpu.matmul %554, %555, %cst_202 {dimension_numbers = #tpu.dot_dimension_numbers<[1], [0], [0], [1], [0, 0, 1, 1], [], []>} : vector<16x8xf32>, vector<8x32xf32>, vector<16x32xf32> -> vector<16x32xf32>
    %557 = arith.addf %535, %556 : vector<16x32xf32>
    %558 = vector.extract_strided_slice %486 {offsets = [0, 0, 24], sizes = [2, 8, 8], strides = [1, 1, 1]} : vector<2x8x32xf32> to vector<2x8x8xf32>
    %cst_203 = arith.constant 0.353553385 : f32
    %559 = vector.broadcast %cst_203 : f32 to vector<2x8x8xf32>
    %560 = arith.mulf %558, %559 : vector<2x8x8xf32>
    %561 = vector.extract_strided_slice %488 {offsets = [0, 0, 24], sizes = [2, 8, 8], strides = [1, 1, 1]} : vector<2x8x32xf32> to vector<2x8x8xf32>
    "tpu.trace_start"() <{level = 10 : i32, message = "bqd,bkd->bqk"}> : () -> ()
    %cst_204 = arith.constant dense<0.000000e+00> : vector<2x8x8xf32>
    %562 = tpu.matmul %560, %561, %cst_204 {dimension_numbers = #tpu.dot_dimension_numbers<[2], [2], [1], [1], [0, 0, 0, 1, 1, 1], [0], [0]>} : vector<2x8x8xf32>, vector<2x8x8xf32>, vector<2x8x8xf32> -> vector<2x8x8xf32>
    "tpu.trace_stop"() : () -> ()
    %563 = arith.addf %562, %94 : vector<2x8x8xf32>
    %cst_205 = arith.constant dense<0xFF800000> : vector<2x8xf32>
    %564 = vector.multi_reduction <maximumf>, %563, %cst_205 [2] : vector<2x8x8xf32> to vector<2x8xf32>
    %565 = vector.shape_cast %564 : vector<2x8xf32> to vector<2x8x1xf32>
    %566 = vector.broadcast %565 : vector<2x8x1xf32> to vector<2x8x8xf32>
    %567 = arith.subf %563, %566 : vector<2x8x8xf32>
    %568 = math.exp %567 : vector<2x8x8xf32>
    %cst_206 = arith.constant dense<0.000000e+00> : vector<2x8xf32>
    %569 = vector.multi_reduction <add>, %568, %cst_206 [2] : vector<2x8x8xf32> to vector<2x8xf32>
    %570 = vector.shape_cast %569 : vector<2x8xf32> to vector<2x8x1xf32>
    %571 = tpu.reciprocal %570 {approx = true} : vector<2x8x1xf32> -> vector<2x8x1xf32>
    %572 = vector.broadcast %571 : vector<2x8x1xf32> to vector<2x8x8xf32>
    %573 = arith.mulf %568, %572 : vector<2x8x8xf32>
    %574 = vector.extract_strided_slice %490 {offsets = [0, 0, 24], sizes = [2, 8, 8], strides = [1, 1, 1]} : vector<2x8x32xf32> to vector<2x8x8xf32>
    "tpu.trace_start"() <{level = 10 : i32, message = "bqk,bkd->bqd"}> : () -> ()
    %cst_207 = arith.constant dense<0.000000e+00> : vector<2x8x8xf32>
    %575 = tpu.matmul %573, %574, %cst_207 {dimension_numbers = #tpu.dot_dimension_numbers<[2], [1], [1], [2], [0, 0, 0, 1, 1, 2], [0], [0]>} : vector<2x8x8xf32>, vector<2x8x8xf32>, vector<2x8x8xf32> -> vector<2x8x8xf32>
    "tpu.trace_stop"() : () -> ()
    %576 = vector.shape_cast %575 : vector<2x8x8xf32> to vector<16x8xf32>
    %577 = vector.extract_strided_slice %479 {offsets = [24, 0], sizes = [8, 32], strides = [1, 1]} : vector<32x32xf32> to vector<8x32xf32>
    %cst_208 = arith.constant dense<0.000000e+00> : vector<16x32xf32>
    %578 = tpu.matmul %576, %577, %cst_208 {dimension_numbers = #tpu.dot_dimension_numbers<[1], [0], [0], [1], [0, 0, 1, 1], [], []>} : vector<16x8xf32>, vector<8x32xf32>, vector<16x32xf32> -> vector<16x32xf32>
    %579 = arith.addf %557, %578 : vector<16x32xf32>
    %580 = vector.broadcast %480 : vector<1x32xf32> to vector<16x32xf32>
    %581 = arith.addf %579, %580 : vector<16x32xf32>
    %582 = vector.shape_cast %581 : vector<16x32xf32> to vector<2x8x32xf32>
    %583 = arith.addf %78, %582 : vector<2x8x32xf32>
    %c0_209 = arith.constant 0 : index
    %c0_210 = arith.constant 0 : index
    %584 = vector.load %arg24[%c0_209, %c0_210] : memref<1x32xf32, #tpu.memory_space<vmem>>, vector<1x32xf32>
    %c0_211 = arith.constant 0 : index
    %c0_212 = arith.constant 0 : index
    %585 = vector.load %arg23[%c0_211, %c0_212] : memref<1x32xf32, #tpu.memory_space<vmem>>, vector<1x32xf32>
    %cst_213 = arith.constant dense<0.000000e+00> : vector<2x8xf32>
    %586 = vector.multi_reduction <add>, %583, %cst_213 [2] : vector<2x8x32xf32> to vector<2x8xf32>
    %587 = vector.shape_cast %586 : vector<2x8xf32> to vector<2x8x1xf32>
    %cst_214 = arith.constant 3.200000e+01 : f32
    %588 = vector.broadcast %cst_214 : f32 to vector<2x8x1xf32>
    %589 = arith.divf %587, %588 : vector<2x8x1xf32>
    %590 = vector.broadcast %589 : vector<2x8x1xf32> to vector<2x8x32xf32>
    %591 = arith.subf %583, %590 : vector<2x8x32xf32>
    %592 = arith.mulf %591, %591 : vector<2x8x32xf32>
    %cst_215 = arith.constant dense<0.000000e+00> : vector<2x8xf32>
    %593 = vector.multi_reduction <add>, %592, %cst_215 [2] : vector<2x8x32xf32> to vector<2x8xf32>
    %594 = vector.shape_cast %593 : vector<2x8xf32> to vector<2x8x1xf32>
    %cst_216 = arith.constant 3.200000e+01 : f32
    %595 = vector.broadcast %cst_216 : f32 to vector<2x8x1xf32>
    %596 = arith.divf %594, %595 : vector<2x8x1xf32>
    %597 = vector.broadcast %589 : vector<2x8x1xf32> to vector<2x8x32xf32>
    %598 = arith.subf %583, %597 : vector<2x8x32xf32>
    %cst_217 = arith.constant 9.99999974E-6 : f32
    %599 = vector.broadcast %cst_217 : f32 to vector<2x8x1xf32>
    %600 = arith.addf %596, %599 : vector<2x8x1xf32>
    %601 = math.rsqrt %600 : vector<2x8x1xf32>
    %602 = vector.broadcast %601 : vector<2x8x1xf32> to vector<2x8x32xf32>
    %603 = arith.mulf %598, %602 : vector<2x8x32xf32>
    %604 = vector.shape_cast %584 : vector<1x32xf32> to vector<1x1x32xf32>
    %605 = vector.broadcast %604 : vector<1x1x32xf32> to vector<2x8x32xf32>
    %606 = arith.mulf %603, %605 : vector<2x8x32xf32>
    %607 = vector.shape_cast %585 : vector<1x32xf32> to vector<1x1x32xf32>
    %608 = vector.broadcast %607 : vector<1x1x32xf32> to vector<2x8x32xf32>
    %609 = arith.addf %606, %608 : vector<2x8x32xf32>
    %c0_218 = arith.constant 0 : index
    %c0_219 = arith.constant 0 : index
    %610 = vector.load %arg39[%c0_218, %c0_219] : memref<32x96xf32, #tpu.memory_space<vmem>>, vector<32x96xf32>
    %c0_220 = arith.constant 0 : index
    %c0_221 = arith.constant 0 : index
    %611 = vector.load %arg37[%c0_220, %c0_221] : memref<1x96xf32, #tpu.memory_space<vmem>>, vector<1x96xf32>
    %c0_222 = arith.constant 0 : index
    %c0_223 = arith.constant 0 : index
    %612 = vector.load %arg38[%c0_222, %c0_223] : memref<32x32xf32, #tpu.memory_space<vmem>>, vector<32x32xf32>
    %c0_224 = arith.constant 0 : index
    %c0_225 = arith.constant 0 : index
    %613 = vector.load %arg36[%c0_224, %c0_225] : memref<1x32xf32, #tpu.memory_space<vmem>>, vector<1x32xf32>
    %614 = vector.shape_cast %609 : vector<2x8x32xf32> to vector<16x32xf32>
    %615 = vector.extract_strided_slice %610 {offsets = [0, 0], sizes = [32, 32], strides = [1, 1]} : vector<32x96xf32> to vector<32x32xf32>
    %cst_226 = arith.constant dense<0.000000e+00> : vector<16x32xf32>
    %616 = tpu.matmul %614, %615, %cst_226 {dimension_numbers = #tpu.dot_dimension_numbers<[1], [0], [0], [1], [0, 0, 1, 1], [], []>} : vector<16x32xf32>, vector<32x32xf32>, vector<16x32xf32> -> vector<16x32xf32>
    %617 = vector.extract_strided_slice %611 {offsets = [0, 0], sizes = [1, 32], strides = [1, 1]} : vector<1x96xf32> to vector<1x32xf32>
    %618 = vector.broadcast %617 : vector<1x32xf32> to vector<16x32xf32>
    %619 = arith.addf %616, %618 : vector<16x32xf32>
    %620 = vector.shape_cast %619 : vector<16x32xf32> to vector<2x8x32xf32>
    %621 = vector.shape_cast %476 : vector<2x8x32xf32> to vector<16x32xf32>
    %622 = vector.extract_strided_slice %610 {offsets = [0, 32], sizes = [32, 64], strides = [1, 1]} : vector<32x96xf32> to vector<32x64xf32>
    %cst_227 = arith.constant dense<0.000000e+00> : vector<16x64xf32>
    %623 = tpu.matmul %621, %622, %cst_227 {dimension_numbers = #tpu.dot_dimension_numbers<[1], [0], [0], [1], [0, 0, 1, 1], [], []>} : vector<16x32xf32>, vector<32x64xf32>, vector<16x64xf32> -> vector<16x64xf32>
    %624 = vector.extract_strided_slice %611 {offsets = [0, 32], sizes = [1, 64], strides = [1, 1]} : vector<1x96xf32> to vector<1x64xf32>
    %625 = vector.broadcast %624 : vector<1x64xf32> to vector<16x64xf32>
    %626 = arith.addf %623, %625 : vector<16x64xf32>
    %627 = vector.extract_strided_slice %626 {offsets = [0, 0], sizes = [16, 32], strides = [1, 1]} : vector<16x64xf32> to vector<16x32xf32>
    %628 = vector.shape_cast %627 : vector<16x32xf32> to vector<2x8x32xf32>
    %629 = vector.extract_strided_slice %626 {offsets = [0, 32], sizes = [16, 32], strides = [1, 1]} : vector<16x64xf32> to vector<16x32xf32>
    %630 = vector.shape_cast %629 : vector<16x32xf32> to vector<2x8x32xf32>
    %cst_228 = arith.constant 0.000000e+00 : f32
    %631 = vector.broadcast %cst_228 : f32 to vector<16x32xf32>
    %632 = vector.extract_strided_slice %620 {offsets = [0, 0, 0], sizes = [2, 8, 8], strides = [1, 1, 1]} : vector<2x8x32xf32> to vector<2x8x8xf32>
    %cst_229 = arith.constant 0.353553385 : f32
    %633 = vector.broadcast %cst_229 : f32 to vector<2x8x8xf32>
    %634 = arith.mulf %632, %633 : vector<2x8x8xf32>
    %635 = vector.extract_strided_slice %628 {offsets = [0, 0, 0], sizes = [2, 8, 8], strides = [1, 1, 1]} : vector<2x8x32xf32> to vector<2x8x8xf32>
    "tpu.trace_start"() <{level = 10 : i32, message = "bqd,bkd->bqk"}> : () -> ()
    %cst_230 = arith.constant dense<0.000000e+00> : vector<2x8x8xf32>
    %636 = tpu.matmul %634, %635, %cst_230 {dimension_numbers = #tpu.dot_dimension_numbers<[2], [2], [1], [1], [0, 0, 0, 1, 1, 1], [0], [0]>} : vector<2x8x8xf32>, vector<2x8x8xf32>, vector<2x8x8xf32> -> vector<2x8x8xf32>
    "tpu.trace_stop"() : () -> ()
    %637 = vector.broadcast %84 : vector<2x1x8xf32> to vector<2x8x8xf32>
    %638 = arith.addf %636, %637 : vector<2x8x8xf32>
    %cst_231 = arith.constant dense<0xFF800000> : vector<2x8xf32>
    %639 = vector.multi_reduction <maximumf>, %638, %cst_231 [2] : vector<2x8x8xf32> to vector<2x8xf32>
    %640 = vector.shape_cast %639 : vector<2x8xf32> to vector<2x8x1xf32>
    %641 = vector.broadcast %640 : vector<2x8x1xf32> to vector<2x8x8xf32>
    %642 = arith.subf %638, %641 : vector<2x8x8xf32>
    %643 = math.exp %642 : vector<2x8x8xf32>
    %cst_232 = arith.constant dense<0.000000e+00> : vector<2x8xf32>
    %644 = vector.multi_reduction <add>, %643, %cst_232 [2] : vector<2x8x8xf32> to vector<2x8xf32>
    %645 = vector.shape_cast %644 : vector<2x8xf32> to vector<2x8x1xf32>
    %646 = tpu.reciprocal %645 {approx = true} : vector<2x8x1xf32> -> vector<2x8x1xf32>
    %647 = vector.broadcast %646 : vector<2x8x1xf32> to vector<2x8x8xf32>
    %648 = arith.mulf %643, %647 : vector<2x8x8xf32>
    %649 = vector.extract_strided_slice %630 {offsets = [0, 0, 0], sizes = [2, 8, 8], strides = [1, 1, 1]} : vector<2x8x32xf32> to vector<2x8x8xf32>
    "tpu.trace_start"() <{level = 10 : i32, message = "bqk,bkd->bqd"}> : () -> ()
    %cst_233 = arith.constant dense<0.000000e+00> : vector<2x8x8xf32>
    %650 = tpu.matmul %648, %649, %cst_233 {dimension_numbers = #tpu.dot_dimension_numbers<[2], [1], [1], [2], [0, 0, 0, 1, 1, 2], [0], [0]>} : vector<2x8x8xf32>, vector<2x8x8xf32>, vector<2x8x8xf32> -> vector<2x8x8xf32>
    "tpu.trace_stop"() : () -> ()
    %651 = vector.shape_cast %650 : vector<2x8x8xf32> to vector<16x8xf32>
    %652 = vector.extract_strided_slice %612 {offsets = [0, 0], sizes = [8, 32], strides = [1, 1]} : vector<32x32xf32> to vector<8x32xf32>
    %cst_234 = arith.constant dense<0.000000e+00> : vector<16x32xf32>
    %653 = tpu.matmul %651, %652, %cst_234 {dimension_numbers = #tpu.dot_dimension_numbers<[1], [0], [0], [1], [0, 0, 1, 1], [], []>} : vector<16x8xf32>, vector<8x32xf32>, vector<16x32xf32> -> vector<16x32xf32>
    %654 = arith.addf %631, %653 : vector<16x32xf32>
    %655 = vector.extract_strided_slice %620 {offsets = [0, 0, 8], sizes = [2, 8, 8], strides = [1, 1, 1]} : vector<2x8x32xf32> to vector<2x8x8xf32>
    %cst_235 = arith.constant 0.353553385 : f32
    %656 = vector.broadcast %cst_235 : f32 to vector<2x8x8xf32>
    %657 = arith.mulf %655, %656 : vector<2x8x8xf32>
    %658 = vector.extract_strided_slice %628 {offsets = [0, 0, 8], sizes = [2, 8, 8], strides = [1, 1, 1]} : vector<2x8x32xf32> to vector<2x8x8xf32>
    "tpu.trace_start"() <{level = 10 : i32, message = "bqd,bkd->bqk"}> : () -> ()
    %cst_236 = arith.constant dense<0.000000e+00> : vector<2x8x8xf32>
    %659 = tpu.matmul %657, %658, %cst_236 {dimension_numbers = #tpu.dot_dimension_numbers<[2], [2], [1], [1], [0, 0, 0, 1, 1, 1], [0], [0]>} : vector<2x8x8xf32>, vector<2x8x8xf32>, vector<2x8x8xf32> -> vector<2x8x8xf32>
    "tpu.trace_stop"() : () -> ()
    %660 = vector.broadcast %84 : vector<2x1x8xf32> to vector<2x8x8xf32>
    %661 = arith.addf %659, %660 : vector<2x8x8xf32>
    %cst_237 = arith.constant dense<0xFF800000> : vector<2x8xf32>
    %662 = vector.multi_reduction <maximumf>, %661, %cst_237 [2] : vector<2x8x8xf32> to vector<2x8xf32>
    %663 = vector.shape_cast %662 : vector<2x8xf32> to vector<2x8x1xf32>
    %664 = vector.broadcast %663 : vector<2x8x1xf32> to vector<2x8x8xf32>
    %665 = arith.subf %661, %664 : vector<2x8x8xf32>
    %666 = math.exp %665 : vector<2x8x8xf32>
    %cst_238 = arith.constant dense<0.000000e+00> : vector<2x8xf32>
    %667 = vector.multi_reduction <add>, %666, %cst_238 [2] : vector<2x8x8xf32> to vector<2x8xf32>
    %668 = vector.shape_cast %667 : vector<2x8xf32> to vector<2x8x1xf32>
    %669 = tpu.reciprocal %668 {approx = true} : vector<2x8x1xf32> -> vector<2x8x1xf32>
    %670 = vector.broadcast %669 : vector<2x8x1xf32> to vector<2x8x8xf32>
    %671 = arith.mulf %666, %670 : vector<2x8x8xf32>
    %672 = vector.extract_strided_slice %630 {offsets = [0, 0, 8], sizes = [2, 8, 8], strides = [1, 1, 1]} : vector<2x8x32xf32> to vector<2x8x8xf32>
    "tpu.trace_start"() <{level = 10 : i32, message = "bqk,bkd->bqd"}> : () -> ()
    %cst_239 = arith.constant dense<0.000000e+00> : vector<2x8x8xf32>
    %673 = tpu.matmul %671, %672, %cst_239 {dimension_numbers = #tpu.dot_dimension_numbers<[2], [1], [1], [2], [0, 0, 0, 1, 1, 2], [0], [0]>} : vector<2x8x8xf32>, vector<2x8x8xf32>, vector<2x8x8xf32> -> vector<2x8x8xf32>
    "tpu.trace_stop"() : () -> ()
    %674 = vector.shape_cast %673 : vector<2x8x8xf32> to vector<16x8xf32>
    %675 = vector.extract_strided_slice %612 {offsets = [8, 0], sizes = [8, 32], strides = [1, 1]} : vector<32x32xf32> to vector<8x32xf32>
    %cst_240 = arith.constant dense<0.000000e+00> : vector<16x32xf32>
    %676 = tpu.matmul %674, %675, %cst_240 {dimension_numbers = #tpu.dot_dimension_numbers<[1], [0], [0], [1], [0, 0, 1, 1], [], []>} : vector<16x8xf32>, vector<8x32xf32>, vector<16x32xf32> -> vector<16x32xf32>
    %677 = arith.addf %654, %676 : vector<16x32xf32>
    %678 = vector.extract_strided_slice %620 {offsets = [0, 0, 16], sizes = [2, 8, 8], strides = [1, 1, 1]} : vector<2x8x32xf32> to vector<2x8x8xf32>
    %cst_241 = arith.constant 0.353553385 : f32
    %679 = vector.broadcast %cst_241 : f32 to vector<2x8x8xf32>
    %680 = arith.mulf %678, %679 : vector<2x8x8xf32>
    %681 = vector.extract_strided_slice %628 {offsets = [0, 0, 16], sizes = [2, 8, 8], strides = [1, 1, 1]} : vector<2x8x32xf32> to vector<2x8x8xf32>
    "tpu.trace_start"() <{level = 10 : i32, message = "bqd,bkd->bqk"}> : () -> ()
    %cst_242 = arith.constant dense<0.000000e+00> : vector<2x8x8xf32>
    %682 = tpu.matmul %680, %681, %cst_242 {dimension_numbers = #tpu.dot_dimension_numbers<[2], [2], [1], [1], [0, 0, 0, 1, 1, 1], [0], [0]>} : vector<2x8x8xf32>, vector<2x8x8xf32>, vector<2x8x8xf32> -> vector<2x8x8xf32>
    "tpu.trace_stop"() : () -> ()
    %683 = vector.broadcast %84 : vector<2x1x8xf32> to vector<2x8x8xf32>
    %684 = arith.addf %682, %683 : vector<2x8x8xf32>
    %cst_243 = arith.constant dense<0xFF800000> : vector<2x8xf32>
    %685 = vector.multi_reduction <maximumf>, %684, %cst_243 [2] : vector<2x8x8xf32> to vector<2x8xf32>
    %686 = vector.shape_cast %685 : vector<2x8xf32> to vector<2x8x1xf32>
    %687 = vector.broadcast %686 : vector<2x8x1xf32> to vector<2x8x8xf32>
    %688 = arith.subf %684, %687 : vector<2x8x8xf32>
    %689 = math.exp %688 : vector<2x8x8xf32>
    %cst_244 = arith.constant dense<0.000000e+00> : vector<2x8xf32>
    %690 = vector.multi_reduction <add>, %689, %cst_244 [2] : vector<2x8x8xf32> to vector<2x8xf32>
    %691 = vector.shape_cast %690 : vector<2x8xf32> to vector<2x8x1xf32>
    %692 = tpu.reciprocal %691 {approx = true} : vector<2x8x1xf32> -> vector<2x8x1xf32>
    %693 = vector.broadcast %692 : vector<2x8x1xf32> to vector<2x8x8xf32>
    %694 = arith.mulf %689, %693 : vector<2x8x8xf32>
    %695 = vector.extract_strided_slice %630 {offsets = [0, 0, 16], sizes = [2, 8, 8], strides = [1, 1, 1]} : vector<2x8x32xf32> to vector<2x8x8xf32>
    "tpu.trace_start"() <{level = 10 : i32, message = "bqk,bkd->bqd"}> : () -> ()
    %cst_245 = arith.constant dense<0.000000e+00> : vector<2x8x8xf32>
    %696 = tpu.matmul %694, %695, %cst_245 {dimension_numbers = #tpu.dot_dimension_numbers<[2], [1], [1], [2], [0, 0, 0, 1, 1, 2], [0], [0]>} : vector<2x8x8xf32>, vector<2x8x8xf32>, vector<2x8x8xf32> -> vector<2x8x8xf32>
    "tpu.trace_stop"() : () -> ()
    %697 = vector.shape_cast %696 : vector<2x8x8xf32> to vector<16x8xf32>
    %698 = vector.extract_strided_slice %612 {offsets = [16, 0], sizes = [8, 32], strides = [1, 1]} : vector<32x32xf32> to vector<8x32xf32>
    %cst_246 = arith.constant dense<0.000000e+00> : vector<16x32xf32>
    %699 = tpu.matmul %697, %698, %cst_246 {dimension_numbers = #tpu.dot_dimension_numbers<[1], [0], [0], [1], [0, 0, 1, 1], [], []>} : vector<16x8xf32>, vector<8x32xf32>, vector<16x32xf32> -> vector<16x32xf32>
    %700 = arith.addf %677, %699 : vector<16x32xf32>
    %701 = vector.extract_strided_slice %620 {offsets = [0, 0, 24], sizes = [2, 8, 8], strides = [1, 1, 1]} : vector<2x8x32xf32> to vector<2x8x8xf32>
    %cst_247 = arith.constant 0.353553385 : f32
    %702 = vector.broadcast %cst_247 : f32 to vector<2x8x8xf32>
    %703 = arith.mulf %701, %702 : vector<2x8x8xf32>
    %704 = vector.extract_strided_slice %628 {offsets = [0, 0, 24], sizes = [2, 8, 8], strides = [1, 1, 1]} : vector<2x8x32xf32> to vector<2x8x8xf32>
    "tpu.trace_start"() <{level = 10 : i32, message = "bqd,bkd->bqk"}> : () -> ()
    %cst_248 = arith.constant dense<0.000000e+00> : vector<2x8x8xf32>
    %705 = tpu.matmul %703, %704, %cst_248 {dimension_numbers = #tpu.dot_dimension_numbers<[2], [2], [1], [1], [0, 0, 0, 1, 1, 1], [0], [0]>} : vector<2x8x8xf32>, vector<2x8x8xf32>, vector<2x8x8xf32> -> vector<2x8x8xf32>
    "tpu.trace_stop"() : () -> ()
    %706 = vector.broadcast %84 : vector<2x1x8xf32> to vector<2x8x8xf32>
    %707 = arith.addf %705, %706 : vector<2x8x8xf32>
    %cst_249 = arith.constant dense<0xFF800000> : vector<2x8xf32>
    %708 = vector.multi_reduction <maximumf>, %707, %cst_249 [2] : vector<2x8x8xf32> to vector<2x8xf32>
    %709 = vector.shape_cast %708 : vector<2x8xf32> to vector<2x8x1xf32>
    %710 = vector.broadcast %709 : vector<2x8x1xf32> to vector<2x8x8xf32>
    %711 = arith.subf %707, %710 : vector<2x8x8xf32>
    %712 = math.exp %711 : vector<2x8x8xf32>
    %cst_250 = arith.constant dense<0.000000e+00> : vector<2x8xf32>
    %713 = vector.multi_reduction <add>, %712, %cst_250 [2] : vector<2x8x8xf32> to vector<2x8xf32>
    %714 = vector.shape_cast %713 : vector<2x8xf32> to vector<2x8x1xf32>
    %715 = tpu.reciprocal %714 {approx = true} : vector<2x8x1xf32> -> vector<2x8x1xf32>
    %716 = vector.broadcast %715 : vector<2x8x1xf32> to vector<2x8x8xf32>
    %717 = arith.mulf %712, %716 : vector<2x8x8xf32>
    %718 = vector.extract_strided_slice %630 {offsets = [0, 0, 24], sizes = [2, 8, 8], strides = [1, 1, 1]} : vector<2x8x32xf32> to vector<2x8x8xf32>
    "tpu.trace_start"() <{level = 10 : i32, message = "bqk,bkd->bqd"}> : () -> ()
    %cst_251 = arith.constant dense<0.000000e+00> : vector<2x8x8xf32>
    %719 = tpu.matmul %717, %718, %cst_251 {dimension_numbers = #tpu.dot_dimension_numbers<[2], [1], [1], [2], [0, 0, 0, 1, 1, 2], [0], [0]>} : vector<2x8x8xf32>, vector<2x8x8xf32>, vector<2x8x8xf32> -> vector<2x8x8xf32>
    "tpu.trace_stop"() : () -> ()
    %720 = vector.shape_cast %719 : vector<2x8x8xf32> to vector<16x8xf32>
    %721 = vector.extract_strided_slice %612 {offsets = [24, 0], sizes = [8, 32], strides = [1, 1]} : vector<32x32xf32> to vector<8x32xf32>
    %cst_252 = arith.constant dense<0.000000e+00> : vector<16x32xf32>
    %722 = tpu.matmul %720, %721, %cst_252 {dimension_numbers = #tpu.dot_dimension_numbers<[1], [0], [0], [1], [0, 0, 1, 1], [], []>} : vector<16x8xf32>, vector<8x32xf32>, vector<16x32xf32> -> vector<16x32xf32>
    %723 = arith.addf %700, %722 : vector<16x32xf32>
    %724 = vector.broadcast %613 : vector<1x32xf32> to vector<16x32xf32>
    %725 = arith.addf %723, %724 : vector<16x32xf32>
    %726 = vector.shape_cast %725 : vector<16x32xf32> to vector<2x8x32xf32>
    %727 = arith.addf %609, %726 : vector<2x8x32xf32>
    %c0_253 = arith.constant 0 : index
    %c0_254 = arith.constant 0 : index
    %728 = vector.load %arg41[%c0_253, %c0_254] : memref<1x32xf32, #tpu.memory_space<vmem>>, vector<1x32xf32>
    %c0_255 = arith.constant 0 : index
    %c0_256 = arith.constant 0 : index
    %729 = vector.load %arg40[%c0_255, %c0_256] : memref<1x32xf32, #tpu.memory_space<vmem>>, vector<1x32xf32>
    %cst_257 = arith.constant dense<0.000000e+00> : vector<2x8xf32>
    %730 = vector.multi_reduction <add>, %727, %cst_257 [2] : vector<2x8x32xf32> to vector<2x8xf32>
    %731 = vector.shape_cast %730 : vector<2x8xf32> to vector<2x8x1xf32>
    %cst_258 = arith.constant 3.200000e+01 : f32
    %732 = vector.broadcast %cst_258 : f32 to vector<2x8x1xf32>
    %733 = arith.divf %731, %732 : vector<2x8x1xf32>
    %734 = vector.broadcast %733 : vector<2x8x1xf32> to vector<2x8x32xf32>
    %735 = arith.subf %727, %734 : vector<2x8x32xf32>
    %736 = arith.mulf %735, %735 : vector<2x8x32xf32>
    %cst_259 = arith.constant dense<0.000000e+00> : vector<2x8xf32>
    %737 = vector.multi_reduction <add>, %736, %cst_259 [2] : vector<2x8x32xf32> to vector<2x8xf32>
    %738 = vector.shape_cast %737 : vector<2x8xf32> to vector<2x8x1xf32>
    %cst_260 = arith.constant 3.200000e+01 : f32
    %739 = vector.broadcast %cst_260 : f32 to vector<2x8x1xf32>
    %740 = arith.divf %738, %739 : vector<2x8x1xf32>
    %741 = vector.broadcast %733 : vector<2x8x1xf32> to vector<2x8x32xf32>
    %742 = arith.subf %727, %741 : vector<2x8x32xf32>
    %cst_261 = arith.constant 9.99999974E-6 : f32
    %743 = vector.broadcast %cst_261 : f32 to vector<2x8x1xf32>
    %744 = arith.addf %740, %743 : vector<2x8x1xf32>
    %745 = math.rsqrt %744 : vector<2x8x1xf32>
    %746 = vector.broadcast %745 : vector<2x8x1xf32> to vector<2x8x32xf32>
    %747 = arith.mulf %742, %746 : vector<2x8x32xf32>
    %748 = vector.shape_cast %728 : vector<1x32xf32> to vector<1x1x32xf32>
    %749 = vector.broadcast %748 : vector<1x1x32xf32> to vector<2x8x32xf32>
    %750 = arith.mulf %747, %749 : vector<2x8x32xf32>
    %751 = vector.shape_cast %729 : vector<1x32xf32> to vector<1x1x32xf32>
    %752 = vector.broadcast %751 : vector<1x1x32xf32> to vector<2x8x32xf32>
    %753 = arith.addf %750, %752 : vector<2x8x32xf32>
    %c0_262 = arith.constant 0 : index
    %c0_263 = arith.constant 0 : index
    %754 = vector.load %arg46[%c0_262, %c0_263] : memref<32x64xf32, #tpu.memory_space<vmem>>, vector<32x64xf32>
    %c0_264 = arith.constant 0 : index
    %c0_265 = arith.constant 0 : index
    %755 = vector.load %arg44[%c0_264, %c0_265] : memref<1x64xf32, #tpu.memory_space<vmem>>, vector<1x64xf32>
    %756 = vector.shape_cast %753 : vector<2x8x32xf32> to vector<16x32xf32>
    %cst_266 = arith.constant dense<0.000000e+00> : vector<16x64xf32>
    %757 = tpu.matmul %756, %754, %cst_266 {dimension_numbers = #tpu.dot_dimension_numbers<[1], [0], [0], [1], [0, 0, 1, 1], [], []>} : vector<16x32xf32>, vector<32x64xf32>, vector<16x64xf32> -> vector<16x64xf32>
    %758 = vector.broadcast %755 : vector<1x64xf32> to vector<16x64xf32>
    %759 = arith.addf %757, %758 : vector<16x64xf32>
    %760 = arith.mulf %759, %759 : vector<16x64xf32>
    %761 = arith.mulf %759, %760 : vector<16x64xf32>
    %cst_267 = arith.constant 4.471500e-02 : f32
    %762 = vector.broadcast %cst_267 : f32 to vector<16x64xf32>
    %763 = arith.mulf %762, %761 : vector<16x64xf32>
    %764 = arith.addf %759, %763 : vector<16x64xf32>
    %cst_268 = arith.constant 0.797884583 : f32
    %765 = vector.broadcast %cst_268 : f32 to vector<16x64xf32>
    %766 = arith.mulf %765, %764 : vector<16x64xf32>
    %767 = math.tanh %766 : vector<16x64xf32>
    %cst_269 = arith.constant 1.000000e+00 : f32
    %768 = vector.broadcast %cst_269 : f32 to vector<16x64xf32>
    %769 = arith.addf %768, %767 : vector<16x64xf32>
    %cst_270 = arith.constant 5.000000e-01 : f32
    %770 = vector.broadcast %cst_270 : f32 to vector<16x64xf32>
    %771 = arith.mulf %770, %769 : vector<16x64xf32>
    %772 = arith.mulf %759, %771 : vector<16x64xf32>
    %773 = vector.shape_cast %772 : vector<16x64xf32> to vector<2x8x64xf32>
    %c0_271 = arith.constant 0 : index
    %c0_272 = arith.constant 0 : index
    %774 = vector.load %arg47[%c0_271, %c0_272] : memref<64x32xf32, #tpu.memory_space<vmem>>, vector<64x32xf32>
    %c0_273 = arith.constant 0 : index
    %c0_274 = arith.constant 0 : index
    %775 = vector.load %arg45[%c0_273, %c0_274] : memref<1x32xf32, #tpu.memory_space<vmem>>, vector<1x32xf32>
    %776 = vector.shape_cast %773 : vector<2x8x64xf32> to vector<16x64xf32>
    %cst_275 = arith.constant dense<0.000000e+00> : vector<16x32xf32>
    %777 = tpu.matmul %776, %774, %cst_275 {dimension_numbers = #tpu.dot_dimension_numbers<[1], [0], [0], [1], [0, 0, 1, 1], [], []>} : vector<16x64xf32>, vector<64x32xf32>, vector<16x32xf32> -> vector<16x32xf32>
    %778 = vector.broadcast %775 : vector<1x32xf32> to vector<16x32xf32>
    %779 = arith.addf %777, %778 : vector<16x32xf32>
    %780 = vector.shape_cast %779 : vector<16x32xf32> to vector<2x8x32xf32>
    %781 = arith.addf %753, %780 : vector<2x8x32xf32>
    %c0_276 = arith.constant 0 : index
    %c0_277 = arith.constant 0 : index
    %782 = vector.load %arg43[%c0_276, %c0_277] : memref<1x32xf32, #tpu.memory_space<vmem>>, vector<1x32xf32>
    %c0_278 = arith.constant 0 : index
    %c0_279 = arith.constant 0 : index
    %783 = vector.load %arg42[%c0_278, %c0_279] : memref<1x32xf32, #tpu.memory_space<vmem>>, vector<1x32xf32>
    %cst_280 = arith.constant dense<0.000000e+00> : vector<2x8xf32>
    %784 = vector.multi_reduction <add>, %781, %cst_280 [2] : vector<2x8x32xf32> to vector<2x8xf32>
    %785 = vector.shape_cast %784 : vector<2x8xf32> to vector<2x8x1xf32>
    %cst_281 = arith.constant 3.200000e+01 : f32
    %786 = vector.broadcast %cst_281 : f32 to vector<2x8x1xf32>
    %787 = arith.divf %785, %786 : vector<2x8x1xf32>
    %788 = vector.broadcast %787 : vector<2x8x1xf32> to vector<2x8x32xf32>
    %789 = arith.subf %781, %788 : vector<2x8x32xf32>
    %790 = arith.mulf %789, %789 : vector<2x8x32xf32>
    %cst_282 = arith.constant dense<0.000000e+00> : vector<2x8xf32>
    %791 = vector.multi_reduction <add>, %790, %cst_282 [2] : vector<2x8x32xf32> to vector<2x8xf32>
    %792 = vector.shape_cast %791 : vector<2x8xf32> to vector<2x8x1xf32>
    %cst_283 = arith.constant 3.200000e+01 : f32
    %793 = vector.broadcast %cst_283 : f32 to vector<2x8x1xf32>
    %794 = arith.divf %792, %793 : vector<2x8x1xf32>
    %795 = vector.broadcast %787 : vector<2x8x1xf32> to vector<2x8x32xf32>
    %796 = arith.subf %781, %795 : vector<2x8x32xf32>
    %cst_284 = arith.constant 9.99999974E-6 : f32
    %797 = vector.broadcast %cst_284 : f32 to vector<2x8x1xf32>
    %798 = arith.addf %794, %797 : vector<2x8x1xf32>
    %799 = math.rsqrt %798 : vector<2x8x1xf32>
    %800 = vector.broadcast %799 : vector<2x8x1xf32> to vector<2x8x32xf32>
    %801 = arith.mulf %796, %800 : vector<2x8x32xf32>
    %802 = vector.shape_cast %782 : vector<1x32xf32> to vector<1x1x32xf32>
    %803 = vector.broadcast %802 : vector<1x1x32xf32> to vector<2x8x32xf32>
    %804 = arith.mulf %801, %803 : vector<2x8x32xf32>
    %805 = vector.shape_cast %783 : vector<1x32xf32> to vector<1x1x32xf32>
    %806 = vector.broadcast %805 : vector<1x1x32xf32> to vector<2x8x32xf32>
    %807 = arith.addf %804, %806 : vector<2x8x32xf32>
    %c0_285 = arith.constant 0 : index
    %c0_286 = arith.constant 0 : index
    %808 = vector.load %arg28[%c0_285, %c0_286] : memref<32x96xf32, #tpu.memory_space<vmem>>, vector<32x96xf32>
    %c0_287 = arith.constant 0 : index
    %c0_288 = arith.constant 0 : index
    %809 = vector.load %arg26[%c0_287, %c0_288] : memref<1x96xf32, #tpu.memory_space<vmem>>, vector<1x96xf32>
    %c0_289 = arith.constant 0 : index
    %c0_290 = arith.constant 0 : index
    %810 = vector.load %arg27[%c0_289, %c0_290] : memref<32x32xf32, #tpu.memory_space<vmem>>, vector<32x32xf32>
    %c0_291 = arith.constant 0 : index
    %c0_292 = arith.constant 0 : index
    %811 = vector.load %arg25[%c0_291, %c0_292] : memref<1x32xf32, #tpu.memory_space<vmem>>, vector<1x32xf32>
    %812 = vector.shape_cast %807 : vector<2x8x32xf32> to vector<16x32xf32>
    %cst_293 = arith.constant dense<0.000000e+00> : vector<16x96xf32>
    %813 = tpu.matmul %812, %808, %cst_293 {dimension_numbers = #tpu.dot_dimension_numbers<[1], [0], [0], [1], [0, 0, 1, 1], [], []>} : vector<16x32xf32>, vector<32x96xf32>, vector<16x96xf32> -> vector<16x96xf32>
    %814 = vector.broadcast %809 : vector<1x96xf32> to vector<16x96xf32>
    %815 = arith.addf %813, %814 : vector<16x96xf32>
    %816 = vector.extract_strided_slice %815 {offsets = [0, 0], sizes = [16, 32], strides = [1, 1]} : vector<16x96xf32> to vector<16x32xf32>
    %817 = vector.shape_cast %816 : vector<16x32xf32> to vector<2x8x32xf32>
    %818 = vector.extract_strided_slice %815 {offsets = [0, 32], sizes = [16, 32], strides = [1, 1]} : vector<16x96xf32> to vector<16x32xf32>
    %819 = vector.shape_cast %818 : vector<16x32xf32> to vector<2x8x32xf32>
    %820 = vector.extract_strided_slice %815 {offsets = [0, 64], sizes = [16, 32], strides = [1, 1]} : vector<16x96xf32> to vector<16x32xf32>
    %821 = vector.shape_cast %820 : vector<16x32xf32> to vector<2x8x32xf32>
    %cst_294 = arith.constant 0.000000e+00 : f32
    %822 = vector.broadcast %cst_294 : f32 to vector<16x32xf32>
    %823 = vector.extract_strided_slice %817 {offsets = [0, 0, 0], sizes = [2, 8, 8], strides = [1, 1, 1]} : vector<2x8x32xf32> to vector<2x8x8xf32>
    %cst_295 = arith.constant 0.353553385 : f32
    %824 = vector.broadcast %cst_295 : f32 to vector<2x8x8xf32>
    %825 = arith.mulf %823, %824 : vector<2x8x8xf32>
    %826 = vector.extract_strided_slice %819 {offsets = [0, 0, 0], sizes = [2, 8, 8], strides = [1, 1, 1]} : vector<2x8x32xf32> to vector<2x8x8xf32>
    "tpu.trace_start"() <{level = 10 : i32, message = "bqd,bkd->bqk"}> : () -> ()
    %cst_296 = arith.constant dense<0.000000e+00> : vector<2x8x8xf32>
    %827 = tpu.matmul %825, %826, %cst_296 {dimension_numbers = #tpu.dot_dimension_numbers<[2], [2], [1], [1], [0, 0, 0, 1, 1, 1], [0], [0]>} : vector<2x8x8xf32>, vector<2x8x8xf32>, vector<2x8x8xf32> -> vector<2x8x8xf32>
    "tpu.trace_stop"() : () -> ()
    %828 = arith.addf %827, %94 : vector<2x8x8xf32>
    %cst_297 = arith.constant dense<0xFF800000> : vector<2x8xf32>
    %829 = vector.multi_reduction <maximumf>, %828, %cst_297 [2] : vector<2x8x8xf32> to vector<2x8xf32>
    %830 = vector.shape_cast %829 : vector<2x8xf32> to vector<2x8x1xf32>
    %831 = vector.broadcast %830 : vector<2x8x1xf32> to vector<2x8x8xf32>
    %832 = arith.subf %828, %831 : vector<2x8x8xf32>
    %833 = math.exp %832 : vector<2x8x8xf32>
    %cst_298 = arith.constant dense<0.000000e+00> : vector<2x8xf32>
    %834 = vector.multi_reduction <add>, %833, %cst_298 [2] : vector<2x8x8xf32> to vector<2x8xf32>
    %835 = vector.shape_cast %834 : vector<2x8xf32> to vector<2x8x1xf32>
    %836 = tpu.reciprocal %835 {approx = true} : vector<2x8x1xf32> -> vector<2x8x1xf32>
    %837 = vector.broadcast %836 : vector<2x8x1xf32> to vector<2x8x8xf32>
    %838 = arith.mulf %833, %837 : vector<2x8x8xf32>
    %839 = vector.extract_strided_slice %821 {offsets = [0, 0, 0], sizes = [2, 8, 8], strides = [1, 1, 1]} : vector<2x8x32xf32> to vector<2x8x8xf32>
    "tpu.trace_start"() <{level = 10 : i32, message = "bqk,bkd->bqd"}> : () -> ()
    %cst_299 = arith.constant dense<0.000000e+00> : vector<2x8x8xf32>
    %840 = tpu.matmul %838, %839, %cst_299 {dimension_numbers = #tpu.dot_dimension_numbers<[2], [1], [1], [2], [0, 0, 0, 1, 1, 2], [0], [0]>} : vector<2x8x8xf32>, vector<2x8x8xf32>, vector<2x8x8xf32> -> vector<2x8x8xf32>
    "tpu.trace_stop"() : () -> ()
    %841 = vector.shape_cast %840 : vector<2x8x8xf32> to vector<16x8xf32>
    %842 = vector.extract_strided_slice %810 {offsets = [0, 0], sizes = [8, 32], strides = [1, 1]} : vector<32x32xf32> to vector<8x32xf32>
    %cst_300 = arith.constant dense<0.000000e+00> : vector<16x32xf32>
    %843 = tpu.matmul %841, %842, %cst_300 {dimension_numbers = #tpu.dot_dimension_numbers<[1], [0], [0], [1], [0, 0, 1, 1], [], []>} : vector<16x8xf32>, vector<8x32xf32>, vector<16x32xf32> -> vector<16x32xf32>
    %844 = arith.addf %822, %843 : vector<16x32xf32>
    %845 = vector.extract_strided_slice %817 {offsets = [0, 0, 8], sizes = [2, 8, 8], strides = [1, 1, 1]} : vector<2x8x32xf32> to vector<2x8x8xf32>
    %cst_301 = arith.constant 0.353553385 : f32
    %846 = vector.broadcast %cst_301 : f32 to vector<2x8x8xf32>
    %847 = arith.mulf %845, %846 : vector<2x8x8xf32>
    %848 = vector.extract_strided_slice %819 {offsets = [0, 0, 8], sizes = [2, 8, 8], strides = [1, 1, 1]} : vector<2x8x32xf32> to vector<2x8x8xf32>
    "tpu.trace_start"() <{level = 10 : i32, message = "bqd,bkd->bqk"}> : () -> ()
    %cst_302 = arith.constant dense<0.000000e+00> : vector<2x8x8xf32>
    %849 = tpu.matmul %847, %848, %cst_302 {dimension_numbers = #tpu.dot_dimension_numbers<[2], [2], [1], [1], [0, 0, 0, 1, 1, 1], [0], [0]>} : vector<2x8x8xf32>, vector<2x8x8xf32>, vector<2x8x8xf32> -> vector<2x8x8xf32>
    "tpu.trace_stop"() : () -> ()
    %850 = arith.addf %849, %94 : vector<2x8x8xf32>
    %cst_303 = arith.constant dense<0xFF800000> : vector<2x8xf32>
    %851 = vector.multi_reduction <maximumf>, %850, %cst_303 [2] : vector<2x8x8xf32> to vector<2x8xf32>
    %852 = vector.shape_cast %851 : vector<2x8xf32> to vector<2x8x1xf32>
    %853 = vector.broadcast %852 : vector<2x8x1xf32> to vector<2x8x8xf32>
    %854 = arith.subf %850, %853 : vector<2x8x8xf32>
    %855 = math.exp %854 : vector<2x8x8xf32>
    %cst_304 = arith.constant dense<0.000000e+00> : vector<2x8xf32>
    %856 = vector.multi_reduction <add>, %855, %cst_304 [2] : vector<2x8x8xf32> to vector<2x8xf32>
    %857 = vector.shape_cast %856 : vector<2x8xf32> to vector<2x8x1xf32>
    %858 = tpu.reciprocal %857 {approx = true} : vector<2x8x1xf32> -> vector<2x8x1xf32>
    %859 = vector.broadcast %858 : vector<2x8x1xf32> to vector<2x8x8xf32>
    %860 = arith.mulf %855, %859 : vector<2x8x8xf32>
    %861 = vector.extract_strided_slice %821 {offsets = [0, 0, 8], sizes = [2, 8, 8], strides = [1, 1, 1]} : vector<2x8x32xf32> to vector<2x8x8xf32>
    "tpu.trace_start"() <{level = 10 : i32, message = "bqk,bkd->bqd"}> : () -> ()
    %cst_305 = arith.constant dense<0.000000e+00> : vector<2x8x8xf32>
    %862 = tpu.matmul %860, %861, %cst_305 {dimension_numbers = #tpu.dot_dimension_numbers<[2], [1], [1], [2], [0, 0, 0, 1, 1, 2], [0], [0]>} : vector<2x8x8xf32>, vector<2x8x8xf32>, vector<2x8x8xf32> -> vector<2x8x8xf32>
    "tpu.trace_stop"() : () -> ()
    %863 = vector.shape_cast %862 : vector<2x8x8xf32> to vector<16x8xf32>
    %864 = vector.extract_strided_slice %810 {offsets = [8, 0], sizes = [8, 32], strides = [1, 1]} : vector<32x32xf32> to vector<8x32xf32>
    %cst_306 = arith.constant dense<0.000000e+00> : vector<16x32xf32>
    %865 = tpu.matmul %863, %864, %cst_306 {dimension_numbers = #tpu.dot_dimension_numbers<[1], [0], [0], [1], [0, 0, 1, 1], [], []>} : vector<16x8xf32>, vector<8x32xf32>, vector<16x32xf32> -> vector<16x32xf32>
    %866 = arith.addf %844, %865 : vector<16x32xf32>
    %867 = vector.extract_strided_slice %817 {offsets = [0, 0, 16], sizes = [2, 8, 8], strides = [1, 1, 1]} : vector<2x8x32xf32> to vector<2x8x8xf32>
    %cst_307 = arith.constant 0.353553385 : f32
    %868 = vector.broadcast %cst_307 : f32 to vector<2x8x8xf32>
    %869 = arith.mulf %867, %868 : vector<2x8x8xf32>
    %870 = vector.extract_strided_slice %819 {offsets = [0, 0, 16], sizes = [2, 8, 8], strides = [1, 1, 1]} : vector<2x8x32xf32> to vector<2x8x8xf32>
    "tpu.trace_start"() <{level = 10 : i32, message = "bqd,bkd->bqk"}> : () -> ()
    %cst_308 = arith.constant dense<0.000000e+00> : vector<2x8x8xf32>
    %871 = tpu.matmul %869, %870, %cst_308 {dimension_numbers = #tpu.dot_dimension_numbers<[2], [2], [1], [1], [0, 0, 0, 1, 1, 1], [0], [0]>} : vector<2x8x8xf32>, vector<2x8x8xf32>, vector<2x8x8xf32> -> vector<2x8x8xf32>
    "tpu.trace_stop"() : () -> ()
    %872 = arith.addf %871, %94 : vector<2x8x8xf32>
    %cst_309 = arith.constant dense<0xFF800000> : vector<2x8xf32>
    %873 = vector.multi_reduction <maximumf>, %872, %cst_309 [2] : vector<2x8x8xf32> to vector<2x8xf32>
    %874 = vector.shape_cast %873 : vector<2x8xf32> to vector<2x8x1xf32>
    %875 = vector.broadcast %874 : vector<2x8x1xf32> to vector<2x8x8xf32>
    %876 = arith.subf %872, %875 : vector<2x8x8xf32>
    %877 = math.exp %876 : vector<2x8x8xf32>
    %cst_310 = arith.constant dense<0.000000e+00> : vector<2x8xf32>
    %878 = vector.multi_reduction <add>, %877, %cst_310 [2] : vector<2x8x8xf32> to vector<2x8xf32>
    %879 = vector.shape_cast %878 : vector<2x8xf32> to vector<2x8x1xf32>
    %880 = tpu.reciprocal %879 {approx = true} : vector<2x8x1xf32> -> vector<2x8x1xf32>
    %881 = vector.broadcast %880 : vector<2x8x1xf32> to vector<2x8x8xf32>
    %882 = arith.mulf %877, %881 : vector<2x8x8xf32>
    %883 = vector.extract_strided_slice %821 {offsets = [0, 0, 16], sizes = [2, 8, 8], strides = [1, 1, 1]} : vector<2x8x32xf32> to vector<2x8x8xf32>
    "tpu.trace_start"() <{level = 10 : i32, message = "bqk,bkd->bqd"}> : () -> ()
    %cst_311 = arith.constant dense<0.000000e+00> : vector<2x8x8xf32>
    %884 = tpu.matmul %882, %883, %cst_311 {dimension_numbers = #tpu.dot_dimension_numbers<[2], [1], [1], [2], [0, 0, 0, 1, 1, 2], [0], [0]>} : vector<2x8x8xf32>, vector<2x8x8xf32>, vector<2x8x8xf32> -> vector<2x8x8xf32>
    "tpu.trace_stop"() : () -> ()
    %885 = vector.shape_cast %884 : vector<2x8x8xf32> to vector<16x8xf32>
    %886 = vector.extract_strided_slice %810 {offsets = [16, 0], sizes = [8, 32], strides = [1, 1]} : vector<32x32xf32> to vector<8x32xf32>
    %cst_312 = arith.constant dense<0.000000e+00> : vector<16x32xf32>
    %887 = tpu.matmul %885, %886, %cst_312 {dimension_numbers = #tpu.dot_dimension_numbers<[1], [0], [0], [1], [0, 0, 1, 1], [], []>} : vector<16x8xf32>, vector<8x32xf32>, vector<16x32xf32> -> vector<16x32xf32>
    %888 = arith.addf %866, %887 : vector<16x32xf32>
    %889 = vector.extract_strided_slice %817 {offsets = [0, 0, 24], sizes = [2, 8, 8], strides = [1, 1, 1]} : vector<2x8x32xf32> to vector<2x8x8xf32>
    %cst_313 = arith.constant 0.353553385 : f32
    %890 = vector.broadcast %cst_313 : f32 to vector<2x8x8xf32>
    %891 = arith.mulf %889, %890 : vector<2x8x8xf32>
    %892 = vector.extract_strided_slice %819 {offsets = [0, 0, 24], sizes = [2, 8, 8], strides = [1, 1, 1]} : vector<2x8x32xf32> to vector<2x8x8xf32>
    "tpu.trace_start"() <{level = 10 : i32, message = "bqd,bkd->bqk"}> : () -> ()
    %cst_314 = arith.constant dense<0.000000e+00> : vector<2x8x8xf32>
    %893 = tpu.matmul %891, %892, %cst_314 {dimension_numbers = #tpu.dot_dimension_numbers<[2], [2], [1], [1], [0, 0, 0, 1, 1, 1], [0], [0]>} : vector<2x8x8xf32>, vector<2x8x8xf32>, vector<2x8x8xf32> -> vector<2x8x8xf32>
    "tpu.trace_stop"() : () -> ()
    %894 = arith.addf %893, %94 : vector<2x8x8xf32>
    %cst_315 = arith.constant dense<0xFF800000> : vector<2x8xf32>
    %895 = vector.multi_reduction <maximumf>, %894, %cst_315 [2] : vector<2x8x8xf32> to vector<2x8xf32>
    %896 = vector.shape_cast %895 : vector<2x8xf32> to vector<2x8x1xf32>
    %897 = vector.broadcast %896 : vector<2x8x1xf32> to vector<2x8x8xf32>
    %898 = arith.subf %894, %897 : vector<2x8x8xf32>
    %899 = math.exp %898 : vector<2x8x8xf32>
    %cst_316 = arith.constant dense<0.000000e+00> : vector<2x8xf32>
    %900 = vector.multi_reduction <add>, %899, %cst_316 [2] : vector<2x8x8xf32> to vector<2x8xf32>
    %901 = vector.shape_cast %900 : vector<2x8xf32> to vector<2x8x1xf32>
    %902 = tpu.reciprocal %901 {approx = true} : vector<2x8x1xf32> -> vector<2x8x1xf32>
    %903 = vector.broadcast %902 : vector<2x8x1xf32> to vector<2x8x8xf32>
    %904 = arith.mulf %899, %903 : vector<2x8x8xf32>
    %905 = vector.extract_strided_slice %821 {offsets = [0, 0, 24], sizes = [2, 8, 8], strides = [1, 1, 1]} : vector<2x8x32xf32> to vector<2x8x8xf32>
    "tpu.trace_start"() <{level = 10 : i32, message = "bqk,bkd->bqd"}> : () -> ()
    %cst_317 = arith.constant dense<0.000000e+00> : vector<2x8x8xf32>
    %906 = tpu.matmul %904, %905, %cst_317 {dimension_numbers = #tpu.dot_dimension_numbers<[2], [1], [1], [2], [0, 0, 0, 1, 1, 2], [0], [0]>} : vector<2x8x8xf32>, vector<2x8x8xf32>, vector<2x8x8xf32> -> vector<2x8x8xf32>
    "tpu.trace_stop"() : () -> ()
    %907 = vector.shape_cast %906 : vector<2x8x8xf32> to vector<16x8xf32>
    %908 = vector.extract_strided_slice %810 {offsets = [24, 0], sizes = [8, 32], strides = [1, 1]} : vector<32x32xf32> to vector<8x32xf32>
    %cst_318 = arith.constant dense<0.000000e+00> : vector<16x32xf32>
    %909 = tpu.matmul %907, %908, %cst_318 {dimension_numbers = #tpu.dot_dimension_numbers<[1], [0], [0], [1], [0, 0, 1, 1], [], []>} : vector<16x8xf32>, vector<8x32xf32>, vector<16x32xf32> -> vector<16x32xf32>
    %910 = arith.addf %888, %909 : vector<16x32xf32>
    %911 = vector.broadcast %811 : vector<1x32xf32> to vector<16x32xf32>
    %912 = arith.addf %910, %911 : vector<16x32xf32>
    %913 = vector.shape_cast %912 : vector<16x32xf32> to vector<2x8x32xf32>
    %914 = arith.addf %807, %913 : vector<2x8x32xf32>
    %c0_319 = arith.constant 0 : index
    %c0_320 = arith.constant 0 : index
    %915 = vector.load %arg30[%c0_319, %c0_320] : memref<1x32xf32, #tpu.memory_space<vmem>>, vector<1x32xf32>
    %c0_321 = arith.constant 0 : index
    %c0_322 = arith.constant 0 : index
    %916 = vector.load %arg29[%c0_321, %c0_322] : memref<1x32xf32, #tpu.memory_space<vmem>>, vector<1x32xf32>
    %cst_323 = arith.constant dense<0.000000e+00> : vector<2x8xf32>
    %917 = vector.multi_reduction <add>, %914, %cst_323 [2] : vector<2x8x32xf32> to vector<2x8xf32>
    %918 = vector.shape_cast %917 : vector<2x8xf32> to vector<2x8x1xf32>
    %cst_324 = arith.constant 3.200000e+01 : f32
    %919 = vector.broadcast %cst_324 : f32 to vector<2x8x1xf32>
    %920 = arith.divf %918, %919 : vector<2x8x1xf32>
    %921 = vector.broadcast %920 : vector<2x8x1xf32> to vector<2x8x32xf32>
    %922 = arith.subf %914, %921 : vector<2x8x32xf32>
    %923 = arith.mulf %922, %922 : vector<2x8x32xf32>
    %cst_325 = arith.constant dense<0.000000e+00> : vector<2x8xf32>
    %924 = vector.multi_reduction <add>, %923, %cst_325 [2] : vector<2x8x32xf32> to vector<2x8xf32>
    %925 = vector.shape_cast %924 : vector<2x8xf32> to vector<2x8x1xf32>
    %cst_326 = arith.constant 3.200000e+01 : f32
    %926 = vector.broadcast %cst_326 : f32 to vector<2x8x1xf32>
    %927 = arith.divf %925, %926 : vector<2x8x1xf32>
    %928 = vector.broadcast %920 : vector<2x8x1xf32> to vector<2x8x32xf32>
    %929 = arith.subf %914, %928 : vector<2x8x32xf32>
    %cst_327 = arith.constant 9.99999974E-6 : f32
    %930 = vector.broadcast %cst_327 : f32 to vector<2x8x1xf32>
    %931 = arith.addf %927, %930 : vector<2x8x1xf32>
    %932 = math.rsqrt %931 : vector<2x8x1xf32>
    %933 = vector.broadcast %932 : vector<2x8x1xf32> to vector<2x8x32xf32>
    %934 = arith.mulf %929, %933 : vector<2x8x32xf32>
    %935 = vector.shape_cast %915 : vector<1x32xf32> to vector<1x1x32xf32>
    %936 = vector.broadcast %935 : vector<1x1x32xf32> to vector<2x8x32xf32>
    %937 = arith.mulf %934, %936 : vector<2x8x32xf32>
    %938 = vector.shape_cast %916 : vector<1x32xf32> to vector<1x1x32xf32>
    %939 = vector.broadcast %938 : vector<1x1x32xf32> to vector<2x8x32xf32>
    %940 = arith.addf %937, %939 : vector<2x8x32xf32>
    %c0_328 = arith.constant 0 : index
    %c0_329 = arith.constant 0 : index
    %941 = vector.load %arg51[%c0_328, %c0_329] : memref<32x96xf32, #tpu.memory_space<vmem>>, vector<32x96xf32>
    %c0_330 = arith.constant 0 : index
    %c0_331 = arith.constant 0 : index
    %942 = vector.load %arg49[%c0_330, %c0_331] : memref<1x96xf32, #tpu.memory_space<vmem>>, vector<1x96xf32>
    %c0_332 = arith.constant 0 : index
    %c0_333 = arith.constant 0 : index
    %943 = vector.load %arg50[%c0_332, %c0_333] : memref<32x32xf32, #tpu.memory_space<vmem>>, vector<32x32xf32>
    %c0_334 = arith.constant 0 : index
    %c0_335 = arith.constant 0 : index
    %944 = vector.load %arg48[%c0_334, %c0_335] : memref<1x32xf32, #tpu.memory_space<vmem>>, vector<1x32xf32>
    %945 = vector.shape_cast %940 : vector<2x8x32xf32> to vector<16x32xf32>
    %946 = vector.extract_strided_slice %941 {offsets = [0, 0], sizes = [32, 32], strides = [1, 1]} : vector<32x96xf32> to vector<32x32xf32>
    %cst_336 = arith.constant dense<0.000000e+00> : vector<16x32xf32>
    %947 = tpu.matmul %945, %946, %cst_336 {dimension_numbers = #tpu.dot_dimension_numbers<[1], [0], [0], [1], [0, 0, 1, 1], [], []>} : vector<16x32xf32>, vector<32x32xf32>, vector<16x32xf32> -> vector<16x32xf32>
    %948 = vector.extract_strided_slice %942 {offsets = [0, 0], sizes = [1, 32], strides = [1, 1]} : vector<1x96xf32> to vector<1x32xf32>
    %949 = vector.broadcast %948 : vector<1x32xf32> to vector<16x32xf32>
    %950 = arith.addf %947, %949 : vector<16x32xf32>
    %951 = vector.shape_cast %950 : vector<16x32xf32> to vector<2x8x32xf32>
    %952 = vector.shape_cast %476 : vector<2x8x32xf32> to vector<16x32xf32>
    %953 = vector.extract_strided_slice %941 {offsets = [0, 32], sizes = [32, 64], strides = [1, 1]} : vector<32x96xf32> to vector<32x64xf32>
    %cst_337 = arith.constant dense<0.000000e+00> : vector<16x64xf32>
    %954 = tpu.matmul %952, %953, %cst_337 {dimension_numbers = #tpu.dot_dimension_numbers<[1], [0], [0], [1], [0, 0, 1, 1], [], []>} : vector<16x32xf32>, vector<32x64xf32>, vector<16x64xf32> -> vector<16x64xf32>
    %955 = vector.extract_strided_slice %942 {offsets = [0, 32], sizes = [1, 64], strides = [1, 1]} : vector<1x96xf32> to vector<1x64xf32>
    %956 = vector.broadcast %955 : vector<1x64xf32> to vector<16x64xf32>
    %957 = arith.addf %954, %956 : vector<16x64xf32>
    %958 = vector.extract_strided_slice %957 {offsets = [0, 0], sizes = [16, 32], strides = [1, 1]} : vector<16x64xf32> to vector<16x32xf32>
    %959 = vector.shape_cast %958 : vector<16x32xf32> to vector<2x8x32xf32>
    %960 = vector.extract_strided_slice %957 {offsets = [0, 32], sizes = [16, 32], strides = [1, 1]} : vector<16x64xf32> to vector<16x32xf32>
    %961 = vector.shape_cast %960 : vector<16x32xf32> to vector<2x8x32xf32>
    %cst_338 = arith.constant 0.000000e+00 : f32
    %962 = vector.broadcast %cst_338 : f32 to vector<16x32xf32>
    %963 = vector.extract_strided_slice %951 {offsets = [0, 0, 0], sizes = [2, 8, 8], strides = [1, 1, 1]} : vector<2x8x32xf32> to vector<2x8x8xf32>
    %cst_339 = arith.constant 0.353553385 : f32
    %964 = vector.broadcast %cst_339 : f32 to vector<2x8x8xf32>
    %965 = arith.mulf %963, %964 : vector<2x8x8xf32>
    %966 = vector.extract_strided_slice %959 {offsets = [0, 0, 0], sizes = [2, 8, 8], strides = [1, 1, 1]} : vector<2x8x32xf32> to vector<2x8x8xf32>
    "tpu.trace_start"() <{level = 10 : i32, message = "bqd,bkd->bqk"}> : () -> ()
    %cst_340 = arith.constant dense<0.000000e+00> : vector<2x8x8xf32>
    %967 = tpu.matmul %965, %966, %cst_340 {dimension_numbers = #tpu.dot_dimension_numbers<[2], [2], [1], [1], [0, 0, 0, 1, 1, 1], [0], [0]>} : vector<2x8x8xf32>, vector<2x8x8xf32>, vector<2x8x8xf32> -> vector<2x8x8xf32>
    "tpu.trace_stop"() : () -> ()
    %968 = vector.broadcast %84 : vector<2x1x8xf32> to vector<2x8x8xf32>
    %969 = arith.addf %967, %968 : vector<2x8x8xf32>
    %cst_341 = arith.constant dense<0xFF800000> : vector<2x8xf32>
    %970 = vector.multi_reduction <maximumf>, %969, %cst_341 [2] : vector<2x8x8xf32> to vector<2x8xf32>
    %971 = vector.shape_cast %970 : vector<2x8xf32> to vector<2x8x1xf32>
    %972 = vector.broadcast %971 : vector<2x8x1xf32> to vector<2x8x8xf32>
    %973 = arith.subf %969, %972 : vector<2x8x8xf32>
    %974 = math.exp %973 : vector<2x8x8xf32>
    %cst_342 = arith.constant dense<0.000000e+00> : vector<2x8xf32>
    %975 = vector.multi_reduction <add>, %974, %cst_342 [2] : vector<2x8x8xf32> to vector<2x8xf32>
    %976 = vector.shape_cast %975 : vector<2x8xf32> to vector<2x8x1xf32>
    %977 = tpu.reciprocal %976 {approx = true} : vector<2x8x1xf32> -> vector<2x8x1xf32>
    %978 = vector.broadcast %977 : vector<2x8x1xf32> to vector<2x8x8xf32>
    %979 = arith.mulf %974, %978 : vector<2x8x8xf32>
    %980 = vector.extract_strided_slice %961 {offsets = [0, 0, 0], sizes = [2, 8, 8], strides = [1, 1, 1]} : vector<2x8x32xf32> to vector<2x8x8xf32>
    "tpu.trace_start"() <{level = 10 : i32, message = "bqk,bkd->bqd"}> : () -> ()
    %cst_343 = arith.constant dense<0.000000e+00> : vector<2x8x8xf32>
    %981 = tpu.matmul %979, %980, %cst_343 {dimension_numbers = #tpu.dot_dimension_numbers<[2], [1], [1], [2], [0, 0, 0, 1, 1, 2], [0], [0]>} : vector<2x8x8xf32>, vector<2x8x8xf32>, vector<2x8x8xf32> -> vector<2x8x8xf32>
    "tpu.trace_stop"() : () -> ()
    %982 = vector.shape_cast %981 : vector<2x8x8xf32> to vector<16x8xf32>
    %983 = vector.extract_strided_slice %943 {offsets = [0, 0], sizes = [8, 32], strides = [1, 1]} : vector<32x32xf32> to vector<8x32xf32>
    %cst_344 = arith.constant dense<0.000000e+00> : vector<16x32xf32>
    %984 = tpu.matmul %982, %983, %cst_344 {dimension_numbers = #tpu.dot_dimension_numbers<[1], [0], [0], [1], [0, 0, 1, 1], [], []>} : vector<16x8xf32>, vector<8x32xf32>, vector<16x32xf32> -> vector<16x32xf32>
    %985 = arith.addf %962, %984 : vector<16x32xf32>
    %986 = vector.extract_strided_slice %951 {offsets = [0, 0, 8], sizes = [2, 8, 8], strides = [1, 1, 1]} : vector<2x8x32xf32> to vector<2x8x8xf32>
    %cst_345 = arith.constant 0.353553385 : f32
    %987 = vector.broadcast %cst_345 : f32 to vector<2x8x8xf32>
    %988 = arith.mulf %986, %987 : vector<2x8x8xf32>
    %989 = vector.extract_strided_slice %959 {offsets = [0, 0, 8], sizes = [2, 8, 8], strides = [1, 1, 1]} : vector<2x8x32xf32> to vector<2x8x8xf32>
    "tpu.trace_start"() <{level = 10 : i32, message = "bqd,bkd->bqk"}> : () -> ()
    %cst_346 = arith.constant dense<0.000000e+00> : vector<2x8x8xf32>
    %990 = tpu.matmul %988, %989, %cst_346 {dimension_numbers = #tpu.dot_dimension_numbers<[2], [2], [1], [1], [0, 0, 0, 1, 1, 1], [0], [0]>} : vector<2x8x8xf32>, vector<2x8x8xf32>, vector<2x8x8xf32> -> vector<2x8x8xf32>
    "tpu.trace_stop"() : () -> ()
    %991 = vector.broadcast %84 : vector<2x1x8xf32> to vector<2x8x8xf32>
    %992 = arith.addf %990, %991 : vector<2x8x8xf32>
    %cst_347 = arith.constant dense<0xFF800000> : vector<2x8xf32>
    %993 = vector.multi_reduction <maximumf>, %992, %cst_347 [2] : vector<2x8x8xf32> to vector<2x8xf32>
    %994 = vector.shape_cast %993 : vector<2x8xf32> to vector<2x8x1xf32>
    %995 = vector.broadcast %994 : vector<2x8x1xf32> to vector<2x8x8xf32>
    %996 = arith.subf %992, %995 : vector<2x8x8xf32>
    %997 = math.exp %996 : vector<2x8x8xf32>
    %cst_348 = arith.constant dense<0.000000e+00> : vector<2x8xf32>
    %998 = vector.multi_reduction <add>, %997, %cst_348 [2] : vector<2x8x8xf32> to vector<2x8xf32>
    %999 = vector.shape_cast %998 : vector<2x8xf32> to vector<2x8x1xf32>
    %1000 = tpu.reciprocal %999 {approx = true} : vector<2x8x1xf32> -> vector<2x8x1xf32>
    %1001 = vector.broadcast %1000 : vector<2x8x1xf32> to vector<2x8x8xf32>
    %1002 = arith.mulf %997, %1001 : vector<2x8x8xf32>
    %1003 = vector.extract_strided_slice %961 {offsets = [0, 0, 8], sizes = [2, 8, 8], strides = [1, 1, 1]} : vector<2x8x32xf32> to vector<2x8x8xf32>
    "tpu.trace_start"() <{level = 10 : i32, message = "bqk,bkd->bqd"}> : () -> ()
    %cst_349 = arith.constant dense<0.000000e+00> : vector<2x8x8xf32>
    %1004 = tpu.matmul %1002, %1003, %cst_349 {dimension_numbers = #tpu.dot_dimension_numbers<[2], [1], [1], [2], [0, 0, 0, 1, 1, 2], [0], [0]>} : vector<2x8x8xf32>, vector<2x8x8xf32>, vector<2x8x8xf32> -> vector<2x8x8xf32>
    "tpu.trace_stop"() : () -> ()
    %1005 = vector.shape_cast %1004 : vector<2x8x8xf32> to vector<16x8xf32>
    %1006 = vector.extract_strided_slice %943 {offsets = [8, 0], sizes = [8, 32], strides = [1, 1]} : vector<32x32xf32> to vector<8x32xf32>
    %cst_350 = arith.constant dense<0.000000e+00> : vector<16x32xf32>
    %1007 = tpu.matmul %1005, %1006, %cst_350 {dimension_numbers = #tpu.dot_dimension_numbers<[1], [0], [0], [1], [0, 0, 1, 1], [], []>} : vector<16x8xf32>, vector<8x32xf32>, vector<16x32xf32> -> vector<16x32xf32>
    %1008 = arith.addf %985, %1007 : vector<16x32xf32>
    %1009 = vector.extract_strided_slice %951 {offsets = [0, 0, 16], sizes = [2, 8, 8], strides = [1, 1, 1]} : vector<2x8x32xf32> to vector<2x8x8xf32>
    %cst_351 = arith.constant 0.353553385 : f32
    %1010 = vector.broadcast %cst_351 : f32 to vector<2x8x8xf32>
    %1011 = arith.mulf %1009, %1010 : vector<2x8x8xf32>
    %1012 = vector.extract_strided_slice %959 {offsets = [0, 0, 16], sizes = [2, 8, 8], strides = [1, 1, 1]} : vector<2x8x32xf32> to vector<2x8x8xf32>
    "tpu.trace_start"() <{level = 10 : i32, message = "bqd,bkd->bqk"}> : () -> ()
    %cst_352 = arith.constant dense<0.000000e+00> : vector<2x8x8xf32>
    %1013 = tpu.matmul %1011, %1012, %cst_352 {dimension_numbers = #tpu.dot_dimension_numbers<[2], [2], [1], [1], [0, 0, 0, 1, 1, 1], [0], [0]>} : vector<2x8x8xf32>, vector<2x8x8xf32>, vector<2x8x8xf32> -> vector<2x8x8xf32>
    "tpu.trace_stop"() : () -> ()
    %1014 = vector.broadcast %84 : vector<2x1x8xf32> to vector<2x8x8xf32>
    %1015 = arith.addf %1013, %1014 : vector<2x8x8xf32>
    %cst_353 = arith.constant dense<0xFF800000> : vector<2x8xf32>
    %1016 = vector.multi_reduction <maximumf>, %1015, %cst_353 [2] : vector<2x8x8xf32> to vector<2x8xf32>
    %1017 = vector.shape_cast %1016 : vector<2x8xf32> to vector<2x8x1xf32>
    %1018 = vector.broadcast %1017 : vector<2x8x1xf32> to vector<2x8x8xf32>
    %1019 = arith.subf %1015, %1018 : vector<2x8x8xf32>
    %1020 = math.exp %1019 : vector<2x8x8xf32>
    %cst_354 = arith.constant dense<0.000000e+00> : vector<2x8xf32>
    %1021 = vector.multi_reduction <add>, %1020, %cst_354 [2] : vector<2x8x8xf32> to vector<2x8xf32>
    %1022 = vector.shape_cast %1021 : vector<2x8xf32> to vector<2x8x1xf32>
    %1023 = tpu.reciprocal %1022 {approx = true} : vector<2x8x1xf32> -> vector<2x8x1xf32>
    %1024 = vector.broadcast %1023 : vector<2x8x1xf32> to vector<2x8x8xf32>
    %1025 = arith.mulf %1020, %1024 : vector<2x8x8xf32>
    %1026 = vector.extract_strided_slice %961 {offsets = [0, 0, 16], sizes = [2, 8, 8], strides = [1, 1, 1]} : vector<2x8x32xf32> to vector<2x8x8xf32>
    "tpu.trace_start"() <{level = 10 : i32, message = "bqk,bkd->bqd"}> : () -> ()
    %cst_355 = arith.constant dense<0.000000e+00> : vector<2x8x8xf32>
    %1027 = tpu.matmul %1025, %1026, %cst_355 {dimension_numbers = #tpu.dot_dimension_numbers<[2], [1], [1], [2], [0, 0, 0, 1, 1, 2], [0], [0]>} : vector<2x8x8xf32>, vector<2x8x8xf32>, vector<2x8x8xf32> -> vector<2x8x8xf32>
    "tpu.trace_stop"() : () -> ()
    %1028 = vector.shape_cast %1027 : vector<2x8x8xf32> to vector<16x8xf32>
    %1029 = vector.extract_strided_slice %943 {offsets = [16, 0], sizes = [8, 32], strides = [1, 1]} : vector<32x32xf32> to vector<8x32xf32>
    %cst_356 = arith.constant dense<0.000000e+00> : vector<16x32xf32>
    %1030 = tpu.matmul %1028, %1029, %cst_356 {dimension_numbers = #tpu.dot_dimension_numbers<[1], [0], [0], [1], [0, 0, 1, 1], [], []>} : vector<16x8xf32>, vector<8x32xf32>, vector<16x32xf32> -> vector<16x32xf32>
    %1031 = arith.addf %1008, %1030 : vector<16x32xf32>
    %1032 = vector.extract_strided_slice %951 {offsets = [0, 0, 24], sizes = [2, 8, 8], strides = [1, 1, 1]} : vector<2x8x32xf32> to vector<2x8x8xf32>
    %cst_357 = arith.constant 0.353553385 : f32
    %1033 = vector.broadcast %cst_357 : f32 to vector<2x8x8xf32>
    %1034 = arith.mulf %1032, %1033 : vector<2x8x8xf32>
    %1035 = vector.extract_strided_slice %959 {offsets = [0, 0, 24], sizes = [2, 8, 8], strides = [1, 1, 1]} : vector<2x8x32xf32> to vector<2x8x8xf32>
    "tpu.trace_start"() <{level = 10 : i32, message = "bqd,bkd->bqk"}> : () -> ()
    %cst_358 = arith.constant dense<0.000000e+00> : vector<2x8x8xf32>
    %1036 = tpu.matmul %1034, %1035, %cst_358 {dimension_numbers = #tpu.dot_dimension_numbers<[2], [2], [1], [1], [0, 0, 0, 1, 1, 1], [0], [0]>} : vector<2x8x8xf32>, vector<2x8x8xf32>, vector<2x8x8xf32> -> vector<2x8x8xf32>
    "tpu.trace_stop"() : () -> ()
    %1037 = vector.broadcast %84 : vector<2x1x8xf32> to vector<2x8x8xf32>
    %1038 = arith.addf %1036, %1037 : vector<2x8x8xf32>
    %cst_359 = arith.constant dense<0xFF800000> : vector<2x8xf32>
    %1039 = vector.multi_reduction <maximumf>, %1038, %cst_359 [2] : vector<2x8x8xf32> to vector<2x8xf32>
    %1040 = vector.shape_cast %1039 : vector<2x8xf32> to vector<2x8x1xf32>
    %1041 = vector.broadcast %1040 : vector<2x8x1xf32> to vector<2x8x8xf32>
    %1042 = arith.subf %1038, %1041 : vector<2x8x8xf32>
    %1043 = math.exp %1042 : vector<2x8x8xf32>
    %cst_360 = arith.constant dense<0.000000e+00> : vector<2x8xf32>
    %1044 = vector.multi_reduction <add>, %1043, %cst_360 [2] : vector<2x8x8xf32> to vector<2x8xf32>
    %1045 = vector.shape_cast %1044 : vector<2x8xf32> to vector<2x8x1xf32>
    %1046 = tpu.reciprocal %1045 {approx = true} : vector<2x8x1xf32> -> vector<2x8x1xf32>
    %1047 = vector.broadcast %1046 : vector<2x8x1xf32> to vector<2x8x8xf32>
    %1048 = arith.mulf %1043, %1047 : vector<2x8x8xf32>
    %1049 = vector.extract_strided_slice %961 {offsets = [0, 0, 24], sizes = [2, 8, 8], strides = [1, 1, 1]} : vector<2x8x32xf32> to vector<2x8x8xf32>
    "tpu.trace_start"() <{level = 10 : i32, message = "bqk,bkd->bqd"}> : () -> ()
    %cst_361 = arith.constant dense<0.000000e+00> : vector<2x8x8xf32>
    %1050 = tpu.matmul %1048, %1049, %cst_361 {dimension_numbers = #tpu.dot_dimension_numbers<[2], [1], [1], [2], [0, 0, 0, 1, 1, 2], [0], [0]>} : vector<2x8x8xf32>, vector<2x8x8xf32>, vector<2x8x8xf32> -> vector<2x8x8xf32>
    "tpu.trace_stop"() : () -> ()
    %1051 = vector.shape_cast %1050 : vector<2x8x8xf32> to vector<16x8xf32>
    %1052 = vector.extract_strided_slice %943 {offsets = [24, 0], sizes = [8, 32], strides = [1, 1]} : vector<32x32xf32> to vector<8x32xf32>
    %cst_362 = arith.constant dense<0.000000e+00> : vector<16x32xf32>
    %1053 = tpu.matmul %1051, %1052, %cst_362 {dimension_numbers = #tpu.dot_dimension_numbers<[1], [0], [0], [1], [0, 0, 1, 1], [], []>} : vector<16x8xf32>, vector<8x32xf32>, vector<16x32xf32> -> vector<16x32xf32>
    %1054 = arith.addf %1031, %1053 : vector<16x32xf32>
    %1055 = vector.broadcast %944 : vector<1x32xf32> to vector<16x32xf32>
    %1056 = arith.addf %1054, %1055 : vector<16x32xf32>
    %1057 = vector.shape_cast %1056 : vector<16x32xf32> to vector<2x8x32xf32>
    %1058 = arith.addf %940, %1057 : vector<2x8x32xf32>
    %c0_363 = arith.constant 0 : index
    %c0_364 = arith.constant 0 : index
    %1059 = vector.load %arg53[%c0_363, %c0_364] : memref<1x32xf32, #tpu.memory_space<vmem>>, vector<1x32xf32>
    %c0_365 = arith.constant 0 : index
    %c0_366 = arith.constant 0 : index
    %1060 = vector.load %arg52[%c0_365, %c0_366] : memref<1x32xf32, #tpu.memory_space<vmem>>, vector<1x32xf32>
    %cst_367 = arith.constant dense<0.000000e+00> : vector<2x8xf32>
    %1061 = vector.multi_reduction <add>, %1058, %cst_367 [2] : vector<2x8x32xf32> to vector<2x8xf32>
    %1062 = vector.shape_cast %1061 : vector<2x8xf32> to vector<2x8x1xf32>
    %cst_368 = arith.constant 3.200000e+01 : f32
    %1063 = vector.broadcast %cst_368 : f32 to vector<2x8x1xf32>
    %1064 = arith.divf %1062, %1063 : vector<2x8x1xf32>
    %1065 = vector.broadcast %1064 : vector<2x8x1xf32> to vector<2x8x32xf32>
    %1066 = arith.subf %1058, %1065 : vector<2x8x32xf32>
    %1067 = arith.mulf %1066, %1066 : vector<2x8x32xf32>
    %cst_369 = arith.constant dense<0.000000e+00> : vector<2x8xf32>
    %1068 = vector.multi_reduction <add>, %1067, %cst_369 [2] : vector<2x8x32xf32> to vector<2x8xf32>
    %1069 = vector.shape_cast %1068 : vector<2x8xf32> to vector<2x8x1xf32>
    %cst_370 = arith.constant 3.200000e+01 : f32
    %1070 = vector.broadcast %cst_370 : f32 to vector<2x8x1xf32>
    %1071 = arith.divf %1069, %1070 : vector<2x8x1xf32>
    %1072 = vector.broadcast %1064 : vector<2x8x1xf32> to vector<2x8x32xf32>
    %1073 = arith.subf %1058, %1072 : vector<2x8x32xf32>
    %cst_371 = arith.constant 9.99999974E-6 : f32
    %1074 = vector.broadcast %cst_371 : f32 to vector<2x8x1xf32>
    %1075 = arith.addf %1071, %1074 : vector<2x8x1xf32>
    %1076 = math.rsqrt %1075 : vector<2x8x1xf32>
    %1077 = vector.broadcast %1076 : vector<2x8x1xf32> to vector<2x8x32xf32>
    %1078 = arith.mulf %1073, %1077 : vector<2x8x32xf32>
    %1079 = vector.shape_cast %1059 : vector<1x32xf32> to vector<1x1x32xf32>
    %1080 = vector.broadcast %1079 : vector<1x1x32xf32> to vector<2x8x32xf32>
    %1081 = arith.mulf %1078, %1080 : vector<2x8x32xf32>
    %1082 = vector.shape_cast %1060 : vector<1x32xf32> to vector<1x1x32xf32>
    %1083 = vector.broadcast %1082 : vector<1x1x32xf32> to vector<2x8x32xf32>
    %1084 = arith.addf %1081, %1083 : vector<2x8x32xf32>
    %c0_372 = arith.constant 0 : index
    %c0_373 = arith.constant 0 : index
    %1085 = vector.load %arg58[%c0_372, %c0_373] : memref<32x64xf32, #tpu.memory_space<vmem>>, vector<32x64xf32>
    %c0_374 = arith.constant 0 : index
    %c0_375 = arith.constant 0 : index
    %1086 = vector.load %arg56[%c0_374, %c0_375] : memref<1x64xf32, #tpu.memory_space<vmem>>, vector<1x64xf32>
    %1087 = vector.shape_cast %1084 : vector<2x8x32xf32> to vector<16x32xf32>
    %cst_376 = arith.constant dense<0.000000e+00> : vector<16x64xf32>
    %1088 = tpu.matmul %1087, %1085, %cst_376 {dimension_numbers = #tpu.dot_dimension_numbers<[1], [0], [0], [1], [0, 0, 1, 1], [], []>} : vector<16x32xf32>, vector<32x64xf32>, vector<16x64xf32> -> vector<16x64xf32>
    %1089 = vector.broadcast %1086 : vector<1x64xf32> to vector<16x64xf32>
    %1090 = arith.addf %1088, %1089 : vector<16x64xf32>
    %1091 = arith.mulf %1090, %1090 : vector<16x64xf32>
    %1092 = arith.mulf %1090, %1091 : vector<16x64xf32>
    %cst_377 = arith.constant 4.471500e-02 : f32
    %1093 = vector.broadcast %cst_377 : f32 to vector<16x64xf32>
    %1094 = arith.mulf %1093, %1092 : vector<16x64xf32>
    %1095 = arith.addf %1090, %1094 : vector<16x64xf32>
    %cst_378 = arith.constant 0.797884583 : f32
    %1096 = vector.broadcast %cst_378 : f32 to vector<16x64xf32>
    %1097 = arith.mulf %1096, %1095 : vector<16x64xf32>
    %1098 = math.tanh %1097 : vector<16x64xf32>
    %cst_379 = arith.constant 1.000000e+00 : f32
    %1099 = vector.broadcast %cst_379 : f32 to vector<16x64xf32>
    %1100 = arith.addf %1099, %1098 : vector<16x64xf32>
    %cst_380 = arith.constant 5.000000e-01 : f32
    %1101 = vector.broadcast %cst_380 : f32 to vector<16x64xf32>
    %1102 = arith.mulf %1101, %1100 : vector<16x64xf32>
    %1103 = arith.mulf %1090, %1102 : vector<16x64xf32>
    %1104 = vector.shape_cast %1103 : vector<16x64xf32> to vector<2x8x64xf32>
    %c0_381 = arith.constant 0 : index
    %c0_382 = arith.constant 0 : index
    %1105 = vector.load %arg59[%c0_381, %c0_382] : memref<64x32xf32, #tpu.memory_space<vmem>>, vector<64x32xf32>
    %c0_383 = arith.constant 0 : index
    %c0_384 = arith.constant 0 : index
    %1106 = vector.load %arg57[%c0_383, %c0_384] : memref<1x32xf32, #tpu.memory_space<vmem>>, vector<1x32xf32>
    %1107 = vector.shape_cast %1104 : vector<2x8x64xf32> to vector<16x64xf32>
    %cst_385 = arith.constant dense<0.000000e+00> : vector<16x32xf32>
    %1108 = tpu.matmul %1107, %1105, %cst_385 {dimension_numbers = #tpu.dot_dimension_numbers<[1], [0], [0], [1], [0, 0, 1, 1], [], []>} : vector<16x64xf32>, vector<64x32xf32>, vector<16x32xf32> -> vector<16x32xf32>
    %1109 = vector.broadcast %1106 : vector<1x32xf32> to vector<16x32xf32>
    %1110 = arith.addf %1108, %1109 : vector<16x32xf32>
    %1111 = vector.shape_cast %1110 : vector<16x32xf32> to vector<2x8x32xf32>
    %1112 = arith.addf %1084, %1111 : vector<2x8x32xf32>
    %c0_386 = arith.constant 0 : index
    %c0_387 = arith.constant 0 : index
    %1113 = vector.load %arg55[%c0_386, %c0_387] : memref<1x32xf32, #tpu.memory_space<vmem>>, vector<1x32xf32>
    %c0_388 = arith.constant 0 : index
    %c0_389 = arith.constant 0 : index
    %1114 = vector.load %arg54[%c0_388, %c0_389] : memref<1x32xf32, #tpu.memory_space<vmem>>, vector<1x32xf32>
    %cst_390 = arith.constant dense<0.000000e+00> : vector<2x8xf32>
    %1115 = vector.multi_reduction <add>, %1112, %cst_390 [2] : vector<2x8x32xf32> to vector<2x8xf32>
    %1116 = vector.shape_cast %1115 : vector<2x8xf32> to vector<2x8x1xf32>
    %cst_391 = arith.constant 3.200000e+01 : f32
    %1117 = vector.broadcast %cst_391 : f32 to vector<2x8x1xf32>
    %1118 = arith.divf %1116, %1117 : vector<2x8x1xf32>
    %1119 = vector.broadcast %1118 : vector<2x8x1xf32> to vector<2x8x32xf32>
    %1120 = arith.subf %1112, %1119 : vector<2x8x32xf32>
    %1121 = arith.mulf %1120, %1120 : vector<2x8x32xf32>
    %cst_392 = arith.constant dense<0.000000e+00> : vector<2x8xf32>
    %1122 = vector.multi_reduction <add>, %1121, %cst_392 [2] : vector<2x8x32xf32> to vector<2x8xf32>
    %1123 = vector.shape_cast %1122 : vector<2x8xf32> to vector<2x8x1xf32>
    %cst_393 = arith.constant 3.200000e+01 : f32
    %1124 = vector.broadcast %cst_393 : f32 to vector<2x8x1xf32>
    %1125 = arith.divf %1123, %1124 : vector<2x8x1xf32>
    %1126 = vector.broadcast %1118 : vector<2x8x1xf32> to vector<2x8x32xf32>
    %1127 = arith.subf %1112, %1126 : vector<2x8x32xf32>
    %cst_394 = arith.constant 9.99999974E-6 : f32
    %1128 = vector.broadcast %cst_394 : f32 to vector<2x8x1xf32>
    %1129 = arith.addf %1125, %1128 : vector<2x8x1xf32>
    %1130 = math.rsqrt %1129 : vector<2x8x1xf32>
    %1131 = vector.broadcast %1130 : vector<2x8x1xf32> to vector<2x8x32xf32>
    %1132 = arith.mulf %1127, %1131 : vector<2x8x32xf32>
    %1133 = vector.shape_cast %1113 : vector<1x32xf32> to vector<1x1x32xf32>
    %1134 = vector.broadcast %1133 : vector<1x1x32xf32> to vector<2x8x32xf32>
    %1135 = arith.mulf %1132, %1134 : vector<2x8x32xf32>
    %1136 = vector.shape_cast %1114 : vector<1x32xf32> to vector<1x1x32xf32>
    %1137 = vector.broadcast %1136 : vector<1x1x32xf32> to vector<2x8x32xf32>
    %1138 = arith.addf %1135, %1137 : vector<2x8x32xf32>
    %c0_395 = arith.constant 0 : index
    %c0_396 = arith.constant 0 : index
    %1139 = vector.load %arg11[%c0_395, %c0_396] : memref<32x32xf32, #tpu.memory_space<vmem>>, vector<32x32xf32>
    %c0_397 = arith.constant 0 : index
    %c0_398 = arith.constant 0 : index
    %1140 = vector.load %arg8[%c0_397, %c0_398] : memref<1x32xf32, #tpu.memory_space<vmem>>, vector<1x32xf32>
    %1141 = vector.shape_cast %1138 : vector<2x8x32xf32> to vector<16x32xf32>
    %cst_399 = arith.constant dense<0.000000e+00> : vector<16x32xf32>
    %1142 = tpu.matmul %1141, %1139, %cst_399 {dimension_numbers = #tpu.dot_dimension_numbers<[1], [0], [0], [1], [0, 0, 1, 1], [], []>} : vector<16x32xf32>, vector<32x32xf32>, vector<16x32xf32> -> vector<16x32xf32>
    %1143 = vector.broadcast %1140 : vector<1x32xf32> to vector<16x32xf32>
    %1144 = arith.addf %1142, %1143 : vector<16x32xf32>
    %1145 = arith.mulf %1144, %1144 : vector<16x32xf32>
    %1146 = arith.mulf %1144, %1145 : vector<16x32xf32>
    %cst_400 = arith.constant 4.471500e-02 : f32
    %1147 = vector.broadcast %cst_400 : f32 to vector<16x32xf32>
    %1148 = arith.mulf %1147, %1146 : vector<16x32xf32>
    %1149 = arith.addf %1144, %1148 : vector<16x32xf32>
    %cst_401 = arith.constant 0.797884583 : f32
    %1150 = vector.broadcast %cst_401 : f32 to vector<16x32xf32>
    %1151 = arith.mulf %1150, %1149 : vector<16x32xf32>
    %1152 = math.tanh %1151 : vector<16x32xf32>
    %cst_402 = arith.constant 1.000000e+00 : f32
    %1153 = vector.broadcast %cst_402 : f32 to vector<16x32xf32>
    %1154 = arith.addf %1153, %1152 : vector<16x32xf32>
    %cst_403 = arith.constant 5.000000e-01 : f32
    %1155 = vector.broadcast %cst_403 : f32 to vector<16x32xf32>
    %1156 = arith.mulf %1155, %1154 : vector<16x32xf32>
    %1157 = arith.mulf %1144, %1156 : vector<16x32xf32>
    %1158 = vector.shape_cast %1157 : vector<16x32xf32> to vector<2x8x32xf32>
    %c0_404 = arith.constant 0 : index
    %c0_405 = arith.constant 0 : index
    %1159 = vector.load %arg12[%c0_404, %c0_405] : memref<32x32xf32, #tpu.memory_space<vmem>>, vector<32x32xf32>
    %c0_406 = arith.constant 0 : index
    %c0_407 = arith.constant 0 : index
    %1160 = vector.load %arg9[%c0_406, %c0_407] : memref<1x32xf32, #tpu.memory_space<vmem>>, vector<1x32xf32>
    %1161 = vector.shape_cast %1158 : vector<2x8x32xf32> to vector<16x32xf32>
    %cst_408 = arith.constant dense<0.000000e+00> : vector<16x32xf32>
    %1162 = tpu.matmul %1161, %1159, %cst_408 {dimension_numbers = #tpu.dot_dimension_numbers<[1], [0], [0], [1], [0, 0, 1, 1], [], []>} : vector<16x32xf32>, vector<32x32xf32>, vector<16x32xf32> -> vector<16x32xf32>
    %1163 = vector.broadcast %1160 : vector<1x32xf32> to vector<16x32xf32>
    %1164 = arith.addf %1162, %1163 : vector<16x32xf32>
    %1165 = vector.shape_cast %1164 : vector<16x32xf32> to vector<2x8x32xf32>
    %1166 = arith.addf %1138, %1165 : vector<2x8x32xf32>
    %c0_409 = arith.constant 0 : index
    %c0_410 = arith.constant 0 : index
    %1167 = vector.load %arg10[%c0_409, %c0_410] : memref<1x32xf32, #tpu.memory_space<vmem>>, vector<1x32xf32>
    %c0_411 = arith.constant 0 : index
    %c0_412 = arith.constant 0 : index
    %1168 = vector.load %arg7[%c0_411, %c0_412] : memref<1x32xf32, #tpu.memory_space<vmem>>, vector<1x32xf32>
    %cst_413 = arith.constant dense<0.000000e+00> : vector<2x8xf32>
    %1169 = vector.multi_reduction <add>, %1166, %cst_413 [2] : vector<2x8x32xf32> to vector<2x8xf32>
    %1170 = vector.shape_cast %1169 : vector<2x8xf32> to vector<2x8x1xf32>
    %cst_414 = arith.constant 3.200000e+01 : f32
    %1171 = vector.broadcast %cst_414 : f32 to vector<2x8x1xf32>
    %1172 = arith.divf %1170, %1171 : vector<2x8x1xf32>
    %1173 = vector.broadcast %1172 : vector<2x8x1xf32> to vector<2x8x32xf32>
    %1174 = arith.subf %1166, %1173 : vector<2x8x32xf32>
    %1175 = arith.mulf %1174, %1174 : vector<2x8x32xf32>
    %cst_415 = arith.constant dense<0.000000e+00> : vector<2x8xf32>
    %1176 = vector.multi_reduction <add>, %1175, %cst_415 [2] : vector<2x8x32xf32> to vector<2x8xf32>
    %1177 = vector.shape_cast %1176 : vector<2x8xf32> to vector<2x8x1xf32>
    %cst_416 = arith.constant 3.200000e+01 : f32
    %1178 = vector.broadcast %cst_416 : f32 to vector<2x8x1xf32>
    %1179 = arith.divf %1177, %1178 : vector<2x8x1xf32>
    %1180 = vector.broadcast %1172 : vector<2x8x1xf32> to vector<2x8x32xf32>
    %1181 = arith.subf %1166, %1180 : vector<2x8x32xf32>
    %cst_417 = arith.constant 9.99999974E-6 : f32
    %1182 = vector.broadcast %cst_417 : f32 to vector<2x8x1xf32>
    %1183 = arith.addf %1179, %1182 : vector<2x8x1xf32>
    %1184 = math.rsqrt %1183 : vector<2x8x1xf32>
    %1185 = vector.broadcast %1184 : vector<2x8x1xf32> to vector<2x8x32xf32>
    %1186 = arith.mulf %1181, %1185 : vector<2x8x32xf32>
    %1187 = vector.shape_cast %1167 : vector<1x32xf32> to vector<1x1x32xf32>
    %1188 = vector.broadcast %1187 : vector<1x1x32xf32> to vector<2x8x32xf32>
    %1189 = arith.mulf %1186, %1188 : vector<2x8x32xf32>
    %1190 = vector.shape_cast %1168 : vector<1x32xf32> to vector<1x1x32xf32>
    %1191 = vector.broadcast %1190 : vector<1x1x32xf32> to vector<2x8x32xf32>
    %1192 = arith.addf %1189, %1191 : vector<2x8x32xf32>
    %c0_418 = arith.constant 0 : index
    %c0_419 = arith.constant 0 : index
    %1193 = vector.load %arg17[%c0_418, %c0_419] : memref<32x32xf32, #tpu.memory_space<vmem>>, vector<32x32xf32>
    %c0_420 = arith.constant 0 : index
    %c0_421 = arith.constant 0 : index
    %1194 = vector.load %arg14[%c0_420, %c0_421] : memref<1x32xf32, #tpu.memory_space<vmem>>, vector<1x32xf32>
    %1195 = vector.shape_cast %1192 : vector<2x8x32xf32> to vector<16x32xf32>
    %cst_422 = arith.constant dense<0.000000e+00> : vector<16x32xf32>
    %1196 = tpu.matmul %1195, %1193, %cst_422 {dimension_numbers = #tpu.dot_dimension_numbers<[1], [0], [0], [1], [0, 0, 1, 1], [], []>} : vector<16x32xf32>, vector<32x32xf32>, vector<16x32xf32> -> vector<16x32xf32>
    %1197 = vector.broadcast %1194 : vector<1x32xf32> to vector<16x32xf32>
    %1198 = arith.addf %1196, %1197 : vector<16x32xf32>
    %1199 = arith.mulf %1198, %1198 : vector<16x32xf32>
    %1200 = arith.mulf %1198, %1199 : vector<16x32xf32>
    %cst_423 = arith.constant 4.471500e-02 : f32
    %1201 = vector.broadcast %cst_423 : f32 to vector<16x32xf32>
    %1202 = arith.mulf %1201, %1200 : vector<16x32xf32>
    %1203 = arith.addf %1198, %1202 : vector<16x32xf32>
    %cst_424 = arith.constant 0.797884583 : f32
    %1204 = vector.broadcast %cst_424 : f32 to vector<16x32xf32>
    %1205 = arith.mulf %1204, %1203 : vector<16x32xf32>
    %1206 = math.tanh %1205 : vector<16x32xf32>
    %cst_425 = arith.constant 1.000000e+00 : f32
    %1207 = vector.broadcast %cst_425 : f32 to vector<16x32xf32>
    %1208 = arith.addf %1207, %1206 : vector<16x32xf32>
    %cst_426 = arith.constant 5.000000e-01 : f32
    %1209 = vector.broadcast %cst_426 : f32 to vector<16x32xf32>
    %1210 = arith.mulf %1209, %1208 : vector<16x32xf32>
    %1211 = arith.mulf %1198, %1210 : vector<16x32xf32>
    %1212 = vector.shape_cast %1211 : vector<16x32xf32> to vector<2x8x32xf32>
    %c0_427 = arith.constant 0 : index
    %c0_428 = arith.constant 0 : index
    %1213 = vector.load %arg18[%c0_427, %c0_428] : memref<32x32xf32, #tpu.memory_space<vmem>>, vector<32x32xf32>
    %c0_429 = arith.constant 0 : index
    %c0_430 = arith.constant 0 : index
    %1214 = vector.load %arg15[%c0_429, %c0_430] : memref<1x32xf32, #tpu.memory_space<vmem>>, vector<1x32xf32>
    %1215 = vector.shape_cast %1212 : vector<2x8x32xf32> to vector<16x32xf32>
    %cst_431 = arith.constant dense<0.000000e+00> : vector<16x32xf32>
    %1216 = tpu.matmul %1215, %1213, %cst_431 {dimension_numbers = #tpu.dot_dimension_numbers<[1], [0], [0], [1], [0, 0, 1, 1], [], []>} : vector<16x32xf32>, vector<32x32xf32>, vector<16x32xf32> -> vector<16x32xf32>
    %1217 = vector.broadcast %1214 : vector<1x32xf32> to vector<16x32xf32>
    %1218 = arith.addf %1216, %1217 : vector<16x32xf32>
    %1219 = vector.shape_cast %1218 : vector<16x32xf32> to vector<2x8x32xf32>
    %1220 = arith.addf %1192, %1219 : vector<2x8x32xf32>
    %c0_432 = arith.constant 0 : index
    %c0_433 = arith.constant 0 : index
    %1221 = vector.load %arg16[%c0_432, %c0_433] : memref<1x32xf32, #tpu.memory_space<vmem>>, vector<1x32xf32>
    %c0_434 = arith.constant 0 : index
    %c0_435 = arith.constant 0 : index
    %1222 = vector.load %arg13[%c0_434, %c0_435] : memref<1x32xf32, #tpu.memory_space<vmem>>, vector<1x32xf32>
    %cst_436 = arith.constant dense<0.000000e+00> : vector<2x8xf32>
    %1223 = vector.multi_reduction <add>, %1220, %cst_436 [2] : vector<2x8x32xf32> to vector<2x8xf32>
    %1224 = vector.shape_cast %1223 : vector<2x8xf32> to vector<2x8x1xf32>
    %cst_437 = arith.constant 3.200000e+01 : f32
    %1225 = vector.broadcast %cst_437 : f32 to vector<2x8x1xf32>
    %1226 = arith.divf %1224, %1225 : vector<2x8x1xf32>
    %1227 = vector.broadcast %1226 : vector<2x8x1xf32> to vector<2x8x32xf32>
    %1228 = arith.subf %1220, %1227 : vector<2x8x32xf32>
    %1229 = arith.mulf %1228, %1228 : vector<2x8x32xf32>
    %cst_438 = arith.constant dense<0.000000e+00> : vector<2x8xf32>
    %1230 = vector.multi_reduction <add>, %1229, %cst_438 [2] : vector<2x8x32xf32> to vector<2x8xf32>
    %1231 = vector.shape_cast %1230 : vector<2x8xf32> to vector<2x8x1xf32>
    %cst_439 = arith.constant 3.200000e+01 : f32
    %1232 = vector.broadcast %cst_439 : f32 to vector<2x8x1xf32>
    %1233 = arith.divf %1231, %1232 : vector<2x8x1xf32>
    %1234 = vector.broadcast %1226 : vector<2x8x1xf32> to vector<2x8x32xf32>
    %1235 = arith.subf %1220, %1234 : vector<2x8x32xf32>
    %cst_440 = arith.constant 9.99999974E-6 : f32
    %1236 = vector.broadcast %cst_440 : f32 to vector<2x8x1xf32>
    %1237 = arith.addf %1233, %1236 : vector<2x8x1xf32>
    %1238 = math.rsqrt %1237 : vector<2x8x1xf32>
    %1239 = vector.broadcast %1238 : vector<2x8x1xf32> to vector<2x8x32xf32>
    %1240 = arith.mulf %1235, %1239 : vector<2x8x32xf32>
    %1241 = vector.shape_cast %1221 : vector<1x32xf32> to vector<1x1x32xf32>
    %1242 = vector.broadcast %1241 : vector<1x1x32xf32> to vector<2x8x32xf32>
    %1243 = arith.mulf %1240, %1242 : vector<2x8x32xf32>
    %1244 = vector.shape_cast %1222 : vector<1x32xf32> to vector<1x1x32xf32>
    %1245 = vector.broadcast %1244 : vector<1x1x32xf32> to vector<2x8x32xf32>
    %1246 = arith.addf %1243, %1245 : vector<2x8x32xf32>
    %c0_441 = arith.constant 0 : index
    %c0_442 = arith.constant 0 : index
    %c0_443 = arith.constant 0 : index
    %1247 = vector.load %arg85[%c0_441, %c0_442, %c0_443] : memref<2x8x32xf32, #tpu.memory_space<vmem>>, vector<2x8x32xf32>
    tpu.vector_store %arg85[%c0_441, %c0_442, %c0_443], %1246 {strides = array<i32>} : memref<2x8x32xf32, #tpu.memory_space<vmem>>, vector<2x8x32xf32>,
    return
  }
}

</mosaic_0001>

<bundles_post_ra>
// kernel: keypoint_module_forward.1
= control target key start
LH: loop header
LB: loop body
LE: loop exit
PB: predicated region body
PF: predicated region fallthrough
CT: control target
= control target key end

     0   :  { %s17564_s6 = smov 1   ;;  %s17565_s10 = smov 2   ;;  %s19750_s0 = inlined_call_operand.smem [shape: u32[86], index: -1, kind: input, shape index: {}] }
   0x1   :  { %s17733_s5 = sld [smem:[%s19750_s0]]   ;;  %s17566_s14 = smov 3  }
   0x2   :  { %s17738_s9 = sld [smem:[%s19750_s0 + %s17564_s6]]   ;;  %s17567_s18 = smov 4  }
   0x3   :  { %s17743_s13 = sld [smem:[%s19750_s0 + %s17565_s10]]   ;;  %s17568_s22 = smov 5  }
   0x4   :  { %s17748_s17 = sld [smem:[%s19750_s0 + %s17566_s14]]   ;;  %s17569_s26 = smov 6  }
   0x5   :  { %s17753_s21 = sld [smem:[%s19750_s0 + %s17567_s18]]   ;;  %s17570_s30 = smov 7  }
   0x6   :  { %s17758_s25 = sld [smem:[%s19750_s0 + %s17568_s22]]   ;;  %s17571_s4 = smov 8  }
   0x7   :  { %19818 = sst [smem:[#allocation120_spill]] %s17733_s5  ;;  %s17572_s10 = smov 9  }
   0x8   :  { %19819 = sst [smem:[#allocation121_spill]] %s17738_s9  ;;  %s17573_s15 = smov 10  }
   0x9   :  { %19820 = sst [smem:[#allocation122_spill]] %s17743_s13  ;;  %s17574_s20 = smov 11  }
   0xa   :  { %s17763_s29 = sld [smem:[%s19750_s0 + %s17569_s26]]   ;;  %s17575_s26 = smov 12  }
   0xb   :  { %19821 = sst [smem:[#allocation123_spill]] %s17753_s21  ;;  %s17576_s1 = smov 13  }
   0xc   :  { %s17768_s3 = sld [smem:[%s19750_s0 + %s17570_s30]]   ;;  %s17577_s7 = smov 14  }
   0xd   :  { %s17773_s8 = sld [smem:[%s19750_s0 + %s17571_s4]]   ;;  %s17579_s22 = smov 16  }
   0xe   :  { %s17778_s14 = sld [smem:[%s19750_s0 + %s17572_s10]]   ;;  %s17580_s28 = smov 17  }
   0xf   :  { %s17783_s19 = sld [smem:[%s19750_s0 + %s17573_s15]]   ;;  %s17578_s15 = smov 15  }
  0x10   :  { %19822 = sst [smem:[#allocation124_spill]] %s17763_s29 }
  0x11   :  { %s17788_s24 = sld [smem:[%s19750_s0 + %s17574_s20]]  }
  0x12   :  { %s17793_s30 = sld [smem:[%s19750_s0 + %s17575_s26]]  }
  0x13   :  { %19823 = sst [smem:[#allocation125_spill]] %s17773_s8 }
  0x14   :  { %s17798_s6 = sld [smem:[%s19750_s0 + %s17576_s1]]  }
  0x15   :  { %19824 = sst [smem:[#allocation126_spill]] %s17783_s19 }
  0x16   :  { %s17803_s12 = sld [smem:[%s19750_s0 + %s17577_s7]]   ;;  %s17581_s7 = smov 18  }
  0x17   :  { %19825 = sst [smem:[#allocation127_spill]] %s17788_s24 }
  0x18   :  { %19826 = sst [smem:[#allocation128_spill]] %s17793_s30 }
  0x19   :  { %s17808_s20 = sld [smem:[%s19750_s0 + %s17578_s15]]   ;;  %s17582_s15 = smov 19  }
  0x1a   :  { %s17813_s27 = sld [smem:[%s19750_s0 + %s17579_s22]]   ;;  %s17583_s22 = smov 20  }
  0x1b   :  { %s17818_s4 = sld [smem:[%s19750_s0 + %s17580_s28]]   ;;  %s17584_s28 = smov 21  }
  0x1c   :  { %19827 = sst [smem:[#allocation129_spill]] %s17803_s12 }
  0x1d   :  { %s17823_s30 = sld [smem:[%s19750_s0 + %s17581_s7]]   ;;  %s17585_s7 = smov 22  }
  0x1e   :  { %s17828_s24 = sld [smem:[%s19750_s0 + %s17582_s15]]   ;;  %s17586_s15 = smov 23  }
  0x1f   :  { %s17833_s9 = sld [smem:[%s19750_s0 + %s17583_s22]]   ;;  %s17587_s22 = smov 24  }
  0x20   :  { %19828 = sst [smem:[#allocation130_spill]] %s17813_s27 }
  0x21   :  { %19829 = sst [smem:[#allocation131_spill]] %s17818_s4 }
  0x22   :  { %s17838_s4 = sld [smem:[%s19750_s0 + %s17584_s28]]   ;;  %s17588_s28 = smov 25  }
  0x23   :  { %19830 = sst [smem:[#allocation132_spill]] %s17823_s30 }
  0x24   :  { %s17843_s30 = sld [smem:[%s19750_s0 + %s17585_s7]]   ;;  %s17589_s7 = smov 26  }
  0x25   :  { %19831 = sst [smem:[#allocation133_spill]] %s17833_s9 }
  0x26   :  { %s17848_s5 = sld [smem:[%s19750_s0 + %s17586_s15]]   ;;  %s17590_s15 = smov 27  }
  0x27   :  { %s17853_s9 = sld [smem:[%s19750_s0 + %s17587_s22]]   ;;  %s17591_s22 = smov 28  }
  0x28   :  { %19832 = sst [smem:[#allocation134_spill]] %s17838_s4 }
  0x29   :  { %s17858_s4 = sld [smem:[%s19750_s0 + %s17588_s28]]   ;;  %s17592_s28 = smov 29  }
  0x2a   :  { %19833 = sst [smem:[#allocation135_spill]] %s17843_s30 }
  0x2b   :  { %s17863_s30 = sld [smem:[%s19750_s0 + %s17589_s7]]   ;;  %s17593_s7 = smov 30  }
  0x2c   :  { %s17868_s27 = sld [smem:[%s19750_s0 + %s17590_s15]]   ;;  %s17594_s15 = smov 31  }
  0x2d   :  { %19834 = sst [smem:[#allocation136_spill]] %s17853_s9 }
  0x2e   :  { %s17873_s9 = sld [smem:[%s19750_s0 + %s17591_s22]]   ;;  %s17595_s22 = smov 32  }
  0x2f   :  { %s17878_s12 = sld [smem:[%s19750_s0 + %s17592_s28]]   ;;  %s17596_s28 = smov 33  }
  0x30   :  { %s17898_s19 = sld [smem:[%s19750_s0 + %s17596_s28]]   ;;  %s17600_s28 = smov 37  }
  0x31   :  { %19835 = sst [smem:[#allocation137_spill]] %s17863_s30 }
  0x32   :  { %19836 = sst [smem:[#allocation138_spill]] %s17868_s27 }
  0x33   :  { %s17883_s30 = sld [smem:[%s19750_s0 + %s17593_s7]]   ;;  %s17597_s7 = smov 34  }
  0x34   :  { %19837 = sst [smem:[#allocation139_spill]] %s17873_s9 }
  0x35   :  { %s17888_s27 = sld [smem:[%s19750_s0 + %s17594_s15]]   ;;  %s17598_s15 = smov 35  }
  0x36   :  { %s17893_s9 = sld [smem:[%s19750_s0 + %s17595_s22]]   ;;  %s17599_s22 = smov 36  }
  0x37   :  { %s17908_s8 = sld [smem:[%s19750_s0 + %s17598_s15]]   ;;  %s17602_s15 = smov 39  }
  0x38   :  { %s17918_s29 = sld [smem:[%s19750_s0 + %s17600_s28]]   ;;  %s17604_s28 = smov 41  }
  0x39   :  { %19838 = sst [smem:[#allocation140_spill]] %s17883_s30 }
  0x3a   :  { %s17903_s30 = sld [smem:[%s19750_s0 + %s17597_s7]]   ;;  %s17601_s7 = smov 38  }
  0x3b   :  { %s17928_s21 = sld [smem:[%s19750_s0 + %s17602_s15]]   ;;  %s17606_s15 = smov 43  }
  0x3c   :  { %19839 = sst [smem:[#allocation141_spill]] %s17893_s9 }
  0x3d   :  { %s17913_s9 = sld [smem:[%s19750_s0 + %s17599_s22]]   ;;  %s17603_s22 = smov 40  }
  0x3e   :  { %s17938_s13 = sld [smem:[%s19750_s0 + %s17604_s28]]   ;;  %s17608_s28 = smov 45  }
  0x40   :  { %19840 = sst [smem:[#allocation142_spill]] %s17903_s30 }
  0x41   :  { %s17923_s30 = sld [smem:[%s19750_s0 + %s17601_s7]]   ;;  %s17605_s7 = smov 42  }
  0x42   :  { %19843 = sst [smem:[#allocation145_spill]] %s17928_s21 }
  0x43   :  { %19841 = sst [smem:[#allocation143_spill]] %s17913_s9 }
  0x44   :  { %s17933_s9 = sld [smem:[%s19750_s0 + %s17603_s22]]   ;;  %s17607_s22 = smov 44  }
  0x45   :  { %19845 = sst [smem:[#allocation147_spill]] %s17938_s13 }
  0x46   :  { %s17948_s21 = sld [smem:[%s19750_s0 + %s17606_s15]]   ;;  %s17610_s15 = smov 47  }
  0x47   :  { %19842 = sst [smem:[#allocation144_spill]] %s17923_s30 }
  0x48   :  { %s17943_s30 = sld [smem:[%s19750_s0 + %s17605_s7]]   ;;  %s17609_s7 = smov 46  }
  0x49   :  { %s17958_s13 = sld [smem:[%s19750_s0 + %s17608_s28]]   ;;  %s17612_s28 = smov 49  }
  0x4a   :  { %19844 = sst [smem:[#allocation146_spill]] %s17933_s9 }
  0x4b   :  { %s17953_s9 = sld [smem:[%s19750_s0 + %s17607_s22]]   ;;  %s17611_s22 = smov 48  }
  0x4c   :  { %19847 = sst [smem:[#allocation149_spill]] %s17948_s21 }
  0x4d   :  { %s17968_s21 = sld [smem:[%s19750_s0 + %s17610_s15]]   ;;  %s17614_s15 = smov 51  }
  0x4e   :  { %19846 = sst [smem:[#allocation148_spill]] %s17943_s30 }
  0x4f   :  { %19849 = sst [smem:[#allocation151_spill]] %s17958_s13 }
  0x50   :  { %s17963_s30 = sld [smem:[%s19750_s0 + %s17609_s7]]   ;;  %s17613_s7 = smov 50  }
  0x51   :  { %19848 = sst [smem:[#allocation150_spill]] %s17953_s9 }
  0x52   :  { %s17973_s9 = sld [smem:[%s19750_s0 + %s17611_s22]]   ;;  %s17615_s22 = smov 52  }
  0x53   :  { %19851 = sst [smem:[#allocation153_spill]] %s17968_s21 }
  0x54   :  { %s17978_s13 = sld [smem:[%s19750_s0 + %s17612_s28]]   ;;  %s17616_s28 = smov 53  }
  0x55   :  { %s17988_s21 = sld [smem:[%s19750_s0 + %s17614_s15]]   ;;  %s17618_s15 = smov 55  }
  0x56   :  { %19850 = sst [smem:[#allocation152_spill]] %s17963_s30 }
  0x57   :  { %s17983_s30 = sld [smem:[%s19750_s0 + %s17613_s7]]   ;;  %s17617_s7 = smov 54  }
  0x58   :  { %19852 = sst [smem:[#allocation154_spill]] %s17973_s9 }
  0x59   :  { %s17993_s9 = sld [smem:[%s19750_s0 + %s17615_s22]]   ;;  %s17619_s22 = smov 56  }
  0x5a   :  { %19853 = sst [smem:[#allocation155_spill]] %s17978_s13 }
  0x5b   :  { %19855 = sst [smem:[#allocation157_spill]] %s17988_s21 }
  0x5c   :  { %s17998_s13 = sld [smem:[%s19750_s0 + %s17616_s28]]   ;;  %s17620_s28 = smov 57  }
  0x5d   :  { %19854 = sst [smem:[#allocation156_spill]] %s17983_s30 }
  0x5e   :  { %s18003_s30 = sld [smem:[%s19750_s0 + %s17617_s7]]   ;;  %s17621_s7 = smov 58  }
  0x5f   :  { %19856 = sst [smem:[#allocation158_spill]] %s17993_s9 }
  0x60   :  { %s18008_s21 = sld [smem:[%s19750_s0 + %s17618_s15]]   ;;  %s17622_s15 = smov 59  }
  0x61   :  { %s18013_s9 = sld [smem:[%s19750_s0 + %s17619_s22]]   ;;  %s17623_s22 = smov 60  }
  0x62   :  { %19857 = sst [smem:[#allocation159_spill]] %s17998_s13 }
  0x63   :  { %s18018_s13 = sld [smem:[%s19750_s0 + %s17620_s28]]   ;;  %s17624_s28 = smov 61  }
  0x64   :  { %19858 = sst [smem:[#allocation160_spill]] %s18003_s30 }
  0x65   :  { %s18023_s30 = sld [smem:[%s19750_s0 + %s17621_s7]]   ;;  %s17625_s7 = smov 62  }
  0x66   :  { %19859 = sst [smem:[#allocation161_spill]] %s18008_s21 }
  0x67   :  { %19860 = sst [smem:[#allocation162_spill]] %s18013_s9 }
  0x68   :  { %s18028_s21 = sld [smem:[%s19750_s0 + %s17622_s15]]   ;;  %s17626_s15 = smov 63  }
  0x69   :  { %19861 = sst [smem:[#allocation163_spill]] %s18018_s13 }
  0x6a   :  { %s18033_s9 = sld [smem:[%s19750_s0 + %s17623_s22]]   ;;  %s17627_s22 = smov 64  }
  0x6b   :  { %19862 = sst [smem:[#allocation164_spill]] %s18023_s30 }
  0x6c   :  { %s18038_s13 = sld [smem:[%s19750_s0 + %s17624_s28]]   ;;  %s17628_s28 = smov 65  }
  0x6d   :  { %s18043_s30 = sld [smem:[%s19750_s0 + %s17625_s7]]   ;;  %s17629_s7 = smov 66  }
  0x6e   :  { %19863 = sst [smem:[#allocation165_spill]] %s18028_s21 }
  0x6f   :  { %s18048_s21 = sld [smem:[%s19750_s0 + %s17626_s15]]   ;;  %s17630_s15 = smov 67  }
  0x70   :  { %19864 = sst [smem:[#allocation166_spill]] %s18033_s9 }
  0x71   :  { %s18053_s9 = sld [smem:[%s19750_s0 + %s17627_s22]]   ;;  %s17631_s22 = smov 68  }
  0x72   :  { %19865 = sst [smem:[#allocation167_spill]] %s18038_s13 }
  0x73   :  { %19866 = sst [smem:[#allocation168_spill]] %s18043_s30 }
  0x74   :  { %s18058_s13 = sld [smem:[%s19750_s0 + %s17628_s28]]   ;;  %s17632_s28 = smov 69  }
  0x75   :  { %19867 = sst [smem:[#allocation169_spill]] %s18048_s21 }
  0x76   :  { %s18063_s30 = sld [smem:[%s19750_s0 + %s17629_s7]]   ;;  %s17633_s7 = smov 70  }
  0x77   :  { %19868 = sst [smem:[#allocation170_spill]] %s18053_s9 }
  0x78   :  { %s18068_s21 = sld [smem:[%s19750_s0 + %s17630_s15]]   ;;  %s17634_s15 = smov 71  }
  0x79   :  { %s18073_s9 = sld [smem:[%s19750_s0 + %s17631_s22]]   ;;  %s17635_s22 = smov 72  }
  0x7a   :  { %19869 = sst [smem:[#allocation171_spill]] %s18058_s13 }
  0x7b   :  { %s18078_s13 = sld [smem:[%s19750_s0 + %s17632_s28]]   ;;  %s17636_s28 = smov 73  }
  0x7c   :  { %19870 = sst [smem:[#allocation172_spill]] %s18063_s30 }
  0x7d   :  { %s18083_s30 = sld [smem:[%s19750_s0 + %s17633_s7]]   ;;  %s17637_s7 = smov 74  }
  0x7e   :  { %19871 = sst [smem:[#allocation173_spill]] %s18068_s21 }
  0x7f   :  { %19872 = sst [smem:[#allocation174_spill]] %s18073_s9 }
  0x80   :  { %s18088_s21 = sld [smem:[%s19750_s0 + %s17634_s15]]   ;;  %s17638_s15 = smov 75  }
  0x81   :  { %19873 = sst [smem:[#allocation175_spill]] %s18078_s13 }
  0x82   :  { %s18093_s9 = sld [smem:[%s19750_s0 + %s17635_s22]]   ;;  %s17639_s22 = smov 76  }
  0x83   :  { %19874 = sst [smem:[#allocation176_spill]] %s18083_s30 }
  0x84   :  { %s18098_s13 = sld [smem:[%s19750_s0 + %s17636_s28]]   ;;  %s17640_s28 = smov 77  }
  0x85   :  { %s18103_s30 = sld [smem:[%s19750_s0 + %s17637_s7]]   ;;  %s17641_s7 = smov 78  }
  0x86   :  { %19875 = sst [smem:[#allocation177_spill]] %s18088_s21 }
  0x87   :  { %s18108_s21 = sld [smem:[%s19750_s0 + %s17638_s15]]   ;;  %s17642_s15 = smov 79  }
  0x88   :  { %19876 = sst [smem:[#allocation178_spill]] %s18093_s9 }
  0x89   :  { %s18113_s9 = sld [smem:[%s19750_s0 + %s17639_s22]]   ;;  %s17643_s22 = smov 80  }
  0x8a   :  { %19877 = sst [smem:[#allocation179_spill]] %s18098_s13 }
  0x8b   :  { %19878 = sst [smem:[#allocation180_spill]] %s18103_s30 }
  0x8c   :  { %s18118_s13 = sld [smem:[%s19750_s0 + %s17640_s28]]   ;;  %s17644_s28 = smov 81  }
  0x8d   :  { %19879 = sst [smem:[#allocation181_spill]] %s18108_s21 }
  0x8e   :  { %s18123_s30 = sld [smem:[%s19750_s0 + %s17641_s7]]   ;;  %s17645_s7 = smov 82  }
  0x8f   :  { %19880 = sst [smem:[#allocation182_spill]] %s18113_s9 }
  0x90   :  { %s18128_s21 = sld [smem:[%s19750_s0 + %s17642_s15]]   ;;  %s17646_s15 = smov 83  }
  0x91   :  { %s18133_s9 = sld [smem:[%s19750_s0 + %s17643_s22]]   ;;  %s17647_s22 = smov 84  }
  0x92   :  { %19881 = sst [smem:[#allocation183_spill]] %s18118_s13 }
  0x93   :  { %s18138_s13 = sld [smem:[%s19750_s0 + %s17644_s28]]   ;;  %s17648_s28 = smov 85  }
  0x94   :  { %19882 = sst [smem:[#allocation184_spill]] %s18123_s30 }
  0x95   :  { %s18143_s30 = sld [smem:[%s19750_s0 + %s17645_s7]]  }
  0x96   :  { %19883 = sst [smem:[#allocation185_spill]] %s18128_s21 }
  0x97   :  { %19884 = sst [smem:[#allocation186_spill]] %s18133_s9 }
  0x98   :  { %s18148_s21 = sld [smem:[%s19750_s0 + %s17646_s15]]  }
  0x99   :  { %19885 = sst [smem:[#allocation187_spill]] %s18138_s13 }
  0x9a   :  { %s18153_s9 = sld [smem:[%s19750_s0 + %s17647_s22]]  }
  0x9b   :  { %s18158_s13 = sld [smem:[%s19750_s0 + %s17648_s28]]  }
  0x9c   :  { %176 = vsyncpa [#allocation3], 0 }
  0x9d   :  { %177 = vsyncpa [#allocation6], 0 }
  0x9e   :  { %178 = vsyncpa [#allocation9], 0 }
  0x9f   :  { %179 = vsyncpa [#allocation12], 0 }
  0xa0   :  { %180 = vsyncpa [#allocation15], 0 }
  0xa1   :  { %181 = vsyncpa [#allocation18], 0 }
  0xa2   :  { %182 = vsyncpa [#allocation21], 0 }
  0xa3   :  { %183 = vsyncpa [#allocation24], 0 }
  0xa4   :  { %184 = vsyncpa [#allocation27], 0 }
  0xa5   :  { %185 = vsyncpa [#allocation30], 0 }
  0xa6   :  { %186 = vsyncpa [#allocation33], 0 }
  0xa7   :  { %187 = vsyncpa [#allocation36], 0 }
  0xa8   :  { %188 = vsyncpa [#allocation39], 0 }
  0xa9   :  { %189 = vsyncpa [#allocation42], 0 }
  0xaa   :  { %190 = vsyncpa [#allocation45], 0 }
  0xab   :  { %191 = vsyncpa [#allocation48], 0 }
  0xac   :  { %192 = vsyncpa [#allocation51], 0 }
  0xad   :  { %193 = vsyncpa [#allocation54], 0 }
  0xae   :  { %194 = vsyncpa [#allocation57], 0 }
  0xaf   :  { %195 = vsyncpa [#allocation60], 0 }
  0xb0   :  { %196 = vsyncpa [#allocation63], 0 }
  0xb1   :  { %197 = vsyncpa [#allocation66], 0 }
  0xb2   :  { %198 = vsyncpa [#allocation69], 0 }
  0xb3   :  { %199 = vsyncpa [#allocation72], 0 }
  0xb4   :  { %200 = vsyncpa [#allocation75], 0 }
  0xb5   :  { %201 = vsyncpa [#allocation78], 0 }
  0xb6   :  { %202 = vsyncpa [#allocation81], 0 }
  0xb7   :  { %203 = vsyncpa [#allocation84], 0 }
  0xb8   :  { %204 = vsyncpa [#allocation87], 0 }
  0xb9   :  { %205 = vsyncpa [#allocation4], 0  ;;  %s17649_s0 = smov [#allocation5]   ;;  %s17650_s10 = smov [#allocation8]  }
  0xba   :  { %s226_s7 = sshll.u32 %s17649_s0, 4  ;;  %s246_s11 = sshll.u32 %s17650_s10, 4  ;;  %s227_s7 = int_to_ptr.vmem [resolvable:$true] %s226_s7  ;;  %s247_s11 = int_to_ptr.vmem [resolvable:$true] %s246_s11 }
  0xbb   :  { %s16228_s15 = scalar_lea.hbm %s17748_s17, 16 }
  0xbc   :  { %p16229_p0 = scmp.ne.s32.totalorder %s17748_s17, %s16228_s15  ;;  %p16232_p1 = scmp.lt.u32.totalorder %s16228_s15, %s17748_s17 }
  0xbe   :  { %p16234_p2 = pnand %p16232_p1, %p16229_p0 }
  0xc0   :  { %16237 = shalt.err (!%p16234_p2)
}
  0xc1   :  { %s16238_s16 = scalar_lea.vmem %s227_s7, 16  ;;  %s16242_s18 = scalar_lea.vmem %s227_s7, 32 }
  0xc2   :  { %p16239_p3 = scmp.ne.s32.totalorder %s227_s7, %s16238_s16  ;;  %p16243_p4 = scmp.lt.s32.totalorder %s227_s7, %s227_s7 }
  0xc3   :  { %p16244_p5 = scmp.lt.s32.totalorder %s16242_s18, %s16238_s16 }
  0xc5   :  { %p16245_p6 = por %p16244_p5, %p16243_p4 }
  0xc7   :  { %p16246_p7 = pnand %p16245_p6, %p16239_p3 }
  0xc9   :  { %16249 = shalt.err (!%p16246_p7)
}
  0xca   :  { %229 = dma.hbm_to_vmem [thread:$0]  %s17748_s17, 16, %s227_s7, [#allocation6]  }
  0xcb   :  { %s16250_s22 = scalar_lea.hbm %s17758_s25, 16 }
  0xcc   :  { %p16251_p8 = scmp.ne.s32.totalorder %s17758_s25, %s16250_s22  ;;  %p16254_p9 = scmp.lt.u32.totalorder %s16250_s22, %s17758_s25 }
  0xce   :  { %p16256_p10 = pnand %p16254_p9, %p16251_p8 }
  0xd0   :  { %16259 = shalt.err (!%p16256_p10)
}
  0xd1   :  { %s16260_s23 = scalar_lea.vmem %s247_s11, 16  ;;  %s16264_s26 = scalar_lea.vmem %s247_s11, 32 }
  0xd2   :  { %p16261_p11 = scmp.ne.s32.totalorder %s247_s11, %s16260_s23  ;;  %p16265_p12 = scmp.lt.s32.totalorder %s247_s11, %s247_s11 }
  0xd3   :  { %p16266_p13 = scmp.lt.s32.totalorder %s16264_s26, %s16260_s23 }
  0xd5   :  { %p16267_p0 = por %p16266_p13, %p16265_p12 }
  0xd7   :  { %p16268_p1 = pnand %p16267_p0, %p16261_p11 }
  0xd9   :  { %16271 = shalt.err (!%p16268_p1)
}
  0xda   :  { %249 = dma.hbm_to_vmem [thread:$0]  %s17758_s25, 16, %s247_s11, [#allocation9]  }
  0xdb   :  { %s17651_s28 = smov [#allocation11]   ;;  %s17652_s1 = smov [#allocation14]  }
  0xdc   :  { %s266_s17 = sshll.u32 %s17651_s28, 4  ;;  %s286_s2 = sshll.u32 %s17652_s1, 4  ;;  %s267_s17 = int_to_ptr.vmem [resolvable:$true] %s266_s17  ;;  %s287_s2 = int_to_ptr.vmem [resolvable:$true] %s286_s2 }
  0xdd   :  { %s16272_s0 = scalar_lea.hbm %s17768_s3, 16 }
  0xde   :  { %p16273_p2 = scmp.ne.s32.totalorder %s17768_s3, %s16272_s0  ;;  %p16276_p3 = scmp.lt.u32.totalorder %s16272_s0, %s17768_s3 }
  0xe0   :  { %p16278_p4 = pnand %p16276_p3, %p16273_p2 }
  0xe2   :  { %16281 = shalt.err (!%p16278_p4)
}
  0xe3   :  { %s16282_s7 = scalar_lea.vmem %s267_s17, 16  ;;  %s16286_s10 = scalar_lea.vmem %s267_s17, 32 }
  0xe4   :  { %p16283_p5 = scmp.ne.s32.totalorder %s267_s17, %s16282_s7  ;;  %p16287_p6 = scmp.lt.s32.totalorder %s267_s17, %s267_s17 }
  0xe5   :  { %p16288_p7 = scmp.lt.s32.totalorder %s16286_s10, %s16282_s7 }
  0xe7   :  { %p16289_p8 = por %p16288_p7, %p16287_p6 }
  0xe9   :  { %p16290_p9 = pnand %p16289_p8, %p16283_p5 }
  0xeb   :  { %16293 = shalt.err (!%p16290_p9)
}
  0xec   :  { %269 = dma.hbm_to_vmem [thread:$0]  %s17768_s3, 16, %s267_s17, [#allocation12]  }
  0xed   :  { %s16294_s25 = scalar_lea.hbm %s17778_s14, 16 }
  0xee   :  { %p16295_p10 = scmp.ne.s32.totalorder %s17778_s14, %s16294_s25  ;;  %p16298_p11 = scmp.lt.u32.totalorder %s16294_s25, %s17778_s14 }
  0xf0   :  { %p16300_p12 = pnand %p16298_p11, %p16295_p10 }
  0xf2   :  { %16303 = shalt.err (!%p16300_p12)
}
  0xf3   :  { %s16304_s11 = scalar_lea.vmem %s287_s2, 16  ;;  %s16308_s15 = scalar_lea.vmem %s287_s2, 32 }
  0xf4   :  { %p16305_p13 = scmp.ne.s32.totalorder %s287_s2, %s16304_s11  ;;  %p16309_p0 = scmp.lt.s32.totalorder %s287_s2, %s287_s2 }
  0xf5   :  { %p16310_p1 = scmp.lt.s32.totalorder %s16308_s15, %s16304_s11 }
  0xf7   :  { %p16311_p2 = por %p16310_p1, %p16309_p0 }
  0xf9   :  { %p16312_p3 = pnand %p16311_p2, %p16305_p13 }
  0xfb   :  { %16315 = shalt.err (!%p16312_p3)
}
  0xfc   :  { %289 = dma.hbm_to_vmem [thread:$0]  %s17778_s14, 16, %s287_s2, [#allocation15]  }
  0xfd   :  { %s17653_s16 = smov [#allocation17]   ;;  %s17654_s18 = smov [#allocation20]  }
  0xfe   :  { %s310_s3 = sshll.u32 %s17653_s16, 4  ;;  %s330_s22 = sshll.u32 %s17654_s18, 4  ;;  %s311_s3 = int_to_ptr.vmem [resolvable:$true] %s310_s3  ;;  %s331_s22 = int_to_ptr.vmem [resolvable:$true] %s330_s22 }
  0xff   :  { %s16316_s23 = scalar_lea.hbm %s17798_s6, 16 }
 0x100   :  { %p16317_p4 = scmp.ne.s32.totalorder %s17798_s6, %s16316_s23  ;;  %p16320_p5 = scmp.lt.u32.totalorder %s16316_s23, %s17798_s6 }
 0x102   :  { %p16322_p6 = pnand %p16320_p5, %p16317_p4 }
 0x104   :  { %16325 = shalt.err (!%p16322_p6)
}
 0x105   :  { %s16326_s26 = scalar_lea.vmem %s311_s3, 16  ;;  %s16330_s28 = scalar_lea.vmem %s311_s3, 32 }
 0x106   :  { %p16327_p7 = scmp.ne.s32.totalorder %s311_s3, %s16326_s26  ;;  %p16331_p8 = scmp.lt.s32.totalorder %s311_s3, %s311_s3 }
 0x107   :  { %p16332_p9 = scmp.lt.s32.totalorder %s16330_s28, %s16326_s26 }
 0x109   :  { %p16333_p10 = por %p16332_p9, %p16331_p8 }
 0x10b   :  { %p16334_p11 = pnand %p16333_p10, %p16327_p7 }
 0x10d   :  { %16337 = shalt.err (!%p16334_p11)
}
 0x10e   :  { %313 = dma.hbm_to_vmem [thread:$0]  %s17798_s6, 16, %s311_s3, [#allocation18]  }
 0x10f   :  { %s16338_s14 = scalar_lea.hbm %s17808_s20, 16 }
 0x110   :  { %p16339_p12 = scmp.ne.s32.totalorder %s17808_s20, %s16338_s14  ;;  %p16342_p13 = scmp.lt.u32.totalorder %s16338_s14, %s17808_s20 }
 0x112   :  { %p16344_p0 = pnand %p16342_p13, %p16339_p12 }
 0x114   :  { %16347 = shalt.err (!%p16344_p0)
}
 0x115   :  { %s16348_s17 = scalar_lea.vmem %s331_s22, 16  ;;  %s16352_s1 = scalar_lea.vmem %s331_s22, 32 }
 0x116   :  { %p16349_p1 = scmp.ne.s32.totalorder %s331_s22, %s16348_s17  ;;  %p16353_p2 = scmp.lt.s32.totalorder %s331_s22, %s331_s22 }
 0x117   :  { %p16354_p3 = scmp.lt.s32.totalorder %s16352_s1, %s16348_s17 }
 0x119   :  { %p16355_p4 = por %p16354_p3, %p16353_p2 }
 0x11b   :  { %p16356_p5 = pnand %p16355_p4, %p16349_p1 }
 0x11d   :  { %16359 = shalt.err (!%p16356_p5)
}
 0x11e   :  { %333 = dma.hbm_to_vmem [thread:$0]  %s17808_s20, 16, %s331_s22, [#allocation21]  }
 0x11f   :  { %s17655_s2 = smov [#allocation23]   ;;  %s17656_s0 = smov [#allocation26]  }
 0x120   :  { %s354_s6 = sshll.u32 %s17655_s2, 4  ;;  %s378_s7 = sshll.u32 %s17656_s0, 4  ;;  %s355_s6 = int_to_ptr.vmem [resolvable:$true] %s354_s6  ;;  %s379_s7 = int_to_ptr.vmem [resolvable:$true] %s378_s7 }
 0x121   :  { %s16360_s10 = scalar_lea.hbm %s17828_s24, 16 }
 0x122   :  { %p16361_p6 = scmp.ne.s32.totalorder %s17828_s24, %s16360_s10  ;;  %p16364_p7 = scmp.lt.u32.totalorder %s16360_s10, %s17828_s24 }
 0x124   :  { %p16366_p8 = pnand %p16364_p7, %p16361_p6 }
 0x126   :  { %16369 = shalt.err (!%p16366_p8)
}
 0x127   :  { %s16370_s25 = scalar_lea.vmem %s355_s6, 16  ;;  %s16374_s11 = scalar_lea.vmem %s355_s6, 32 }
 0x128   :  { %p16371_p9 = scmp.ne.s32.totalorder %s355_s6, %s16370_s25  ;;  %p16375_p10 = scmp.lt.s32.totalorder %s355_s6, %s355_s6 }
 0x129   :  { %p16376_p11 = scmp.lt.s32.totalorder %s16374_s11, %s16370_s25 }
 0x12b   :  { %p16377_p12 = por %p16376_p11, %p16375_p10 }
 0x12d   :  { %p16378_p13 = pnand %p16377_p12, %p16371_p9 }
 0x12f   :  { %16381 = shalt.err (!%p16378_p13)
}
 0x130   :  { %357 = dma.hbm_to_vmem [thread:$0]  %s17828_s24, 16, %s355_s6, [#allocation24]  }
 0x131   :  { %s16382_s20 = scalar_lea.hbm %s17848_s5, 16 }
 0x132   :  { %p16383_p0 = scmp.ne.s32.totalorder %s17848_s5, %s16382_s20  ;;  %p16386_p1 = scmp.lt.u32.totalorder %s16382_s20, %s17848_s5 }
 0x134   :  { %p16388_p2 = pnand %p16386_p1, %p16383_p0 }
 0x136   :  { %16391 = shalt.err (!%p16388_p2)
}
 0x137   :  { %s16392_s15 = scalar_lea.vmem %s379_s7, 16  ;;  %s16396_s16 = scalar_lea.vmem %s379_s7, 32 }
 0x138   :  { %p16393_p3 = scmp.ne.s32.totalorder %s379_s7, %s16392_s15  ;;  %p16397_p4 = scmp.lt.s32.totalorder %s379_s7, %s379_s7 }
 0x139   :  { %p16398_p5 = scmp.lt.s32.totalorder %s16396_s16, %s16392_s15 }
 0x13b   :  { %p16399_p6 = por %p16398_p5, %p16397_p4 }
 0x13d   :  { %p16400_p7 = pnand %p16399_p6, %p16393_p3 }
 0x13f   :  { %16403 = shalt.err (!%p16400_p7)
}
 0x140   :  { %381 = dma.hbm_to_vmem [thread:$0]  %s17848_s5, 16, %s379_s7, [#allocation27]  }
 0x141   :  { %s17657_s3 = smov [#allocation29]   ;;  %s17658_s18 = smov [#allocation32]  }
 0x142   :  { %s398_s24 = sshll.u32 %s17657_s3, 4  ;;  %s422_s22 = sshll.u32 %s17658_s18, 4  ;;  %s399_s24 = int_to_ptr.vmem [resolvable:$true] %s398_s24  ;;  %s423_s22 = int_to_ptr.vmem [resolvable:$true] %s422_s22 }
 0x143   :  { %s16404_s23 = scalar_lea.hbm %s17858_s4, 16 }
 0x144   :  { %p16405_p8 = scmp.ne.s32.totalorder %s17858_s4, %s16404_s23  ;;  %p16408_p9 = scmp.lt.u32.totalorder %s16404_s23, %s17858_s4 }
 0x146   :  { %p16410_p10 = pnand %p16408_p9, %p16405_p8 }
 0x148   :  { %16413 = shalt.err (!%p16410_p10)
}
 0x149   :  { %s16414_s26 = scalar_lea.vmem %s399_s24, 16  ;;  %s16418_s28 = scalar_lea.vmem %s399_s24, 32 }
 0x14a   :  { %p16415_p11 = scmp.ne.s32.totalorder %s399_s24, %s16414_s26  ;;  %p16419_p12 = scmp.lt.s32.totalorder %s399_s24, %s399_s24 }
 0x14b   :  { %p16420_p13 = scmp.lt.s32.totalorder %s16418_s28, %s16414_s26 }
 0x14d   :  { %p16421_p0 = por %p16420_p13, %p16419_p12 }
 0x14f   :  { %p16422_p1 = pnand %p16421_p0, %p16415_p11 }
 0x151   :  { %16425 = shalt.err (!%p16422_p1)
}
 0x152   :  { %401 = dma.hbm_to_vmem [thread:$0]  %s17858_s4, 16, %s399_s24, [#allocation30]  }
 0x153   :  { %s16426_s5 = scalar_lea.hbm %s17878_s12, 16 }
 0x154   :  { %p16427_p2 = scmp.ne.s32.totalorder %s17878_s12, %s16426_s5  ;;  %p16430_p3 = scmp.lt.u32.totalorder %s16426_s5, %s17878_s12 }
 0x156   :  { %p16432_p4 = pnand %p16430_p3, %p16427_p2 }
 0x158   :  { %16435 = shalt.err (!%p16432_p4)
}
 0x159   :  { %s16436_s14 = scalar_lea.vmem %s423_s22, 16  ;;  %s16440_s17 = scalar_lea.vmem %s423_s22, 32 }
 0x15a   :  { %p16437_p5 = scmp.ne.s32.totalorder %s423_s22, %s16436_s14  ;;  %p16441_p6 = scmp.lt.s32.totalorder %s423_s22, %s423_s22 }
 0x15b   :  { %p16442_p7 = scmp.lt.s32.totalorder %s16440_s17, %s16436_s14 }
 0x15d   :  { %p16443_p8 = por %p16442_p7, %p16441_p6 }
 0x15f   :  { %p16444_p9 = pnand %p16443_p8, %p16437_p5 }
 0x161   :  { %16447 = shalt.err (!%p16444_p9)
}
 0x162   :  { %425 = dma.hbm_to_vmem [thread:$0]  %s17878_s12, 16, %s423_s22, [#allocation33]  }
 0x163   :  { %s17659_s1 = smov [#allocation35]   ;;  %s16448_s2 = scalar_lea.hbm %s17888_s27, 256 }
 0x164   :  { %s441_s4 = sshll.u32 %s17659_s1, 4  ;;  %p16449_p10 = scmp.ne.s32.totalorder %s17888_s27, %s16448_s2  ;;  %s442_s4 = int_to_ptr.vmem [resolvable:$true] %s441_s4 }
 0x165   :  { %p16452_p11 = scmp.lt.u32.totalorder %s16448_s2, %s17888_s27 }
 0x167   :  { %p16454_p12 = pnand %p16452_p11, %p16449_p10 }
 0x169   :  { %16457 = shalt.err (!%p16454_p12)
}
 0x16a   :  { %s16458_s6 = scalar_lea.vmem %s442_s4, 256  ;;  %p16463_p0 = scmp.lt.s32.totalorder %s442_s4, %s442_s4 }
 0x16b   :  { %p16459_p13 = scmp.ne.s32.totalorder %s442_s4, %s16458_s6  ;;  %p16464_p1 = scmp.lt.s32.totalorder %s16458_s6, %s16458_s6 }
 0x16d   :  { %p16465_p2 = por %p16464_p1, %p16463_p0 }
 0x16f   :  { %p16466_p3 = pnand %p16465_p2, %p16459_p13 }
 0x171   :  { %16469 = shalt.err (!%p16466_p3)
}
 0x172   :  { %s17660_s0 = smov 128   ;;  %s17661_s12 = smov 8  }
 0x173   :  { %447 = dma.hbm_to_vmem [thread:$0]  %s17888_s27, 256, %s442_s4, [#allocation36], %s17660_s0, %s17660_s0, %s17661_s12  }
 0x174   :  { %s17662_s7 = smov [#allocation38]   ;;  %s17663_s25 = smov [#allocation41]  }
 0x175   :  { %s464_s10 = sshll.u32 %s17662_s7, 4  ;;  %s484_s11 = sshll.u32 %s17663_s25, 4  ;;  %s465_s10 = int_to_ptr.vmem [resolvable:$true] %s464_s10  ;;  %s485_s11 = int_to_ptr.vmem [resolvable:$true] %s484_s11 }
 0x176   :  { %s16470_s20 = scalar_lea.hbm %s17898_s19, 16 }
 0x177   :  { %p16471_p4 = scmp.ne.s32.totalorder %s17898_s19, %s16470_s20  ;;  %p16474_p5 = scmp.lt.u32.totalorder %s16470_s20, %s17898_s19 }
 0x179   :  { %p16476_p6 = pnand %p16474_p5, %p16471_p4 }
 0x17b   :  { %16479 = shalt.err (!%p16476_p6)
}
 0x17c   :  { %s16480_s15 = scalar_lea.vmem %s465_s10, 16  ;;  %s16484_s16 = scalar_lea.vmem %s465_s10, 32 }
 0x17d   :  { %p16481_p7 = scmp.ne.s32.totalorder %s465_s10, %s16480_s15  ;;  %p16485_p8 = scmp.lt.s32.totalorder %s465_s10, %s465_s10 }
 0x17e   :  { %p16486_p9 = scmp.lt.s32.totalorder %s16484_s16, %s16480_s15 }
 0x180   :  { %p16487_p10 = por %p16486_p9, %p16485_p8 }
 0x182   :  { %p16488_p11 = pnand %p16487_p10, %p16481_p7 }
 0x184   :  { %16491 = shalt.err (!%p16488_p11)
}
 0x185   :  { %467 = dma.hbm_to_vmem [thread:$0]  %s17898_s19, 16, %s465_s10, [#allocation39]  }
 0x186   :  { %s16492_s27 = scalar_lea.hbm %s17908_s8, 16 }
 0x187   :  { %p16493_p12 = scmp.ne.s32.totalorder %s17908_s8, %s16492_s27  ;;  %p16496_p13 = scmp.lt.u32.totalorder %s16492_s27, %s17908_s8 }
 0x189   :  { %p16498_p0 = pnand %p16496_p13, %p16493_p12 }
 0x18b   :  { %16501 = shalt.err (!%p16498_p0)
}
 0x18c   :  { %s16502_s3 = scalar_lea.vmem %s485_s11, 16  ;;  %s16506_s24 = scalar_lea.vmem %s485_s11, 32 }
 0x18d   :  { %p16503_p1 = scmp.ne.s32.totalorder %s485_s11, %s16502_s3  ;;  %p16507_p2 = scmp.lt.s32.totalorder %s485_s11, %s485_s11 }
 0x18e   :  { %p16508_p3 = scmp.lt.s32.totalorder %s16506_s24, %s16502_s3 }
 0x190   :  { %p16509_p4 = por %p16508_p3, %p16507_p2 }
 0x192   :  { %p16510_p5 = pnand %p16509_p4, %p16503_p1 }
 0x194   :  { %16513 = shalt.err (!%p16510_p5)
}
 0x195   :  { %487 = dma.hbm_to_vmem [thread:$0]  %s17908_s8, 16, %s485_s11, [#allocation42]  }
 0x196   :  { %s17664_s19 = smov [#allocation44]   ;;  %s17665_s22 = smov [#allocation47]  }
 0x197   :  { %s504_s18 = sshll.u32 %s17664_s19, 4  ;;  %s528_s23 = sshll.u32 %s17665_s22, 4  ;;  %s505_s18 = int_to_ptr.vmem [resolvable:$true] %s504_s18  ;;  %s529_s23 = int_to_ptr.vmem [resolvable:$true] %s528_s23 }
 0x198   :  { %s16514_s26 = scalar_lea.hbm %s17918_s29, 16 }
 0x199   :  { %p16515_p6 = scmp.ne.s32.totalorder %s17918_s29, %s16514_s26  ;;  %p16518_p7 = scmp.lt.u32.totalorder %s16514_s26, %s17918_s29 }
 0x19b   :  { %p16520_p8 = pnand %p16518_p7, %p16515_p6 }
 0x19d   :  { %16523 = shalt.err (!%p16520_p8)
}
 0x19e   :  { %s16524_s28 = scalar_lea.vmem %s505_s18, 16  ;;  %s16528_s5 = scalar_lea.vmem %s505_s18, 32 }
 0x19f   :  { %p16525_p9 = scmp.ne.s32.totalorder %s505_s18, %s16524_s28  ;;  %p16529_p10 = scmp.lt.s32.totalorder %s505_s18, %s505_s18 }
 0x1a0   :  { %p16530_p11 = scmp.lt.s32.totalorder %s16528_s5, %s16524_s28 }
 0x1a2   :  { %p16531_p12 = por %p16530_p11, %p16529_p10 }
 0x1a4   :  { %p16532_p13 = pnand %p16531_p12, %p16525_p9 }
 0x1a6   :  { %16535 = shalt.err (!%p16532_p13)
}
 0x1a7   :  { %s19886_s8 = sld [smem:[#allocation147_spill]] }
 0x1a8   :  { %507 = dma.hbm_to_vmem [thread:$0]  %s17918_s29, 16, %s505_s18, [#allocation45]  }
 0x1ad   :  { %s16536_s14 = scalar_lea.hbm %s19886_s8, 16 }
 0x1ae   :  { %p16537_p0 = scmp.ne.s32.totalorder %s19886_s8, %s16536_s14  ;;  %p16540_p1 = scmp.lt.u32.totalorder %s16536_s14, %s19886_s8 }
 0x1b0   :  { %p16542_p2 = pnand %p16540_p1, %p16537_p0 }
 0x1b2   :  { %16545 = shalt.err (!%p16542_p2)
}
 0x1b3   :  { %s16546_s17 = scalar_lea.vmem %s529_s23, 16  ;;  %s16550_s1 = scalar_lea.vmem %s529_s23, 32 }
 0x1b4   :  { %p16547_p3 = scmp.ne.s32.totalorder %s529_s23, %s16546_s17  ;;  %p16551_p4 = scmp.lt.s32.totalorder %s529_s23, %s529_s23 }
 0x1b5   :  { %p16552_p5 = scmp.lt.s32.totalorder %s16550_s1, %s16546_s17 }
 0x1b7   :  { %p16553_p6 = por %p16552_p5, %p16551_p4 }
 0x1b9   :  { %p16554_p7 = pnand %p16553_p6, %p16547_p3 }
 0x1bb   :  { %16557 = shalt.err (!%p16554_p7)
}
 0x1bc   :  { %s19887_s4 = sld [smem:[#allocation149_spill]]  ;;  %s17666_s29 = smov [#allocation50]  }
 0x1bd   :  { %531 = dma.hbm_to_vmem [thread:$0]  %s19886_s8, 16, %s529_s23, [#allocation48]  }
 0x1be   :  { %s548_s2 = sshll.u32 %s17666_s29, 4  ;;  %s17667_s6 = smov [#allocation53]   ;;  %s549_s2 = int_to_ptr.vmem [resolvable:$true] %s548_s2 }
 0x1bf   :  { %s568_s7 = sshll.u32 %s17667_s6, 4  ;;  %s569_s7 = int_to_ptr.vmem [resolvable:$true] %s568_s7 }
 0x1c2   :  { %s16558_s10 = scalar_lea.hbm %s19887_s4, 16 }
 0x1c3   :  { %p16559_p8 = scmp.ne.s32.totalorder %s19887_s4, %s16558_s10  ;;  %p16562_p9 = scmp.lt.u32.totalorder %s16558_s10, %s19887_s4 }
 0x1c5   :  { %p16564_p10 = pnand %p16562_p9, %p16559_p8 }
 0x1c7   :  { %16567 = shalt.err (!%p16564_p10)
}
 0x1c8   :  { %s16568_s25 = scalar_lea.vmem %s549_s2, 16  ;;  %s16572_s11 = scalar_lea.vmem %s549_s2, 32 }
 0x1c9   :  { %p16569_p11 = scmp.ne.s32.totalorder %s549_s2, %s16568_s25  ;;  %p16573_p12 = scmp.lt.s32.totalorder %s549_s2, %s549_s2 }
 0x1ca   :  { %p16574_p13 = scmp.lt.s32.totalorder %s16572_s11, %s16568_s25 }
 0x1cc   :  { %p16575_p0 = por %p16574_p13, %p16573_p12 }
 0x1ce   :  { %p16576_p1 = pnand %p16575_p0, %p16569_p11 }
 0x1d0   :  { %16579 = shalt.err (!%p16576_p1)
}
 0x1d1   :  { %s19888_s20 = sld [smem:[#allocation151_spill]] }
 0x1d2   :  { %551 = dma.hbm_to_vmem [thread:$0]  %s19887_s4, 16, %s549_s2, [#allocation51]  }
 0x1d7   :  { %s16580_s15 = scalar_lea.hbm %s19888_s20, 16 }
 0x1d8   :  { %p16581_p2 = scmp.ne.s32.totalorder %s19888_s20, %s16580_s15  ;;  %p16584_p3 = scmp.lt.u32.totalorder %s16580_s15, %s19888_s20 }
 0x1da   :  { %p16586_p4 = pnand %p16584_p3, %p16581_p2 }
 0x1dc   :  { %16589 = shalt.err (!%p16586_p4)
}
 0x1dd   :  { %s16590_s16 = scalar_lea.vmem %s569_s7, 16  ;;  %s16594_s27 = scalar_lea.vmem %s569_s7, 32 }
 0x1de   :  { %p16591_p5 = scmp.ne.s32.totalorder %s569_s7, %s16590_s16  ;;  %p16595_p6 = scmp.lt.s32.totalorder %s569_s7, %s569_s7 }
 0x1df   :  { %p16596_p7 = scmp.lt.s32.totalorder %s16594_s27, %s16590_s16 }
 0x1e1   :  { %p16597_p8 = por %p16596_p7, %p16595_p6 }
 0x1e3   :  { %p16598_p9 = pnand %p16597_p8, %p16591_p5 }
 0x1e5   :  { %16601 = shalt.err (!%p16598_p9)
}
 0x1e6   :  { %s19889_s3 = sld [smem:[#allocation155_spill]]  ;;  %s17668_s24 = smov [#allocation56]  }
 0x1e7   :  { %571 = dma.hbm_to_vmem [thread:$0]  %s19888_s20, 16, %s569_s7, [#allocation54]  }
 0x1e8   :  { %s592_s19 = sshll.u32 %s17668_s24, 4  ;;  %s17669_s18 = smov [#allocation59]   ;;  %s593_s19 = int_to_ptr.vmem [resolvable:$true] %s592_s19 }
 0x1e9   :  { %s616_s22 = sshll.u32 %s17669_s18, 4  ;;  %s617_s22 = int_to_ptr.vmem [resolvable:$true] %s616_s22 }
 0x1ec   :  { %s16602_s23 = scalar_lea.hbm %s19889_s3, 16 }
 0x1ed   :  { %p16603_p10 = scmp.ne.s32.totalorder %s19889_s3, %s16602_s23  ;;  %p16606_p11 = scmp.lt.u32.totalorder %s16602_s23, %s19889_s3 }
 0x1ef   :  { %p16608_p12 = pnand %p16606_p11, %p16603_p10 }
 0x1f1   :  { %16611 = shalt.err (!%p16608_p12)
}
 0x1f2   :  { %s16612_s26 = scalar_lea.vmem %s593_s19, 16  ;;  %s16616_s28 = scalar_lea.vmem %s593_s19, 32 }
 0x1f3   :  { %p16613_p13 = scmp.ne.s32.totalorder %s593_s19, %s16612_s26  ;;  %p16617_p0 = scmp.lt.s32.totalorder %s593_s19, %s593_s19 }
 0x1f4   :  { %p16618_p1 = scmp.lt.s32.totalorder %s16616_s28, %s16612_s26 }
 0x1f6   :  { %p16619_p2 = por %p16618_p1, %p16617_p0 }
 0x1f8   :  { %p16620_p3 = pnand %p16619_p2, %p16613_p13 }
 0x1fa   :  { %16623 = shalt.err (!%p16620_p3)
}
 0x1fb   :  { %s19890_s5 = sld [smem:[#allocation159_spill]] }
 0x1fc   :  { %595 = dma.hbm_to_vmem [thread:$0]  %s19889_s3, 16, %s593_s19, [#allocation57]  }
 0x201   :  { %s16624_s8 = scalar_lea.hbm %s19890_s5, 16 }
 0x202   :  { %p16625_p4 = scmp.ne.s32.totalorder %s19890_s5, %s16624_s8  ;;  %p16628_p5 = scmp.lt.u32.totalorder %s16624_s8, %s19890_s5 }
 0x204   :  { %p16630_p6 = pnand %p16628_p5, %p16625_p4 }
 0x206   :  { %16633 = shalt.err (!%p16630_p6)
}
 0x207   :  { %s16634_s14 = scalar_lea.vmem %s617_s22, 16  ;;  %s16638_s17 = scalar_lea.vmem %s617_s22, 32 }
 0x208   :  { %p16635_p7 = scmp.ne.s32.totalorder %s617_s22, %s16634_s14  ;;  %p16639_p8 = scmp.lt.s32.totalorder %s617_s22, %s617_s22 }
 0x209   :  { %p16640_p9 = scmp.lt.s32.totalorder %s16638_s17, %s16634_s14 }
 0x20b   :  { %p16641_p10 = por %p16640_p9, %p16639_p8 }
 0x20d   :  { %p16642_p11 = pnand %p16641_p10, %p16635_p7 }
 0x20f   :  { %16645 = shalt.err (!%p16642_p11)
}
 0x210   :  { %s19891_s1 = sld [smem:[#allocation161_spill]]  ;;  %s17670_s4 = smov [#allocation62]  }
 0x211   :  { %619 = dma.hbm_to_vmem [thread:$0]  %s19890_s5, 16, %s617_s22, [#allocation60]  }
 0x212   :  { %s636_s29 = sshll.u32 %s17670_s4, 4  ;;  %s17671_s2 = smov [#allocation65]   ;;  %s637_s29 = int_to_ptr.vmem [resolvable:$true] %s636_s29 }
 0x213   :  { %s656_s6 = sshll.u32 %s17671_s2, 4  ;;  %s657_s6 = int_to_ptr.vmem [resolvable:$true] %s656_s6 }
 0x216   :  { %s16646_s7 = scalar_lea.hbm %s19891_s1, 16 }
 0x217   :  { %p16647_p12 = scmp.ne.s32.totalorder %s19891_s1, %s16646_s7  ;;  %p16650_p13 = scmp.lt.u32.totalorder %s16646_s7, %s19891_s1 }
 0x219   :  { %p16652_p0 = pnand %p16650_p13, %p16647_p12 }
 0x21b   :  { %16655 = shalt.err (!%p16652_p0)
}
 0x21c   :  { %s16656_s10 = scalar_lea.vmem %s637_s29, 16  ;;  %s16660_s25 = scalar_lea.vmem %s637_s29, 32 }
 0x21d   :  { %p16657_p1 = scmp.ne.s32.totalorder %s637_s29, %s16656_s10  ;;  %p16661_p2 = scmp.lt.s32.totalorder %s637_s29, %s637_s29 }
 0x21e   :  { %p16662_p3 = scmp.lt.s32.totalorder %s16660_s25, %s16656_s10 }
 0x220   :  { %p16663_p4 = por %p16662_p3, %p16661_p2 }
 0x222   :  { %p16664_p5 = pnand %p16663_p4, %p16657_p1 }
 0x224   :  { %16667 = shalt.err (!%p16664_p5)
}
 0x225   :  { %s19892_s11 = sld [smem:[#allocation163_spill]] }
 0x226   :  { %639 = dma.hbm_to_vmem [thread:$0]  %s19891_s1, 16, %s637_s29, [#allocation63]  }
 0x22b   :  { %s16668_s20 = scalar_lea.hbm %s19892_s11, 16 }
 0x22c   :  { %p16669_p6 = scmp.ne.s32.totalorder %s19892_s11, %s16668_s20  ;;  %p16672_p7 = scmp.lt.u32.totalorder %s16668_s20, %s19892_s11 }
 0x22e   :  { %p16674_p8 = pnand %p16672_p7, %p16669_p6 }
 0x230   :  { %16677 = shalt.err (!%p16674_p8)
}
 0x231   :  { %s16678_s15 = scalar_lea.vmem %s657_s6, 16  ;;  %s16682_s16 = scalar_lea.vmem %s657_s6, 32 }
 0x232   :  { %p16679_p9 = scmp.ne.s32.totalorder %s657_s6, %s16678_s15  ;;  %p16683_p10 = scmp.lt.s32.totalorder %s657_s6, %s657_s6 }
 0x233   :  { %p16684_p11 = scmp.lt.s32.totalorder %s16682_s16, %s16678_s15 }
 0x235   :  { %p16685_p12 = por %p16684_p11, %p16683_p10 }
 0x237   :  { %p16686_p13 = pnand %p16685_p12, %p16679_p9 }
 0x239   :  { %16689 = shalt.err (!%p16686_p13)
}
 0x23a   :  { %s19893_s27 = sld [smem:[#allocation167_spill]]  ;;  %s17672_s3 = smov [#allocation68]  }
 0x23b   :  { %659 = dma.hbm_to_vmem [thread:$0]  %s19892_s11, 16, %s657_s6, [#allocation66]  }
 0x23c   :  { %s680_s24 = sshll.u32 %s17672_s3, 4  ;;  %s17673_s19 = smov [#allocation71]   ;;  %s681_s24 = int_to_ptr.vmem [resolvable:$true] %s680_s24 }
 0x23d   :  { %s704_s18 = sshll.u32 %s17673_s19, 4  ;;  %s705_s18 = int_to_ptr.vmem [resolvable:$true] %s704_s18 }
 0x240   :  { %s16690_s22 = scalar_lea.hbm %s19893_s27, 16 }
 0x241   :  { %p16691_p0 = scmp.ne.s32.totalorder %s19893_s27, %s16690_s22  ;;  %p16694_p1 = scmp.lt.u32.totalorder %s16690_s22, %s19893_s27 }
 0x243   :  { %p16696_p2 = pnand %p16694_p1, %p16691_p0 }
 0x245   :  { %16699 = shalt.err (!%p16696_p2)
}
 0x246   :  { %s16700_s23 = scalar_lea.vmem %s681_s24, 16  ;;  %s16704_s26 = scalar_lea.vmem %s681_s24, 32 }
 0x247   :  { %p16701_p3 = scmp.ne.s32.totalorder %s681_s24, %s16700_s23  ;;  %p16705_p4 = scmp.lt.s32.totalorder %s681_s24, %s681_s24 }
 0x248   :  { %p16706_p5 = scmp.lt.s32.totalorder %s16704_s26, %s16700_s23 }
 0x24a   :  { %p16707_p6 = por %p16706_p5, %p16705_p4 }
 0x24c   :  { %p16708_p7 = pnand %p16707_p6, %p16701_p3 }
 0x24e   :  { %16711 = shalt.err (!%p16708_p7)
}
 0x24f   :  { %s19894_s28 = sld [smem:[#allocation171_spill]] }
 0x250   :  { %683 = dma.hbm_to_vmem [thread:$0]  %s19893_s27, 16, %s681_s24, [#allocation69]  }
 0x255   :  { %s16712_s5 = scalar_lea.hbm %s19894_s28, 16 }
 0x256   :  { %p16713_p8 = scmp.ne.s32.totalorder %s19894_s28, %s16712_s5  ;;  %p16716_p9 = scmp.lt.u32.totalorder %s16712_s5, %s19894_s28 }
 0x258   :  { %p16718_p10 = pnand %p16716_p9, %p16713_p8 }
 0x25a   :  { %16721 = shalt.err (!%p16718_p10)
}
 0x25b   :  { %s16722_s8 = scalar_lea.vmem %s705_s18, 16  ;;  %s16726_s14 = scalar_lea.vmem %s705_s18, 32 }
 0x25c   :  { %p16723_p11 = scmp.ne.s32.totalorder %s705_s18, %s16722_s8  ;;  %p16727_p12 = scmp.lt.s32.totalorder %s705_s18, %s705_s18 }
 0x25d   :  { %p16728_p13 = scmp.lt.s32.totalorder %s16726_s14, %s16722_s8 }
 0x25f   :  { %p16729_p0 = por %p16728_p13, %p16727_p12 }
 0x261   :  { %p16730_p1 = pnand %p16729_p0, %p16723_p11 }
 0x263   :  { %16733 = shalt.err (!%p16730_p1)
}
 0x264   :  { %s19895_s17 = sld [smem:[#allocation173_spill]]  ;;  %s17674_s1 = smov [#allocation74]  }
 0x265   :  { %707 = dma.hbm_to_vmem [thread:$0]  %s19894_s28, 16, %s705_s18, [#allocation72]  }
 0x266   :  { %s724_s4 = sshll.u32 %s17674_s1, 4  ;;  %s17675_s29 = smov [#allocation77]   ;;  %s725_s4 = int_to_ptr.vmem [resolvable:$true] %s724_s4 }
 0x267   :  { %s744_s2 = sshll.u32 %s17675_s29, 4  ;;  %s745_s2 = int_to_ptr.vmem [resolvable:$true] %s744_s2 }
 0x26a   :  { %s16734_s6 = scalar_lea.hbm %s19895_s17, 16 }
 0x26b   :  { %p16735_p2 = scmp.ne.s32.totalorder %s19895_s17, %s16734_s6  ;;  %p16738_p3 = scmp.lt.u32.totalorder %s16734_s6, %s19895_s17 }
 0x26d   :  { %p16740_p4 = pnand %p16738_p3, %p16735_p2 }
 0x26f   :  { %16743 = shalt.err (!%p16740_p4)
}
 0x270   :  { %s16744_s7 = scalar_lea.vmem %s725_s4, 16  ;;  %s16748_s10 = scalar_lea.vmem %s725_s4, 32 }
 0x271   :  { %p16745_p5 = scmp.ne.s32.totalorder %s725_s4, %s16744_s7  ;;  %p16749_p6 = scmp.lt.s32.totalorder %s725_s4, %s725_s4 }
 0x272   :  { %p16750_p7 = scmp.lt.s32.totalorder %s16748_s10, %s16744_s7 }
 0x274   :  { %p16751_p8 = por %p16750_p7, %p16749_p6 }
 0x276   :  { %p16752_p9 = pnand %p16751_p8, %p16745_p5 }
 0x278   :  { %16755 = shalt.err (!%p16752_p9)
}
 0x279   :  { %s19896_s25 = sld [smem:[#allocation175_spill]] }
 0x27a   :  { %727 = dma.hbm_to_vmem [thread:$0]  %s19895_s17, 16, %s725_s4, [#allocation75]  }
 0x27f   :  { %s16756_s11 = scalar_lea.hbm %s19896_s25, 16 }
 0x280   :  { %p16757_p10 = scmp.ne.s32.totalorder %s19896_s25, %s16756_s11  ;;  %p16760_p11 = scmp.lt.u32.totalorder %s16756_s11, %s19896_s25 }
 0x282   :  { %p16762_p12 = pnand %p16760_p11, %p16757_p10 }
 0x284   :  { %16765 = shalt.err (!%p16762_p12)
}
 0x285   :  { %s16766_s20 = scalar_lea.vmem %s745_s2, 16  ;;  %s16770_s15 = scalar_lea.vmem %s745_s2, 32 }
 0x286   :  { %p16767_p13 = scmp.ne.s32.totalorder %s745_s2, %s16766_s20  ;;  %p16771_p0 = scmp.lt.s32.totalorder %s745_s2, %s745_s2 }
 0x287   :  { %p16772_p1 = scmp.lt.s32.totalorder %s16770_s15, %s16766_s20 }
 0x289   :  { %p16773_p2 = por %p16772_p1, %p16771_p0 }
 0x28b   :  { %p16774_p3 = pnand %p16773_p2, %p16767_p13 }
 0x28d   :  { %16777 = shalt.err (!%p16774_p3)
}
 0x28e   :  { %s19897_s16 = sld [smem:[#allocation182_spill]]  ;;  %s17676_s27 = smov [#allocation80]  }
 0x28f   :  { %747 = dma.hbm_to_vmem [thread:$0]  %s19896_s25, 16, %s745_s2, [#allocation78]  }
 0x290   :  { %s774_s3 = sshll.u32 %s17676_s27, 4  ;;  %s17677_s24 = smov [#allocation83]   ;;  %s775_s3 = int_to_ptr.vmem [resolvable:$true] %s774_s3 }
 0x291   :  { %s794_s19 = sshll.u32 %s17677_s24, 4  ;;  %s795_s19 = int_to_ptr.vmem [resolvable:$true] %s794_s19 }
 0x294   :  { %s16778_s18 = scalar_lea.hbm %s19897_s16, 16 }
 0x295   :  { %p16779_p4 = scmp.ne.s32.totalorder %s19897_s16, %s16778_s18  ;;  %p16782_p5 = scmp.lt.u32.totalorder %s16778_s18, %s19897_s16 }
 0x297   :  { %p16784_p6 = pnand %p16782_p5, %p16779_p4 }
 0x299   :  { %16787 = shalt.err (!%p16784_p6)
}
 0x29a   :  { %s16788_s22 = scalar_lea.vmem %s775_s3, 16  ;;  %s16792_s23 = scalar_lea.vmem %s775_s3, 32 }
 0x29b   :  { %p16789_p7 = scmp.ne.s32.totalorder %s775_s3, %s16788_s22  ;;  %p16793_p8 = scmp.lt.s32.totalorder %s775_s3, %s775_s3 }
 0x29c   :  { %p16794_p9 = scmp.lt.s32.totalorder %s16792_s23, %s16788_s22 }
 0x29e   :  { %p16795_p10 = por %p16794_p9, %p16793_p8 }
 0x2a0   :  { %p16796_p11 = pnand %p16795_p10, %p16789_p7 }
 0x2a2   :  { %16799 = shalt.err (!%p16796_p11)
}
 0x2a3   :  { %s19898_s26 = sld [smem:[#allocation184_spill]] }
 0x2a4   :  { %777 = dma.hbm_to_vmem [thread:$0]  %s19897_s16, 16, %s775_s3, [#allocation81]  }
 0x2a9   :  { %s16800_s28 = scalar_lea.hbm %s19898_s26, 16 }
 0x2aa   :  { %p16801_p12 = scmp.ne.s32.totalorder %s19898_s26, %s16800_s28  ;;  %p16804_p13 = scmp.lt.u32.totalorder %s16800_s28, %s19898_s26 }
 0x2ac   :  { %p16806_p0 = pnand %p16804_p13, %p16801_p12 }
 0x2ae   :  { %16809 = shalt.err (!%p16806_p0)
}
 0x2af   :  { %s16810_s5 = scalar_lea.vmem %s795_s19, 16  ;;  %s16814_s8 = scalar_lea.vmem %s795_s19, 32 }
 0x2b0   :  { %p16811_p1 = scmp.ne.s32.totalorder %s795_s19, %s16810_s5  ;;  %p16815_p2 = scmp.lt.s32.totalorder %s795_s19, %s795_s19 }
 0x2b1   :  { %p16816_p3 = scmp.lt.s32.totalorder %s16814_s8, %s16810_s5 }
 0x2b3   :  { %p16817_p4 = por %p16816_p3, %p16815_p2 }
 0x2b5   :  { %p16818_p5 = pnand %p16817_p4, %p16811_p1 }
 0x2b7   :  { %16821 = shalt.err (!%p16818_p5)
}
 0x2b8   :  { %s19899_s14 = sld [smem:[#allocation186_spill]]  ;;  %s17678_s17 = smov [#allocation86]  }
 0x2b9   :  { %797 = dma.hbm_to_vmem [thread:$0]  %s19898_s26, 16, %s795_s19, [#allocation84]  }
 0x2ba   :  { %s814_s1 = sshll.u32 %s17678_s17, 4  ;;  %s17679_s4 = smov [#allocation2]   ;;  %s815_s1 = int_to_ptr.vmem [resolvable:$true] %s814_s1 }
 0x2bb   :  { %s216_s29 = sshll.u32 %s17679_s4, 4  ;;  %s217_s29 = int_to_ptr.vmem [resolvable:$true] %s216_s29 }
 0x2be   :  { %s16822_s2 = scalar_lea.hbm %s19899_s14, 16 }
 0x2bf   :  { %p16823_p6 = scmp.ne.s32.totalorder %s19899_s14, %s16822_s2  ;;  %p16826_p7 = scmp.lt.u32.totalorder %s16822_s2, %s19899_s14 }
 0x2c1   :  { %p16828_p8 = pnand %p16826_p7, %p16823_p6 }
 0x2c3   :  { %16831 = shalt.err (!%p16828_p8)
}
 0x2c4   :  { %s16832_s6 = scalar_lea.vmem %s815_s1, 16  ;;  %s16836_s7 = scalar_lea.vmem %s815_s1, 32 }
 0x2c5   :  { %p16833_p9 = scmp.ne.s32.totalorder %s815_s1, %s16832_s6  ;;  %p16837_p10 = scmp.lt.s32.totalorder %s815_s1, %s815_s1 }
 0x2c6   :  { %p16838_p11 = scmp.lt.s32.totalorder %s16836_s7, %s16832_s6 }
 0x2c8   :  { %p16839_p12 = por %p16838_p11, %p16837_p10 }
 0x2ca   :  { %p16840_p13 = pnand %p16839_p12, %p16833_p9 }
 0x2cc   :  { %16843 = shalt.err (!%p16840_p13)
}
 0x2cd   :  { %s19900_s10 = sld [smem:[#allocation122_spill]] }
 0x2ce   :  { %817 = dma.hbm_to_vmem [thread:$0]  %s19899_s14, 16, %s815_s1, [#allocation87]  }
 0x2d3   :  { %s16844_s25 = scalar_lea.hbm %s19900_s10, 32 }
 0x2d4   :  { %p16845_p0 = scmp.ne.s32.totalorder %s19900_s10, %s16844_s25  ;;  %p16848_p1 = scmp.lt.u32.totalorder %s16844_s25, %s19900_s10 }
 0x2d6   :  { %p16850_p2 = pnand %p16848_p1, %p16845_p0 }
 0x2d8   :  { %16853 = shalt.err (!%p16850_p2)
}
 0x2d9   :  { %s16854_s11 = scalar_lea.vmem %s217_s29, 32  ;;  %p16859_p4 = scmp.lt.s32.totalorder %s217_s29, %s217_s29 }
 0x2da   :  { %p16855_p3 = scmp.ne.s32.totalorder %s217_s29, %s16854_s11  ;;  %p16860_p5 = scmp.lt.s32.totalorder %s16854_s11, %s16854_s11 }
 0x2dc   :  { %p16861_p6 = por %p16860_p5, %p16859_p4 }
 0x2de   :  { %p16862_p7 = pnand %p16861_p6, %p16855_p3 }
 0x2e0   :  { %16865 = shalt.err (!%p16862_p7)
}
 0x2e1   :  { %s19901_s20 = sld [smem:[#allocation123_spill]]  ;;  %s17680_s15 = smov [#allocation7]  }
 0x2e2   :  { %219 = dma.hbm_to_vmem [thread:$0]  %s19900_s10, 32, %s217_s29, [#allocation3]  }
 0x2e3   :  { %s236_s16 = sshll.u32 %s17680_s15, 4  ;;  %s17681_s27 = smov [#allocation10]   ;;  %s237_s16 = int_to_ptr.vmem [resolvable:$true] %s236_s16 }
 0x2e4   :  { %s256_s3 = sshll.u32 %s17681_s27, 4  ;;  %s257_s3 = int_to_ptr.vmem [resolvable:$true] %s256_s3 }
 0x2e7   :  { %s16866_s24 = scalar_lea.hbm %s19901_s20, 64 }
 0x2e8   :  { %p16867_p8 = scmp.ne.s32.totalorder %s19901_s20, %s16866_s24  ;;  %p16870_p9 = scmp.lt.u32.totalorder %s16866_s24, %s19901_s20 }
 0x2ea   :  { %p16872_p10 = pnand %p16870_p9, %p16867_p8 }
 0x2ec   :  { %16875 = shalt.err (!%p16872_p10)
}
 0x2ed   :  { %s16876_s19 = scalar_lea.vmem %s237_s16, 64  ;;  %p16881_p12 = scmp.lt.s32.totalorder %s237_s16, %s237_s16 }
 0x2ee   :  { %p16877_p11 = scmp.ne.s32.totalorder %s237_s16, %s16876_s19  ;;  %p16882_p13 = scmp.lt.s32.totalorder %s16876_s19, %s16876_s19 }
 0x2f0   :  { %p16883_p0 = por %p16882_p13, %p16881_p12 }
 0x2f2   :  { %p16884_p1 = pnand %p16883_p0, %p16877_p11 }
 0x2f4   :  { %16887 = shalt.err (!%p16884_p1)
}
 0x2f5   :  { %s19902_s18 = sld [smem:[#allocation124_spill]] }
 0x2f6   :  { %239 = dma.hbm_to_vmem [thread:$0]  %s19901_s20, 64, %s237_s16, [#allocation6]  }
 0x2fb   :  { %s16888_s22 = scalar_lea.hbm %s19902_s18, 64 }
 0x2fc   :  { %p16889_p2 = scmp.ne.s32.totalorder %s19902_s18, %s16888_s22  ;;  %p16892_p3 = scmp.lt.u32.totalorder %s16888_s22, %s19902_s18 }
 0x2fe   :  { %p16894_p4 = pnand %p16892_p3, %p16889_p2 }
 0x300   :  { %16897 = shalt.err (!%p16894_p4)
}
 0x301   :  { %s16898_s23 = scalar_lea.vmem %s257_s3, 64  ;;  %p16903_p6 = scmp.lt.s32.totalorder %s257_s3, %s257_s3 }
 0x302   :  { %p16899_p5 = scmp.ne.s32.totalorder %s257_s3, %s16898_s23  ;;  %p16904_p7 = scmp.lt.s32.totalorder %s16898_s23, %s16898_s23 }
 0x304   :  { %p16905_p8 = por %p16904_p7, %p16903_p6 }
 0x306   :  { %p16906_p9 = pnand %p16905_p8, %p16899_p5 }
 0x308   :  { %16909 = shalt.err (!%p16906_p9)
}
 0x309   :  { %s19903_s26 = sld [smem:[#allocation125_spill]]  ;;  %s17682_s28 = smov [#allocation13]  }
 0x30a   :  { %259 = dma.hbm_to_vmem [thread:$0]  %s19902_s18, 64, %s257_s3, [#allocation9]  }
 0x30b   :  { %s276_s5 = sshll.u32 %s17682_s28, 4  ;;  %s17683_s8 = smov [#allocation16]   ;;  %s277_s5 = int_to_ptr.vmem [resolvable:$true] %s276_s5 }
 0x30c   :  { %s296_s14 = sshll.u32 %s17683_s8, 4  ;;  %s297_s14 = int_to_ptr.vmem [resolvable:$true] %s296_s14 }
 0x30f   :  { %s16910_s17 = scalar_lea.hbm %s19903_s26, 16 }
 0x310   :  { %p16911_p10 = scmp.ne.s32.totalorder %s19903_s26, %s16910_s17  ;;  %p16914_p11 = scmp.lt.u32.totalorder %s16910_s17, %s19903_s26 }
 0x312   :  { %p16916_p12 = pnand %p16914_p11, %p16911_p10 }
 0x314   :  { %16919 = shalt.err (!%p16916_p12)
}
 0x315   :  { %s16920_s1 = scalar_lea.vmem %s277_s5, 16  ;;  %s16924_s4 = scalar_lea.vmem %s277_s5, 32 }
 0x316   :  { %p16921_p13 = scmp.ne.s32.totalorder %s277_s5, %s16920_s1  ;;  %p16925_p0 = scmp.lt.s32.totalorder %s277_s5, %s277_s5 }
 0x317   :  { %p16926_p1 = scmp.lt.s32.totalorder %s16924_s4, %s16920_s1 }
 0x319   :  { %p16927_p2 = por %p16926_p1, %p16925_p0 }
 0x31b   :  { %p16928_p3 = pnand %p16927_p2, %p16921_p13 }
 0x31d   :  { %16931 = shalt.err (!%p16928_p3)
}
 0x31e   :  { %s19904_s29 = sld [smem:[#allocation126_spill]] }
 0x31f   :  { %279 = dma.hbm_to_vmem [thread:$0]  %s19903_s26, 16, %s277_s5, [#allocation12]  }
 0x324   :  { %s16932_s2 = scalar_lea.hbm %s19904_s29, 16 }
 0x325   :  { %p16933_p4 = scmp.ne.s32.totalorder %s19904_s29, %s16932_s2  ;;  %p16936_p5 = scmp.lt.u32.totalorder %s16932_s2, %s19904_s29 }
 0x327   :  { %p16938_p6 = pnand %p16936_p5, %p16933_p4 }
 0x329   :  { %16941 = shalt.err (!%p16938_p6)
}
 0x32a   :  { %s16942_s6 = scalar_lea.vmem %s297_s14, 16  ;;  %s16946_s7 = scalar_lea.vmem %s297_s14, 32 }
 0x32b   :  { %p16943_p7 = scmp.ne.s32.totalorder %s297_s14, %s16942_s6  ;;  %p16947_p8 = scmp.lt.s32.totalorder %s297_s14, %s297_s14 }
 0x32c   :  { %p16948_p9 = scmp.lt.s32.totalorder %s16946_s7, %s16942_s6 }
 0x32e   :  { %p16949_p10 = por %p16948_p9, %p16947_p8 }
 0x330   :  { %p16950_p11 = pnand %p16949_p10, %p16943_p7 }
 0x332   :  { %16953 = shalt.err (!%p16950_p11)
}
 0x333   :  { %s19905_s10 = sld [smem:[#allocation129_spill]]  ;;  %s17684_s25 = smov [#allocation19]  }
 0x334   :  { %299 = dma.hbm_to_vmem [thread:$0]  %s19904_s29, 16, %s297_s14, [#allocation15]  }
 0x335   :  { %s320_s11 = sshll.u32 %s17684_s25, 4  ;;  %s17685_s20 = smov [#allocation22]   ;;  %s321_s11 = int_to_ptr.vmem [resolvable:$true] %s320_s11 }
 0x336   :  { %s340_s15 = sshll.u32 %s17685_s20, 4  ;;  %s341_s15 = int_to_ptr.vmem [resolvable:$true] %s340_s15 }
 0x339   :  { %s16954_s16 = scalar_lea.hbm %s19905_s10, 16 }
 0x33a   :  { %p16955_p12 = scmp.ne.s32.totalorder %s19905_s10, %s16954_s16  ;;  %p16958_p13 = scmp.lt.u32.totalorder %s16954_s16, %s19905_s10 }
 0x33c   :  { %p16960_p0 = pnand %p16958_p13, %p16955_p12 }
 0x33e   :  { %16963 = shalt.err (!%p16960_p0)
}
 0x33f   :  { %s16964_s27 = scalar_lea.vmem %s321_s11, 16  ;;  %s16968_s3 = scalar_lea.vmem %s321_s11, 32 }
 0x340   :  { %p16965_p1 = scmp.ne.s32.totalorder %s321_s11, %s16964_s27  ;;  %p16969_p2 = scmp.lt.s32.totalorder %s321_s11, %s321_s11 }
 0x341   :  { %p16970_p3 = scmp.lt.s32.totalorder %s16968_s3, %s16964_s27 }
 0x343   :  { %p16971_p4 = por %p16970_p3, %p16969_p2 }
 0x345   :  { %p16972_p5 = pnand %p16971_p4, %p16965_p1 }
 0x347   :  { %16975 = shalt.err (!%p16972_p5)
}
 0x348   :  { %s19906_s24 = sld [smem:[#allocation130_spill]] }
 0x349   :  { %323 = dma.hbm_to_vmem [thread:$0]  %s19905_s10, 16, %s321_s11, [#allocation18]  }
 0x34e   :  { %s16976_s19 = scalar_lea.hbm %s19906_s24, 16 }
 0x34f   :  { %p16977_p6 = scmp.ne.s32.totalorder %s19906_s24, %s16976_s19  ;;  %p16980_p7 = scmp.lt.u32.totalorder %s16976_s19, %s19906_s24 }
 0x351   :  { %p16982_p8 = pnand %p16980_p7, %p16977_p6 }
 0x353   :  { %16985 = shalt.err (!%p16982_p8)
}
 0x354   :  { %s16986_s18 = scalar_lea.vmem %s341_s15, 16  ;;  %s16990_s22 = scalar_lea.vmem %s341_s15, 32 }
 0x355   :  { %p16987_p9 = scmp.ne.s32.totalorder %s341_s15, %s16986_s18  ;;  %p16991_p10 = scmp.lt.s32.totalorder %s341_s15, %s341_s15 }
 0x356   :  { %p16992_p11 = scmp.lt.s32.totalorder %s16990_s22, %s16986_s18 }
 0x358   :  { %p16993_p12 = por %p16992_p11, %p16991_p10 }
 0x35a   :  { %p16994_p13 = pnand %p16993_p12, %p16987_p9 }
 0x35c   :  { %16997 = shalt.err (!%p16994_p13)
}
 0x35d   :  { %s19907_s23 = sld [smem:[#allocation133_spill]]  ;;  %s17686_s26 = smov [#allocation25]  }
 0x35e   :  { %343 = dma.hbm_to_vmem [thread:$0]  %s19906_s24, 16, %s341_s15, [#allocation21]  }
 0x35f   :  { %s364_s28 = sshll.u32 %s17686_s26, 4  ;;  %s17687_s5 = smov [#allocation28]   ;;  %s365_s28 = int_to_ptr.vmem [resolvable:$true] %s364_s28 }
 0x360   :  { %s388_s8 = sshll.u32 %s17687_s5, 4  ;;  %s389_s8 = int_to_ptr.vmem [resolvable:$true] %s388_s8 }
 0x363   :  { %s16998_s14 = scalar_lea.hbm %s19907_s23, 16 }
 0x364   :  { %p16999_p0 = scmp.ne.s32.totalorder %s19907_s23, %s16998_s14  ;;  %p17002_p1 = scmp.lt.u32.totalorder %s16998_s14, %s19907_s23 }
 0x366   :  { %p17004_p2 = pnand %p17002_p1, %p16999_p0 }
 0x368   :  { %17007 = shalt.err (!%p17004_p2)
}
 0x369   :  { %s17008_s17 = scalar_lea.vmem %s365_s28, 16  ;;  %s17012_s1 = scalar_lea.vmem %s365_s28, 32 }
 0x36a   :  { %p17009_p3 = scmp.ne.s32.totalorder %s365_s28, %s17008_s17  ;;  %p17013_p4 = scmp.lt.s32.totalorder %s365_s28, %s365_s28 }
 0x36b   :  { %p17014_p5 = scmp.lt.s32.totalorder %s17012_s1, %s17008_s17 }
 0x36d   :  { %p17015_p6 = por %p17014_p5, %p17013_p4 }
 0x36f   :  { %p17016_p7 = pnand %p17015_p6, %p17009_p3 }
 0x371   :  { %17019 = shalt.err (!%p17016_p7)
}
 0x372   :  { %s19908_s4 = sld [smem:[#allocation136_spill]] }
 0x373   :  { %367 = dma.hbm_to_vmem [thread:$0]  %s19907_s23, 16, %s365_s28, [#allocation24]  }
 0x378   :  { %s17020_s29 = scalar_lea.hbm %s19908_s4, 16 }
 0x379   :  { %p17021_p8 = scmp.ne.s32.totalorder %s19908_s4, %s17020_s29  ;;  %p17024_p9 = scmp.lt.u32.totalorder %s17020_s29, %s19908_s4 }
 0x37b   :  { %p17026_p10 = pnand %p17024_p9, %p17021_p8 }
 0x37d   :  { %17029 = shalt.err (!%p17026_p10)
}
 0x37e   :  { %s17030_s2 = scalar_lea.vmem %s389_s8, 16  ;;  %s17034_s6 = scalar_lea.vmem %s389_s8, 32 }
 0x37f   :  { %p17031_p11 = scmp.ne.s32.totalorder %s389_s8, %s17030_s2  ;;  %p17035_p12 = scmp.lt.s32.totalorder %s389_s8, %s389_s8 }
 0x380   :  { %p17036_p13 = scmp.lt.s32.totalorder %s17034_s6, %s17030_s2 }
 0x382   :  { %p17037_p0 = por %p17036_p13, %p17035_p12 }
 0x384   :  { %p17038_p1 = pnand %p17037_p0, %p17031_p11 }
 0x386   :  { %17041 = shalt.err (!%p17038_p1)
}
 0x387   :  { %s19909_s7 = sld [smem:[#allocation137_spill]]  ;;  %s17688_s10 = smov [#allocation31]  }
 0x388   :  { %391 = dma.hbm_to_vmem [thread:$0]  %s19908_s4, 16, %s389_s8, [#allocation27]  }
 0x389   :  { %s408_s25 = sshll.u32 %s17688_s10, 4  ;;  %s17689_s11 = smov [#allocation34]   ;;  %s409_s25 = int_to_ptr.vmem [resolvable:$true] %s408_s25 }
 0x38a   :  { %s432_s20 = sshll.u32 %s17689_s11, 4  ;;  %s433_s20 = int_to_ptr.vmem [resolvable:$true] %s432_s20 }
 0x38d   :  { %s17042_s15 = scalar_lea.hbm %s19909_s7, 16 }
 0x38e   :  { %p17043_p2 = scmp.ne.s32.totalorder %s19909_s7, %s17042_s15  ;;  %p17046_p3 = scmp.lt.u32.totalorder %s17042_s15, %s19909_s7 }
 0x390   :  { %p17048_p4 = pnand %p17046_p3, %p17043_p2 }
 0x392   :  { %17051 = shalt.err (!%p17048_p4)
}
 0x393   :  { %s17052_s16 = scalar_lea.vmem %s409_s25, 16  ;;  %s17056_s27 = scalar_lea.vmem %s409_s25, 32 }
 0x394   :  { %p17053_p5 = scmp.ne.s32.totalorder %s409_s25, %s17052_s16  ;;  %p17057_p6 = scmp.lt.s32.totalorder %s409_s25, %s409_s25 }
 0x395   :  { %p17058_p7 = scmp.lt.s32.totalorder %s17056_s27, %s17052_s16 }
 0x397   :  { %p17059_p8 = por %p17058_p7, %p17057_p6 }
 0x399   :  { %p17060_p9 = pnand %p17059_p8, %p17053_p5 }
 0x39b   :  { %17063 = shalt.err (!%p17060_p9)
}
 0x39c   :  { %s19910_s3 = sld [smem:[#allocation140_spill]] }
 0x39d   :  { %411 = dma.hbm_to_vmem [thread:$0]  %s19909_s7, 16, %s409_s25, [#allocation30]  }
 0x3a2   :  { %s17064_s24 = scalar_lea.hbm %s19910_s3, 16 }
 0x3a3   :  { %p17065_p10 = scmp.ne.s32.totalorder %s19910_s3, %s17064_s24  ;;  %p17068_p11 = scmp.lt.u32.totalorder %s17064_s24, %s19910_s3 }
 0x3a5   :  { %p17070_p12 = pnand %p17068_p11, %p17065_p10 }
 0x3a7   :  { %17073 = shalt.err (!%p17070_p12)
}
 0x3a8   :  { %s17074_s19 = scalar_lea.vmem %s433_s20, 16  ;;  %s17078_s18 = scalar_lea.vmem %s433_s20, 32 }
 0x3a9   :  { %p17075_p13 = scmp.ne.s32.totalorder %s433_s20, %s17074_s19  ;;  %p17079_p0 = scmp.lt.s32.totalorder %s433_s20, %s433_s20 }
 0x3aa   :  { %p17080_p1 = scmp.lt.s32.totalorder %s17078_s18, %s17074_s19 }
 0x3ac   :  { %p17081_p2 = por %p17080_p1, %p17079_p0 }
 0x3ae   :  { %p17082_p3 = pnand %p17081_p2, %p17075_p13 }
 0x3b0   :  { %17085 = shalt.err (!%p17082_p3)
}
 0x3b1   :  { %s19911_s22 = sld [smem:[#allocation141_spill]]  ;;  %s17690_s23 = smov [#allocation37]  }
 0x3b2   :  { %435 = dma.hbm_to_vmem [thread:$0]  %s19910_s3, 16, %s433_s20, [#allocation33]  }
 0x3b3   :  { %s454_s26 = sshll.u32 %s17690_s23, 4  ;;  %s17691_s28 = smov [#allocation40]   ;;  %s455_s26 = int_to_ptr.vmem [resolvable:$true] %s454_s26 }
 0x3b4   :  { %s474_s5 = sshll.u32 %s17691_s28, 4  ;;  %s475_s5 = int_to_ptr.vmem [resolvable:$true] %s474_s5 }
 0x3b7   :  { %s17086_s8 = scalar_lea.hbm %s19911_s22, 16 }
 0x3b8   :  { %p17087_p4 = scmp.ne.s32.totalorder %s19911_s22, %s17086_s8  ;;  %p17090_p5 = scmp.lt.u32.totalorder %s17086_s8, %s19911_s22 }
 0x3ba   :  { %p17092_p6 = pnand %p17090_p5, %p17087_p4 }
 0x3bc   :  { %17095 = shalt.err (!%p17092_p6)
}
 0x3bd   :  { %s17096_s14 = scalar_lea.vmem %s455_s26, 16  ;;  %s17100_s17 = scalar_lea.vmem %s455_s26, 32 }
 0x3be   :  { %p17097_p7 = scmp.ne.s32.totalorder %s455_s26, %s17096_s14  ;;  %p17101_p8 = scmp.lt.s32.totalorder %s455_s26, %s455_s26 }
 0x3bf   :  { %p17102_p9 = scmp.lt.s32.totalorder %s17100_s17, %s17096_s14 }
 0x3c1   :  { %p17103_p10 = por %p17102_p9, %p17101_p8 }
 0x3c3   :  { %p17104_p11 = pnand %p17103_p10, %p17097_p7 }
 0x3c5   :  { %17107 = shalt.err (!%p17104_p11)
}
 0x3c6   :  { %s19912_s1 = sld [smem:[#allocation142_spill]] }
 0x3c7   :  { %457 = dma.hbm_to_vmem [thread:$0]  %s19911_s22, 16, %s455_s26, [#allocation36]  }
 0x3cc   :  { %s17108_s4 = scalar_lea.hbm %s19912_s1, 16 }
 0x3cd   :  { %p17109_p12 = scmp.ne.s32.totalorder %s19912_s1, %s17108_s4  ;;  %p17112_p13 = scmp.lt.u32.totalorder %s17108_s4, %s19912_s1 }
 0x3cf   :  { %p17114_p0 = pnand %p17112_p13, %p17109_p12 }
 0x3d1   :  { %17117 = shalt.err (!%p17114_p0)
}
 0x3d2   :  { %s17118_s29 = scalar_lea.vmem %s475_s5, 16  ;;  %s17122_s2 = scalar_lea.vmem %s475_s5, 32 }
 0x3d3   :  { %p17119_p1 = scmp.ne.s32.totalorder %s475_s5, %s17118_s29  ;;  %p17123_p2 = scmp.lt.s32.totalorder %s475_s5, %s475_s5 }
 0x3d4   :  { %p17124_p3 = scmp.lt.s32.totalorder %s17122_s2, %s17118_s29 }
 0x3d6   :  { %p17125_p4 = por %p17124_p3, %p17123_p2 }
 0x3d8   :  { %p17126_p5 = pnand %p17125_p4, %p17119_p1 }
 0x3da   :  { %17129 = shalt.err (!%p17126_p5)
}
 0x3db   :  { %s19913_s6 = sld [smem:[#allocation143_spill]]  ;;  %s17692_s7 = smov [#allocation43]  }
 0x3dc   :  { %477 = dma.hbm_to_vmem [thread:$0]  %s19912_s1, 16, %s475_s5, [#allocation39]  }
 0x3dd   :  { %s494_s10 = sshll.u32 %s17692_s7, 4  ;;  %s17693_s25 = smov [#allocation46]   ;;  %s495_s10 = int_to_ptr.vmem [resolvable:$true] %s494_s10 }
 0x3de   :  { %s518_s11 = sshll.u32 %s17693_s25, 4  ;;  %s519_s11 = int_to_ptr.vmem [resolvable:$true] %s518_s11 }
 0x3e1   :  { %s17130_s20 = scalar_lea.hbm %s19913_s6, 16 }
 0x3e2   :  { %p17131_p6 = scmp.ne.s32.totalorder %s19913_s6, %s17130_s20  ;;  %p17134_p7 = scmp.lt.u32.totalorder %s17130_s20, %s19913_s6 }
 0x3e4   :  { %p17136_p8 = pnand %p17134_p7, %p17131_p6 }
 0x3e6   :  { %17139 = shalt.err (!%p17136_p8)
}
 0x3e7   :  { %s17140_s15 = scalar_lea.vmem %s495_s10, 16  ;;  %s17144_s16 = scalar_lea.vmem %s495_s10, 32 }
 0x3e8   :  { %p17141_p9 = scmp.ne.s32.totalorder %s495_s10, %s17140_s15  ;;  %p17145_p10 = scmp.lt.s32.totalorder %s495_s10, %s495_s10 }
 0x3e9   :  { %p17146_p11 = scmp.lt.s32.totalorder %s17144_s16, %s17140_s15 }
 0x3eb   :  { %p17147_p12 = por %p17146_p11, %p17145_p10 }
 0x3ed   :  { %p17148_p13 = pnand %p17147_p12, %p17141_p9 }
 0x3ef   :  { %17151 = shalt.err (!%p17148_p13)
}
 0x3f0   :  { %s19914_s27 = sld [smem:[#allocation146_spill]] }
 0x3f1   :  { %497 = dma.hbm_to_vmem [thread:$0]  %s19913_s6, 16, %s495_s10, [#allocation42]  }
 0x3f6   :  { %s17152_s3 = scalar_lea.hbm %s19914_s27, 16 }
 0x3f7   :  { %p17153_p0 = scmp.ne.s32.totalorder %s19914_s27, %s17152_s3  ;;  %p17156_p1 = scmp.lt.u32.totalorder %s17152_s3, %s19914_s27 }
 0x3f9   :  { %p17158_p2 = pnand %p17156_p1, %p17153_p0 }
 0x3fb   :  { %17161 = shalt.err (!%p17158_p2)
}
 0x3fc   :  { %s17162_s24 = scalar_lea.vmem %s519_s11, 16  ;;  %s17166_s19 = scalar_lea.vmem %s519_s11, 32 }
 0x3fd   :  { %p17163_p3 = scmp.ne.s32.totalorder %s519_s11, %s17162_s24  ;;  %p17167_p4 = scmp.lt.s32.totalorder %s519_s11, %s519_s11 }
 0x3fe   :  { %p17168_p5 = scmp.lt.s32.totalorder %s17166_s19, %s17162_s24 }
 0x400   :  { %p17169_p6 = por %p17168_p5, %p17167_p4 }
 0x402   :  { %p17170_p7 = pnand %p17169_p6, %p17163_p3 }
 0x404   :  { %17173 = shalt.err (!%p17170_p7)
}
 0x405   :  { %s19915_s18 = sld [smem:[#allocation148_spill]]  ;;  %s17694_s22 = smov [#allocation49]  }
 0x406   :  { %521 = dma.hbm_to_vmem [thread:$0]  %s19914_s27, 16, %s519_s11, [#allocation45]  }
 0x407   :  { %s538_s23 = sshll.u32 %s17694_s22, 4  ;;  %s17695_s26 = smov [#allocation52]   ;;  %s539_s23 = int_to_ptr.vmem [resolvable:$true] %s538_s23 }
 0x408   :  { %s558_s28 = sshll.u32 %s17695_s26, 4  ;;  %s559_s28 = int_to_ptr.vmem [resolvable:$true] %s558_s28 }
 0x40b   :  { %s17174_s5 = scalar_lea.hbm %s19915_s18, 16 }
 0x40c   :  { %p17175_p8 = scmp.ne.s32.totalorder %s19915_s18, %s17174_s5  ;;  %p17178_p9 = scmp.lt.u32.totalorder %s17174_s5, %s19915_s18 }
 0x40e   :  { %p17180_p10 = pnand %p17178_p9, %p17175_p8 }
 0x410   :  { %17183 = shalt.err (!%p17180_p10)
}
 0x411   :  { %s17184_s8 = scalar_lea.vmem %s539_s23, 16  ;;  %s17188_s14 = scalar_lea.vmem %s539_s23, 32 }
 0x412   :  { %p17185_p11 = scmp.ne.s32.totalorder %s539_s23, %s17184_s8  ;;  %p17189_p12 = scmp.lt.s32.totalorder %s539_s23, %s539_s23 }
 0x413   :  { %p17190_p13 = scmp.lt.s32.totalorder %s17188_s14, %s17184_s8 }
 0x415   :  { %p17191_p0 = por %p17190_p13, %p17189_p12 }
 0x417   :  { %p17192_p1 = pnand %p17191_p0, %p17185_p11 }
 0x419   :  { %17195 = shalt.err (!%p17192_p1)
}
 0x41a   :  { %s19916_s17 = sld [smem:[#allocation150_spill]] }
 0x41b   :  { %541 = dma.hbm_to_vmem [thread:$0]  %s19915_s18, 16, %s539_s23, [#allocation48]  }
 0x420   :  { %s17196_s1 = scalar_lea.hbm %s19916_s17, 16 }
 0x421   :  { %p17197_p2 = scmp.ne.s32.totalorder %s19916_s17, %s17196_s1  ;;  %p17200_p3 = scmp.lt.u32.totalorder %s17196_s1, %s19916_s17 }
 0x423   :  { %p17202_p4 = pnand %p17200_p3, %p17197_p2 }
 0x425   :  { %17205 = shalt.err (!%p17202_p4)
}
 0x426   :  { %s17206_s4 = scalar_lea.vmem %s559_s28, 16  ;;  %s17210_s29 = scalar_lea.vmem %s559_s28, 32 }
 0x427   :  { %p17207_p5 = scmp.ne.s32.totalorder %s559_s28, %s17206_s4  ;;  %p17211_p6 = scmp.lt.s32.totalorder %s559_s28, %s559_s28 }
 0x428   :  { %p17212_p7 = scmp.lt.s32.totalorder %s17210_s29, %s17206_s4 }
 0x42a   :  { %p17213_p8 = por %p17212_p7, %p17211_p6 }
 0x42c   :  { %p17214_p9 = pnand %p17213_p8, %p17207_p5 }
 0x42e   :  { %17217 = shalt.err (!%p17214_p9)
}
 0x42f   :  { %s19917_s2 = sld [smem:[#allocation154_spill]]  ;;  %s17696_s6 = smov [#allocation55]  }
 0x430   :  { %561 = dma.hbm_to_vmem [thread:$0]  %s19916_s17, 16, %s559_s28, [#allocation51]  }
 0x431   :  { %s582_s7 = sshll.u32 %s17696_s6, 4  ;;  %s17697_s10 = smov [#allocation58]   ;;  %s583_s7 = int_to_ptr.vmem [resolvable:$true] %s582_s7 }
 0x432   :  { %s606_s25 = sshll.u32 %s17697_s10, 4  ;;  %s607_s25 = int_to_ptr.vmem [resolvable:$true] %s606_s25 }
 0x435   :  { %s17218_s11 = scalar_lea.hbm %s19917_s2, 16 }
 0x436   :  { %p17219_p10 = scmp.ne.s32.totalorder %s19917_s2, %s17218_s11  ;;  %p17222_p11 = scmp.lt.u32.totalorder %s17218_s11, %s19917_s2 }
 0x438   :  { %p17224_p12 = pnand %p17222_p11, %p17219_p10 }
 0x43a   :  { %17227 = shalt.err (!%p17224_p12)
}
 0x43b   :  { %s17228_s20 = scalar_lea.vmem %s583_s7, 16  ;;  %s17232_s15 = scalar_lea.vmem %s583_s7, 32 }
 0x43c   :  { %p17229_p13 = scmp.ne.s32.totalorder %s583_s7, %s17228_s20  ;;  %p17233_p0 = scmp.lt.s32.totalorder %s583_s7, %s583_s7 }
 0x43d   :  { %p17234_p1 = scmp.lt.s32.totalorder %s17232_s15, %s17228_s20 }
 0x43f   :  { %p17235_p2 = por %p17234_p1, %p17233_p0 }
 0x441   :  { %p17236_p3 = pnand %p17235_p2, %p17229_p13 }
 0x443   :  { %17239 = shalt.err (!%p17236_p3)
}
 0x444   :  { %s19918_s16 = sld [smem:[#allocation158_spill]] }
 0x445   :  { %585 = dma.hbm_to_vmem [thread:$0]  %s19917_s2, 16, %s583_s7, [#allocation54]  }
 0x44a   :  { %s17240_s27 = scalar_lea.hbm %s19918_s16, 16 }
 0x44b   :  { %p17241_p4 = scmp.ne.s32.totalorder %s19918_s16, %s17240_s27  ;;  %p17244_p5 = scmp.lt.u32.totalorder %s17240_s27, %s19918_s16 }
 0x44d   :  { %p17246_p6 = pnand %p17244_p5, %p17241_p4 }
 0x44f   :  { %17249 = shalt.err (!%p17246_p6)
}
 0x450   :  { %s17250_s3 = scalar_lea.vmem %s607_s25, 16  ;;  %s17254_s24 = scalar_lea.vmem %s607_s25, 32 }
 0x451   :  { %p17251_p7 = scmp.ne.s32.totalorder %s607_s25, %s17250_s3  ;;  %p17255_p8 = scmp.lt.s32.totalorder %s607_s25, %s607_s25 }
 0x452   :  { %p17256_p9 = scmp.lt.s32.totalorder %s17254_s24, %s17250_s3 }
 0x454   :  { %p17257_p10 = por %p17256_p9, %p17255_p8 }
 0x456   :  { %p17258_p11 = pnand %p17257_p10, %p17251_p7 }
 0x458   :  { %17261 = shalt.err (!%p17258_p11)
}
 0x459   :  { %s19919_s19 = sld [smem:[#allocation160_spill]]  ;;  %s17698_s18 = smov [#allocation61]  }
 0x45a   :  { %609 = dma.hbm_to_vmem [thread:$0]  %s19918_s16, 16, %s607_s25, [#allocation57]  }
 0x45b   :  { %s626_s22 = sshll.u32 %s17698_s18, 4  ;;  %s17699_s23 = smov [#allocation64]   ;;  %s627_s22 = int_to_ptr.vmem [resolvable:$true] %s626_s22 }
 0x45c   :  { %s646_s26 = sshll.u32 %s17699_s23, 4  ;;  %s647_s26 = int_to_ptr.vmem [resolvable:$true] %s646_s26 }
 0x45f   :  { %s17262_s28 = scalar_lea.hbm %s19919_s19, 16 }
 0x460   :  { %p17263_p12 = scmp.ne.s32.totalorder %s19919_s19, %s17262_s28  ;;  %p17266_p13 = scmp.lt.u32.totalorder %s17262_s28, %s19919_s19 }
 0x462   :  { %p17268_p0 = pnand %p17266_p13, %p17263_p12 }
 0x464   :  { %17271 = shalt.err (!%p17268_p0)
}
 0x465   :  { %s17272_s5 = scalar_lea.vmem %s627_s22, 16  ;;  %s17276_s8 = scalar_lea.vmem %s627_s22, 32 }
 0x466   :  { %p17273_p1 = scmp.ne.s32.totalorder %s627_s22, %s17272_s5  ;;  %p17277_p2 = scmp.lt.s32.totalorder %s627_s22, %s627_s22 }
 0x467   :  { %p17278_p3 = scmp.lt.s32.totalorder %s17276_s8, %s17272_s5 }
 0x469   :  { %p17279_p4 = por %p17278_p3, %p17277_p2 }
 0x46b   :  { %p17280_p5 = pnand %p17279_p4, %p17273_p1 }
 0x46d   :  { %17283 = shalt.err (!%p17280_p5)
}
 0x46e   :  { %s19920_s14 = sld [smem:[#allocation162_spill]] }
 0x46f   :  { %629 = dma.hbm_to_vmem [thread:$0]  %s19919_s19, 16, %s627_s22, [#allocation60]  }
 0x474   :  { %s17284_s17 = scalar_lea.hbm %s19920_s14, 16 }
 0x475   :  { %p17285_p6 = scmp.ne.s32.totalorder %s19920_s14, %s17284_s17  ;;  %p17288_p7 = scmp.lt.u32.totalorder %s17284_s17, %s19920_s14 }
 0x477   :  { %p17290_p8 = pnand %p17288_p7, %p17285_p6 }
 0x479   :  { %17293 = shalt.err (!%p17290_p8)
}
 0x47a   :  { %s17294_s1 = scalar_lea.vmem %s647_s26, 16  ;;  %s17298_s4 = scalar_lea.vmem %s647_s26, 32 }
 0x47b   :  { %p17295_p9 = scmp.ne.s32.totalorder %s647_s26, %s17294_s1  ;;  %p17299_p10 = scmp.lt.s32.totalorder %s647_s26, %s647_s26 }
 0x47c   :  { %p17300_p11 = scmp.lt.s32.totalorder %s17298_s4, %s17294_s1 }
 0x47e   :  { %p17301_p12 = por %p17300_p11, %p17299_p10 }
 0x480   :  { %p17302_p13 = pnand %p17301_p12, %p17295_p9 }
 0x482   :  { %17305 = shalt.err (!%p17302_p13)
}
 0x483   :  { %s19921_s29 = sld [smem:[#allocation166_spill]]  ;;  %s17700_s2 = smov [#allocation67]  }
 0x484   :  { %649 = dma.hbm_to_vmem [thread:$0]  %s19920_s14, 16, %s647_s26, [#allocation63]  }
 0x485   :  { %s670_s6 = sshll.u32 %s17700_s2, 4  ;;  %s17701_s7 = smov [#allocation70]   ;;  %s671_s6 = int_to_ptr.vmem [resolvable:$true] %s670_s6 }
 0x486   :  { %s694_s10 = sshll.u32 %s17701_s7, 4  ;;  %s695_s10 = int_to_ptr.vmem [resolvable:$true] %s694_s10 }
 0x489   :  { %s17306_s25 = scalar_lea.hbm %s19921_s29, 16 }
 0x48a   :  { %p17307_p0 = scmp.ne.s32.totalorder %s19921_s29, %s17306_s25  ;;  %p17310_p1 = scmp.lt.u32.totalorder %s17306_s25, %s19921_s29 }
 0x48c   :  { %p17312_p2 = pnand %p17310_p1, %p17307_p0 }
 0x48e   :  { %17315 = shalt.err (!%p17312_p2)
}
 0x48f   :  { %s17316_s11 = scalar_lea.vmem %s671_s6, 16  ;;  %s17320_s20 = scalar_lea.vmem %s671_s6, 32 }
 0x490   :  { %p17317_p3 = scmp.ne.s32.totalorder %s671_s6, %s17316_s11  ;;  %p17321_p4 = scmp.lt.s32.totalorder %s671_s6, %s671_s6 }
 0x491   :  { %p17322_p5 = scmp.lt.s32.totalorder %s17320_s20, %s17316_s11 }
 0x493   :  { %p17323_p6 = por %p17322_p5, %p17321_p4 }
 0x495   :  { %p17324_p7 = pnand %p17323_p6, %p17317_p3 }
 0x497   :  { %17327 = shalt.err (!%p17324_p7)
}
 0x498   :  { %s19922_s15 = sld [smem:[#allocation170_spill]] }
 0x499   :  { %673 = dma.hbm_to_vmem [thread:$0]  %s19921_s29, 16, %s671_s6, [#allocation66]  }
 0x49e   :  { %s17328_s16 = scalar_lea.hbm %s19922_s15, 16 }
 0x49f   :  { %p17329_p8 = scmp.ne.s32.totalorder %s19922_s15, %s17328_s16  ;;  %p17332_p9 = scmp.lt.u32.totalorder %s17328_s16, %s19922_s15 }
 0x4a1   :  { %p17334_p10 = pnand %p17332_p9, %p17329_p8 }
 0x4a3   :  { %17337 = shalt.err (!%p17334_p10)
}
 0x4a4   :  { %s17338_s27 = scalar_lea.vmem %s695_s10, 16  ;;  %s17342_s3 = scalar_lea.vmem %s695_s10, 32 }
 0x4a5   :  { %p17339_p11 = scmp.ne.s32.totalorder %s695_s10, %s17338_s27  ;;  %p17343_p12 = scmp.lt.s32.totalorder %s695_s10, %s695_s10 }
 0x4a6   :  { %p17344_p13 = scmp.lt.s32.totalorder %s17342_s3, %s17338_s27 }
 0x4a8   :  { %p17345_p0 = por %p17344_p13, %p17343_p12 }
 0x4aa   :  { %p17346_p1 = pnand %p17345_p0, %p17339_p11 }
 0x4ac   :  { %17349 = shalt.err (!%p17346_p1)
}
 0x4ad   :  { %s19923_s24 = sld [smem:[#allocation172_spill]]  ;;  %s17702_s19 = smov [#allocation73]  }
 0x4ae   :  { %697 = dma.hbm_to_vmem [thread:$0]  %s19922_s15, 16, %s695_s10, [#allocation69]  }
 0x4af   :  { %s714_s18 = sshll.u32 %s17702_s19, 4  ;;  %s17703_s22 = smov [#allocation76]   ;;  %s715_s18 = int_to_ptr.vmem [resolvable:$true] %s714_s18 }
 0x4b0   :  { %s734_s23 = sshll.u32 %s17703_s22, 4  ;;  %s735_s23 = int_to_ptr.vmem [resolvable:$true] %s734_s23 }
 0x4b3   :  { %s17350_s26 = scalar_lea.hbm %s19923_s24, 16 }
 0x4b4   :  { %p17351_p2 = scmp.ne.s32.totalorder %s19923_s24, %s17350_s26  ;;  %p17354_p3 = scmp.lt.u32.totalorder %s17350_s26, %s19923_s24 }
 0x4b6   :  { %p17356_p4 = pnand %p17354_p3, %p17351_p2 }
 0x4b8   :  { %17359 = shalt.err (!%p17356_p4)
}
 0x4b9   :  { %s17360_s28 = scalar_lea.vmem %s715_s18, 16  ;;  %s17364_s5 = scalar_lea.vmem %s715_s18, 32 }
 0x4ba   :  { %p17361_p5 = scmp.ne.s32.totalorder %s715_s18, %s17360_s28  ;;  %p17365_p6 = scmp.lt.s32.totalorder %s715_s18, %s715_s18 }
 0x4bb   :  { %p17366_p7 = scmp.lt.s32.totalorder %s17364_s5, %s17360_s28 }
 0x4bd   :  { %p17367_p8 = por %p17366_p7, %p17365_p6 }
 0x4bf   :  { %p17368_p9 = pnand %p17367_p8, %p17361_p5 }
 0x4c1   :  { %17371 = shalt.err (!%p17368_p9)
}
 0x4c2   :  { %s19924_s8 = sld [smem:[#allocation174_spill]] }
 0x4c3   :  { %717 = dma.hbm_to_vmem [thread:$0]  %s19923_s24, 16, %s715_s18, [#allocation72]  }
 0x4c8   :  { %s17372_s14 = scalar_lea.hbm %s19924_s8, 16 }
 0x4c9   :  { %p17373_p10 = scmp.ne.s32.totalorder %s19924_s8, %s17372_s14  ;;  %p17376_p11 = scmp.lt.u32.totalorder %s17372_s14, %s19924_s8 }
 0x4cb   :  { %p17378_p12 = pnand %p17376_p11, %p17373_p10 }
 0x4cd   :  { %17381 = shalt.err (!%p17378_p12)
}
 0x4ce   :  { %s17382_s17 = scalar_lea.vmem %s735_s23, 16  ;;  %s17386_s1 = scalar_lea.vmem %s735_s23, 32 }
 0x4cf   :  { %p17383_p13 = scmp.ne.s32.totalorder %s735_s23, %s17382_s17  ;;  %p17387_p0 = scmp.lt.s32.totalorder %s735_s23, %s735_s23 }
 0x4d0   :  { %p17388_p1 = scmp.lt.s32.totalorder %s17386_s1, %s17382_s17 }
 0x4d2   :  { %p17389_p2 = por %p17388_p1, %p17387_p0 }
 0x4d4   :  { %p17390_p3 = pnand %p17389_p2, %p17383_p13 }
 0x4d6   :  { %17393 = shalt.err (!%p17390_p3)
}
 0x4d7   :  { %s19925_s4 = sld [smem:[#allocation178_spill]]  ;;  %s17704_s29 = smov [#allocation79]  }
 0x4d8   :  { %737 = dma.hbm_to_vmem [thread:$0]  %s19924_s8, 16, %s735_s23, [#allocation75]  }
 0x4d9   :  { %s758_s2 = sshll.u32 %s17704_s29, 4  ;;  %s17705_s6 = smov [#allocation82]   ;;  %s759_s2 = int_to_ptr.vmem [resolvable:$true] %s758_s2 }
 0x4da   :  { %s784_s7 = sshll.u32 %s17705_s6, 4  ;;  %s785_s7 = int_to_ptr.vmem [resolvable:$true] %s784_s7 }
 0x4dd   :  { %s17394_s10 = scalar_lea.hbm %s19925_s4, 16 }
 0x4de   :  { %p17395_p4 = scmp.ne.s32.totalorder %s19925_s4, %s17394_s10  ;;  %p17398_p5 = scmp.lt.u32.totalorder %s17394_s10, %s19925_s4 }
 0x4e0   :  { %p17400_p6 = pnand %p17398_p5, %p17395_p4 }
 0x4e2   :  { %17403 = shalt.err (!%p17400_p6)
}
 0x4e3   :  { %s17404_s25 = scalar_lea.vmem %s759_s2, 16  ;;  %s17408_s11 = scalar_lea.vmem %s759_s2, 32 }
 0x4e4   :  { %p17405_p7 = scmp.ne.s32.totalorder %s759_s2, %s17404_s25  ;;  %p17409_p8 = scmp.lt.s32.totalorder %s759_s2, %s759_s2 }
 0x4e5   :  { %p17410_p9 = scmp.lt.s32.totalorder %s17408_s11, %s17404_s25 }
 0x4e7   :  { %p17411_p10 = por %p17410_p9, %p17409_p8 }
 0x4e9   :  { %p17412_p11 = pnand %p17411_p10, %p17405_p7 }
 0x4eb   :  { %17415 = shalt.err (!%p17412_p11)
}
 0x4ec   :  { %s19926_s20 = sld [smem:[#allocation183_spill]] }
 0x4ed   :  { %761 = dma.hbm_to_vmem [thread:$0]  %s19925_s4, 16, %s759_s2, [#allocation78]  }
 0x4f2   :  { %s17416_s15 = scalar_lea.hbm %s19926_s20, 16 }
 0x4f3   :  { %p17417_p12 = scmp.ne.s32.totalorder %s19926_s20, %s17416_s15  ;;  %p17420_p13 = scmp.lt.u32.totalorder %s17416_s15, %s19926_s20 }
 0x4f5   :  { %p17422_p0 = pnand %p17420_p13, %p17417_p12 }
 0x4f7   :  { %17425 = shalt.err (!%p17422_p0)
}
 0x4f8   :  { %s17426_s16 = scalar_lea.vmem %s785_s7, 16  ;;  %s17430_s27 = scalar_lea.vmem %s785_s7, 32 }
 0x4f9   :  { %p17427_p1 = scmp.ne.s32.totalorder %s785_s7, %s17426_s16  ;;  %p17431_p2 = scmp.lt.s32.totalorder %s785_s7, %s785_s7 }
 0x4fa   :  { %p17432_p3 = scmp.lt.s32.totalorder %s17430_s27, %s17426_s16 }
 0x4fc   :  { %p17433_p4 = por %p17432_p3, %p17431_p2 }
 0x4fe   :  { %p17434_p5 = pnand %p17433_p4, %p17427_p1 }
 0x500   :  { %17437 = shalt.err (!%p17434_p5)
}
 0x501   :  { %s19927_s3 = sld [smem:[#allocation185_spill]]  ;;  %s17706_s24 = smov [#allocation85]  }
 0x502   :  { %787 = dma.hbm_to_vmem [thread:$0]  %s19926_s20, 16, %s785_s7, [#allocation81]  }
 0x503   :  { %s804_s19 = sshll.u32 %s17706_s24, 4  ;;  %s17707_s18 = smov [#allocation88]   ;;  %s805_s19 = int_to_ptr.vmem [resolvable:$true] %s804_s19 }
 0x504   :  { %s824_s22 = sshll.u32 %s17707_s18, 4  ;;  %s825_s22 = int_to_ptr.vmem [resolvable:$true] %s824_s22 }
 0x507   :  { %s17438_s23 = scalar_lea.hbm %s19927_s3, 16 }
 0x508   :  { %p17439_p6 = scmp.ne.s32.totalorder %s19927_s3, %s17438_s23  ;;  %p17442_p7 = scmp.lt.u32.totalorder %s17438_s23, %s19927_s3 }
 0x50a   :  { %p17444_p8 = pnand %p17442_p7, %p17439_p6 }
 0x50c   :  { %17447 = shalt.err (!%p17444_p8)
}
 0x50d   :  { %s17448_s26 = scalar_lea.vmem %s805_s19, 16  ;;  %s17452_s28 = scalar_lea.vmem %s805_s19, 32 }
 0x50e   :  { %p17449_p9 = scmp.ne.s32.totalorder %s805_s19, %s17448_s26  ;;  %p17453_p10 = scmp.lt.s32.totalorder %s805_s19, %s805_s19 }
 0x50f   :  { %p17454_p11 = scmp.lt.s32.totalorder %s17452_s28, %s17448_s26 }
 0x511   :  { %p17455_p12 = por %p17454_p11, %p17453_p10 }
 0x513   :  { %p17456_p13 = pnand %p17455_p12, %p17449_p9 }
 0x515   :  { %17459 = shalt.err (!%p17456_p13)
}
 0x516   :  { %s19928_s5 = sld [smem:[#allocation187_spill]] }
 0x517   :  { %807 = dma.hbm_to_vmem [thread:$0]  %s19927_s3, 16, %s805_s19, [#allocation84]  }
 0x51c   :  { %s17460_s8 = scalar_lea.hbm %s19928_s5, 16 }
 0x51d   :  { %p17461_p0 = scmp.ne.s32.totalorder %s19928_s5, %s17460_s8  ;;  %p17464_p1 = scmp.lt.u32.totalorder %s17460_s8, %s19928_s5 }
 0x51f   :  { %p17466_p2 = pnand %p17464_p1, %p17461_p0 }
 0x521   :  { %17469 = shalt.err (!%p17466_p2)
}
 0x522   :  { %s17470_s14 = scalar_lea.vmem %s825_s22, 16  ;;  %s17474_s17 = scalar_lea.vmem %s825_s22, 32 }
 0x523   :  { %p17471_p3 = scmp.ne.s32.totalorder %s825_s22, %s17470_s14  ;;  %p17475_p4 = scmp.lt.s32.totalorder %s825_s22, %s825_s22 }
 0x524   :  { %p17476_p5 = scmp.lt.s32.totalorder %s17474_s17, %s17470_s14 }
 0x526   :  { %p17477_p6 = por %p17476_p5, %p17475_p4 }
 0x528   :  { %p17478_p7 = pnand %p17477_p6, %p17471_p3 }
 0x52a   :  { %17481 = shalt.err (!%p17478_p7)
}
 0x52b   :  { %827 = dma.hbm_to_vmem [thread:$0]  %s19928_s5, 16, %s825_s22, [#allocation87]  }
 0x52c   :  { %17504 = dma.done.wait [#allocation3], 32  }
 0x52d   :  { %17505 = vsyncadd [#allocation3], 4294967264 }
 0x52e   :  { %17506 = dma.done.wait [#allocation6], 80  }
 0x52f   :  { %17507 = vsyncadd [#allocation6], 4294967216 }
 0x530   :  { %17508 = dma.done.wait [#allocation9], 80  }
 0x531   :  { %17509 = vsyncadd [#allocation9], 4294967216 }
 0x532   :  { %17510 = dma.done.wait [#allocation12], 32  }
 0x533   :  { %17511 = vsyncadd [#allocation12], 4294967264 }
 0x534   :  { %17512 = dma.done.wait [#allocation15], 32  }
 0x535   :  { %17513 = vsyncadd [#allocation15], 4294967264 }
 0x536   :  { %17514 = dma.done.wait [#allocation18], 32  }
 0x537   :  { %17515 = vsyncadd [#allocation18], 4294967264 }
 0x538   :  { %17516 = dma.done.wait [#allocation21], 32  }
 0x539   :  { %17517 = vsyncadd [#allocation21], 4294967264 }
 0x53a   :  { %17518 = dma.done.wait [#allocation24], 32  }
 0x53b   :  { %17519 = vsyncadd [#allocation24], 4294967264 }
 0x53c   :  { %17520 = dma.done.wait [#allocation27], 32  }
 0x53d   :  { %17521 = vsyncadd [#allocation27], 4294967264 }
 0x53e   :  { %17522 = dma.done.wait [#allocation30], 32  }
 0x53f   :  { %17523 = vsyncadd [#allocation30], 4294967264 }
 0x540   :  { %17524 = dma.done.wait [#allocation33], 32  }
 0x541   :  { %17525 = vsyncadd [#allocation33], 4294967264 }
 0x542   :  { %17526 = dma.done.wait [#allocation36], 272  }
 0x543   :  { %17527 = vsyncadd [#allocation36], 4294967024 }
 0x544   :  { %17528 = dma.done.wait [#allocation39], 32  }
 0x545   :  { %17529 = vsyncadd [#allocation39], 4294967264 }
 0x546   :  { %17530 = dma.done.wait [#allocation42], 32  }
 0x547   :  { %17531 = vsyncadd [#allocation42], 4294967264 }
 0x548   :  { %17532 = dma.done.wait [#allocation45], 32  }
 0x549   :  { %17533 = vsyncadd [#allocation45], 4294967264 }
 0x54a   :  { %17534 = dma.done.wait [#allocation48], 32  }
 0x54b   :  { %17535 = vsyncadd [#allocation48], 4294967264 }
 0x54c   :  { %17536 = dma.done.wait [#allocation51], 32  }
 0x54d   :  { %17537 = vsyncadd [#allocation51], 4294967264 }
 0x54e   :  { %17538 = dma.done.wait [#allocation54], 32  }
 0x54f   :  { %17539 = vsyncadd [#allocation54], 4294967264 }
 0x550   :  { %17540 = dma.done.wait [#allocation57], 32  }
 0x551   :  { %17541 = vsyncadd [#allocation57], 4294967264 }
 0x552   :  { %17542 = dma.done.wait [#allocation60], 32  }
 0x553   :  { %17543 = vsyncadd [#allocation60], 4294967264 }
 0x554   :  { %17544 = dma.done.wait [#allocation63], 32  }
 0x555   :  { %17545 = vsyncadd [#allocation63], 4294967264 }
 0x556   :  { %17546 = dma.done.wait [#allocation66], 32  }
 0x557   :  { %17547 = vsyncadd [#allocation66], 4294967264 }
 0x558   :  { %17548 = dma.done.wait [#allocation69], 32  }
 0x559   :  { %17549 = vsyncadd [#allocation69], 4294967264 }
 0x55a   :  { %17550 = dma.done.wait [#allocation72], 32  }
 0x55b   :  { %17551 = vsyncadd [#allocation72], 4294967264 }
 0x55c   :  { %17552 = dma.done.wait [#allocation75], 32  }
 0x55d   :  { %17553 = vsyncadd [#allocation75], 4294967264 }
 0x55e   :  { %17554 = dma.done.wait [#allocation78], 32  }
 0x55f   :  { %17555 = vsyncadd [#allocation78], 4294967264 }
 0x560   :  { %17556 = dma.done.wait [#allocation81], 32  }
 0x561   :  { %17557 = vsyncadd [#allocation81], 4294967264 }
 0x562   :  { %17558 = dma.done.wait [#allocation84], 32  }
 0x563   :  { %17559 = vsyncadd [#allocation84], 4294967264 }
 0x564   :  { %17560 = dma.done.wait [#allocation87], 32  }
 0x565   :  { %17561 = vsyncadd [#allocation87], 4294967264  ;;  %s19929_s1 = sld [smem:[#allocation120_spill]]  ;;  %vm1025_vm0 = vcmask 1043456   ;;  %vm1018_vm1 = vcmask 31744   ;;  %v1196_v6 = vld [vmem:[%s18153_s9] sm:$0xff]  ;;  %v1304_v62 = vlaneseq }
 0x566   :  { %v1010_v0 = vld [vmem:[#allocation7] sm:$0xf]  ;;  %v13986_v3 = vld [vmem:[#allocation5] ss:$0 sm:$0xff]  ;;  %vm1204_vm2 = vcmask 261120   ;;  %s19930_s4 = sld [smem:[#allocation169_spill]] }
 0x567   :  { %14685 = vmatprep.subr.msk.mxu0 %vm1025_vm0, %v1010_v0  ;;  %s19931_s9 = sld [smem:[#allocation121_spill]]  ;;  %v13994_v36 = vld [vmem:[#allocation41] ss:$0 sm:$0xff]  ;;  %v13995_v38 = vld [vmem:[#allocation40] ss:$0 sm:$0xff]  ;;  %v17708_v48 = vmov 0.0  }
 0x568   :  { %14686 = vmatpush3.msk.msra.mxu0 %vm1025_vm0, %v1010_v0  ;;  %v1104_v45 = vld [vmem:[#allocation10] sm:$0xf]  ;;  %vm17709_vm3 = vmmov 0   ;;  %v13999_v49 = vld [vmem:[#allocation68] ss:$0 sm:$0xff]  ;;  %s17710_s29 = smov 96  }
 0x569   :  { %14690 = vmatprep.subr.msk.mxu1 %vm1025_vm0, %v1104_v45  ;;  %vm1458_vm4 = vcmask 64512   ;;  %v17711_v60 = vmov 1966171168   ;;  %v18457_v0 = vshrl.u32 %v1304_v62, 7  ;;  %s17713_s2 = smov 88   ;;  %s17714_s6 = smov 120  }
 0x56a   :  { %14691 = vmatpush3.msk.msra.mxu1 %vm1025_vm0, %v1104_v45  ;;  %v1302_v61 = vunpack.c.l.s4 %v17711_v60  ;;  %s17715_s7 = smov 80   ;;  %s17716_s10 = smov 64   ;;  %vm3283_vm7 = vcmask 523264  }
 0x56b   :  { %v1005_v1 = vld [vmem:[%s19929_s1] sm:$0xff]  ;;  %v1006_v2 = vld [vmem:[%s19929_s1 + $0x8] sm:$0xff]  ;;  %14706 = vmatprep.subr.mxu1 %v17708_v48  ;;  %s17717_s25 = smov 56   ;;  %s17718_s11 = smov 112  }
 0x56c   :  { %14687 = vmatprep.mubr.msk.f32.mxu0 %vm1018_vm1, %v1005_v1  ;;  %v1344_v23 = vld [vmem:[%s19930_s4] sm:$0xff]  ;;  %v1345_v24 = vld [vmem:[%s19930_s4 + $0x8] sm:$0xff]  ;;  %v1346_v25 = vld [vmem:[%s19930_s4 + $0x10] sm:$0xff]  ;;  %v1303_v63 = vunpack.c.0.s8 %v1302_v61  ;;  %s17719_s20 = smov 48   ;;  %s17720_s15 = smov 72  }
 0x56d   :  { %14688 = vmatmul.mubr.msk.f32.vlgmr.msra.gmra.mrb[0].mxu0 %vm1018_vm1, %v1006_v2  ;;  %v15547_v26 = vpack.c.bf16 %v1345_v24, %v1344_v23  ;;  %v1347_v27 = vld [vmem:[%s19930_s4 + $0x18] sm:$0xff]  ;;  %v1007_v46 = vld [vmem:[%s19931_s9] sm:$0xff]  ;;  %v1008_v47 = vld [vmem:[%s19931_s9 + $0x8] sm:$0xff]  ;;  %s17721_s16 = smov 104   ;;  %s19934_s27 = sld [smem:[#allocation168_spill]] }
 0x56e   :  { %v15551_v28 = vpack.c.bf16 %v1347_v27, %v1346_v25  ;;  %14692 = vmatprep.mubr.msk.f32.mxu1 %vm1018_vm1, %v1007_v46  ;;  %v13998_v1 = vld.sshfl [vmem:[#allocation2] sm:$0x11 pattern:$0x75316420]  ;;  %s17722_s3 = smov 40   ;;  %s19935_s24 = sld [smem:[#allocation176_spill]] }
 0x56f   :  { %15548 = vmatprep.subr.bf16.mxu0 %v15547_v26  ;;  %14693 = vmatmul.mubr.msk.f32.vlgmr.msra.gmra.mrb[0].mxu1 %vm1018_vm1, %v1008_v47  ;;  %v1300_v2 = vcombine.high %v13998_v1, %v13998_v1  ;;  %s19936_s19 = sld [smem:[#allocation177_spill]]  ;;  %s19937_s18 = sld [smem:[#allocation181_spill]] }
 0x570   :  { %15550 = vmatpush3.bf16.msra.mxu0 %v15547_v26  ;;  %14708 = vmatprep.mubr.msk.f32.mxu1 %vm17709_vm3, %v17708_v48  ;;  %s19938_s22 = sld [smem:[#allocation179_spill]]  ;;  %s19939_s23 = sld [smem:[#allocation180_spill]] }
 0x571   :  { %15552 = vmatprep.subr.bf16.mxu0 %v15551_v28  ;;  %s19940_s26 = sld [smem:[#allocation135_spill]]  ;;  %s19943_s28 = sld [smem:[#allocation144_spill]] }
 0x572   :  { %s19944_s5 = sld [smem:[#allocation152_spill]]  ;;  %s19945_s8 = sld [smem:[#allocation153_spill]] }
 0x573   :  { %s19946_s14 = sld [smem:[#allocation139_spill]]  ;;  %s19947_s17 = sld [smem:[#allocation138_spill]] }
 0x574   :  { %15554 = vmatpush3.bf16.msra.mxu0 %v15551_v28  ;;  %s19948_s1 = sld [smem:[#allocation157_spill]]  ;;  %s19949_s4 = sld [smem:[#allocation156_spill]] }
 0x575   :  { %14716 = vmatprep.subr.mxu0 %v17708_v48  ;;  %s19950_s9 = sld [smem:[#allocation164_spill]] }
 0x640   :  { %v14689_v4 = vpop.f32.mrb[0].mxu0 }
 0x641   :  { %v1095_v5 = vpop.f32.mrb[1].mxu0  ;;  %v1101_v7 = vadd.f32 %v14689_v4, %v13986_v3 }
 0x642   :  { %v1096_v8 = vadd.f32 %v13986_v3, %v1095_v5  ;;  %v18434_v54 = vpop.f32.mrb[0].mxu1  ;;  %v1306_v3 = vsub.s32 %v1303_v63, %v18457_v0  ;;  %v17712_v5 = vmov -3.4028235e+38  }
 0x643   :  { %v1199_v11 = vadd.f32 %v1196_v6, %v1101_v7  ;;  %v18436_v55 = vpop.f32.mrb[1].mxu1  ;;  %v18467_v7 = vsub.s32 0, %v18457_v0 }
 0x644   :  { %v1198_v9 = vadd.f32 %v1196_v6, %v1096_v8  ;;  %v18460_v4 = vrot.slane %v1300_v2, %v1306_v3 }
 0x645   :  { %v1208_v12 = vsel %vm1204_vm2, %v1199_v11, 0.0 }
 0x646   :  { %v1205_v10 = vsel %vm1204_vm2, %v1198_v9, 0.0  ;;  %vm1318_vm5 = vcmp.gt.f32.partialorder %v18460_v4, 0.5 }
 0x647   :  { %1206 = vadd.xlane.f32.xlu0 %v1205_v10  ;;  %v1320_v6 = vsel %vm1318_vm5, 0.0, %v17712_v5 }
 0x648   :  { %v18470_v10 = vrot.slane %v1320_v6, %v18467_v7 }
 0x64b   :  { %1209 = vadd.xlane.f32.xlu0 %v1208_v12 }
 0x6d4   :  { %v1207_v13 = vpop.xlane.xlu0 %1206 }
 0x6d5   :  { %v1212_v14 = vmul.f32 0.03125, %v1207_v13 }
 0x6d7   :  { %v1214_v15 = vsub.f32 %v1198_v9, %v1212_v14 }
 0x6d8   :  { %v1210_v16 = vpop.xlane.xlu0 %1209 }
 0x6d9   :  { %v1213_v17 = vmul.f32 0.03125, %v1210_v16  ;;  %v1216_v18 = vmul.f32 %v1214_v15, %v1214_v15 }
 0x6db   :  { %v1215_v19 = vsub.f32 %v1199_v11, %v1213_v17  ;;  %v1218_v20 = vsel %vm1204_vm2, %v1216_v18, 0.0 }
 0x6dc   :  { %1219 = vadd.xlane.f32.xlu1 %v1218_v20 }
 0x6dd   :  { %v1217_v21 = vmul.f32 %v1215_v19, %v1215_v19 }
 0x6df   :  { %v1221_v22 = vsel %vm1204_vm2, %v1217_v21, 0.0 }
 0x6e0   :  { %1222 = vadd.xlane.f32.xlu1 %v1221_v22 }
 0x769   :  { %v1220_v29 = vpop.xlane.xlu1 %1219 }
 0x76a   :  { %v1224_v30 = vmul.f32 0.03125, %v1220_v29 }
 0x76c   :  { %v1226_v31 = vadd.f32 1e-05, %v1224_v30 }
 0x76d   :  { %v1223_v32 = vpop.xlane.xlu1 %1222 }
 0x76e   :  { %15956 = vrsqrt.f32 %v1226_v31  ;;  %v1225_v33 = vmul.f32 0.03125, %v1223_v32 }
 0x770   :  { %v1227_v34 = vadd.f32 1e-05, %v1225_v33 }
 0x772   :  { %15958 = vrsqrt.f32 %v1227_v34 }
 0x778   :  { %v15957_v35 = vpop.eup %15956 }
 0x779   :  { %v1230_v37 = vmul.f32 %v15957_v35, %v1214_v15  ;;  %v1307_v15 = vrot.slane %v13998_v1, %v1306_v3 }
 0x77b   :  { %v1238_v39 = vmul.f32 %v13994_v36, %v1230_v37  ;;  %vm18478_vm6 = vcmp.gt.f32.partialorder %v1307_v15, 0.5 }
 0x77c   :  { %v15959_v40 = vpop.eup %15958  ;;  %v1319_v17 = vsel %vm18478_vm6, 0.0, %v17712_v5 }
 0x77d   :  { %v1231_v41 = vmul.f32 %v15959_v40, %v1215_v19  ;;  %v18406_v42 = vadd.f32 %v13995_v38, %v1238_v39  ;;  %v18486_v18 = vrot.slane %v1319_v17, %v18467_v7 }
 0x77f   :  { %v1239_v43 = vmul.f32 %v13994_v36, %v1231_v41  ;;  %14703 = vmatprep.mubr.msk.f32.mxu0 %vm1204_vm2, %v18406_v42 }
 0x781   :  { %v18410_v44 = vadd.f32 %v13995_v38, %v1239_v43 }
 0x783   :  { %14704 = vmatmul.mubr.msk.f32.vlgmr.msra.gmra.mrb[2].mxu0 %vm1204_vm2, %v18410_v44 }
 0x784   :  { %14718 = vmatprep.mubr.msk.f32.mxu0 %vm17709_vm3, %v17708_v48 }
 0x856   :  { %v14705_v50 = vpop.f32.mrb[2].mxu0 }
 0x857   :  { %v18426_v51 = vadd.f32 %v14705_v50, %v13999_v49  ;;  %v1432_v52 = vpop.f32.mrb[3].mxu0 }
 0x858   :  { %v18428_v53 = vadd.f32 %v13999_v49, %v1432_v52 }
 0x859   :  { %1535 = vrot.lane.b32.xlu1 %v18426_v51, %s17710_s29  ;;  %v18449_v59 = vmul.f32 0.35355338, %v18426_v51 }
 0x85a   :  { %1456 = vrot.lane.b32.xlu0 %v18428_v53, %s17710_s29  ;;  %v18440_v57 = vmul.f32 0.35355338, %v18428_v53 }
 0x8cb   :  { %v1536_v58 = vpop.permute.xlu1 %1535 }
 0x8cc   :  { %v1457_v56 = vpop.permute.xlu0 %1456 }
 0x8cd   :  { %14707 = vmatpush3.xpose.msk.msra.mxu1 %vm1458_vm4, %v1457_v56 }
 0x8ce   :  { %14711 = vmatprep.subr.mxu1 %v17708_v48 }
 0x8d0   :  { %14709 = vmatmul.mubr.msk.f32.vlgmr.msra.gmra.mrb[2].mxu1 %vm1458_vm4, %v18440_v57 }
 0x8d1   :  { %14712 = vmatpush3.xpose.msk.msra.mxu1 %vm1458_vm4, %v1536_v58  ;;  %14713 = vmatprep.mubr.msk.f32.mxu1 %vm17709_vm3, %v17708_v48 }
 0x8d2   :  { %14721 = vmatprep.subr.mxu1 %v17708_v48 }
 0x8d4   :  { %14714 = vmatmul.mubr.msk.f32.vlgmr.msra.gmra.mrb[4].mxu1 %vm1458_vm4, %v18449_v59 }
 0x8d5   :  { %14723 = vmatprep.mubr.msk.f32.mxu1 %vm17709_vm3, %v17708_v48 }
 0x9a3   :  { %v1530_v8 = vpop.f32.mrb[2].mxu1 }
 0x9a4   :  { %v14710_v9 = vpop.f32.mrb[3].mxu1  ;;  %v1531_v19 = vadd.f32 %v1530_v8, %v18486_v18 }
 0x9a6   :  { %v1612_v20 = vsel %vm1458_vm4, %v1531_v19, -inf }
 0x9a7   :  { %v1608_v11 = vpop.f32.mrb[4].mxu1 }
 0x9a8   :  { %v1609_v12 = vadd.f32 %v1608_v11, %v18470_v10  ;;  %v14715_v13 = vpop.f32.mrb[5].mxu1 }
 0x9aa   :  { %v1615_v14 = vsel %vm1458_vm4, %v1609_v12, -inf }
 0x9ab   :  { %1616 = vmax.xlane.f32.xlu1 %v1615_v14 }
 0x9bc   :  { %1866 = vrot.lane.b32.xlu1 %v18426_v51, %s17713_s2 }
 0x9c0   :  { %1864 = vrot.lane.b32.xlu1 %v18449_v59, %s17714_s6 }
 0x9e4   :  { %1613 = vmax.xlane.f32.xlu1 %v1612_v20 }
 0x9f5   :  { %1788 = vrot.lane.b32.xlu1 %v18428_v53, %s17713_s2 }
 0x9f9   :  { %1786 = vrot.lane.b32.xlu1 %v18440_v57, %s17714_s6 }
 0x9fd   :  { %2280 = vrot.lane.b32.xlu1 %v18428_v53, %s17715_s7 }
 0xa38   :  { %v1617_v21 = vpop.xlane.xlu1 %1616 }
 0xa39   :  { %v1619_v22 = vsub.f32 %v1609_v12, %v1617_v21 }
 0xa3b   :  { %v1622_v23 = vmul.f32 1.442695, %v1619_v22 }
 0xa3c   :  { %v1867_v26 = vpop.permute.xlu1 %1866 }
 0xa3d   :  { %15960 = vpow2.f32 %v1622_v23 }
 0xa40   :  { %v1865_v27 = vpop.permute.xlu1 %1864 }
 0xa47   :  { %v15961_v24 = vpop.eup %15960 }
 0xa48   :  { %v1627_v25 = vsel %vm1458_vm4, %v15961_v24, 0.0 }
 0xa49   :  { %1628 = vadd.xlane.f32.xlu0 %v1627_v25 }
 0xa5f   :  { %1710 = vrot.lane.b32.xlu0 %v18426_v51, %s17716_s10 }
 0xa71   :  { %v1614_v28 = vpop.xlane.xlu1 %1613 }
 0xa72   :  { %v1618_v29 = vsub.f32 %v1531_v19, %v1614_v28 }
 0xa74   :  { %v1620_v30 = vmul.f32 1.442695, %v1618_v29 }
 0xa75   :  { %v1789_v40 = vpop.permute.xlu1 %1788 }
 0xa76   :  { %15962 = vpow2.f32 %v1620_v30 }
 0xa79   :  { %v1787_v43 = vpop.permute.xlu1 %1786 }
 0xa7d   :  { %v2281_v12 = vpop.permute.xlu1 %2280 }
 0xa80   :  { %v15963_v31 = vpop.eup %15962 }
 0xa81   :  { %v1624_v32 = vsel %vm1458_vm4, %v15963_v31, 0.0 }
 0xa82   :  { %1625 = vadd.xlane.f32.xlu0 %v1624_v32 }
 0xa98   :  { %1634 = vrot.lane.b32.xlu0 %v18428_v53, %s17716_s10 }
 0xad6   :  { %v1629_v33 = vpop.xlane.xlu0 %1628 }
 0xad7   :  { %15964 = vrcp.f32 %v1629_v33 }
 0xada   :  { %v1711_v34 = vpop.permute.xlu0 %1710 }
 0xadb   :  { %14722 = vmatpush3.msra.mxu1 %v1711_v34 }
 0xadc   :  { %14731 = vmatprep.subr.mxu1 %v17708_v48 }
 0xae1   :  { %v15965_v35 = vpop.eup %15964 }
 0xae2   :  { %v1633_v36 = vmul.f32 %v15965_v35, %v15961_v24 }
 0xae4   :  { %14724 = vmatmul.mubr.msk.f32.vlgmr.msra.gmra.mrb[6].mxu1 %vm1458_vm4, %v1633_v36 }
 0xae5   :  { %14732 = vmatpush3.xpose.msk.msra.mxu1 %vm1458_vm4, %v1867_v26  ;;  %14733 = vmatprep.mubr.msk.f32.mxu1 %vm17709_vm3, %v17708_v48 }
 0xae6   :  { %14741 = vmatprep.subr.mxu1 %v17708_v48 }
 0xae8   :  { %14734 = vmatmul.mubr.msk.f32.vlgmr.msra.gmra.mrb[8].mxu1 %vm1458_vm4, %v1865_v27 }
 0xae9   :  { %14743 = vmatprep.mubr.msk.f32.mxu1 %vm17709_vm3, %v17708_v48 }
 0xb0f   :  { %v1626_v37 = vpop.xlane.xlu0 %1625 }
 0xb10   :  { %15966 = vrcp.f32 %v1626_v37 }
 0xb13   :  { %v1635_v38 = vpop.permute.xlu0 %1634 }
 0xb14   :  { %14717 = vmatpush3.msra.mxu0 %v1635_v38 }
 0xb15   :  { %14726 = vmatprep.subr.mxu0 %v17708_v48 }
 0xb1a   :  { %v15967_v39 = vpop.eup %15966 }
 0xb1b   :  { %v1632_v41 = vmul.f32 %v15967_v39, %v15963_v31 }
 0xb1d   :  { %14719 = vmatmul.mubr.msk.f32.vlgmr.msra.gmra.mrb[4].mxu0 %vm1458_vm4, %v1632_v41  ;;  %v1349_v41 = vld [vmem:[%s19934_s27] sm:$0xff] }
 0xb1e   :  { %14727 = vmatpush3.xpose.msk.msra.mxu0 %vm1458_vm4, %v1789_v40  ;;  %14728 = vmatprep.mubr.msk.f32.mxu0 %vm17709_vm3, %v17708_v48  ;;  %v1350_v40 = vld [vmem:[%s19934_s27 + $0x8] sm:$0xff] }
 0xb1f   :  { %14736 = vmatprep.subr.mxu0 %v17708_v48 }
 0xb21   :  { %14729 = vmatmul.mubr.msk.f32.vlgmr.msra.gmra.mrb[6].mxu0 %vm1458_vm4, %v1787_v43 }
 0xb22   :  { %14738 = vmatprep.mubr.msk.f32.mxu0 %vm17709_vm3, %v17708_v48 }
 0xbb7   :  { %v18520_v45 = vpop.f32.mrb[6].mxu1 }
 0xbb8   :  { %v14725_v46 = vpop.f32.mrb[7].mxu1 }
 0xbbb   :  { %v1938_v47 = vpop.f32.mrb[8].mxu1 }
 0xbbc   :  { %v1939_v49 = vadd.f32 %v1938_v47, %v18470_v10  ;;  %v14735_v50 = vpop.f32.mrb[9].mxu1 }
 0xbbe   :  { %v1945_v52 = vsel %vm1458_vm4, %v1939_v49, -inf }
 0xbbf   :  { %1946 = vmax.xlane.f32.xlu0 %v1945_v52 }
 0xbd5   :  { %2040 = vrot.lane.b32.xlu0 %v18426_v51, %s17717_s25 }
 0xbd9   :  { %2278 = vrot.lane.b32.xlu0 %v18440_v57, %s17718_s11 }
 0xbdd   :  { %2356 = vrot.lane.b32.xlu0 %v18449_v59, %s17718_s11 }
 0xbf0   :  { %v18530_v56 = vpop.f32.mrb[4].mxu0 }
 0xbf1   :  { %v14720_v58 = vpop.f32.mrb[5].mxu0 }
 0xbf4   :  { %v1860_v60 = vpop.f32.mrb[6].mxu0 }
 0xbf5   :  { %v14730_v61 = vpop.f32.mrb[7].mxu0  ;;  %v1861_v9 = vadd.f32 %v1860_v60, %v18486_v18 }
 0xbf7   :  { %v1942_v11 = vsel %vm1458_vm4, %v1861_v9, -inf }
 0xc4c   :  { %v1947_v63 = vpop.xlane.xlu0 %1946 }
 0xc4d   :  { %v1949_v1 = vsub.f32 %v1939_v49, %v1947_v63 }
 0xc4f   :  { %v1952_v2 = vmul.f32 1.442695, %v1949_v1 }
 0xc50   :  { %v2041_v3 = vpop.permute.xlu0 %2040 }
 0xc51   :  { %15968 = vpow2.f32 %v1952_v2  ;;  %14742 = vmatpush3.msra.mxu1 %v2041_v3 }
 0xc52   :  { %14756 = vmatprep.subr.mxu1 %v17708_v48 }
 0xc54   :  { %v2279_v17 = vpop.permute.xlu0 %2278 }
 0xc58   :  { %v2357_v20 = vpop.permute.xlu0 %2356 }
 0xc5b   :  { %v15969_v6 = vpop.eup %15968 }
 0xc5c   :  { %v1957_v8 = vsel %vm1458_vm4, %v15969_v6, 0.0 }
 0xc5d   :  { %1958 = vadd.xlane.f32.xlu1 %v1957_v8 }
 0xc6e   :  { %2358 = vrot.lane.b32.xlu1 %v18426_v51, %s17715_s7 }
 0xc92   :  { %1943 = vmax.xlane.f32.xlu1 %v1942_v11 }
 0xcea   :  { %v1959_v13 = vpop.xlane.xlu1 %1958 }
 0xceb   :  { %15970 = vrcp.f32 %v1959_v13 }
 0xcee   :  { %v2359_v19 = vpop.permute.xlu1 %2358 }
 0xcf5   :  { %v15971_v14 = vpop.eup %15970 }
 0xcf6   :  { %v1963_v15 = vmul.f32 %v15971_v14, %v15969_v6  ;;  %v1351_v6 = vld [vmem:[%s19934_s27 + $0x10] sm:$0xff] }
 0xcf8   :  { %14744 = vmatmul.mubr.msk.f32.vlgmr.msra.gmra.mrb[10].mxu1 %vm1458_vm4, %v1963_v15 }
 0xcf9   :  { %14757 = vmatpush3.xpose.msk.msra.mxu1 %vm1458_vm4, %v2281_v12  ;;  %14758 = vmatprep.mubr.msk.f32.mxu1 %vm17709_vm3, %v17708_v48 }
 0xcfa   :  { %14761 = vmatprep.subr.mxu1 %v17708_v48 }
 0xcfc   :  { %14759 = vmatmul.mubr.msk.f32.vlgmr.msra.gmra.mrb[12].mxu1 %vm1458_vm4, %v2279_v17 }
 0xcfd   :  { %14762 = vmatpush3.xpose.msk.msra.mxu1 %vm1458_vm4, %v2359_v19  ;;  %14763 = vmatprep.mubr.msk.f32.mxu1 %vm17709_vm3, %v17708_v48 }
 0xcfe   :  { %14771 = vmatprep.subr.mxu1 %v17708_v48 }
 0xd00   :  { %14764 = vmatmul.mubr.msk.f32.vlgmr.msra.gmra.mrb[14].mxu1 %vm1458_vm4, %v2357_v20 }
 0xd01   :  { %14773 = vmatprep.mubr.msk.f32.mxu1 %vm17709_vm3, %v17708_v48 }
 0xd1f   :  { %v1944_v21 = vpop.xlane.xlu1 %1943 }
 0xd20   :  { %v1948_v22 = vsub.f32 %v1861_v9, %v1944_v21 }
 0xd22   :  { %v1950_v23 = vmul.f32 1.442695, %v1948_v22 }
 0xd24   :  { %15972 = vpow2.f32 %v1950_v23 }
 0xd2e   :  { %v15973_v24 = vpop.eup %15972 }
 0xd2f   :  { %v1954_v25 = vsel %vm1458_vm4, %v15973_v24, 0.0 }
 0xd30   :  { %1955 = vadd.xlane.f32.xlu0 %v1954_v25 }
 0xd46   :  { %1964 = vrot.lane.b32.xlu0 %v18428_v53, %s17717_s25 }
 0xd4a   :  { %2532 = vrot.lane.b32.xlu0 %v18426_v51, %s17719_s20 }
 0xd4e   :  { %2693 = vrot.lane.b32.xlu0 %v18428_v53, %s17720_s15 }
 0xd52   :  { %2771 = vrot.lane.b32.xlu0 %v18426_v51, %s17720_s15 }
 0xd56   :  { %2691 = vrot.lane.b32.xlu0 %v18440_v57, %s17721_s16 }
 0xdbd   :  { %v1956_v26 = vpop.xlane.xlu0 %1955 }
 0xdbe   :  { %15974 = vrcp.f32 %v1956_v26 }
 0xdc1   :  { %v1965_v27 = vpop.permute.xlu0 %1964 }
 0xdc2   :  { %14737 = vmatpush3.msra.mxu0 %v1965_v27 }
 0xdc3   :  { %14746 = vmatprep.subr.mxu0 %v1350_v40 }
 0xdc5   :  { %v2533_v28 = vpop.permute.xlu0 %2532 }
 0xdc6   :  { %14772 = vmatpush3.msra.mxu1 %v2533_v28 }
 0xdc7   :  { %14781 = vmatprep.subr.mxu1 %v17708_v48 }
 0xdc8   :  { %v15975_v29 = vpop.eup %15974 }
 0xdc9   :  { %v1962_v30 = vmul.f32 %v15975_v29, %v15973_v24  ;;  %v2694_v9 = vpop.permute.xlu0 %2693 }
 0xdcb   :  { %14739 = vmatmul.mubr.msk.f32.vlgmr.msra.gmra.mrb[8].mxu0 %vm1458_vm4, %v1962_v30  ;;  %v2112_v31 = vpop.f32.mrb[10].mxu1 }
 0xdcc   :  { %v14745_v32 = vpop.f32.mrb[11].mxu1  ;;  %14747 = vmatpush3.msra.mxu0 %v1350_v40 }
 0xdcd   :  { %14751 = vmatprep.subr.mxu0 %v1349_v41  ;;  %v2772_v13 = vpop.permute.xlu0 %2771 }
 0xdcf   :  { %v2352_v33 = vpop.f32.mrb[12].mxu1 }
 0xdd0   :  { %v2353_v34 = vadd.f32 %v2352_v33, %v18486_v18  ;;  %v14760_v57 = vpop.f32.mrb[13].mxu1 }
 0xdd1   :  { %v2692_v14 = vpop.permute.xlu0 %2691 }
 0xdd2   :  { %v2434_v35 = vsel %vm1458_vm4, %v2353_v34, -inf }
 0xdd3   :  { %2435 = vmax.xlane.f32.xlu1 %v2434_v35  ;;  %v2430_v36 = vpop.f32.mrb[14].mxu1 }
 0xdd4   :  { %v2431_v37 = vadd.f32 %v2430_v36, %v18470_v10  ;;  %v14765_v38 = vpop.f32.mrb[15].mxu1 }
 0xdd6   :  { %v2437_v39 = vsel %vm1458_vm4, %v2431_v37, -inf }
 0xdd7   :  { %2438 = vmax.xlane.f32.xlu1 %v2437_v39 }
 0xe60   :  { %v2436_v43 = vpop.xlane.xlu1 %2435 }
 0xe61   :  { %v2440_v46 = vsub.f32 %v2353_v34, %v2436_v43 }
 0xe63   :  { %v2442_v47 = vmul.f32 1.442695, %v2440_v46 }
 0xe64   :  { %v2439_v49 = vpop.xlane.xlu1 %2438 }
 0xe65   :  { %15976 = vpow2.f32 %v2442_v47  ;;  %v2441_v50 = vsub.f32 %v2431_v37, %v2439_v49 }
 0xe67   :  { %v2444_v52 = vmul.f32 1.442695, %v2441_v50  ;;  %v1352_v50 = vld [vmem:[%s19934_s27 + $0x18] sm:$0xff] }
 0xe69   :  { %15978 = vpow2.f32 %v2444_v52 }
 0xe6f   :  { %v15977_v58 = vpop.eup %15976 }
 0xe70   :  { %v2446_v60 = vsel %vm1458_vm4, %v15977_v58, 0.0 }
 0xe71   :  { %2447 = vadd.xlane.f32.xlu1 %v2446_v60 }
 0xe73   :  { %v15979_v61 = vpop.eup %15978 }
 0xe74   :  { %v2449_v63 = vsel %vm1458_vm4, %v15979_v61, 0.0 }
 0xe75   :  { %2450 = vadd.xlane.f32.xlu1 %v2449_v63 }
 0xe86   :  { %2456 = vrot.lane.b32.xlu1 %v18428_v53, %s17719_s20 }
 0xe8a   :  { %2769 = vrot.lane.b32.xlu1 %v18449_v59, %s17721_s16 }
 0xe9e   :  { %v2036_v1 = vpop.f32.mrb[8].mxu0 }
 0xe9f   :  { %v14740_v2 = vpop.f32.mrb[9].mxu0  ;;  %14748 = vmatprep.mubr.msk.f32.mxu0 %vm1458_vm4, %v2036_v1 }
 0xea0   :  { %14749 = vmatmul.mubr.msk.f32.vlgmr.msra.gmra.mrb[10].mxu0 %vm1458_vm4, %v2112_v31 }
 0xea1   :  { %14753 = vmatprep.mubr.msk.f32.mxu0 %vm1458_vm4, %v18530_v56  ;;  %14752 = vmatpush3.msra.mxu0 %v1349_v41 }
 0xea2   :  { %14766 = vmatprep.subr.mxu0 %v17708_v48 }
 0xea8   :  { %14754 = vmatmul.mubr.msk.f32.vlgmr.msra.gmra.mrb[10].mxu0 %vm1458_vm4, %v18520_v45 }
 0xea9   :  { %14768 = vmatprep.mubr.msk.f32.mxu0 %vm17709_vm3, %v17708_v48 }
 0xefe   :  { %v2448_v3 = vpop.xlane.xlu1 %2447 }
 0xeff   :  { %15980 = vrcp.f32 %v2448_v3 }
 0xf02   :  { %v2451_v59 = vpop.xlane.xlu1 %2450 }
 0xf03   :  { %15982 = vrcp.f32 %v2451_v59 }
 0xf06   :  { %v2457_v8 = vpop.permute.xlu1 %2456 }
 0xf07   :  { %14767 = vmatpush3.msra.mxu0 %v2457_v8 }
 0xf08   :  { %14776 = vmatprep.subr.mxu0 %v1351_v6 }
 0xf09   :  { %v15981_v11 = vpop.eup %15980 }
 0xf0a   :  { %v2454_v56 = vmul.f32 %v15981_v11, %v15977_v58  ;;  %v2770_v21 = vpop.permute.xlu1 %2769 }
 0xf0c   :  { %14769 = vmatmul.mubr.msk.f32.vlgmr.msra.gmra.mrb[12].mxu0 %vm1458_vm4, %v2454_v56 }
 0xf0d   :  { %v15983_v12 = vpop.eup %15982  ;;  %14777 = vmatpush3.msra.mxu0 %v1351_v6 }
 0xf0e   :  { %v2455_v45 = vmul.f32 %v15983_v12, %v15979_v61  ;;  %14786 = vmatprep.subr.mxu0 %v17708_v48  ;;  %v14034_v61 = vld [vmem:[#allocation67] ss:$0 sm:$0xff] }
 0xf10   :  { %14774 = vmatmul.mubr.msk.f32.vlgmr.msra.gmra.mrb[16].mxu1 %vm1458_vm4, %v2455_v45 }
 0xf11   :  { %14782 = vmatpush3.xpose.msk.msra.mxu1 %vm1458_vm4, %v2694_v9  ;;  %14783 = vmatprep.mubr.msk.f32.mxu1 %vm17709_vm3, %v17708_v48 }
 0xf12   :  { %14791 = vmatprep.subr.mxu1 %v17708_v48 }
 0xf14   :  { %14784 = vmatmul.mubr.msk.f32.vlgmr.msra.gmra.mrb[18].mxu1 %vm1458_vm4, %v2692_v14 }
 0xf15   :  { %14793 = vmatprep.mubr.msk.f32.mxu1 %vm17709_vm3, %v17708_v48 }
 0xfdf   :  { %v2528_v15 = vpop.f32.mrb[12].mxu0 }
 0xfe0   :  { %v14770_v17 = vpop.f32.mrb[13].mxu0  ;;  %14778 = vmatprep.mubr.msk.f32.mxu0 %vm1458_vm4, %v2528_v15 }
 0xfe3   :  { %v2604_v19 = vpop.f32.mrb[16].mxu1 }
 0xfe4   :  { %v14775_v20 = vpop.f32.mrb[17].mxu1  ;;  %14779 = vmatmul.mubr.msk.f32.vlgmr.msra.gmra.mrb[10].mxu0 %vm1458_vm4, %v2604_v19  ;;  %v3158_v19 = vld [vmem:[%s19935_s24] sm:$0xff] }
 0xfe5   :  { %14787 = vmatpush3.xpose.msk.msra.mxu0 %vm1458_vm4, %v2772_v13  ;;  %14788 = vmatprep.mubr.msk.f32.mxu0 %vm17709_vm3, %v17708_v48  ;;  %v3159_v20 = vld [vmem:[%s19935_s24 + $0x8] sm:$0xff] }
 0xfe6   :  { %14796 = vmatprep.subr.mxu0 %v17708_v48 }
 0xfe7   :  { %v2765_v22 = vpop.f32.mrb[18].mxu1 }
 0xfe8   :  { %v2766_v23 = vadd.f32 %v2765_v22, %v18486_v18  ;;  %v14785_v24 = vpop.f32.mrb[19].mxu1  ;;  %14789 = vmatmul.mubr.msk.f32.vlgmr.msra.gmra.mrb[14].mxu0 %vm1458_vm4, %v2770_v21  ;;  %v3160_v21 = vld [vmem:[%s19935_s24 + $0x10] sm:$0xff]  ;;  %v15555_v22 = vpack.c.bf16 %v3159_v20, %v3158_v19 }
 0xfe9   :  { %14798 = vmatprep.mubr.msk.f32.mxu0 %vm17709_vm3, %v17708_v48 }
 0xfea   :  { %v2847_v25 = vsel %vm1458_vm4, %v2766_v23, -inf }
 0xfeb   :  { %2848 = vmax.xlane.f32.xlu0 %v2847_v25 }
0x1078   :  { %v2849_v26 = vpop.xlane.xlu0 %2848 }
0x1079   :  { %v2853_v27 = vsub.f32 %v2766_v23, %v2849_v26  ;;  %v3161_v23 = vld [vmem:[%s19935_s24 + $0x18] sm:$0xff] }
0x107a   :  { %v15559_v24 = vpack.c.bf16 %v3161_v23, %v3160_v21  ;;  %v14040_v23 = vld [vmem:[#allocation77] ss:$0 sm:$0xff] }
0x107b   :  { %v2855_v28 = vmul.f32 1.442695, %v2853_v27 }
0x107d   :  { %15984 = vpow2.f32 %v2855_v28 }
0x1087   :  { %v15985_v29 = vpop.eup %15984 }
0x1088   :  { %v2859_v30 = vsel %vm1458_vm4, %v15985_v29, 0.0 }
0x1089   :  { %2860 = vadd.xlane.f32.xlu0 %v2859_v30 }
0x10bb   :  { %v2843_v31 = vpop.f32.mrb[14].mxu0 }
0x10bc   :  { %v2844_v32 = vadd.f32 %v2843_v31, %v18470_v10  ;;  %v14790_v33 = vpop.f32.mrb[15].mxu0 }
0x10be   :  { %v2850_v34 = vsel %vm1458_vm4, %v2844_v32, -inf }
0x10bf   :  { %2851 = vmax.xlane.f32.xlu1 %v2850_v34 }
0x10d0   :  { %2945 = vrot.lane.b32.xlu1 %v18426_v51, %s17722_s3 }
0x1116   :  { %v2861_v40 = vpop.xlane.xlu0 %2860 }
0x114c   :  { %v2852_v57 = vpop.xlane.xlu1 %2851 }
0x114d   :  { %v2854_v35 = vsub.f32 %v2844_v32, %v2852_v57  ;;  %v14035_v32 = vld [vmem:[#allocation71] ss:$0 sm:$0xff] }
0x114f   :  { %v2857_v36 = vmul.f32 1.442695, %v2854_v35  ;;  %v14036_v35 = vld [vmem:[#allocation70] ss:$0 sm:$0xff] }
0x1150   :  { %v2946_v37 = vpop.permute.xlu1 %2945 }
0x1151   :  { %15986 = vpow2.f32 %v2857_v36  ;;  %14797 = vmatpush3.msra.mxu0 %v2946_v37 }
0x1152   :  { %15988 = vrcp.f32 %v2861_v40  ;;  %14801 = vmatprep.subr.mxu0 %v1352_v50  ;;  %v3268_v40 = vld [vmem:[%s19936_s19] sm:$0xff] }
0x115b   :  { %v15987_v38 = vpop.eup %15986 }
0x115c   :  { %v2862_v39 = vsel %vm1458_vm4, %v15987_v38, 0.0  ;;  %v15989_v43 = vpop.eup %15988 }
0x115d   :  { %2863 = vadd.xlane.f32.xlu0 %v2862_v39  ;;  %v2867_v46 = vmul.f32 %v15989_v43, %v15985_v29 }
0x1173   :  { %2869 = vrot.lane.b32.xlu0 %v18428_v53, %s17722_s3 }
0x11ea   :  { %v2864_v41 = vpop.xlane.xlu0 %2863 }
0x11eb   :  { %15990 = vrcp.f32 %v2864_v41  ;;  %v3269_v41 = vld [vmem:[%s19936_s19 + $0x8] sm:$0xff] }
0x11ec   :  { %v15563_v43 = vpack.c.bf16 %v3269_v41, %v3268_v40  ;;  %v3411_v41 = vld [vmem:[%s19937_s18] sm:$0xff] }
0x11ee   :  { %v2870_v51 = vpop.permute.xlu0 %2869 }
0x11ef   :  { %14792 = vmatpush3.msra.mxu1 %v2870_v51  ;;  %v3270_v51 = vld [vmem:[%s19936_s19 + $0x10] sm:$0xff] }
0x11f0   :  { %14794 = vmatmul.mubr.msk.f32.vlgmr.msra.gmra.mrb[20].mxu1 %vm1458_vm4, %v2867_v46  ;;  %15556 = vmatprep.subr.bf16.mxu1 %v15555_v22  ;;  %v3271_v46 = vld [vmem:[%s19936_s19 + $0x18] sm:$0xff] }
0x11f1   :  { %15558 = vmatpush3.bf16.msra.mxu1 %v15555_v22 }
0x11f2   :  { %15560 = vmatprep.subr.bf16.mxu1 %v15559_v24 }
0x11f5   :  { %v15991_v47 = vpop.eup %15990  ;;  %15562 = vmatpush3.bf16.msra.mxu1 %v15559_v24 }
0x11f6   :  { %v2868_v49 = vmul.f32 %v15991_v47, %v15987_v38  ;;  %v15567_v47 = vpack.c.bf16 %v3271_v46, %v3270_v51  ;;  %v3413_v51 = vld [vmem:[%s19937_s18 + $0x10] sm:$0xff] }
0x11f8   :  { %14799 = vmatmul.mubr.msk.f32.vlgmr.msra.gmra.mrb[16].mxu0 %vm1458_vm4, %v2868_v49  ;;  %v3272_v49 = vld [vmem:[%s19936_s19 + $0x20] sm:$0xff] }
0x11f9   :  { %14802 = vmatpush3.msra.mxu0 %v1352_v50  ;;  %v3273_v50 = vld [vmem:[%s19936_s19 + $0x28] sm:$0xff] }
0x11fa   :  { %15564 = vmatprep.subr.bf16.mxu0 %v15563_v43 }
0x12c3   :  { %v2941_v52 = vpop.f32.mrb[20].mxu1 }
0x12c4   :  { %v14795_v58 = vpop.f32.mrb[21].mxu1  ;;  %14803 = vmatprep.mubr.msk.f32.mxu0 %vm1458_vm4, %v2941_v52  ;;  %v15571_v52 = vpack.c.bf16 %v3273_v50, %v3272_v49 }
0x12c5   :  { %v3274_v58 = vld [vmem:[%s19936_s19 + $0x30] sm:$0xff] }
0x12cb   :  { %v3017_v53 = vpop.f32.mrb[16].mxu0 }
0x12cc   :  { %v14800_v60 = vpop.f32.mrb[17].mxu0  ;;  %14804 = vmatmul.mubr.msk.f32.vlgmr.msra.gmra.mrb[10].mxu0 %vm1458_vm4, %v3017_v53  ;;  %v3275_v53 = vld [vmem:[%s19936_s19 + $0x38] sm:$0xff] }
0x12cd   :  { %15566 = vmatpush3.bf16.msra.mxu0 %v15563_v43  ;;  %v15575_v60 = vpack.c.bf16 %v3275_v53, %v3274_v58  ;;  %v3412_v43 = vld [vmem:[%s19937_s18 + $0x8] sm:$0xff] }
0x12ce   :  { %15568 = vmatprep.subr.bf16.mxu0 %v15567_v47  ;;  %v15579_v46 = vpack.c.bf16 %v3412_v43, %v3411_v41 }
0x12d0   :  { %15580 = vmatprep.subr.bf16.mxu1 %v15579_v46 }
0x12d1   :  { %15570 = vmatpush3.bf16.msra.mxu0 %v15567_v47  ;;  %v3414_v47 = vld [vmem:[%s19937_s18 + $0x18] sm:$0xff] }
0x12d2   :  { %15572 = vmatprep.subr.bf16.mxu0 %v15571_v52  ;;  %v15583_v49 = vpack.c.bf16 %v3414_v47, %v3413_v51 }
0x12d5   :  { %15574 = vmatpush3.bf16.msra.mxu0 %v15571_v52 }
0x12d6   :  { %15576 = vmatprep.subr.bf16.mxu0 %v15575_v60 }
0x12d9   :  { %15578 = vmatpush3.bf16.msra.mxu0 %v15575_v60 }
0x12da   :  { %14857 = vmatprep.subr.mxu0 %v17708_v48 }
0x139f   :  { %v14805_v63 = vpop.f32.mrb[10].mxu0 }
0x13a0   :  { %v3111_v1 = vadd.f32 %v14805_v63, %v14034_v61  ;;  %v3093_v2 = vpop.f32.mrb[11].mxu0 }
0x13a1   :  { %v3110_v3 = vadd.f32 %v14034_v61, %v3093_v2  ;;  %v14037_v61 = vld [vmem:[#allocation76] ss:$0 sm:$0xff] }
0x13a2   :  { %v3113_v59 = vadd.f32 %v3111_v1, %v18410_v44 }
0x13a3   :  { %v3112_v6 = vadd.f32 %v3110_v3, %v18406_v42 }
0x13a4   :  { %v3119_v8 = vsel %vm1204_vm2, %v3113_v59, 0.0 }
0x13a5   :  { %3120 = vadd.xlane.f32.xlu0 %v3119_v8  ;;  %v3116_v9 = vsel %vm1204_vm2, %v3112_v6, 0.0 }
0x13a6   :  { %3117 = vadd.xlane.f32.xlu1 %v3116_v9 }
0x1432   :  { %v3121_v11 = vpop.xlane.xlu0 %3120 }
0x1433   :  { %v3123_v56 = vmul.f32 0.03125, %v3121_v11  ;;  %v3118_v12 = vpop.xlane.xlu1 %3117 }
0x1434   :  { %v3122_v13 = vmul.f32 0.03125, %v3118_v12 }
0x1435   :  { %v3125_v45 = vsub.f32 %v3113_v59, %v3123_v56 }
0x1436   :  { %v3124_v14 = vsub.f32 %v3112_v6, %v3122_v13 }
0x1437   :  { %v3127_v15 = vmul.f32 %v3125_v45, %v3125_v45 }
0x1438   :  { %v3126_v44 = vmul.f32 %v3124_v14, %v3124_v14 }
0x1439   :  { %v3131_v42 = vsel %vm1204_vm2, %v3127_v15, 0.0 }
0x143a   :  { %3132 = vadd.xlane.f32.xlu1 %v3131_v42  ;;  %v3128_v17 = vsel %vm1204_vm2, %v3126_v44, 0.0 }
0x143b   :  { %3129 = vadd.xlane.f32.xlu0 %v3128_v17 }
0x14c7   :  { %v3133_v25 = vpop.xlane.xlu1 %3132 }
0x14c8   :  { %v3135_v26 = vmul.f32 0.03125, %v3133_v25  ;;  %v3130_v27 = vpop.xlane.xlu0 %3129 }
0x14c9   :  { %v3134_v28 = vmul.f32 0.03125, %v3130_v27 }
0x14ca   :  { %v3137_v29 = vadd.f32 1e-05, %v3135_v26 }
0x14cb   :  { %v3136_v30 = vadd.f32 1e-05, %v3134_v28 }
0x14cc   :  { %15992 = vrsqrt.f32 %v3137_v29 }
0x14cd   :  { %15994 = vrsqrt.f32 %v3136_v30 }
0x14d6   :  { %v15993_v31 = vpop.eup %15992 }
0x14d7   :  { %v15995_v33 = vpop.eup %15994  ;;  %v3141_v34 = vmul.f32 %v15993_v31, %v3125_v45 }
0x14d8   :  { %v3140_v57 = vmul.f32 %v15995_v33, %v3124_v14 }
0x14d9   :  { %v3149_v36 = vmul.f32 %v14035_v32, %v3141_v34 }
0x14da   :  { %v3148_v37 = vmul.f32 %v14035_v32, %v3140_v57 }
0x14db   :  { %v3157_v39 = vadd.f32 %v14036_v35, %v3149_v36 }
0x14dc   :  { %v3156_v38 = vadd.f32 %v14036_v35, %v3148_v37 }
0x14de   :  { %14814 = vmatprep.mubr.msk.f32.mxu1 %vm1204_vm2, %v3156_v38 }
0x14df   :  { %14815 = vmatmul.mubr.msk.f32.vlgmr.msra.gmra.mrb[22].mxu1 %vm1204_vm2, %v3157_v39 }
0x14e0   :  { %15582 = vmatpush3.bf16.msra.mxu1 %v15579_v46 }
0x14e1   :  { %15584 = vmatprep.subr.bf16.mxu1 %v15583_v49 }
0x14e4   :  { %15586 = vmatpush3.bf16.msra.mxu1 %v15583_v49 }
0x14e5   :  { %14847 = vmatprep.subr.mxu1 %v17708_v48 }
0x15b2   :  { %v14816_v63 = vpop.f32.mrb[22].mxu1 }
0x15b3   :  { %v3247_v1 = vadd.f32 %v14816_v63, %v14037_v61  ;;  %v3241_v2 = vpop.f32.mrb[23].mxu1 }
0x15b4   :  { %v3242_v3 = vadd.f32 %v14037_v61, %v3241_v2 }
0x15b5   :  { %v3251_v59 = vmul.f32 %v3247_v1, %v3247_v1 }
0x15b6   :  { %v3250_v6 = vmul.f32 %v3242_v3, %v3242_v3 }
0x15b7   :  { %v3253_v8 = vmul.f32 %v3251_v59, %v3247_v1 }
0x15b8   :  { %v3252_v9 = vmul.f32 %v3250_v6, %v3242_v3  ;;  %v14044_v6 = vld [vmem:[#allocation73] ss:$0 sm:$0xff] }
0x15b9   :  { %v3255_v11 = vmul.f32 0.044715, %v3253_v8 }
0x15ba   :  { %v3254_v56 = vmul.f32 0.044715, %v3252_v9 }
0x15bb   :  { %v3257_v12 = vadd.f32 %v3255_v11, %v3247_v1 }
0x15bc   :  { %v3256_v13 = vadd.f32 %v3254_v56, %v3242_v3 }
0x15bd   :  { %v3259_v45 = vmul.f32 0.7978846, %v3257_v12  ;;  %v14045_v12 = vld [vmem:[%s19938_s22] ss:$0 sm:$0xff] }
0x15be   :  { %v3258_v14 = vmul.f32 0.7978846, %v3256_v13 }
0x15bf   :  { %15996 = vtanh.f32 %v3259_v45 }
0x15c0   :  { %15998 = vtanh.f32 %v3258_v14 }
0x15c9   :  { %v15997_v15 = vpop.eup %15996 }
0x15ca   :  { %v15999_v44 = vpop.eup %15998  ;;  %v3263_v42 = vadd.f32 1.0, %v15997_v15 }
0x15cb   :  { %v3262_v17 = vadd.f32 1.0, %v15999_v44 }
0x15cc   :  { %v3265_v19 = vmul.f32 0.5, %v3263_v42 }
0x15cd   :  { %v3264_v20 = vmul.f32 0.5, %v3262_v17 }
0x15ce   :  { %v3267_v22 = vmul.f32 %v3265_v19, %v3247_v1  ;;  %v14043_v1 = vld [vmem:[#allocation74] ss:$0 sm:$0xff] }
0x15cf   :  { %v3266_v21 = vmul.f32 %v3264_v20, %v3242_v3 }
0x15d1   :  { %14833 = vmatprep.mubr.msk.f32.mxu0 %vm3283_vm7, %v3266_v21 }
0x15d2   :  { %14834 = vmatmul.mubr.msk.f32.vlgmr.msra.gmra.mrb[18].mxu0 %vm3283_vm7, %v3267_v22 }
0x15d3   :  { %14859 = vmatprep.mubr.msk.f32.mxu0 %vm17709_vm3, %v17708_v48 }
0x16a5   :  { %v14835_v24 = vpop.f32.mrb[18].mxu0 }
0x16a6   :  { %v3362_v25 = vadd.f32 %v14835_v24, %v14040_v23  ;;  %v3356_v26 = vpop.f32.mrb[19].mxu0 }
0x16a7   :  { %v3357_v27 = vadd.f32 %v14040_v23, %v3356_v26 }
0x16a8   :  { %v3366_v28 = vadd.f32 %v3362_v25, %v3157_v39 }
0x16a9   :  { %v3365_v29 = vadd.f32 %v3357_v27, %v3156_v38 }
0x16aa   :  { %v3372_v30 = vsel %vm1204_vm2, %v3366_v28, 0.0 }
0x16ab   :  { %3373 = vadd.xlane.f32.xlu1 %v3372_v30  ;;  %v3369_v31 = vsel %vm1204_vm2, %v3365_v29, 0.0 }
0x16ac   :  { %3370 = vadd.xlane.f32.xlu0 %v3369_v31 }
0x1738   :  { %v3374_v32 = vpop.xlane.xlu1 %3373 }
0x1739   :  { %v3376_v33 = vmul.f32 0.03125, %v3374_v32  ;;  %v3371_v34 = vpop.xlane.xlu0 %3370 }
0x173a   :  { %v3375_v57 = vmul.f32 0.03125, %v3371_v34 }
0x173b   :  { %v3378_v35 = vsub.f32 %v3366_v28, %v3376_v33 }
0x173c   :  { %v3377_v36 = vsub.f32 %v3365_v29, %v3375_v57 }
0x173d   :  { %v3380_v37 = vmul.f32 %v3378_v35, %v3378_v35 }
0x173e   :  { %v3379_v40 = vmul.f32 %v3377_v36, %v3377_v36 }
0x173f   :  { %v3384_v38 = vsel %vm1204_vm2, %v3380_v37, 0.0 }
0x1740   :  { %3385 = vadd.xlane.f32.xlu1 %v3384_v38  ;;  %v3381_v39 = vsel %vm1204_vm2, %v3379_v40, 0.0 }
0x1741   :  { %3382 = vadd.xlane.f32.xlu0 %v3381_v39 }
0x17cd   :  { %v3386_v50 = vpop.xlane.xlu1 %3385 }
0x17ce   :  { %v3388_v52 = vmul.f32 0.03125, %v3386_v50  ;;  %v3383_v58 = vpop.xlane.xlu0 %3382 }
0x17cf   :  { %v3387_v53 = vmul.f32 0.03125, %v3383_v58 }
0x17d0   :  { %v3390_v60 = vadd.f32 1e-05, %v3388_v52 }
0x17d1   :  { %v3389_v61 = vadd.f32 1e-05, %v3387_v53 }
0x17d2   :  { %16000 = vrsqrt.f32 %v3390_v60 }
0x17d3   :  { %16002 = vrsqrt.f32 %v3389_v61 }
0x17dc   :  { %v16001_v63 = vpop.eup %16000 }
0x17dd   :  { %v16003_v2 = vpop.eup %16002  ;;  %v3394_v3 = vmul.f32 %v16001_v63, %v3378_v35 }
0x17de   :  { %v3393_v59 = vmul.f32 %v16003_v2, %v3377_v36 }
0x17df   :  { %v3402_v8 = vmul.f32 %v14043_v1, %v3394_v3 }
0x17e0   :  { %v3401_v9 = vmul.f32 %v14043_v1, %v3393_v59 }
0x17e1   :  { %v18656_v56 = vadd.f32 %v14044_v6, %v3402_v8 }
0x17e2   :  { %v18654_v11 = vadd.f32 %v14044_v6, %v3401_v9 }
0x17e4   :  { %14844 = vmatprep.mubr.msk.f32.mxu1 %vm1204_vm2, %v18654_v11 }
0x17e5   :  { %14845 = vmatmul.mubr.msk.f32.vlgmr.msra.gmra.mrb[24].mxu1 %vm1204_vm2, %v18656_v56 }
0x17e6   :  { %14849 = vmatprep.mubr.msk.f32.mxu1 %vm17709_vm3, %v17708_v48 }
0x18b8   :  { %v14846_v13 = vpop.f32.mrb[24].mxu1 }
0x18b9   :  { %v18665_v45 = vadd.f32 %v14846_v13, %v14045_v12  ;;  %v3499_v14 = vpop.f32.mrb[25].mxu1 }
0x18ba   :  { %v18667_v15 = vadd.f32 %v14045_v12, %v3499_v14 }
0x18bb   :  { %3589 = vrot.lane.b32.xlu1 %v18665_v45, %s17710_s29  ;;  %v18684_v19 = vmul.f32 0.35355338, %v18665_v45 }
0x18bc   :  { %3511 = vrot.lane.b32.xlu0 %v18667_v15, %s17710_s29  ;;  %v18675_v42 = vmul.f32 0.35355338, %v18667_v15 }
0x192d   :  { %v3590_v17 = vpop.permute.xlu1 %3589 }
0x192e   :  { %v3512_v44 = vpop.permute.xlu0 %3511 }
0x192f   :  { %14848 = vmatpush3.xpose.msk.msra.mxu1 %vm1458_vm4, %v3512_v44 }
0x1930   :  { %14852 = vmatprep.subr.mxu1 %v17708_v48 }
0x1932   :  { %14850 = vmatmul.mubr.msk.f32.vlgmr.msra.gmra.mrb[26].mxu1 %vm1458_vm4, %v18675_v42 }
0x1933   :  { %14853 = vmatpush3.xpose.msk.msra.mxu1 %vm1458_vm4, %v3590_v17  ;;  %14854 = vmatprep.mubr.msk.f32.mxu1 %vm17709_vm3, %v17708_v48 }
0x1934   :  { %14862 = vmatprep.subr.mxu1 %v17708_v48 }
0x1936   :  { %14855 = vmatmul.mubr.msk.f32.vlgmr.msra.gmra.mrb[28].mxu1 %vm1458_vm4, %v18684_v19 }
0x1937   :  { %14864 = vmatprep.mubr.msk.f32.mxu1 %vm17709_vm3, %v17708_v48 }
0x1a05   :  { %v3584_v20 = vpop.f32.mrb[26].mxu1 }
0x1a06   :  { %v14851_v21 = vpop.f32.mrb[27].mxu1  ;;  %v3585_v26 = vadd.f32 %v3584_v20, %v18486_v18 }
0x1a08   :  { %v3666_v27 = vsel %vm1458_vm4, %v3585_v26, -inf }
0x1a09   :  { %v3662_v22 = vpop.f32.mrb[28].mxu1 }
0x1a0a   :  { %v3663_v23 = vadd.f32 %v3662_v22, %v18470_v10  ;;  %v14856_v24 = vpop.f32.mrb[29].mxu1 }
0x1a0c   :  { %v3669_v25 = vsel %vm1458_vm4, %v3663_v23, -inf }
0x1a0d   :  { %3670 = vmax.xlane.f32.xlu1 %v3669_v25 }
0x1a1e   :  { %3920 = vrot.lane.b32.xlu1 %v18665_v45, %s17713_s2 }
0x1a22   :  { %3918 = vrot.lane.b32.xlu1 %v18684_v19, %s17714_s6 }
0x1a46   :  { %3667 = vmax.xlane.f32.xlu1 %v3666_v27 }
0x1a57   :  { %3842 = vrot.lane.b32.xlu1 %v18667_v15, %s17713_s2 }
0x1a5b   :  { %3840 = vrot.lane.b32.xlu1 %v18675_v42, %s17714_s6 }
0x1a5f   :  { %4334 = vrot.lane.b32.xlu1 %v18667_v15, %s17715_s7 }
0x1a9a   :  { %v3671_v28 = vpop.xlane.xlu1 %3670 }
0x1a9b   :  { %v3673_v29 = vsub.f32 %v3663_v23, %v3671_v28 }
0x1a9d   :  { %v3676_v30 = vmul.f32 1.442695, %v3673_v29 }
0x1a9e   :  { %v3921_v33 = vpop.permute.xlu1 %3920 }
0x1a9f   :  { %16004 = vpow2.f32 %v3676_v30 }
0x1aa2   :  { %v3919_v34 = vpop.permute.xlu1 %3918 }
0x1aa9   :  { %v16005_v31 = vpop.eup %16004 }
0x1aaa   :  { %v3681_v32 = vsel %vm1458_vm4, %v16005_v31, 0.0 }
0x1aab   :  { %3682 = vadd.xlane.f32.xlu0 %v3681_v32 }
0x1ac1   :  { %3764 = vrot.lane.b32.xlu0 %v18665_v45, %s17716_s10 }
0x1ad3   :  { %v3668_v57 = vpop.xlane.xlu1 %3667 }
0x1ad4   :  { %v3672_v35 = vsub.f32 %v3585_v26, %v3668_v57 }
0x1ad6   :  { %v3674_v36 = vmul.f32 1.442695, %v3672_v35 }
0x1ad7   :  { %v3843_v49 = vpop.permute.xlu1 %3842 }
0x1ad8   :  { %16006 = vpow2.f32 %v3674_v36 }
0x1adb   :  { %v3841_v52 = vpop.permute.xlu1 %3840 }
0x1adf   :  { %v4335_v21 = vpop.permute.xlu1 %4334 }
0x1ae2   :  { %v16007_v37 = vpop.eup %16006 }
0x1ae3   :  { %v3678_v40 = vsel %vm1458_vm4, %v16007_v37, 0.0 }
0x1ae4   :  { %3679 = vadd.xlane.f32.xlu0 %v3678_v40 }
0x1afa   :  { %3688 = vrot.lane.b32.xlu0 %v18667_v15, %s17716_s10 }
0x1b38   :  { %v3683_v38 = vpop.xlane.xlu0 %3682 }
0x1b39   :  { %16008 = vrcp.f32 %v3683_v38 }
0x1b3c   :  { %v3765_v39 = vpop.permute.xlu0 %3764 }
0x1b3d   :  { %14863 = vmatpush3.msra.mxu1 %v3765_v39 }
0x1b3e   :  { %14872 = vmatprep.subr.mxu1 %v17708_v48 }
0x1b43   :  { %v16009_v41 = vpop.eup %16008 }
0x1b44   :  { %v3687_v43 = vmul.f32 %v16009_v41, %v16005_v31 }
0x1b46   :  { %14865 = vmatmul.mubr.msk.f32.vlgmr.msra.gmra.mrb[30].mxu1 %vm1458_vm4, %v3687_v43 }
0x1b47   :  { %14873 = vmatpush3.xpose.msk.msra.mxu1 %vm1458_vm4, %v3921_v33  ;;  %14874 = vmatprep.mubr.msk.f32.mxu1 %vm17709_vm3, %v17708_v48 }
0x1b48   :  { %14882 = vmatprep.subr.mxu1 %v17708_v48 }
0x1b4a   :  { %14875 = vmatmul.mubr.msk.f32.vlgmr.msra.gmra.mrb[32].mxu1 %vm1458_vm4, %v3919_v34 }
0x1b4b   :  { %14884 = vmatprep.mubr.msk.f32.mxu1 %vm17709_vm3, %v17708_v48 }
0x1b71   :  { %v3680_v51 = vpop.xlane.xlu0 %3679 }
0x1b72   :  { %16010 = vrcp.f32 %v3680_v51 }
0x1b75   :  { %v3689_v46 = vpop.permute.xlu0 %3688 }
0x1b76   :  { %14858 = vmatpush3.msra.mxu0 %v3689_v46 }
0x1b77   :  { %14867 = vmatprep.subr.mxu0 %v17708_v48 }
0x1b7c   :  { %v16011_v47 = vpop.eup %16010 }
0x1b7d   :  { %v3686_v50 = vmul.f32 %v16011_v47, %v16007_v37 }
0x1b7f   :  { %14860 = vmatmul.mubr.msk.f32.vlgmr.msra.gmra.mrb[20].mxu0 %vm1458_vm4, %v3686_v50  ;;  %v3416_v50 = vld [vmem:[%s19939_s23] sm:$0xff] }
0x1b80   :  { %14868 = vmatpush3.xpose.msk.msra.mxu0 %vm1458_vm4, %v3843_v49  ;;  %14869 = vmatprep.mubr.msk.f32.mxu0 %vm17709_vm3, %v17708_v48  ;;  %v3417_v49 = vld [vmem:[%s19939_s23 + $0x8] sm:$0xff] }
0x1b81   :  { %14877 = vmatprep.subr.mxu0 %v17708_v48 }
0x1b83   :  { %14870 = vmatmul.mubr.msk.f32.vlgmr.msra.gmra.mrb[22].mxu0 %vm1458_vm4, %v3841_v52 }
0x1b84   :  { %14879 = vmatprep.mubr.msk.f32.mxu0 %vm17709_vm3, %v17708_v48 }
0x1c19   :  { %v18729_v58 = vpop.f32.mrb[30].mxu1 }
0x1c1a   :  { %v14866_v53 = vpop.f32.mrb[31].mxu1 }
0x1c1d   :  { %v3992_v60 = vpop.f32.mrb[32].mxu1 }
0x1c1e   :  { %v3993_v61 = vadd.f32 %v3992_v60, %v18470_v10  ;;  %v14876_v63 = vpop.f32.mrb[33].mxu1 }
0x1c20   :  { %v3999_v1 = vsel %vm1458_vm4, %v3993_v61, -inf }
0x1c21   :  { %4000 = vmax.xlane.f32.xlu0 %v3999_v1 }
0x1c37   :  { %4094 = vrot.lane.b32.xlu0 %v18665_v45, %s17717_s25 }
0x1c3b   :  { %4332 = vrot.lane.b32.xlu0 %v18675_v42, %s17718_s11 }
0x1c3f   :  { %4410 = vrot.lane.b32.xlu0 %v18684_v19, %s17718_s11 }
0x1c52   :  { %v18739_v2 = vpop.f32.mrb[20].mxu0 }
0x1c53   :  { %v14861_v3 = vpop.f32.mrb[21].mxu0 }
0x1c56   :  { %v3914_v59 = vpop.f32.mrb[22].mxu0 }
0x1c57   :  { %v14871_v6 = vpop.f32.mrb[23].mxu0  ;;  %v3915_v17 = vadd.f32 %v3914_v59, %v18486_v18 }
0x1c59   :  { %v3996_v20 = vsel %vm1458_vm4, %v3915_v17, -inf }
0x1cae   :  { %v4001_v8 = vpop.xlane.xlu0 %4000 }
0x1caf   :  { %v4003_v9 = vsub.f32 %v3993_v61, %v4001_v8 }
0x1cb1   :  { %v4006_v12 = vmul.f32 1.442695, %v4003_v9 }
0x1cb2   :  { %v4095_v13 = vpop.permute.xlu0 %4094 }
0x1cb3   :  { %16012 = vpow2.f32 %v4006_v12  ;;  %14883 = vmatpush3.msra.mxu1 %v4095_v13 }
0x1cb4   :  { %14897 = vmatprep.subr.mxu1 %v17708_v48 }
0x1cb6   :  { %v4333_v25 = vpop.permute.xlu0 %4332 }
0x1cba   :  { %v4411_v27 = vpop.permute.xlu0 %4410 }
0x1cbd   :  { %v16013_v14 = vpop.eup %16012 }
0x1cbe   :  { %v4011_v44 = vsel %vm1458_vm4, %v16013_v14, 0.0 }
0x1cbf   :  { %4012 = vadd.xlane.f32.xlu1 %v4011_v44 }
0x1cd0   :  { %4412 = vrot.lane.b32.xlu1 %v18665_v45, %s17715_s7 }
0x1cf4   :  { %3997 = vmax.xlane.f32.xlu1 %v3996_v20 }
0x1d4c   :  { %v4013_v22 = vpop.xlane.xlu1 %4012 }
0x1d4d   :  { %16014 = vrcp.f32 %v4013_v22 }
0x1d50   :  { %v4413_v26 = vpop.permute.xlu1 %4412 }
0x1d57   :  { %v16015_v23 = vpop.eup %16014 }
0x1d58   :  { %v4017_v24 = vmul.f32 %v16015_v23, %v16013_v14  ;;  %v3418_v14 = vld [vmem:[%s19939_s23 + $0x10] sm:$0xff] }
0x1d5a   :  { %14885 = vmatmul.mubr.msk.f32.vlgmr.msra.gmra.mrb[34].mxu1 %vm1458_vm4, %v4017_v24 }
0x1d5b   :  { %14898 = vmatpush3.xpose.msk.msra.mxu1 %vm1458_vm4, %v4335_v21  ;;  %14899 = vmatprep.mubr.msk.f32.mxu1 %vm17709_vm3, %v17708_v48 }
0x1d5c   :  { %14902 = vmatprep.subr.mxu1 %v17708_v48 }
0x1d5e   :  { %14900 = vmatmul.mubr.msk.f32.vlgmr.msra.gmra.mrb[36].mxu1 %vm1458_vm4, %v4333_v25 }
0x1d5f   :  { %14903 = vmatpush3.xpose.msk.msra.mxu1 %vm1458_vm4, %v4413_v26  ;;  %14904 = vmatprep.mubr.msk.f32.mxu1 %vm17709_vm3, %v17708_v48 }
0x1d60   :  { %14912 = vmatprep.subr.mxu1 %v17708_v48 }
0x1d62   :  { %14905 = vmatmul.mubr.msk.f32.vlgmr.msra.gmra.mrb[38].mxu1 %vm1458_vm4, %v4411_v27 }
0x1d63   :  { %14914 = vmatprep.mubr.msk.f32.mxu1 %vm17709_vm3, %v17708_v48 }
0x1d81   :  { %v3998_v28 = vpop.xlane.xlu1 %3997 }
0x1d82   :  { %v4002_v29 = vsub.f32 %v3915_v17, %v3998_v28 }
0x1d84   :  { %v4004_v30 = vmul.f32 1.442695, %v4002_v29 }
0x1d86   :  { %16016 = vpow2.f32 %v4004_v30 }
0x1d90   :  { %v16017_v31 = vpop.eup %16016 }
0x1d91   :  { %v4008_v32 = vsel %vm1458_vm4, %v16017_v31, 0.0 }
0x1d92   :  { %4009 = vadd.xlane.f32.xlu0 %v4008_v32 }
0x1da8   :  { %4018 = vrot.lane.b32.xlu0 %v18667_v15, %s17717_s25 }
0x1dac   :  { %4586 = vrot.lane.b32.xlu0 %v18665_v45, %s17719_s20 }
0x1db0   :  { %4747 = vrot.lane.b32.xlu0 %v18667_v15, %s17720_s15 }
0x1db4   :  { %4825 = vrot.lane.b32.xlu0 %v18665_v45, %s17720_s15 }
0x1db8   :  { %4745 = vrot.lane.b32.xlu0 %v18675_v42, %s17721_s16 }
0x1e1f   :  { %v4010_v33 = vpop.xlane.xlu0 %4009 }
0x1e20   :  { %16018 = vrcp.f32 %v4010_v33 }
0x1e23   :  { %v4019_v34 = vpop.permute.xlu0 %4018 }
0x1e24   :  { %14878 = vmatpush3.msra.mxu0 %v4019_v34 }
0x1e25   :  { %14887 = vmatprep.subr.mxu0 %v3417_v49 }
0x1e27   :  { %v4587_v57 = vpop.permute.xlu0 %4586 }
0x1e28   :  { %14913 = vmatpush3.msra.mxu1 %v4587_v57 }
0x1e29   :  { %14922 = vmatprep.subr.mxu1 %v17708_v48 }
0x1e2a   :  { %v16019_v35 = vpop.eup %16018 }
0x1e2b   :  { %v4016_v36 = vmul.f32 %v16019_v35, %v16017_v31  ;;  %v4748_v17 = vpop.permute.xlu0 %4747 }
0x1e2d   :  { %14880 = vmatmul.mubr.msk.f32.vlgmr.msra.gmra.mrb[24].mxu0 %vm1458_vm4, %v4016_v36  ;;  %v4166_v37 = vpop.f32.mrb[34].mxu1 }
0x1e2e   :  { %v14886_v40 = vpop.f32.mrb[35].mxu1  ;;  %14888 = vmatpush3.msra.mxu0 %v3417_v49 }
0x1e2f   :  { %14892 = vmatprep.subr.mxu0 %v3416_v50  ;;  %v4826_v22 = vpop.permute.xlu0 %4825 }
0x1e31   :  { %v4406_v38 = vpop.f32.mrb[36].mxu1 }
0x1e32   :  { %v4407_v39 = vadd.f32 %v4406_v38, %v18486_v18  ;;  %v14901_v42 = vpop.f32.mrb[37].mxu1 }
0x1e33   :  { %v4746_v23 = vpop.permute.xlu0 %4745 }
0x1e34   :  { %v4488_v41 = vsel %vm1458_vm4, %v4407_v39, -inf }
0x1e35   :  { %4489 = vmax.xlane.f32.xlu1 %v4488_v41  ;;  %v4484_v43 = vpop.f32.mrb[38].mxu1 }
0x1e36   :  { %v4485_v51 = vadd.f32 %v4484_v43, %v18470_v10  ;;  %v14906_v46 = vpop.f32.mrb[39].mxu1 }
0x1e38   :  { %v4491_v47 = vsel %vm1458_vm4, %v4485_v51, -inf }
0x1e39   :  { %4492 = vmax.xlane.f32.xlu1 %v4491_v47 }
0x1ec2   :  { %v4490_v52 = vpop.xlane.xlu1 %4489 }
0x1ec3   :  { %v4494_v53 = vsub.f32 %v4407_v39, %v4490_v52 }
0x1ec5   :  { %v4496_v60 = vmul.f32 1.442695, %v4494_v53 }
0x1ec6   :  { %v4493_v61 = vpop.xlane.xlu1 %4492 }
0x1ec7   :  { %16020 = vpow2.f32 %v4496_v60  ;;  %v4495_v63 = vsub.f32 %v4485_v51, %v4493_v61 }
0x1ec9   :  { %v4498_v1 = vmul.f32 1.442695, %v4495_v63  ;;  %v3419_v63 = vld [vmem:[%s19939_s23 + $0x18] sm:$0xff] }
0x1ecb   :  { %16022 = vpow2.f32 %v4498_v1 }
0x1ed1   :  { %v16021_v3 = vpop.eup %16020 }
0x1ed2   :  { %v4500_v59 = vsel %vm1458_vm4, %v16021_v3, 0.0 }
0x1ed3   :  { %4501 = vadd.xlane.f32.xlu1 %v4500_v59 }
0x1ed5   :  { %v16023_v6 = vpop.eup %16022 }
0x1ed6   :  { %v4503_v8 = vsel %vm1458_vm4, %v16023_v6, 0.0 }
0x1ed7   :  { %4504 = vadd.xlane.f32.xlu1 %v4503_v8  ;;  %v14080_v8 = vld [vmem:[#allocation79] ss:$0 sm:$0xff] }
0x1ee8   :  { %4510 = vrot.lane.b32.xlu1 %v18667_v15, %s17719_s20 }
0x1eec   :  { %4823 = vrot.lane.b32.xlu1 %v18684_v19, %s17721_s16 }
0x1f00   :  { %v4090_v9 = vpop.f32.mrb[24].mxu0 }
0x1f01   :  { %v14881_v12 = vpop.f32.mrb[25].mxu0  ;;  %14889 = vmatprep.mubr.msk.f32.mxu0 %vm1458_vm4, %v4090_v9 }
0x1f02   :  { %14890 = vmatmul.mubr.msk.f32.vlgmr.msra.gmra.mrb[26].mxu0 %vm1458_vm4, %v4166_v37 }
0x1f03   :  { %14894 = vmatprep.mubr.msk.f32.mxu0 %vm1458_vm4, %v18739_v2  ;;  %14893 = vmatpush3.msra.mxu0 %v3416_v50 }
0x1f04   :  { %14907 = vmatprep.subr.mxu0 %v17708_v48 }
0x1f0a   :  { %14895 = vmatmul.mubr.msk.f32.vlgmr.msra.gmra.mrb[26].mxu0 %vm1458_vm4, %v18729_v58 }
0x1f0b   :  { %14909 = vmatprep.mubr.msk.f32.mxu0 %vm17709_vm3, %v17708_v48 }
0x1f60   :  { %v4502_v13 = vpop.xlane.xlu1 %4501 }
0x1f61   :  { %16024 = vrcp.f32 %v4502_v13 }
0x1f64   :  { %v4505_v19 = vpop.xlane.xlu1 %4504 }
0x1f65   :  { %16026 = vrcp.f32 %v4505_v19 }
0x1f68   :  { %v4511_v44 = vpop.permute.xlu1 %4510 }
0x1f69   :  { %14908 = vmatpush3.msra.mxu0 %v4511_v44 }
0x1f6a   :  { %14917 = vmatprep.subr.mxu0 %v3418_v14 }
0x1f6b   :  { %v16025_v20 = vpop.eup %16024 }
0x1f6c   :  { %v4508_v2 = vmul.f32 %v16025_v20, %v16021_v3  ;;  %v4824_v28 = vpop.permute.xlu1 %4823 }
0x1f6e   :  { %14910 = vmatmul.mubr.msk.f32.vlgmr.msra.gmra.mrb[28].mxu0 %vm1458_vm4, %v4508_v2 }
0x1f6f   :  { %v16027_v21 = vpop.eup %16026  ;;  %14918 = vmatpush3.msra.mxu0 %v3418_v14 }
0x1f70   :  { %v4509_v58 = vmul.f32 %v16027_v21, %v16023_v6  ;;  %14927 = vmatprep.subr.mxu0 %v17708_v48  ;;  %v13990_v6 = vld [vmem:[#allocation8] ss:$0 sm:$0xff] }
0x1f71   :  { %v1188_v12 = vadd.f32 %v13990_v6, %v18436_v55  ;;  %v1193_v14 = vadd.f32 %v18434_v54, %v13990_v6 }
0x1f72   :  { %14915 = vmatmul.mubr.msk.f32.vlgmr.msra.gmra.mrb[40].mxu1 %vm1458_vm4, %v4509_v58 }
0x1f73   :  { %14923 = vmatpush3.xpose.msk.msra.mxu1 %vm1458_vm4, %v4748_v17  ;;  %14924 = vmatprep.mubr.msk.f32.mxu1 %vm17709_vm3, %v17708_v48  ;;  %v1197_v17 = vld [vmem:[#allocation35] sm:$0xff] }
0x1f74   :  { %14932 = vmatprep.subr.mxu1 %v17708_v48 }
0x1f76   :  { %14925 = vmatmul.mubr.msk.f32.vlgmr.msra.gmra.mrb[42].mxu1 %vm1458_vm4, %v4746_v23  ;;  %v1201_v23 = vadd.f32 %v1197_v17, %v1193_v14 }
0x1f77   :  { %14934 = vmatprep.mubr.msk.f32.mxu1 %vm17709_vm3, %v17708_v48 }
0x2041   :  { %v4582_v24 = vpop.f32.mrb[28].mxu0 }
0x2042   :  { %v14911_v25 = vpop.f32.mrb[29].mxu0  ;;  %14919 = vmatprep.mubr.msk.f32.mxu0 %vm1458_vm4, %v4582_v24  ;;  %v1253_v24 = vsel %vm1204_vm2, %v1201_v23, 0.0 }
0x2045   :  { %v4658_v26 = vpop.f32.mrb[40].mxu1 }
0x2046   :  { %v14916_v27 = vpop.f32.mrb[41].mxu1  ;;  %14920 = vmatmul.mubr.msk.f32.vlgmr.msra.gmra.mrb[26].mxu0 %vm1458_vm4, %v4658_v26 }
0x2047   :  { %14928 = vmatpush3.xpose.msk.msra.mxu0 %vm1458_vm4, %v4826_v22  ;;  %14929 = vmatprep.mubr.msk.f32.mxu0 %vm17709_vm3, %v17708_v48  ;;  %v1200_v22 = vadd.f32 %v1197_v17, %v1188_v12  ;;  %v14082_v17 = vld [vmem:[#allocation80] ss:$0 sm:$0xff] }
0x2048   :  { %14937 = vmatprep.subr.mxu0 %v17708_v48 }
0x2049   :  { %v4819_v29 = vpop.f32.mrb[42].mxu1  ;;  %v1250_v55 = vsel %vm1204_vm2, %v1200_v22, 0.0 }
0x204a   :  { %v4820_v30 = vadd.f32 %v4819_v29, %v18486_v18  ;;  %v14926_v31 = vpop.f32.mrb[43].mxu1  ;;  %14930 = vmatmul.mubr.msk.f32.vlgmr.msra.gmra.mrb[30].mxu0 %vm1458_vm4, %v4824_v28 }
0x204b   :  { %14939 = vmatprep.mubr.msk.f32.mxu0 %vm17709_vm3, %v17708_v48 }
0x204c   :  { %v4901_v32 = vsel %vm1458_vm4, %v4820_v30, -inf }
0x204d   :  { %4902 = vmax.xlane.f32.xlu0 %v4901_v32 }
0x20da   :  { %v4903_v33 = vpop.xlane.xlu0 %4902 }
0x20db   :  { %v4907_v34 = vsub.f32 %v4820_v30, %v4903_v33 }
0x20dd   :  { %v4909_v57 = vmul.f32 1.442695, %v4907_v34 }
0x20df   :  { %16028 = vpow2.f32 %v4909_v57 }
0x20e9   :  { %v16029_v35 = vpop.eup %16028 }
0x20ea   :  { %v4913_v36 = vsel %vm1458_vm4, %v16029_v35, 0.0 }
0x20eb   :  { %4914 = vadd.xlane.f32.xlu0 %v4913_v36 }
0x211d   :  { %v4897_v37 = vpop.f32.mrb[30].mxu0 }
0x211e   :  { %v4898_v40 = vadd.f32 %v4897_v37, %v18470_v10  ;;  %v14931_v38 = vpop.f32.mrb[31].mxu0 }
0x2120   :  { %v4904_v39 = vsel %vm1458_vm4, %v4898_v40, -inf }
0x2121   :  { %4905 = vmax.xlane.f32.xlu1 %v4904_v39 }
0x2132   :  { %4999 = vrot.lane.b32.xlu1 %v18665_v45, %s17722_s3 }
0x2178   :  { %v4915_v49 = vpop.xlane.xlu0 %4914 }
0x21ae   :  { %v4906_v42 = vpop.xlane.xlu1 %4905 }
0x21af   :  { %v4908_v41 = vsub.f32 %v4898_v40, %v4906_v42  ;;  %v5212_v42 = vld [vmem:[%s18143_s30] sm:$0xff] }
0x21b1   :  { %v4911_v43 = vmul.f32 1.442695, %v4908_v41  ;;  %v5213_v41 = vld [vmem:[%s18143_s30 + $0x8] sm:$0xff] }
0x21b2   :  { %v5000_v51 = vpop.permute.xlu1 %4999 }
0x21b3   :  { %16030 = vpow2.f32 %v4911_v43  ;;  %14938 = vmatpush3.msra.mxu0 %v5000_v51  ;;  %v5214_v43 = vld [vmem:[%s18143_s30 + $0x10] sm:$0xff]  ;;  %v15587_v51 = vpack.c.bf16 %v5213_v41, %v5212_v42  ;;  %v14083_v41 = vld [vmem:[#allocation86] ss:$0 sm:$0xff] }
0x21b4   :  { %16032 = vrcp.f32 %v4915_v49  ;;  %14942 = vmatprep.subr.mxu0 %v3419_v63  ;;  %v5464_v49 = vld [vmem:[%s19940_s26] sm:$0xff] }
0x21bd   :  { %v16031_v46 = vpop.eup %16030 }
0x21be   :  { %v4916_v47 = vsel %vm1458_vm4, %v16031_v46, 0.0  ;;  %v16033_v52 = vpop.eup %16032 }
0x21bf   :  { %4917 = vadd.xlane.f32.xlu0 %v4916_v47  ;;  %v4921_v53 = vmul.f32 %v16033_v52, %v16029_v35 }
0x21d5   :  { %4923 = vrot.lane.b32.xlu0 %v18667_v15, %s17722_s3 }
0x224c   :  { %v4918_v50 = vpop.xlane.xlu0 %4917 }
0x224d   :  { %16034 = vrcp.f32 %v4918_v50  ;;  %v5465_v50 = vld [vmem:[%s19940_s26 + $0x8] sm:$0xff] }
0x224e   :  { %v15611_v52 = vpack.c.bf16 %v5465_v50, %v5464_v49 }
0x2250   :  { %v4924_v45 = vpop.permute.xlu0 %4923 }
0x2251   :  { %14933 = vmatpush3.msra.mxu1 %v4924_v45 }
0x2252   :  { %14935 = vmatmul.mubr.msk.f32.vlgmr.msra.gmra.mrb[44].mxu1 %vm1458_vm4, %v4921_v53  ;;  %15588 = vmatprep.subr.bf16.mxu1 %v15587_v51 }
0x2253   :  { %15590 = vmatpush3.bf16.msra.mxu1 %v15587_v51 }
0x2257   :  { %v16035_v60 = vpop.eup %16034 }
0x2258   :  { %v4922_v61 = vmul.f32 %v16035_v60, %v16031_v46  ;;  %v5215_v46 = vld [vmem:[%s18143_s30 + $0x18] sm:$0xff]  ;;  %s19942_s30 = sld [smem:[#allocation145_spill]] }
0x2259   :  { %v15591_v47 = vpack.c.bf16 %v5215_v46, %v5214_v43 }
0x225a   :  { %14940 = vmatmul.mubr.msk.f32.vlgmr.msra.gmra.mrb[32].mxu0 %vm1458_vm4, %v4922_v61 }
0x225b   :  { %14943 = vmatpush3.msra.mxu0 %v3419_v63  ;;  %15592 = vmatprep.subr.bf16.mxu1 %v15591_v47 }
0x225c   :  { %15594 = vmatpush3.bf16.msra.mxu1 %v15591_v47 }
0x225d   :  { %15612 = vmatprep.subr.bf16.mxu1 %v15611_v52 }
0x2325   :  { %v4995_v1 = vpop.f32.mrb[44].mxu1 }
0x2326   :  { %v14936_v3 = vpop.f32.mrb[45].mxu1  ;;  %14944 = vmatprep.mubr.msk.f32.mxu0 %vm1458_vm4, %v4995_v1 }
0x232d   :  { %v5071_v15 = vpop.f32.mrb[32].mxu0 }
0x232e   :  { %v14941_v59 = vpop.f32.mrb[33].mxu0  ;;  %14945 = vmatmul.mubr.msk.f32.vlgmr.msra.gmra.mrb[26].mxu0 %vm1458_vm4, %v5071_v15 }
0x2401   :  { %v14946_v9 = vpop.f32.mrb[26].mxu0 }
0x2402   :  { %v5165_v13 = vadd.f32 %v14946_v9, %v14080_v8  ;;  %v5147_v19 = vpop.f32.mrb[27].mxu0 }
0x2403   :  { %v5164_v44 = vadd.f32 %v14080_v8, %v5147_v19 }
0x2404   :  { %v5167_v20 = vadd.f32 %v5165_v13, %v18656_v56  ;;  %v14081_v13 = vld [vmem:[#allocation82] ss:$0 sm:$0xff] }
0x2405   :  { %v5166_v2 = vadd.f32 %v5164_v44, %v18654_v11 }
0x2406   :  { %v5173_v21 = vsel %vm1204_vm2, %v5167_v20, 0.0 }
0x2407   :  { %5174 = vadd.xlane.f32.xlu0 %v5173_v21  ;;  %v5170_v58 = vsel %vm1204_vm2, %v5166_v2, 0.0  ;;  %v5466_v21 = vld [vmem:[%s19940_s26 + $0x10] sm:$0xff] }
0x2408   :  { %5171 = vadd.xlane.f32.xlu1 %v5170_v58 }
0x240b   :  { %1251 = vadd.xlane.f32.xlu0 %v1250_v55 }
0x240c   :  { %1254 = vadd.xlane.f32.xlu1 %v1253_v24 }
0x2494   :  { %v5175_v54 = vpop.xlane.xlu0 %5174 }
0x2495   :  { %v5177_v25 = vmul.f32 0.03125, %v5175_v54  ;;  %v5172_v26 = vpop.xlane.xlu1 %5171 }
0x2496   :  { %v5176_v56 = vmul.f32 0.03125, %v5172_v26 }
0x2497   :  { %v5179_v27 = vsub.f32 %v5167_v20, %v5177_v25 }
0x2498   :  { %v5178_v11 = vsub.f32 %v5166_v2, %v5176_v56  ;;  %v1252_v28 = vpop.xlane.xlu0 %1251  ;;  %v13997_v56 = vld [vmem:[#allocation37] ss:$0 sm:$0xff] }
0x2499   :  { %v1256_v29 = vmul.f32 0.03125, %v1252_v28  ;;  %v1255_v30 = vpop.xlane.xlu1 %1254  ;;  %v5181_v31 = vmul.f32 %v5179_v27, %v5179_v27 }
0x249a   :  { %v1257_v32 = vmul.f32 0.03125, %v1255_v30  ;;  %v5180_v33 = vmul.f32 %v5178_v11, %v5178_v11 }
0x249b   :  { %v1258_v34 = vsub.f32 %v1200_v22, %v1256_v29  ;;  %v5185_v57 = vsel %vm1204_vm2, %v5181_v31, 0.0  ;;  %v5467_v22 = vld [vmem:[%s19940_s26 + $0x18] sm:$0xff]  ;;  %v5322_v31 = vld [vmem:[%s18148_s21] sm:$0xff] }
0x249c   :  { %v1259_v35 = vsub.f32 %v1201_v23, %v1257_v32  ;;  %5186 = vadd.xlane.f32.xlu1 %v5185_v57  ;;  %v5182_v36 = vsel %vm1204_vm2, %v5180_v33, 0.0  ;;  %v13996_v23 = vld [vmem:[#allocation38] ss:$0 sm:$0xff]  ;;  %v15615_v26 = vpack.c.bf16 %v5467_v22, %v5466_v21  ;;  %v5323_v32 = vld [vmem:[%s18148_s21 + $0x8] sm:$0xff]  ;;  %v5325_v57 = vld [vmem:[%s18148_s21 + $0x18] sm:$0xff] }
0x249d   :  { %5183 = vadd.xlane.f32.xlu0 %v5182_v36  ;;  %v1260_v37 = vmul.f32 %v1258_v34, %v1258_v34  ;;  %v15595_v33 = vpack.c.bf16 %v5323_v32, %v5322_v31  ;;  %v5326_v36 = vld [vmem:[%s18148_s21 + $0x20] sm:$0xff]  ;;  %v1324_v31 = vand.u32 127, %v1304_v62 }
0x249e   :  { %v1261_v40 = vmul.f32 %v1259_v35, %v1259_v35 }
0x249f   :  { %v1262_v38 = vsel %vm1204_vm2, %v1260_v37, 0.0  ;;  %15596 = vmatprep.subr.bf16.mxu0 %v15595_v33  ;;  %v5327_v37 = vld [vmem:[%s18148_s21 + $0x28] sm:$0xff]  ;;  %vm1325_vm9 = vcmp.le.s32.totalorder %v1324_v31, %v18457_v0 }
0x24a0   :  { %v1265_v39 = vsel %vm1204_vm2, %v1261_v40, 0.0  ;;  %15598 = vmatpush3.bf16.msra.mxu0 %v15595_v33  ;;  %v15603_v40 = vpack.c.bf16 %v5327_v37, %v5326_v36 }
0x24a1   :  { %1263 = vadd.xlane.f32.xlu0 %v1262_v38  ;;  %1266 = vadd.xlane.f32.xlu1 %v1265_v39  ;;  %v5328_v38 = vld [vmem:[%s18148_s21 + $0x30] sm:$0xff]  ;;  %v5329_v39 = vld [vmem:[%s18148_s21 + $0x38] sm:$0xff] }
0x24a2   :  { %v15607_v42 = vpack.c.bf16 %v5329_v39, %v5328_v38 }
0x2529   :  { %v5187_v45 = vpop.xlane.xlu1 %5186 }
0x252a   :  { %v5189_v53 = vmul.f32 0.03125, %v5187_v45  ;;  %v5184_v60 = vpop.xlane.xlu0 %5183 }
0x252b   :  { %v5188_v61 = vmul.f32 0.03125, %v5184_v60 }
0x252c   :  { %v5191_v63 = vadd.f32 1e-05, %v5189_v53  ;;  %v14091_v53 = vld [vmem:[#allocation25] ss:$0 sm:$0xff] }
0x252d   :  { %v5190_v1 = vadd.f32 1e-05, %v5188_v61 }
0x252e   :  { %16036 = vrsqrt.f32 %v5191_v63  ;;  %v1264_v3 = vpop.xlane.xlu0 %1263  ;;  %v1267_v15 = vpop.xlane.xlu1 %1266 }
0x252f   :  { %16038 = vrsqrt.f32 %v5190_v1  ;;  %v1268_v59 = vmul.f32 0.03125, %v1264_v3  ;;  %v1269_v6 = vmul.f32 0.03125, %v1267_v15 }
0x2531   :  { %v1270_v8 = vadd.f32 1e-05, %v1268_v59  ;;  %v1271_v9 = vadd.f32 1e-05, %v1269_v6 }
0x2533   :  { %16040 = vrsqrt.f32 %v1270_v8 }
0x2534   :  { %16042 = vrsqrt.f32 %v1271_v9 }
0x2538   :  { %v16037_v12 = vpop.eup %16036 }
0x2539   :  { %v16039_v19 = vpop.eup %16038  ;;  %v5195_v14 = vmul.f32 %v16037_v12, %v5179_v27 }
0x253a   :  { %v5194_v44 = vmul.f32 %v16039_v19, %v5178_v11 }
0x253b   :  { %v5203_v20 = vmul.f32 %v14081_v13, %v5195_v14 }
0x253c   :  { %v5202_v2 = vmul.f32 %v14081_v13, %v5194_v44 }
0x253d   :  { %v16041_v58 = vpop.eup %16040  ;;  %v18851_v25 = vadd.f32 %v14082_v17, %v5203_v20 }
0x253e   :  { %v16043_v55 = vpop.eup %16042  ;;  %v18849_v24 = vadd.f32 %v14082_v17, %v5202_v2  ;;  %v1274_v54 = vmul.f32 %v16041_v58, %v1258_v34  ;;  %v5324_v34 = vld [vmem:[%s18148_s21 + $0x10] sm:$0xff]  ;;  %s19941_s21 = sld [smem:[#allocation134_spill]] }
0x253f   :  { %v1275_v28 = vmul.f32 %v16043_v55, %v1259_v35  ;;  %v15599_v35 = vpack.c.bf16 %v5325_v57, %v5324_v34  ;;  %v18907_v55 = vld [vmem:[#allocation88] ss:$0 sm:$0xff] }
0x2540   :  { %14955 = vmatprep.mubr.msk.f32.mxu1 %vm1204_vm2, %v18849_v24  ;;  %v1282_v27 = vmul.f32 %v13996_v23, %v1274_v54 }
0x2541   :  { %14956 = vmatmul.mubr.msk.f32.vlgmr.msra.gmra.mrb[46].mxu1 %vm1204_vm2, %v18851_v25  ;;  %v1283_v29 = vmul.f32 %v13996_v23, %v1275_v28  ;;  %15600 = vmatprep.subr.bf16.mxu0 %v15599_v35  ;;  %v17723_v28 = vmov 0  }
0x2542   :  { %15614 = vmatpush3.bf16.msra.mxu1 %v15611_v52  ;;  %v18857_v11 = vadd.f32 %v13997_v56, %v1282_v27  ;;  %15602 = vmatpush3.bf16.msra.mxu0 %v15599_v35  ;;  %v1329_v27 = vsel %vm1318_vm5, 1, %v17723_v28  ;;  %v1328_v62 = vsel %vm18478_vm6, 1, %v17723_v28 }
0x2543   :  { %15616 = vmatprep.subr.bf16.mxu1 %v15615_v26  ;;  %v18861_v30 = vadd.f32 %v13997_v56, %v1283_v29  ;;  %15604 = vmatprep.subr.bf16.mxu0 %v15603_v40  ;;  %v1337_v29 = vrot.slane %v1329_v27, %v18467_v7  ;;  %v1333_v37 = vrot.slane %v1328_v62, %v18467_v7 }
0x2544   :  { %14985 = vmatprep.mubr.msk.f32.mxu1 %vm1204_vm2, %v18857_v11 }
0x2545   :  { %vm1339_vm8 = vcmp.eq.s32.totalorder %v1337_v29, 1  ;;  %vm1338_vm11 = vcmp.eq.s32.totalorder %v1333_v37, 1 }
0x2546   :  { %15618 = vmatpush3.bf16.msra.mxu1 %v15615_v26  ;;  %15606 = vmatpush3.bf16.msra.mxu0 %v15603_v40  ;;  %vm1341_vm10 = vmand %vm1325_vm9, %vm1339_vm8 }
0x2547   :  { %14988 = vmatprep.subr.mxu1 %v17708_v48  ;;  %15608 = vmatprep.subr.bf16.mxu0 %v15607_v42  ;;  %v18922_v34 = vsel %vm1341_vm10, 0.0, %v17712_v5  ;;  %vm1340_vm12 = vmand %vm1325_vm9, %vm1338_vm11 }
0x2548   :  { %v18936_v40 = vsel %vm1340_vm12, 0.0, %v17712_v5 }
0x2549   :  { %14986 = vmatmul.mubr.msk.f32.vlgmr.msra.gmra.mrb[48].mxu1 %vm1204_vm2, %v18861_v30 }
0x254a   :  { %14990 = vmatprep.mubr.msk.f32.mxu1 %vm17709_vm3, %v17708_v48  ;;  %15610 = vmatpush3.bf16.msra.mxu0 %v15607_v42 }
0x254b   :  { %14998 = vmatprep.subr.mxu0 %v17708_v48 }
0x2614   :  { %v14957_v43 = vpop.f32.mrb[46].mxu1 }
0x2615   :  { %v5301_v51 = vadd.f32 %v14957_v43, %v14083_v41  ;;  %v5295_v46 = vpop.f32.mrb[47].mxu1 }
0x2616   :  { %v5296_v47 = vadd.f32 %v14083_v41, %v5295_v46 }
0x2617   :  { %v5305_v49 = vmul.f32 %v5301_v51, %v5301_v51 }
0x2618   :  { %v5304_v50 = vmul.f32 %v5296_v47, %v5296_v47 }
0x2619   :  { %v5307_v52 = vmul.f32 %v5305_v49, %v5301_v51 }
0x261a   :  { %v5306_v45 = vmul.f32 %v5304_v50, %v5296_v47 }
0x261b   :  { %v5309_v60 = vmul.f32 0.044715, %v5307_v52 }
0x261c   :  { %v5308_v61 = vmul.f32 0.044715, %v5306_v45  ;;  %v14987_v63 = vpop.f32.mrb[48].mxu1 }
0x261d   :  { %v5311_v1 = vadd.f32 %v5309_v60, %v5301_v51  ;;  %v18877_v3 = vadd.f32 %v14987_v63, %v14091_v53  ;;  %v5552_v15 = vpop.f32.mrb[49].mxu1 }
0x261e   :  { %v5310_v59 = vadd.f32 %v5308_v61, %v5296_v47  ;;  %v18879_v6 = vadd.f32 %v14091_v53, %v5552_v15 }
0x261f   :  { %v5313_v8 = vmul.f32 0.7978846, %v5311_v1  ;;  %5642 = vrot.lane.b32.xlu1 %v18877_v3, %s17710_s29  ;;  %v18900_v23 = vmul.f32 0.35355338, %v18877_v3 }
0x2620   :  { %v5312_v9 = vmul.f32 0.7978846, %v5310_v59  ;;  %5564 = vrot.lane.b32.xlu0 %v18879_v6, %s17710_s29  ;;  %v18891_v22 = vmul.f32 0.35355338, %v18879_v6 }
0x2621   :  { %16044 = vtanh.f32 %v5313_v8 }
0x2622   :  { %16046 = vtanh.f32 %v5312_v9 }
0x262b   :  { %v16045_v12 = vpop.eup %16044 }
0x262c   :  { %v16047_v13 = vpop.eup %16046  ;;  %v5317_v19 = vadd.f32 1.0, %v16045_v12 }
0x262d   :  { %v5316_v14 = vadd.f32 1.0, %v16047_v13 }
0x262e   :  { %v5319_v44 = vmul.f32 0.5, %v5317_v19 }
0x262f   :  { %v5318_v17 = vmul.f32 0.5, %v5316_v14 }
0x2630   :  { %v5321_v2 = vmul.f32 %v5319_v44, %v5301_v51 }
0x2631   :  { %v5320_v20 = vmul.f32 %v5318_v17, %v5296_v47 }
0x2633   :  { %14974 = vmatprep.mubr.msk.f32.mxu0 %vm3283_vm7, %v5320_v20 }
0x2634   :  { %14975 = vmatmul.mubr.msk.f32.vlgmr.msra.gmra.mrb[34].mxu0 %vm3283_vm7, %v5321_v2 }
0x2635   :  { %15000 = vmatprep.mubr.msk.f32.mxu0 %vm17709_vm3, %v17708_v48 }
0x2691   :  { %v5643_v58 = vpop.permute.xlu1 %5642 }
0x2692   :  { %v5565_v21 = vpop.permute.xlu0 %5564 }
0x2693   :  { %14989 = vmatpush3.xpose.msk.msra.mxu1 %vm1458_vm4, %v5565_v21 }
0x2694   :  { %14993 = vmatprep.subr.mxu1 %v17708_v48 }
0x2696   :  { %14991 = vmatmul.mubr.msk.f32.vlgmr.msra.gmra.mrb[50].mxu1 %vm1458_vm4, %v18891_v22 }
0x2697   :  { %14994 = vmatpush3.xpose.msk.msra.mxu1 %vm1458_vm4, %v5643_v58  ;;  %14995 = vmatprep.mubr.msk.f32.mxu1 %vm17709_vm3, %v17708_v48 }
0x2698   :  { %15003 = vmatprep.subr.mxu1 %v17708_v48 }
0x269a   :  { %14996 = vmatmul.mubr.msk.f32.vlgmr.msra.gmra.mrb[52].mxu1 %vm1458_vm4, %v18900_v23 }
0x269b   :  { %15005 = vmatprep.mubr.msk.f32.mxu1 %vm17709_vm3, %v17708_v48 }
0x2707   :  { %v14976_v54 = vpop.f32.mrb[34].mxu0 }
0x2708   :  { %v18910_v26 = vadd.f32 %v14976_v54, %v18907_v55  ;;  %v18912_v56 = vpop.f32.mrb[35].mxu0 }
0x2769   :  { %v5637_v32 = vpop.f32.mrb[50].mxu1 }
0x276a   :  { %v14992_v33 = vpop.f32.mrb[51].mxu1  ;;  %v5638_v38 = vadd.f32 %v5637_v32, %v18936_v40 }
0x276c   :  { %v5719_v39 = vsel %vm1458_vm4, %v5638_v38, -inf }
0x276d   :  { %v5715_v57 = vpop.f32.mrb[52].mxu1 }
0x276e   :  { %v5716_v35 = vadd.f32 %v5715_v57, %v18922_v34  ;;  %v14997_v4 = vpop.f32.mrb[53].mxu1 }
0x2770   :  { %v5722_v36 = vsel %vm1458_vm4, %v5716_v35, -inf }
0x2771   :  { %5723 = vmax.xlane.f32.xlu1 %v5722_v36 }
0x2782   :  { %5973 = vrot.lane.b32.xlu1 %v18877_v3, %s17713_s2 }
0x2786   :  { %5971 = vrot.lane.b32.xlu1 %v18900_v23, %s17714_s6 }
0x27aa   :  { %5720 = vmax.xlane.f32.xlu1 %v5719_v39 }
0x27bb   :  { %5895 = vrot.lane.b32.xlu1 %v18879_v6, %s17713_s2 }
0x27bf   :  { %5893 = vrot.lane.b32.xlu1 %v18891_v22, %s17714_s6 }
0x27c3   :  { %6387 = vrot.lane.b32.xlu1 %v18879_v6, %s17715_s7 }
0x27fe   :  { %v5724_v7 = vpop.xlane.xlu1 %5723 }
0x27ff   :  { %v5726_v0 = vsub.f32 %v5716_v35, %v5724_v7 }
0x2801   :  { %v5729_v16 = vmul.f32 1.442695, %v5726_v0 }
0x2802   :  { %v5974_v41 = vpop.permute.xlu1 %5973 }
0x2803   :  { %16048 = vpow2.f32 %v5729_v16 }
0x2806   :  { %v5972_v43 = vpop.permute.xlu1 %5971 }
0x280d   :  { %v16049_v5 = vpop.eup %16048 }
0x280e   :  { %v5734_v42 = vsel %vm1458_vm4, %v16049_v5, 0.0 }
0x280f   :  { %5735 = vadd.xlane.f32.xlu0 %v5734_v42 }
0x2825   :  { %5817 = vrot.lane.b32.xlu0 %v18877_v3, %s17716_s10 }
0x2837   :  { %v5721_v51 = vpop.xlane.xlu1 %5720 }
0x2838   :  { %v5725_v46 = vsub.f32 %v5638_v38, %v5721_v51 }
0x283a   :  { %v5727_v47 = vmul.f32 1.442695, %v5725_v46 }
0x283b   :  { %v5896_v15 = vpop.permute.xlu1 %5895 }
0x283c   :  { %16050 = vpow2.f32 %v5727_v47 }
0x283f   :  { %v5894_v8 = vpop.permute.xlu1 %5893 }
0x2843   :  { %v6388_v57 = vpop.permute.xlu1 %6387 }
0x2846   :  { %v16051_v49 = vpop.eup %16050 }
0x2847   :  { %v5731_v50 = vsel %vm1458_vm4, %v16051_v49, 0.0 }
0x2848   :  { %5732 = vadd.xlane.f32.xlu0 %v5731_v50 }
0x285e   :  { %5741 = vrot.lane.b32.xlu0 %v18879_v6, %s17716_s10 }
0x289c   :  { %v5736_v52 = vpop.xlane.xlu0 %5735 }
0x289d   :  { %16052 = vrcp.f32 %v5736_v52 }
0x28a0   :  { %v5818_v45 = vpop.permute.xlu0 %5817 }
0x28a1   :  { %15004 = vmatpush3.msra.mxu1 %v5818_v45 }
0x28a2   :  { %15013 = vmatprep.subr.mxu1 %v17708_v48 }
0x28a7   :  { %v16053_v53 = vpop.eup %16052 }
0x28a8   :  { %v5740_v60 = vmul.f32 %v16053_v53, %v16049_v5 }
0x28aa   :  { %15006 = vmatmul.mubr.msk.f32.vlgmr.msra.gmra.mrb[54].mxu1 %vm1458_vm4, %v5740_v60 }
0x28ab   :  { %15014 = vmatpush3.xpose.msk.msra.mxu1 %vm1458_vm4, %v5974_v41  ;;  %15015 = vmatprep.mubr.msk.f32.mxu1 %vm17709_vm3, %v17708_v48 }
0x28ac   :  { %15023 = vmatprep.subr.mxu1 %v17708_v48 }
0x28ae   :  { %15016 = vmatmul.mubr.msk.f32.vlgmr.msra.gmra.mrb[56].mxu1 %vm1458_vm4, %v5972_v43 }
0x28af   :  { %15025 = vmatprep.mubr.msk.f32.mxu1 %vm17709_vm3, %v17708_v48 }
0x28d5   :  { %v5733_v61 = vpop.xlane.xlu0 %5732 }
0x28d6   :  { %16054 = vrcp.f32 %v5733_v61 }
0x28d9   :  { %v5742_v63 = vpop.permute.xlu0 %5741 }
0x28da   :  { %14999 = vmatpush3.msra.mxu0 %v5742_v63 }
0x28db   :  { %15008 = vmatprep.subr.mxu0 %v17708_v48 }
0x28e0   :  { %v16055_v1 = vpop.eup %16054 }
0x28e1   :  { %v5739_v59 = vmul.f32 %v16055_v1, %v16051_v49  ;;  %v5470_v1 = vld [vmem:[%s19941_s21 + $0x8] sm:$0xff] }
0x28e3   :  { %15001 = vmatmul.mubr.msk.f32.vlgmr.msra.gmra.mrb[36].mxu0 %vm1458_vm4, %v5739_v59 }
0x28e4   :  { %15009 = vmatpush3.xpose.msk.msra.mxu0 %vm1458_vm4, %v5896_v15  ;;  %15010 = vmatprep.mubr.msk.f32.mxu0 %vm17709_vm3, %v17708_v48  ;;  %v5469_v15 = vld [vmem:[%s19941_s21] sm:$0xff] }
0x28e5   :  { %15018 = vmatprep.subr.mxu0 %v17708_v48 }
0x28e7   :  { %15011 = vmatmul.mubr.msk.f32.vlgmr.msra.gmra.mrb[38].mxu0 %vm1458_vm4, %v5894_v8 }
0x28e8   :  { %15020 = vmatprep.mubr.msk.f32.mxu0 %vm17709_vm3, %v17708_v48 }
0x297d   :  { %v18970_v9 = vpop.f32.mrb[54].mxu1 }
0x297e   :  { %v15007_v12 = vpop.f32.mrb[55].mxu1 }
0x2981   :  { %v6045_v13 = vpop.f32.mrb[56].mxu1 }
0x2982   :  { %v6046_v19 = vadd.f32 %v6045_v13, %v18922_v34  ;;  %v15017_v14 = vpop.f32.mrb[57].mxu1 }
0x2984   :  { %v6052_v44 = vsel %vm1458_vm4, %v6046_v19, -inf }
0x2985   :  { %6053 = vmax.xlane.f32.xlu0 %v6052_v44 }
0x299b   :  { %6147 = vrot.lane.b32.xlu0 %v18877_v3, %s17717_s25 }
0x299f   :  { %6385 = vrot.lane.b32.xlu0 %v18891_v22, %s17718_s11 }
0x29a3   :  { %6463 = vrot.lane.b32.xlu0 %v18900_v23, %s17718_s11 }
0x29b6   :  { %v18980_v17 = vpop.f32.mrb[36].mxu0 }
0x29b7   :  { %v15002_v20 = vpop.f32.mrb[37].mxu0 }
0x29ba   :  { %v5967_v2 = vpop.f32.mrb[38].mxu0 }
0x29bb   :  { %v15012_v21 = vpop.f32.mrb[39].mxu0  ;;  %v5968_v32 = vadd.f32 %v5967_v2, %v18936_v40 }
0x29bd   :  { %v6049_v33 = vsel %vm1458_vm4, %v5968_v32, -inf }
0x2a12   :  { %v6054_v58 = vpop.xlane.xlu0 %6053 }
0x2a13   :  { %v6056_v54 = vsub.f32 %v6046_v19, %v6054_v58 }
0x2a15   :  { %v6059_v28 = vmul.f32 1.442695, %v6056_v54 }
0x2a16   :  { %v6148_v27 = vpop.permute.xlu0 %6147 }
0x2a17   :  { %16056 = vpow2.f32 %v6059_v28  ;;  %15024 = vmatpush3.msra.mxu1 %v6148_v27  ;;  %v5471_v27 = vld [vmem:[%s19941_s21 + $0x10] sm:$0xff] }
0x2a18   :  { %15038 = vmatprep.subr.mxu1 %v17708_v48 }
0x2a1a   :  { %v6386_v62 = vpop.permute.xlu0 %6385 }
0x2a1e   :  { %v6464_v38 = vpop.permute.xlu0 %6463 }
0x2a21   :  { %v16057_v29 = vpop.eup %16056 }
0x2a22   :  { %v6064_v31 = vsel %vm1458_vm4, %v16057_v29, 0.0 }
0x2a23   :  { %6065 = vadd.xlane.f32.xlu1 %v6064_v31 }
0x2a34   :  { %6465 = vrot.lane.b32.xlu1 %v18877_v3, %s17715_s7 }
0x2a58   :  { %6050 = vmax.xlane.f32.xlu1 %v6049_v33 }
0x2ab0   :  { %v6066_v35 = vpop.xlane.xlu1 %6065 }
0x2ab1   :  { %16058 = vrcp.f32 %v6066_v35 }
0x2ab4   :  { %v6466_v37 = vpop.permute.xlu1 %6465 }
0x2abb   :  { %v16059_v4 = vpop.eup %16058 }
0x2abc   :  { %v6070_v36 = vmul.f32 %v16059_v4, %v16057_v29 }
0x2abe   :  { %15026 = vmatmul.mubr.msk.f32.vlgmr.msra.gmra.mrb[58].mxu1 %vm1458_vm4, %v6070_v36 }
0x2abf   :  { %15039 = vmatpush3.xpose.msk.msra.mxu1 %vm1458_vm4, %v6388_v57  ;;  %15040 = vmatprep.mubr.msk.f32.mxu1 %vm17709_vm3, %v17708_v48 }
0x2ac0   :  { %15043 = vmatprep.subr.mxu1 %v17708_v48 }
0x2ac2   :  { %15041 = vmatmul.mubr.msk.f32.vlgmr.msra.gmra.mrb[60].mxu1 %vm1458_vm4, %v6386_v62 }
0x2ac3   :  { %15044 = vmatpush3.xpose.msk.msra.mxu1 %vm1458_vm4, %v6466_v37  ;;  %15045 = vmatprep.mubr.msk.f32.mxu1 %vm17709_vm3, %v17708_v48 }
0x2ac4   :  { %15053 = vmatprep.subr.mxu1 %v17708_v48 }
0x2ac6   :  { %15046 = vmatmul.mubr.msk.f32.vlgmr.msra.gmra.mrb[62].mxu1 %vm1458_vm4, %v6464_v38 }
0x2ac7   :  { %15055 = vmatprep.mubr.msk.f32.mxu1 %vm17709_vm3, %v17708_v48 }
0x2ae5   :  { %v6051_v39 = vpop.xlane.xlu1 %6050 }
0x2ae6   :  { %v6055_v7 = vsub.f32 %v5968_v32, %v6051_v39 }
0x2ae8   :  { %v6057_v0 = vmul.f32 1.442695, %v6055_v7 }
0x2aea   :  { %16060 = vpow2.f32 %v6057_v0 }
0x2af4   :  { %v16061_v16 = vpop.eup %16060 }
0x2af5   :  { %v6061_v5 = vsel %vm1458_vm4, %v16061_v16, 0.0 }
0x2af6   :  { %6062 = vadd.xlane.f32.xlu0 %v6061_v5 }
0x2b0c   :  { %6071 = vrot.lane.b32.xlu0 %v18879_v6, %s17717_s25 }
0x2b10   :  { %6639 = vrot.lane.b32.xlu0 %v18877_v3, %s17719_s20 }
0x2b14   :  { %6800 = vrot.lane.b32.xlu0 %v18879_v6, %s17720_s15 }
0x2b18   :  { %6878 = vrot.lane.b32.xlu0 %v18877_v3, %s17720_s15 }
0x2b1c   :  { %6798 = vrot.lane.b32.xlu0 %v18891_v22, %s17721_s16 }
0x2b83   :  { %v6063_v42 = vpop.xlane.xlu0 %6062 }
0x2b84   :  { %16062 = vrcp.f32 %v6063_v42 }
0x2b87   :  { %v6072_v41 = vpop.permute.xlu0 %6071 }
0x2b88   :  { %15019 = vmatpush3.msra.mxu0 %v6072_v41 }
0x2b89   :  { %15028 = vmatprep.subr.mxu0 %v5470_v1 }
0x2b8b   :  { %v6640_v43 = vpop.permute.xlu0 %6639 }
0x2b8c   :  { %15054 = vmatpush3.msra.mxu1 %v6640_v43 }
0x2b8d   :  { %15063 = vmatprep.subr.mxu1 %v17708_v48 }
0x2b8e   :  { %v16063_v51 = vpop.eup %16062 }
0x2b8f   :  { %v6069_v46 = vmul.f32 %v16063_v51, %v16061_v16  ;;  %v6801_v31 = vpop.permute.xlu0 %6800 }
0x2b91   :  { %15021 = vmatmul.mubr.msk.f32.vlgmr.msra.gmra.mrb[40].mxu0 %vm1458_vm4, %v6069_v46  ;;  %v6219_v47 = vpop.f32.mrb[58].mxu1 }
0x2b92   :  { %v15027_v49 = vpop.f32.mrb[59].mxu1  ;;  %15029 = vmatpush3.msra.mxu0 %v5470_v1 }
0x2b93   :  { %15033 = vmatprep.subr.mxu0 %v5469_v15  ;;  %v6879_v57 = vpop.permute.xlu0 %6878 }
0x2b95   :  { %v6459_v50 = vpop.f32.mrb[60].mxu1 }
0x2b96   :  { %v6460_v52 = vadd.f32 %v6459_v50, %v18936_v40  ;;  %v15042_v22 = vpop.f32.mrb[61].mxu1 }
0x2b97   :  { %v6799_v35 = vpop.permute.xlu0 %6798 }
0x2b98   :  { %v6541_v45 = vsel %vm1458_vm4, %v6460_v52, -inf }
0x2b99   :  { %v6537_v53 = vpop.f32.mrb[62].mxu1  ;;  %6542 = vmax.xlane.f32.xlu1 %v6541_v45 }
0x2b9a   :  { %v6538_v60 = vadd.f32 %v6537_v53, %v18922_v34  ;;  %v15047_v61 = vpop.f32.mrb[63].mxu1 }
0x2b9c   :  { %v6544_v63 = vsel %vm1458_vm4, %v6538_v60, -inf }
0x2b9d   :  { %6545 = vmax.xlane.f32.xlu1 %v6544_v63 }
0x2c26   :  { %v6543_v59 = vpop.xlane.xlu1 %6542 }
0x2c27   :  { %v6547_v8 = vsub.f32 %v6460_v52, %v6543_v59  ;;  %v5410_v52 = vadd.f32 %v18907_v55, %v18912_v56 }
0x2c29   :  { %v6549_v12 = vmul.f32 1.442695, %v6547_v8  ;;  %v5418_v22 = vadd.f32 %v5410_v52, %v18849_v24  ;;  %v5419_v24 = vadd.f32 %v18910_v26, %v18851_v25  ;;  %v7268_v52 = vld [vmem:[%s19942_s30 + $0x18] sm:$0xff] }
0x2c2a   :  { %v6546_v13 = vpop.xlane.xlu1 %6545 }
0x2c2b   :  { %16064 = vpow2.f32 %v6549_v12  ;;  %v6548_v19 = vsub.f32 %v6538_v60, %v6546_v13  ;;  %v5422_v45 = vsel %vm1204_vm2, %v5418_v22, 0.0 }
0x2c2d   :  { %v6551_v14 = vmul.f32 1.442695, %v6548_v19 }
0x2c2f   :  { %16066 = vpow2.f32 %v6551_v14 }
0x2c35   :  { %v16065_v44 = vpop.eup %16064 }
0x2c36   :  { %v6553_v20 = vsel %vm1458_vm4, %v16065_v44, 0.0 }
0x2c37   :  { %6554 = vadd.xlane.f32.xlu1 %v6553_v20 }
0x2c39   :  { %v16067_v2 = vpop.eup %16066 }
0x2c3a   :  { %v6556_v21 = vsel %vm1458_vm4, %v16067_v2, 0.0 }
0x2c3b   :  { %6557 = vadd.xlane.f32.xlu1 %v6556_v21 }
0x2c4c   :  { %6563 = vrot.lane.b32.xlu1 %v18879_v6, %s17719_s20 }
0x2c50   :  { %6876 = vrot.lane.b32.xlu1 %v18900_v23, %s17721_s16 }
0x2c64   :  { %v6143_v58 = vpop.f32.mrb[40].mxu0 }
0x2c65   :  { %v15022_v54 = vpop.f32.mrb[41].mxu0  ;;  %15030 = vmatprep.mubr.msk.f32.mxu0 %vm1458_vm4, %v6143_v58 }
0x2c66   :  { %15031 = vmatmul.mubr.msk.f32.vlgmr.msra.gmra.mrb[42].mxu0 %vm1458_vm4, %v6219_v47  ;;  %v14126_v54 = vld [vmem:[#allocation23] ss:$0 sm:$0xff] }
0x2c67   :  { %15035 = vmatprep.mubr.msk.f32.mxu0 %vm1458_vm4, %v18980_v17  ;;  %15034 = vmatpush3.msra.mxu0 %v5469_v15 }
0x2c68   :  { %15048 = vmatprep.subr.mxu0 %v17708_v48 }
0x2c6e   :  { %15036 = vmatmul.mubr.msk.f32.vlgmr.msra.gmra.mrb[42].mxu0 %vm1458_vm4, %v18970_v9 }
0x2c6f   :  { %15050 = vmatprep.mubr.msk.f32.mxu0 %vm17709_vm3, %v17708_v48 }
0x2cc4   :  { %v6555_v28 = vpop.xlane.xlu1 %6554 }
0x2cc5   :  { %16068 = vrcp.f32 %v6555_v28 }
0x2cc8   :  { %v6558_v23 = vpop.xlane.xlu1 %6557 }
0x2cc9   :  { %16070 = vrcp.f32 %v6558_v23 }
0x2ccc   :  { %v6564_v29 = vpop.permute.xlu1 %6563 }
0x2ccd   :  { %15049 = vmatpush3.msra.mxu0 %v6564_v29 }
0x2cce   :  { %15058 = vmatprep.subr.mxu0 %v5471_v27 }
0x2ccf   :  { %v16069_v32 = vpop.eup %16068 }
0x2cd0   :  { %v6561_v17 = vmul.f32 %v16069_v32, %v16065_v44  ;;  %v6877_v38 = vpop.permute.xlu1 %6876 }
0x2cd2   :  { %15051 = vmatmul.mubr.msk.f32.vlgmr.msra.gmra.mrb[44].mxu0 %vm1458_vm4, %v6561_v17 }
0x2cd3   :  { %v16071_v33 = vpop.eup %16070  ;;  %15059 = vmatpush3.msra.mxu0 %v5471_v27 }
0x2cd4   :  { %v6562_v9 = vmul.f32 %v16071_v33, %v16067_v2  ;;  %15068 = vmatprep.subr.mxu0 %v17708_v48 }
0x2cd6   :  { %15056 = vmatmul.mubr.msk.f32.vlgmr.msra.gmra.mrb[64].mxu1 %vm1458_vm4, %v6562_v9 }
0x2cd7   :  { %15064 = vmatpush3.xpose.msk.msra.mxu1 %vm1458_vm4, %v6801_v31  ;;  %15065 = vmatprep.mubr.msk.f32.mxu1 %vm17709_vm3, %v17708_v48 }
0x2cd8   :  { %15073 = vmatprep.subr.mxu1 %v17708_v48 }
0x2cda   :  { %15066 = vmatmul.mubr.msk.f32.vlgmr.msra.gmra.mrb[66].mxu1 %vm1458_vm4, %v6799_v35 }
0x2cdb   :  { %15075 = vmatprep.mubr.msk.f32.mxu1 %vm17709_vm3, %v17708_v48 }
0x2da5   :  { %v6635_v4 = vpop.f32.mrb[44].mxu0 }
0x2da6   :  { %v15052_v36 = vpop.f32.mrb[45].mxu0  ;;  %15060 = vmatprep.mubr.msk.f32.mxu0 %vm1458_vm4, %v6635_v4 }
0x2da9   :  { %v6711_v62 = vpop.f32.mrb[64].mxu1 }
0x2daa   :  { %v15057_v37 = vpop.f32.mrb[65].mxu1  ;;  %15061 = vmatmul.mubr.msk.f32.vlgmr.msra.gmra.mrb[42].mxu0 %vm1458_vm4, %v6711_v62 }
0x2dab   :  { %15069 = vmatpush3.xpose.msk.msra.mxu0 %vm1458_vm4, %v6879_v57  ;;  %15070 = vmatprep.mubr.msk.f32.mxu0 %vm17709_vm3, %v17708_v48 }
0x2dac   :  { %15078 = vmatprep.subr.mxu0 %v17708_v48 }
0x2dad   :  { %v6872_v39 = vpop.f32.mrb[66].mxu1 }
0x2dae   :  { %v6873_v7 = vadd.f32 %v6872_v39, %v18936_v40  ;;  %v15067_v0 = vpop.f32.mrb[67].mxu1  ;;  %15071 = vmatmul.mubr.msk.f32.vlgmr.msra.gmra.mrb[46].mxu0 %vm1458_vm4, %v6877_v38 }
0x2daf   :  { %15080 = vmatprep.mubr.msk.f32.mxu0 %vm17709_vm3, %v17708_v48 }
0x2db0   :  { %v6954_v16 = vsel %vm1458_vm4, %v6873_v7, -inf }
0x2db1   :  { %6955 = vmax.xlane.f32.xlu0 %v6954_v16 }
0x2e3e   :  { %v6956_v5 = vpop.xlane.xlu0 %6955 }
0x2e3f   :  { %v6960_v42 = vsub.f32 %v6873_v7, %v6956_v5 }
0x2e41   :  { %v6962_v41 = vmul.f32 1.442695, %v6960_v42 }
0x2e43   :  { %16072 = vpow2.f32 %v6962_v41 }
0x2e4d   :  { %v16073_v43 = vpop.eup %16072 }
0x2e4e   :  { %v6966_v51 = vsel %vm1458_vm4, %v16073_v43, 0.0 }
0x2e4f   :  { %6967 = vadd.xlane.f32.xlu0 %v6966_v51 }
0x2e81   :  { %v6950_v46 = vpop.f32.mrb[46].mxu0 }
0x2e82   :  { %v6951_v47 = vadd.f32 %v6950_v46, %v18922_v34  ;;  %v15072_v49 = vpop.f32.mrb[47].mxu0 }
0x2e84   :  { %v6957_v50 = vsel %vm1458_vm4, %v6951_v47, -inf }
0x2e85   :  { %6958 = vmax.xlane.f32.xlu1 %v6957_v50  ;;  %v7267_v50 = vld [vmem:[%s19942_s30 + $0x10] sm:$0xff] }
0x2e96   :  { %7052 = vrot.lane.b32.xlu1 %v18877_v3, %s17722_s3  ;;  %v5425_v3 = vsel %vm1204_vm2, %v5419_v24, 0.0 }
0x2eba   :  { %5423 = vadd.xlane.f32.xlu1 %v5422_v45  ;;  %v14089_v45 = vld [vmem:[#allocation85] ss:$0 sm:$0xff] }
0x2edc   :  { %v6968_v55 = vpop.xlane.xlu0 %6967 }
0x2f12   :  { %v6959_v53 = vpop.xlane.xlu1 %6958 }
0x2f13   :  { %v6961_v60 = vsub.f32 %v6951_v47, %v6959_v53 }
0x2f15   :  { %v6964_v61 = vmul.f32 1.442695, %v6961_v60 }
0x2f16   :  { %v7053_v63 = vpop.permute.xlu1 %7052 }
0x2f17   :  { %16074 = vpow2.f32 %v6964_v61  ;;  %15079 = vmatpush3.msra.mxu0 %v7053_v63  ;;  %v14090_v61 = vld [vmem:[#allocation83] ss:$0 sm:$0xff] }
0x2f18   :  { %16076 = vrcp.f32 %v6968_v55  ;;  %v7265_v55 = vld [vmem:[%s19942_s30] sm:$0xff] }
0x2f21   :  { %v16075_v1 = vpop.eup %16074 }
0x2f22   :  { %v6969_v15 = vsel %vm1458_vm4, %v16075_v1, 0.0  ;;  %v16077_v59 = vpop.eup %16076 }
0x2f23   :  { %6970 = vadd.xlane.f32.xlu0 %v6969_v15  ;;  %v6974_v12 = vmul.f32 %v16077_v59, %v16073_v43 }
0x2f39   :  { %6976 = vrot.lane.b32.xlu0 %v18879_v6, %s17722_s3  ;;  %v5472_v6 = vld [vmem:[%s19941_s21 + $0x18] sm:$0xff] }
0x2f3a   :  { %15083 = vmatprep.subr.mxu0 %v5472_v6 }
0x2f47   :  { %v5424_v2 = vpop.xlane.xlu1 %5423 }
0x2f48   :  { %v5428_v58 = vmul.f32 0.03125, %v5424_v2 }
0x2f4a   :  { %v5430_v31 = vsub.f32 %v5418_v22, %v5428_v58 }
0x2f4c   :  { %v5432_v4 = vmul.f32 %v5430_v31, %v5430_v31 }
0x2f4e   :  { %v5434_v62 = vsel %vm1204_vm2, %v5432_v4, 0.0 }
0x2f58   :  { %5426 = vadd.xlane.f32.xlu0 %v5425_v3 }
0x2fb0   :  { %v6971_v56 = vpop.xlane.xlu0 %6970 }
0x2fb1   :  { %16078 = vrcp.f32 %v6971_v56  ;;  %v7266_v56 = vld [vmem:[%s19942_s30 + $0x8] sm:$0xff] }
0x2fb4   :  { %v6977_v8 = vpop.permute.xlu0 %6976 }
0x2fb5   :  { %15074 = vmatpush3.msra.mxu1 %v6977_v8  ;;  %v15936_v8 = vpack.i.bf16 %v7266_v56, %v7265_v55 }
0x2fb6   :  { %15076 = vmatmul.mubr.msk.f32.vlgmr.msra.gmra.mrb[68].mxu1 %vm1458_vm4, %v6974_v12  ;;  %v15619_v12 = vpack.c.bf16 %v7266_v56, %v7265_v55 }
0x2fb8   :  { %15620 = vmatprep.subr.bf16.mxu1 %v15619_v12 }
0x2fb9   :  { %15622 = vmatpush3.bf16.msra.mxu1 %v15619_v12 }
0x2fbb   :  { %v16079_v13 = vpop.eup %16078 }
0x2fbc   :  { %v6975_v19 = vmul.f32 %v16079_v13, %v16075_v1  ;;  %v15941_v1 = vpack.i.bf16 %v7268_v52, %v7267_v50  ;;  %v15623_v13 = vpack.c.bf16 %v7268_v52, %v7267_v50 }
0x2fbe   :  { %15081 = vmatmul.mubr.msk.f32.vlgmr.msra.gmra.mrb[48].mxu0 %vm1458_vm4, %v6975_v19  ;;  %15624 = vmatprep.subr.bf16.mxu1 %v15623_v13  ;;  %v14129_v19 = vld [vmem:[#allocation44] ss:$0 sm:$0xff] }
0x2fbf   :  { %15084 = vmatpush3.msra.mxu0 %v5472_v6  ;;  %15626 = vmatpush3.bf16.msra.mxu1 %v15623_v13 }
0x2fc0   :  { %15110 = vmatprep.subr.mxu1 %v17708_v48 }
0x2fe5   :  { %v5427_v20 = vpop.xlane.xlu0 %5426 }
0x2fe6   :  { %v5429_v21 = vmul.f32 0.03125, %v5427_v20 }
0x2fe8   :  { %v5431_v23 = vsub.f32 %v5419_v24, %v5429_v21 }
0x2fea   :  { %v5433_v9 = vmul.f32 %v5431_v23, %v5431_v23 }
0x2fec   :  { %v5437_v36 = vsel %vm1204_vm2, %v5433_v9, 0.0  ;;  %v14128_v9 = vld [vmem:[#allocation26] ss:$0 sm:$0xff] }
0x3089   :  { %v7048_v25 = vpop.f32.mrb[68].mxu1 }
0x308a   :  { %v15077_v26 = vpop.f32.mrb[69].mxu1  ;;  %15085 = vmatprep.mubr.msk.f32.mxu0 %vm1458_vm4, %v7048_v25 }
0x3091   :  { %v7124_v14 = vpop.f32.mrb[48].mxu0 }
0x3092   :  { %v15082_v44 = vpop.f32.mrb[49].mxu0  ;;  %15086 = vmatmul.mubr.msk.f32.vlgmr.msra.gmra.mrb[42].mxu0 %vm1458_vm4, %v7124_v14 }
0x3165   :  { %v15087_v28 = vpop.f32.mrb[42].mxu0 }
0x3166   :  { %v7218_v27 = vadd.f32 %v15087_v28, %v14126_v54  ;;  %v7200_v29 = vpop.f32.mrb[43].mxu0 }
0x3167   :  { %v7217_v32 = vadd.f32 %v14126_v54, %v7200_v29 }
0x3168   :  { %v7220_v17 = vadd.f32 %v7218_v27, %v18861_v30 }
0x3169   :  { %v7219_v33 = vadd.f32 %v7217_v32, %v18857_v11  ;;  %v14127_v32 = vld [vmem:[#allocation28] ss:$0 sm:$0xff] }
0x316a   :  { %v7226_v57 = vsel %vm1204_vm2, %v7220_v17, 0.0 }
0x316b   :  { %7227 = vadd.xlane.f32.xlu1 %v7226_v57  ;;  %v7223_v35 = vsel %vm1204_vm2, %v7219_v33, 0.0 }
0x316c   :  { %7224 = vadd.xlane.f32.xlu0 %v7223_v35 }
0x316f   :  { %5438 = vadd.xlane.f32.xlu1 %v5437_v36 }
0x3170   :  { %5435 = vadd.xlane.f32.xlu0 %v5434_v62 }
0x31f8   :  { %v7228_v37 = vpop.xlane.xlu1 %7227 }
0x31f9   :  { %v7230_v38 = vmul.f32 0.03125, %v7228_v37  ;;  %v7225_v39 = vpop.xlane.xlu0 %7224 }
0x31fa   :  { %v7229_v30 = vmul.f32 0.03125, %v7225_v39 }
0x31fb   :  { %v19083_v7 = vsub.f32 %v7220_v17, %v7230_v38 }
0x31fc   :  { %v19085_v11 = vsub.f32 %v7219_v33, %v7229_v30  ;;  %v5439_v0 = vpop.xlane.xlu1 %5438 }
0x31fd   :  { %v5441_v16 = vmul.f32 0.03125, %v5439_v0  ;;  %v5436_v5 = vpop.xlane.xlu0 %5435  ;;  %v7234_v42 = vmul.f32 %v19083_v7, %v19083_v7 }
0x31fe   :  { %v5440_v41 = vmul.f32 0.03125, %v5436_v5  ;;  %v7233_v43 = vmul.f32 %v19085_v11, %v19085_v11 }
0x31ff   :  { %v5443_v51 = vadd.f32 1e-05, %v5441_v16  ;;  %v7238_v46 = vsel %vm1204_vm2, %v7234_v42, 0.0 }
0x3200   :  { %v5442_v47 = vadd.f32 1e-05, %v5440_v41  ;;  %7239 = vadd.xlane.f32.xlu1 %v7238_v46  ;;  %v7235_v49 = vsel %vm1204_vm2, %v7233_v43, 0.0 }
0x3201   :  { %16080 = vrsqrt.f32 %v5443_v51  ;;  %7236 = vadd.xlane.f32.xlu0 %v7235_v49 }
0x3202   :  { %16082 = vrsqrt.f32 %v5442_v47 }
0x320b   :  { %v16081_v22 = vpop.eup %16080 }
0x320c   :  { %v16083_v53 = vpop.eup %16082  ;;  %v5447_v60 = vmul.f32 %v16081_v22, %v5431_v23 }
0x320d   :  { %v5446_v63 = vmul.f32 %v16083_v53, %v5430_v31 }
0x320e   :  { %v5455_v15 = vmul.f32 %v14089_v45, %v5447_v60 }
0x320f   :  { %v5454_v24 = vmul.f32 %v14089_v45, %v5446_v63 }
0x3210   :  { %v19095_v3 = vadd.f32 %v14090_v61, %v5455_v15 }
0x3211   :  { %v19099_v59 = vadd.f32 %v14090_v61, %v5454_v24  ;;  %15942 = vrot.lane.b32.xlu1 %v15941_v1, %s17710_s29 }
0x3213   :  { %15107 = vmatprep.mubr.msk.f32.mxu0 %vm1204_vm2, %v19099_v59 }
0x3215   :  { %7378 = vrot.lane.b32.xlu1 %v14129_v19, %s17710_s29 }
0x3217   :  { %15937 = vrot.lane.b32.xlu0 %v15936_v8, %s17710_s29 }
0x328d   :  { %v7240_v6 = vpop.xlane.xlu1 %7239 }
0x328e   :  { %v7242_v25 = vmul.f32 0.03125, %v7240_v6  ;;  %v7237_v26 = vpop.xlane.xlu0 %7236 }
0x328f   :  { %v7241_v14 = vmul.f32 0.03125, %v7237_v26 }
0x3290   :  { %v7244_v44 = vadd.f32 1e-05, %v7242_v25 }
0x3291   :  { %v7243_v20 = vadd.f32 1e-05, %v7241_v14  ;;  %v15943_v2 = vpop.permute.xlu1 %15942 }
0x3292   :  { %16084 = vrsqrt.f32 %v7244_v44  ;;  %v15938_v21 = vpop.permute.xlu0 %15937  ;;  %v15945_v58 = vunpack.i.h.bf16 %v15943_v2  ;;  %v15944_v54 = vunpack.i.l.bf16 %v15943_v2 }
0x3293   :  { %16086 = vrsqrt.f32 %v7243_v20  ;;  %v15940_v28 = vunpack.i.h.bf16 %v15938_v21  ;;  %v15939_v23 = vunpack.i.l.bf16 %v15938_v21 }
0x3294   :  { %v15631_v29 = vpack.c.bf16 %v15945_v58, %v15944_v54 }
0x3295   :  { %v15627_v27 = vpack.c.bf16 %v15940_v28, %v15939_v23  ;;  %v7379_v37 = vpop.permute.xlu1 %7378 }
0x3297   :  { %15628 = vmatprep.subr.bf16.mxu0 %v15627_v27 }
0x3298   :  { %15630 = vmatpush3.bf16.msra.mxu0 %v15627_v27 }
0x3299   :  { %15632 = vmatprep.subr.bf16.mxu0 %v15631_v29 }
0x329c   :  { %v16085_v31 = vpop.eup %16084  ;;  %15634 = vmatpush3.bf16.msra.mxu0 %v15631_v29 }
0x329d   :  { %v16087_v17 = vpop.eup %16086  ;;  %v7248_v33 = vmul.f32 %v16085_v31, %v19083_v7  ;;  %15120 = vmatprep.subr.mxu0 %v17708_v48 }
0x329e   :  { %v7247_v57 = vmul.f32 %v16087_v17, %v19085_v11 }
0x329f   :  { %15108 = vmatmul.mubr.msk.f32.vlgmr.msra.gmra.mrb[50].mxu0 %vm1204_vm2, %v19095_v3  ;;  %v7256_v35 = vmul.f32 %v14127_v32, %v7248_v33 }
0x32a0   :  { %v7255_v4 = vmul.f32 %v14127_v32, %v7247_v57  ;;  %15122 = vmatprep.mubr.msk.f32.mxu0 %vm17709_vm3, %v17708_v48 }
0x32a1   :  { %v19116_v62 = vadd.f32 %v14128_v9, %v7256_v35 }
0x32a2   :  { %v19114_v36 = vadd.f32 %v14128_v9, %v7255_v4 }
0x32a4   :  { %15096 = vmatprep.mubr.msk.f32.mxu1 %vm1204_vm2, %v19114_v36 }
0x32a5   :  { %15097 = vmatmul.mubr.msk.f32.vlgmr.msra.gmra.mrb[70].mxu1 %vm1204_vm2, %v19116_v62 }
0x32a6   :  { %15112 = vmatprep.mubr.msk.f32.mxu1 %vm17709_vm3, %v17708_v48 }
0x3372   :  { %v15109_v38 = vpop.f32.mrb[50].mxu0 }
0x3373   :  { %v7453_v39 = vpop.f32.mrb[51].mxu0  ;;  %v19131_v42 = vadd.f32 %v15109_v38, %v7379_v37 }
0x3374   :  { %v19124_v30 = vadd.f32 %v7453_v39, %v7379_v37 }
0x3376   :  { %15111 = vmatpush3.xpose.msk.msra.mxu1 %vm1458_vm4, %v19124_v30 }
0x3377   :  { %15115 = vmatprep.subr.mxu1 %v17708_v48 }
0x3378   :  { %v15098_v7 = vpop.f32.mrb[70].mxu1 }
0x3379   :  { %v7353_v11 = vpop.f32.mrb[71].mxu1  ;;  %v7359_v16 = vadd.f32 %v15098_v7, %v14129_v19 }
0x337a   :  { %v7354_v0 = vadd.f32 %v14129_v19, %v7353_v11 }
0x337b   :  { %v19139_v41 = vmul.f32 0.35355338, %v7359_v16 }
0x337c   :  { %v19129_v5 = vmul.f32 0.35355338, %v7354_v0 }
0x337e   :  { %15113 = vmatmul.mubr.msk.f32.vlgmr.msra.gmra.mrb[72].mxu1 %vm1458_vm4, %v19129_v5 }
0x337f   :  { %15116 = vmatpush3.xpose.msk.msra.mxu1 %vm1458_vm4, %v19131_v42  ;;  %15117 = vmatprep.mubr.msk.f32.mxu1 %vm17709_vm3, %v17708_v48 }
0x3380   :  { %15125 = vmatprep.subr.mxu1 %v17708_v48 }
0x3382   :  { %15118 = vmatmul.mubr.msk.f32.vlgmr.msra.gmra.mrb[74].mxu1 %vm1458_vm4, %v19139_v41 }
0x3383   :  { %15127 = vmatprep.mubr.msk.f32.mxu1 %vm17709_vm3, %v17708_v48 }
0x3451   :  { %v7536_v43 = vpop.f32.mrb[72].mxu1 }
0x3452   :  { %v15114_v51 = vpop.f32.mrb[73].mxu1  ;;  %v7537_v61 = vadd.f32 %v7536_v43, %v18486_v18 }
0x3454   :  { %v7616_v63 = vsel %vm1458_vm4, %v7537_v61, -inf }
0x3455   :  { %v7612_v46 = vpop.f32.mrb[74].mxu1 }
0x3456   :  { %v7613_v47 = vadd.f32 %v7612_v46, %v18470_v10  ;;  %v15119_v49 = vpop.f32.mrb[75].mxu1 }
0x3458   :  { %v7619_v50 = vsel %vm1458_vm4, %v7613_v47, -inf }
0x3459   :  { %7620 = vmax.xlane.f32.xlu1 %v7619_v50 }
0x346a   :  { %7870 = vrot.lane.b32.xlu1 %v19131_v42, %s17714_s6 }
0x346e   :  { %7868 = vrot.lane.b32.xlu1 %v19139_v41, %s17714_s6 }
0x34e6   :  { %v7621_v52 = vpop.xlane.xlu1 %7620 }
0x34e7   :  { %v7623_v22 = vsub.f32 %v7613_v47, %v7621_v52 }
0x34e9   :  { %v7626_v45 = vmul.f32 1.442695, %v7623_v22 }
0x34ea   :  { %v7871_v55 = vpop.permute.xlu1 %7870 }
0x34eb   :  { %16088 = vpow2.f32 %v7626_v45 }
0x34ee   :  { %v7869_v8 = vpop.permute.xlu1 %7868 }
0x34f5   :  { %v16089_v53 = vpop.eup %16088 }
0x34f6   :  { %v7631_v60 = vsel %vm1458_vm4, %v16089_v53, 0.0 }
0x34f7   :  { %7632 = vadd.xlane.f32.xlu0 %v7631_v60 }
0x350d   :  { %7714 = vrot.lane.b32.xlu0 %v19131_v42, %s17710_s29 }
0x352c   :  { %7617 = vmax.xlane.f32.xlu0 %v7616_v63 }
0x3542   :  { %7638 = vrot.lane.b32.xlu0 %v19124_v30, %s17710_s29 }
0x3546   :  { %7790 = vrot.lane.b32.xlu0 %v19129_v5, %s17714_s6 }
0x3584   :  { %v7633_v1 = vpop.xlane.xlu0 %7632 }
0x3585   :  { %16090 = vrcp.f32 %v7633_v1 }
0x3588   :  { %v7715_v15 = vpop.permute.xlu0 %7714 }
0x3589   :  { %15126 = vmatpush3.msra.mxu1 %v7715_v15 }
0x358a   :  { %15135 = vmatprep.subr.mxu1 %v17708_v48 }
0x358f   :  { %v16091_v24 = vpop.eup %16090 }
0x3590   :  { %v7637_v56 = vmul.f32 %v16091_v24, %v16089_v53 }
0x3592   :  { %15128 = vmatmul.mubr.msk.f32.vlgmr.msra.gmra.mrb[76].mxu1 %vm1458_vm4, %v7637_v56 }
0x3593   :  { %15136 = vmatpush3.xpose.msk.msra.mxu1 %vm1458_vm4, %v7871_v55  ;;  %15137 = vmatprep.mubr.msk.f32.mxu1 %vm17709_vm3, %v17708_v48 }
0x3594   :  { %15145 = vmatprep.subr.mxu1 %v17708_v48 }
0x3596   :  { %15138 = vmatmul.mubr.msk.f32.vlgmr.msra.gmra.mrb[78].mxu1 %vm1458_vm4, %v7869_v8 }
0x3597   :  { %15147 = vmatprep.mubr.msk.f32.mxu1 %vm17709_vm3, %v17708_v48 }
0x35b9   :  { %v7618_v12 = vpop.xlane.xlu0 %7617 }
0x35ba   :  { %v7622_v13 = vsub.f32 %v7537_v61, %v7618_v12 }
0x35bc   :  { %v7624_v19 = vmul.f32 1.442695, %v7622_v13 }
0x35bd   :  { %v7639_v6 = vpop.permute.xlu0 %7638 }
0x35be   :  { %16092 = vpow2.f32 %v7624_v19  ;;  %15121 = vmatpush3.msra.mxu0 %v7639_v6  ;;  %v7271_v19 = vld [vmem:[%s19943_s28 + $0x8] sm:$0xff]  ;;  %v7270_v6 = vld [vmem:[%s19943_s28] sm:$0xff] }
0x35bf   :  { %15130 = vmatprep.subr.mxu0 %v17708_v48 }
0x35c1   :  { %v7791_v54 = vpop.permute.xlu0 %7790 }
0x35c8   :  { %v16093_v25 = vpop.eup %16092 }
0x35c9   :  { %v7628_v26 = vsel %vm1458_vm4, %v16093_v25, 0.0 }
0x35ca   :  { %7629 = vadd.xlane.f32.xlu1 %v7628_v26 }
0x35db   :  { %7792 = vrot.lane.b32.xlu1 %v19124_v30, %s17714_s6 }
0x3657   :  { %v7630_v14 = vpop.xlane.xlu1 %7629 }
0x3658   :  { %16094 = vrcp.f32 %v7630_v14 }
0x365b   :  { %v7793_v2 = vpop.permute.xlu1 %7792 }
0x3662   :  { %v16095_v44 = vpop.eup %16094 }
0x3663   :  { %v7636_v20 = vmul.f32 %v16095_v44, %v16093_v25 }
0x3665   :  { %15123 = vmatmul.mubr.msk.f32.vlgmr.msra.gmra.mrb[52].mxu0 %vm1458_vm4, %v7636_v20  ;;  %v19175_v21 = vpop.f32.mrb[76].mxu1 }
0x3666   :  { %15131 = vmatpush3.xpose.msk.msra.mxu0 %vm1458_vm4, %v7793_v2  ;;  %v15129_v58 = vpop.f32.mrb[77].mxu1  ;;  %15132 = vmatprep.mubr.msk.f32.mxu0 %vm17709_vm3, %v17708_v48 }
0x3667   :  { %15140 = vmatprep.subr.mxu0 %v17708_v48 }
0x3669   :  { %15133 = vmatmul.mubr.msk.f32.vlgmr.msra.gmra.mrb[54].mxu0 %vm1458_vm4, %v7791_v54  ;;  %v7942_v28 = vpop.f32.mrb[78].mxu1 }
0x366a   :  { %v7943_v23 = vadd.f32 %v7942_v28, %v18470_v10  ;;  %v15139_v27 = vpop.f32.mrb[79].mxu1  ;;  %15142 = vmatprep.mubr.msk.f32.mxu0 %vm17709_vm3, %v17708_v48 }
0x366c   :  { %v7949_v29 = vsel %vm1458_vm4, %v7943_v23, -inf }
0x366d   :  { %7950 = vmax.xlane.f32.xlu1 %v7949_v29 }
0x367e   :  { %8284 = vrot.lane.b32.xlu1 %v19124_v30, %s17718_s11 }
0x3682   :  { %8282 = vrot.lane.b32.xlu1 %v19129_v5, %s17718_s11 }
0x3686   :  { %8360 = vrot.lane.b32.xlu1 %v19139_v41, %s17718_s11 }
0x36fa   :  { %v7951_v31 = vpop.xlane.xlu1 %7950 }
0x36fb   :  { %v7953_v32 = vsub.f32 %v7943_v23, %v7951_v31  ;;  %v7272_v31 = vld [vmem:[%s19943_s28 + $0x10] sm:$0xff] }
0x36fd   :  { %v7956_v17 = vmul.f32 1.442695, %v7953_v32 }
0x36fe   :  { %v8285_v0 = vpop.permute.xlu1 %8284 }
0x36ff   :  { %16096 = vpow2.f32 %v7956_v17 }
0x3702   :  { %v8283_v51 = vpop.permute.xlu1 %8282 }
0x3709   :  { %v16097_v33 = vpop.eup %16096 }
0x370a   :  { %v7961_v57 = vsel %vm1458_vm4, %v16097_v33, 0.0 }
0x370b   :  { %7962 = vadd.xlane.f32.xlu0 %v7961_v57 }
0x3721   :  { %8044 = vrot.lane.b32.xlu0 %v19131_v42, %s17713_s2 }
0x3725   :  { %8362 = vrot.lane.b32.xlu0 %v19131_v42, %s17718_s11 }
0x3738   :  { %v19197_v9 = vpop.f32.mrb[52].mxu0 }
0x3739   :  { %v15124_v35 = vpop.f32.mrb[53].mxu0 }
0x373c   :  { %v7864_v4 = vpop.f32.mrb[54].mxu0 }
0x373d   :  { %v15134_v37 = vpop.f32.mrb[55].mxu0  ;;  %v7865_v38 = vadd.f32 %v7864_v4, %v18486_v18 }
0x373f   :  { %v7946_v39 = vsel %vm1458_vm4, %v7865_v38, -inf }
0x3744   :  { %7947 = vmax.xlane.f32.xlu0 %v7946_v39 }
0x375a   :  { %7968 = vrot.lane.b32.xlu0 %v19124_v30, %s17713_s2 }
0x375e   :  { %8460 = vrot.lane.b32.xlu0 %v19124_v30, %s17715_s7 }
0x3762   :  { %8697 = vrot.lane.b32.xlu0 %v19124_v30, %s17721_s16 }
0x3766   :  { %8775 = vrot.lane.b32.xlu0 %v19131_v42, %s17721_s16 }
0x376a   :  { %8695 = vrot.lane.b32.xlu0 %v19129_v5, %s17721_s16 }
0x376e   :  { %8773 = vrot.lane.b32.xlu0 %v19139_v41, %s17721_s16  ;;  %v8361_v41 = vpop.permute.xlu1 %8360 }
0x3798   :  { %v7963_v7 = vpop.xlane.xlu0 %7962 }
0x3799   :  { %16098 = vrcp.f32 %v7963_v7 }
0x379c   :  { %v8045_v11 = vpop.permute.xlu0 %8044 }
0x379d   :  { %15146 = vmatpush3.msra.mxu1 %v8045_v11 }
0x379e   :  { %15160 = vmatprep.subr.mxu1 %v17708_v48 }
0x37a0   :  { %v8363_v5 = vpop.permute.xlu0 %8362 }
0x37a3   :  { %v16099_v16 = vpop.eup %16098 }
0x37a4   :  { %v7967_v43 = vmul.f32 %v16099_v16, %v16097_v33 }
0x37a6   :  { %15148 = vmatmul.mubr.msk.f32.vlgmr.msra.gmra.mrb[80].mxu1 %vm1458_vm4, %v7967_v43 }
0x37a7   :  { %15161 = vmatpush3.xpose.msk.msra.mxu1 %vm1458_vm4, %v8285_v0  ;;  %15162 = vmatprep.mubr.msk.f32.mxu1 %vm17709_vm3, %v17708_v48 }
0x37a8   :  { %15165 = vmatprep.subr.mxu1 %v17708_v48 }
0x37aa   :  { %15163 = vmatmul.mubr.msk.f32.vlgmr.msra.gmra.mrb[82].mxu1 %vm1458_vm4, %v8283_v51 }
0x37ab   :  { %15166 = vmatpush3.xpose.msk.msra.mxu1 %vm1458_vm4, %v8363_v5  ;;  %15167 = vmatprep.mubr.msk.f32.mxu1 %vm17709_vm3, %v17708_v48 }
0x37ac   :  { %15175 = vmatprep.subr.mxu1 %v17708_v48 }
0x37ae   :  { %15168 = vmatmul.mubr.msk.f32.vlgmr.msra.gmra.mrb[84].mxu1 %vm1458_vm4, %v8361_v41 }
0x37af   :  { %15177 = vmatprep.mubr.msk.f32.mxu1 %vm17709_vm3, %v17708_v48 }
0x37d1   :  { %v7948_v46 = vpop.xlane.xlu0 %7947 }
0x37d2   :  { %v7952_v47 = vsub.f32 %v7865_v38, %v7948_v46 }
0x37d4   :  { %v7954_v49 = vmul.f32 1.442695, %v7952_v47 }
0x37d5   :  { %v7969_v50 = vpop.permute.xlu0 %7968 }
0x37d6   :  { %16100 = vpow2.f32 %v7954_v49  ;;  %15141 = vmatpush3.msra.mxu0 %v7969_v50 }
0x37d7   :  { %15150 = vmatprep.subr.mxu0 %v7271_v19 }
0x37d9   :  { %v8461_v32 = vpop.permute.xlu0 %8460 }
0x37dd   :  { %v8698_v35 = vpop.permute.xlu0 %8697 }
0x37e0   :  { %v16101_v52 = vpop.eup %16100 }
0x37e1   :  { %v7958_v22 = vsel %vm1458_vm4, %v16101_v52, 0.0 }
0x37e2   :  { %7959 = vadd.xlane.f32.xlu1 %v7958_v22 }
0x386f   :  { %v7960_v45 = vpop.xlane.xlu1 %7959 }
0x3870   :  { %16102 = vrcp.f32 %v7960_v45 }
0x3879   :  { %v8116_v53 = vpop.f32.mrb[80].mxu1 }
0x387a   :  { %v16103_v60 = vpop.eup %16102  ;;  %v15149_v61 = vpop.f32.mrb[81].mxu1 }
0x387b   :  { %v7966_v63 = vmul.f32 %v16103_v60, %v16101_v52 }
0x387d   :  { %15143 = vmatmul.mubr.msk.f32.vlgmr.msra.gmra.mrb[56].mxu0 %vm1458_vm4, %v7966_v63  ;;  %v8356_v1 = vpop.f32.mrb[82].mxu1 }
0x387e   :  { %v8357_v15 = vadd.f32 %v8356_v1, %v18486_v18  ;;  %v15164_v24 = vpop.f32.mrb[83].mxu1  ;;  %15151 = vmatpush3.msra.mxu0 %v7271_v19  ;;  %v7273_v19 = vld [vmem:[%s19943_s28 + $0x18] sm:$0xff] }
0x387f   :  { %15155 = vmatprep.subr.mxu0 %v7270_v6 }
0x3880   :  { %v8438_v55 = vsel %vm1458_vm4, %v8357_v15, -inf }
0x3881   :  { %8439 = vmax.xlane.f32.xlu1 %v8438_v55  ;;  %v8434_v56 = vpop.f32.mrb[84].mxu1 }
0x3882   :  { %v8435_v8 = vadd.f32 %v8434_v56, %v18470_v10  ;;  %v15169_v12 = vpop.f32.mrb[85].mxu1 }
0x3884   :  { %v8441_v13 = vsel %vm1458_vm4, %v8435_v8, -inf }
0x3885   :  { %8442 = vmax.xlane.f32.xlu1 %v8441_v13 }
0x390e   :  { %v8440_v25 = vpop.xlane.xlu1 %8439 }
0x390f   :  { %v8444_v26 = vsub.f32 %v8357_v15, %v8440_v25 }
0x3911   :  { %v8446_v14 = vmul.f32 1.442695, %v8444_v26 }
0x3912   :  { %v8443_v44 = vpop.xlane.xlu1 %8442 }
0x3913   :  { %16104 = vpow2.f32 %v8446_v14  ;;  %v8445_v20 = vsub.f32 %v8435_v8, %v8443_v44 }
0x3915   :  { %v8448_v2 = vmul.f32 1.442695, %v8445_v20 }
0x3917   :  { %16106 = vpow2.f32 %v8448_v2 }
0x391d   :  { %v16105_v58 = vpop.eup %16104 }
0x391e   :  { %v8450_v54 = vsel %vm1458_vm4, %v16105_v58, 0.0 }
0x391f   :  { %8451 = vadd.xlane.f32.xlu1 %v8450_v54 }
0x3921   :  { %v16107_v28 = vpop.eup %16106 }
0x3922   :  { %v8453_v23 = vsel %vm1458_vm4, %v16107_v28, 0.0 }
0x3923   :  { %8454 = vadd.xlane.f32.xlu1 %v8453_v23 }
0x3934   :  { %8536 = vrot.lane.b32.xlu1 %v19131_v42, %s17715_s7 }
0x3950   :  { %v8040_v27 = vpop.f32.mrb[56].mxu0 }
0x3951   :  { %v15144_v29 = vpop.f32.mrb[57].mxu0  ;;  %15152 = vmatprep.mubr.msk.f32.mxu0 %vm1458_vm4, %v8040_v27 }
0x3952   :  { %15153 = vmatmul.mubr.msk.f32.vlgmr.msra.gmra.mrb[58].mxu0 %vm1458_vm4, %v8116_v53 }
0x3953   :  { %15157 = vmatprep.mubr.msk.f32.mxu0 %vm1458_vm4, %v19197_v9  ;;  %15156 = vmatpush3.msra.mxu0 %v7270_v6 }
0x3954   :  { %15170 = vmatprep.subr.mxu0 %v17708_v48 }
0x395a   :  { %15158 = vmatmul.mubr.msk.f32.vlgmr.msra.gmra.mrb[58].mxu0 %vm1458_vm4, %v19175_v21  ;;  %v8776_v21 = vpop.permute.xlu0 %8775 }
0x395b   :  { %15171 = vmatpush3.msra.mxu0 %v8461_v32  ;;  %15172 = vmatprep.mubr.msk.f32.mxu0 %vm17709_vm3, %v17708_v48 }
0x395c   :  { %15180 = vmatprep.subr.mxu0 %v7272_v31 }
0x395e   :  { %v8696_v39 = vpop.permute.xlu0 %8695 }
0x3962   :  { %v8774_v43 = vpop.permute.xlu0 %8773 }
0x39ac   :  { %v8452_v17 = vpop.xlane.xlu1 %8451 }
0x39ad   :  { %16108 = vrcp.f32 %v8452_v17 }
0x39b0   :  { %v8455_v33 = vpop.xlane.xlu1 %8454 }
0x39b1   :  { %16110 = vrcp.f32 %v8455_v33 }
0x39b4   :  { %v8537_v57 = vpop.permute.xlu1 %8536 }
0x39b5   :  { %15176 = vmatpush3.msra.mxu1 %v8537_v57 }
0x39b6   :  { %15185 = vmatprep.subr.mxu1 %v17708_v48 }
0x39b7   :  { %v16109_v9 = vpop.eup %16108 }
0x39b8   :  { %v8458_v4 = vmul.f32 %v16109_v9, %v16105_v58 }
0x39ba   :  { %15173 = vmatmul.mubr.msk.f32.vlgmr.msra.gmra.mrb[60].mxu0 %vm1458_vm4, %v8458_v4 }
0x39bb   :  { %v16111_v37 = vpop.eup %16110  ;;  %15181 = vmatpush3.msra.mxu0 %v7272_v31 }
0x39bc   :  { %v8459_v38 = vmul.f32 %v16111_v37, %v16107_v28  ;;  %15190 = vmatprep.subr.mxu0 %v17708_v48 }
0x39be   :  { %15178 = vmatmul.mubr.msk.f32.vlgmr.msra.gmra.mrb[86].mxu1 %vm1458_vm4, %v8459_v38  ;;  %v9162_v38 = vld [vmem:[%s19944_s5] sm:$0xff] }
0x39bf   :  { %15186 = vmatpush3.xpose.msk.msra.mxu1 %vm1458_vm4, %v8698_v35  ;;  %15187 = vmatprep.mubr.msk.f32.mxu1 %vm17709_vm3, %v17708_v48 }
0x39c0   :  { %15195 = vmatprep.subr.mxu1 %v17708_v48 }
0x39c2   :  { %15188 = vmatmul.mubr.msk.f32.vlgmr.msra.gmra.mrb[88].mxu1 %vm1458_vm4, %v8696_v39  ;;  %v9163_v39 = vld [vmem:[%s19944_s5 + $0x8] sm:$0xff] }
0x39c3   :  { %15197 = vmatprep.mubr.msk.f32.mxu1 %vm17709_vm3, %v17708_v48 }
0x3a8d   :  { %v8532_v7 = vpop.f32.mrb[60].mxu0 }
0x3a8e   :  { %v15174_v11 = vpop.f32.mrb[61].mxu0  ;;  %15182 = vmatprep.mubr.msk.f32.mxu0 %vm1458_vm4, %v8532_v7  ;;  %v9164_v7 = vld [vmem:[%s19944_s5 + $0x10] sm:$0xff] }
0x3a8f   :  { %v15635_v11 = vpack.c.bf16 %v9163_v39, %v9162_v38  ;;  %v14172_v38 = vld [vmem:[#allocation53] ss:$0 sm:$0xff] }
0x3a91   :  { %v8608_v0 = vpop.f32.mrb[86].mxu1 }
0x3a92   :  { %v15179_v16 = vpop.f32.mrb[87].mxu1  ;;  %15183 = vmatmul.mubr.msk.f32.vlgmr.msra.gmra.mrb[58].mxu0 %vm1458_vm4, %v8608_v0  ;;  %v9165_v0 = vld [vmem:[%s19944_s5 + $0x18] sm:$0xff] }
0x3a93   :  { %15191 = vmatpush3.xpose.msk.msra.mxu0 %vm1458_vm4, %v8776_v21  ;;  %15192 = vmatprep.mubr.msk.f32.mxu0 %vm17709_vm3, %v17708_v48  ;;  %v15639_v16 = vpack.c.bf16 %v9165_v0, %v9164_v7 }
0x3a94   :  { %15200 = vmatprep.subr.mxu0 %v17708_v48 }
0x3a95   :  { %v8769_v51 = vpop.f32.mrb[88].mxu1 }
0x3a96   :  { %v8770_v5 = vadd.f32 %v8769_v51, %v18486_v18  ;;  %v15189_v41 = vpop.f32.mrb[89].mxu1  ;;  %15193 = vmatmul.mubr.msk.f32.vlgmr.msra.gmra.mrb[62].mxu0 %vm1458_vm4, %v8774_v43 }
0x3a97   :  { %15202 = vmatprep.mubr.msk.f32.mxu0 %vm17709_vm3, %v17708_v48 }
0x3a98   :  { %v8851_v46 = vsel %vm1458_vm4, %v8770_v5, -inf }
0x3a99   :  { %8852 = vmax.xlane.f32.xlu1 %v8851_v46 }
0x3aaa   :  { %8873 = vrot.lane.b32.xlu1 %v19124_v30, %s17720_s15 }
0x3b26   :  { %v8853_v47 = vpop.xlane.xlu1 %8852 }
0x3b27   :  { %v8857_v50 = vsub.f32 %v8770_v5, %v8853_v47 }
0x3b29   :  { %v8859_v52 = vmul.f32 1.442695, %v8857_v50  ;;  %v14167_v50 = vld [vmem:[#allocation47] ss:$0 sm:$0xff] }
0x3b2a   :  { %v8874_v49 = vpop.permute.xlu1 %8873 }
0x3b2b   :  { %15196 = vmatpush3.msra.mxu1 %v8874_v49  ;;  %16112 = vpow2.f32 %v8859_v52 }
0x3b2c   :  { %15636 = vmatprep.subr.bf16.mxu1 %v15635_v11 }
0x3b35   :  { %v16113_v61 = vpop.eup %16112 }
0x3b36   :  { %v8863_v63 = vsel %vm1458_vm4, %v16113_v61, 0.0 }
0x3b69   :  { %v8847_v22 = vpop.f32.mrb[62].mxu0 }
0x3b6a   :  { %v8848_v45 = vadd.f32 %v8847_v22, %v18470_v10  ;;  %v15194_v53 = vpop.f32.mrb[63].mxu0 }
0x3b6b   :  { %v14168_v53 = vld [vmem:[#allocation46] ss:$0 sm:$0xff] }
0x3b6c   :  { %v8854_v60 = vsel %vm1458_vm4, %v8848_v45, -inf }
0x3b6d   :  { %8855 = vmax.xlane.f32.xlu0 %v8854_v60 }
0x3b71   :  { %8864 = vadd.xlane.f32.xlu0 %v8863_v63 }
0x3bfa   :  { %v8856_v1 = vpop.xlane.xlu0 %8855 }
0x3bfb   :  { %v8858_v30 = vsub.f32 %v8848_v45, %v8856_v1 }
0x3bfd   :  { %v8861_v15 = vmul.f32 1.442695, %v8858_v30  ;;  %v9272_v30 = vld [vmem:[%s19945_s8] sm:$0xff] }
0x3bfe   :  { %v8865_v24 = vpop.xlane.xlu0 %8864 }
0x3bff   :  { %16114 = vpow2.f32 %v8861_v15  ;;  %v9273_v15 = vld [vmem:[%s19945_s8 + $0x8] sm:$0xff] }
0x3c00   :  { %16116 = vrcp.f32 %v8865_v24  ;;  %v15643_v24 = vpack.c.bf16 %v9273_v15, %v9272_v30  ;;  %v9416_v30 = vld [vmem:[%s19946_s14 + $0x10] sm:$0xff]  ;;  %v9417_v15 = vld [vmem:[%s19946_s14 + $0x18] sm:$0xff] }
0x3c09   :  { %v16115_v55 = vpop.eup %16114 }
0x3c0a   :  { %v16117_v56 = vpop.eup %16116  ;;  %v8866_v8 = vsel %vm1458_vm4, %v16115_v55, 0.0 }
0x3c0b   :  { %8867 = vadd.xlane.f32.xlu0 %v8866_v8  ;;  %v8871_v12 = vmul.f32 %v16117_v56, %v16113_v61  ;;  %v9275_v56 = vld [vmem:[%s19945_s8 + $0x18] sm:$0xff] }
0x3c0d   :  { %15198 = vmatmul.mubr.msk.f32.vlgmr.msra.gmra.mrb[90].mxu1 %vm1458_vm4, %v8871_v12  ;;  %v9276_v12 = vld [vmem:[%s19945_s8 + $0x20] sm:$0xff] }
0x3c0e   :  { %15638 = vmatpush3.bf16.msra.mxu1 %v15635_v11 }
0x3c0f   :  { %15640 = vmatprep.subr.bf16.mxu1 %v15639_v16 }
0x3c12   :  { %15642 = vmatpush3.bf16.msra.mxu1 %v15639_v16 }
0x3c21   :  { %8949 = vrot.lane.b32.xlu0 %v19131_v42, %s17720_s15  ;;  %v14166_v42 = vld [vmem:[#allocation43] ss:$0 sm:$0xff] }
0x3c98   :  { %v8868_v13 = vpop.xlane.xlu0 %8867 }
0x3c99   :  { %16118 = vrcp.f32 %v8868_v13  ;;  %v9277_v13 = vld [vmem:[%s19945_s8 + $0x28] sm:$0xff] }
0x3c9c   :  { %v8950_v6 = vpop.permute.xlu0 %8949 }
0x3c9d   :  { %15201 = vmatpush3.msra.mxu0 %v8950_v6  ;;  %v9278_v6 = vld [vmem:[%s19945_s8 + $0x30] sm:$0xff] }
0x3c9e   :  { %15205 = vmatprep.subr.mxu0 %v7273_v19 }
0x3ca3   :  { %v16119_v25 = vpop.eup %16118 }
0x3ca4   :  { %v8872_v26 = vmul.f32 %v16119_v25, %v16115_v55  ;;  %v9274_v55 = vld [vmem:[%s19945_s8 + $0x10] sm:$0xff]  ;;  %v9279_v25 = vld [vmem:[%s19945_s8 + $0x38] sm:$0xff] }
0x3ca5   :  { %v15647_v8 = vpack.c.bf16 %v9275_v56, %v9274_v55 }
0x3ca6   :  { %15203 = vmatmul.mubr.msk.f32.vlgmr.msra.gmra.mrb[64].mxu0 %vm1458_vm4, %v8872_v26  ;;  %v15655_v26 = vpack.c.bf16 %v9279_v25, %v9278_v6  ;;  %v14175_v25 = vld [vmem:[#allocation50] ss:$0 sm:$0xff] }
0x3ca7   :  { %15206 = vmatpush3.msra.mxu0 %v7273_v19  ;;  %v15651_v19 = vpack.c.bf16 %v9277_v13, %v9276_v12 }
0x3ca8   :  { %15644 = vmatprep.subr.bf16.mxu0 %v15643_v24 }
0x3ce0   :  { %v8945_v14 = vpop.f32.mrb[90].mxu1 }
0x3ce1   :  { %v15199_v44 = vpop.f32.mrb[91].mxu1  ;;  %15207 = vmatprep.mubr.msk.f32.mxu0 %vm1458_vm4, %v8945_v14  ;;  %v14169_v14 = vld [vmem:[#allocation52] ss:$0 sm:$0xff] }
0x3d79   :  { %v9021_v20 = vpop.f32.mrb[64].mxu0 }
0x3d7a   :  { %v15204_v2 = vpop.f32.mrb[65].mxu0  ;;  %15208 = vmatmul.mubr.msk.f32.vlgmr.msra.gmra.mrb[58].mxu0 %vm1458_vm4, %v9021_v20 }
0x3d7b   :  { %15646 = vmatpush3.bf16.msra.mxu0 %v15643_v24  ;;  %v15663_v24 = vpack.c.bf16 %v9417_v15, %v9416_v30 }
0x3d7c   :  { %15648 = vmatprep.subr.bf16.mxu0 %v15647_v8 }
0x3d7f   :  { %15650 = vmatpush3.bf16.msra.mxu0 %v15647_v8 }
0x3d80   :  { %15652 = vmatprep.subr.bf16.mxu0 %v15651_v19 }
0x3d83   :  { %15654 = vmatpush3.bf16.msra.mxu0 %v15651_v19 }
0x3d84   :  { %15656 = vmatprep.subr.bf16.mxu0 %v15655_v26 }
0x3d87   :  { %15658 = vmatpush3.bf16.msra.mxu0 %v15655_v26 }
0x3d88   :  { %15261 = vmatprep.subr.mxu0 %v17708_v48 }
0x3e4d   :  { %v15209_v58 = vpop.f32.mrb[58].mxu0 }
0x3e4e   :  { %v9115_v54 = vadd.f32 %v15209_v58, %v14166_v42  ;;  %v9097_v28 = vpop.f32.mrb[59].mxu0 }
0x3e4f   :  { %v9114_v23 = vadd.f32 %v14166_v42, %v9097_v28 }
0x3e50   :  { %v9117_v27 = vadd.f32 %v9115_v54, %v19116_v62 }
0x3e51   :  { %v9116_v29 = vadd.f32 %v9114_v23, %v19114_v36 }
0x3e52   :  { %v9123_v31 = vsel %vm1204_vm2, %v9117_v27, 0.0 }
0x3e53   :  { %9124 = vadd.xlane.f32.xlu0 %v9123_v31  ;;  %v9120_v32 = vsel %vm1204_vm2, %v9116_v29, 0.0 }
0x3e54   :  { %9121 = vadd.xlane.f32.xlu1 %v9120_v32 }
0x3ee0   :  { %v9125_v17 = vpop.xlane.xlu0 %9124 }
0x3ee1   :  { %v9127_v33 = vmul.f32 0.03125, %v9125_v17  ;;  %v9122_v57 = vpop.xlane.xlu1 %9121 }
0x3ee2   :  { %v9126_v35 = vmul.f32 0.03125, %v9122_v57 }
0x3ee3   :  { %v9129_v9 = vsub.f32 %v9117_v27, %v9127_v33 }
0x3ee4   :  { %v9128_v4 = vsub.f32 %v9116_v29, %v9126_v35 }
0x3ee5   :  { %v9131_v37 = vmul.f32 %v9129_v9, %v9129_v9 }
0x3ee6   :  { %v9130_v62 = vmul.f32 %v9128_v4, %v9128_v4 }
0x3ee7   :  { %v9135_v36 = vsel %vm1204_vm2, %v9131_v37, 0.0 }
0x3ee8   :  { %9136 = vadd.xlane.f32.xlu0 %v9135_v36  ;;  %v9132_v21 = vsel %vm1204_vm2, %v9130_v62, 0.0 }
0x3ee9   :  { %9133 = vadd.xlane.f32.xlu1 %v9132_v21 }
0x3f75   :  { %v9137_v43 = vpop.xlane.xlu0 %9136 }
0x3f76   :  { %v9139_v51 = vmul.f32 0.03125, %v9137_v43  ;;  %v9134_v5 = vpop.xlane.xlu1 %9133 }
0x3f77   :  { %v9138_v41 = vmul.f32 0.03125, %v9134_v5 }
0x3f78   :  { %v9141_v46 = vadd.f32 1e-05, %v9139_v51 }
0x3f79   :  { %v9140_v47 = vadd.f32 1e-05, %v9138_v41 }
0x3f7a   :  { %16120 = vrsqrt.f32 %v9141_v46 }
0x3f7b   :  { %16122 = vrsqrt.f32 %v9140_v47 }
0x3f84   :  { %v16121_v49 = vpop.eup %16120 }
0x3f85   :  { %v16123_v52 = vpop.eup %16122  ;;  %v9145_v22 = vmul.f32 %v16121_v49, %v9129_v9 }
0x3f86   :  { %v9144_v45 = vmul.f32 %v16123_v52, %v9128_v4 }
0x3f87   :  { %v9153_v60 = vmul.f32 %v14167_v50, %v9145_v22 }
0x3f88   :  { %v9152_v61 = vmul.f32 %v14167_v50, %v9144_v45 }
0x3f89   :  { %v9161_v1 = vadd.f32 %v14168_v53, %v9153_v60 }
0x3f8a   :  { %v9160_v63 = vadd.f32 %v14168_v53, %v9152_v61  ;;  %v9414_v61 = vld [vmem:[%s19946_s14] sm:$0xff] }
0x3f8c   :  { %15218 = vmatprep.mubr.msk.f32.mxu1 %vm1204_vm2, %v9160_v63 }
0x3f8d   :  { %15219 = vmatmul.mubr.msk.f32.vlgmr.msra.gmra.mrb[92].mxu1 %vm1204_vm2, %v9161_v1 }
0x4060   :  { %v15220_v44 = vpop.f32.mrb[92].mxu1 }
0x4061   :  { %v9251_v20 = vadd.f32 %v15220_v44, %v14169_v14  ;;  %v9245_v2 = vpop.f32.mrb[93].mxu1 }
0x4062   :  { %v9246_v42 = vadd.f32 %v14169_v14, %v9245_v2 }
0x4063   :  { %v9255_v58 = vmul.f32 %v9251_v20, %v9251_v20 }
0x4064   :  { %v9254_v54 = vmul.f32 %v9246_v42, %v9246_v42 }
0x4065   :  { %v9257_v28 = vmul.f32 %v9255_v58, %v9251_v20 }
0x4066   :  { %v9256_v23 = vmul.f32 %v9254_v54, %v9246_v42 }
0x4067   :  { %v9259_v27 = vmul.f32 0.044715, %v9257_v28  ;;  %v14177_v28 = vld [vmem:[#allocation31] ss:$0 sm:$0xff] }
0x4068   :  { %v9258_v29 = vmul.f32 0.044715, %v9256_v23 }
0x4069   :  { %v9261_v31 = vadd.f32 %v9259_v27, %v9251_v20 }
0x406a   :  { %v9260_v32 = vadd.f32 %v9258_v29, %v9246_v42 }
0x406b   :  { %v9263_v17 = vmul.f32 0.7978846, %v9261_v31 }
0x406c   :  { %v9262_v33 = vmul.f32 0.7978846, %v9260_v32 }
0x406d   :  { %16124 = vtanh.f32 %v9263_v17 }
0x406e   :  { %16126 = vtanh.f32 %v9262_v33 }
0x4077   :  { %v16125_v57 = vpop.eup %16124 }
0x4078   :  { %v16127_v35 = vpop.eup %16126  ;;  %v9267_v9 = vadd.f32 1.0, %v16125_v57 }
0x4079   :  { %v9266_v4 = vadd.f32 1.0, %v16127_v35 }
0x407a   :  { %v9269_v37 = vmul.f32 0.5, %v9267_v9 }
0x407b   :  { %v9268_v62 = vmul.f32 0.5, %v9266_v4 }
0x407c   :  { %v9271_v21 = vmul.f32 %v9269_v37, %v9251_v20  ;;  %v14176_v20 = vld [vmem:[#allocation49] ss:$0 sm:$0xff] }
0x407d   :  { %v9270_v36 = vmul.f32 %v9268_v62, %v9246_v42 }
0x407f   :  { %15237 = vmatprep.mubr.msk.f32.mxu0 %vm3283_vm7, %v9270_v36 }
0x4080   :  { %15238 = vmatmul.mubr.msk.f32.vlgmr.msra.gmra.mrb[66].mxu0 %vm3283_vm7, %v9271_v21 }
0x4081   :  { %15263 = vmatprep.mubr.msk.f32.mxu0 %vm17709_vm3, %v17708_v48 }
0x4153   :  { %v15239_v39 = vpop.f32.mrb[66].mxu0 }
0x4154   :  { %v9365_v7 = vadd.f32 %v15239_v39, %v14172_v38  ;;  %v9359_v11 = vpop.f32.mrb[67].mxu0 }
0x4155   :  { %v9360_v0 = vadd.f32 %v14172_v38, %v9359_v11 }
0x4156   :  { %v9369_v16 = vadd.f32 %v9365_v7, %v9161_v1 }
0x4157   :  { %v9368_v43 = vadd.f32 %v9360_v0, %v9160_v63  ;;  %v9415_v63 = vld [vmem:[%s19946_s14 + $0x8] sm:$0xff] }
0x4158   :  { %v9375_v51 = vsel %vm1204_vm2, %v9369_v16, 0.0  ;;  %v15659_v1 = vpack.c.bf16 %v9415_v63, %v9414_v61 }
0x4159   :  { %9376 = vadd.xlane.f32.xlu0 %v9375_v51  ;;  %v9372_v5 = vsel %vm1204_vm2, %v9368_v43, 0.0 }
0x415a   :  { %9373 = vadd.xlane.f32.xlu1 %v9372_v5  ;;  %15660 = vmatprep.subr.bf16.mxu1 %v15659_v1 }
0x415b   :  { %15662 = vmatpush3.bf16.msra.mxu1 %v15659_v1 }
0x415c   :  { %15664 = vmatprep.subr.bf16.mxu1 %v15663_v24 }
0x415f   :  { %15666 = vmatpush3.bf16.msra.mxu1 %v15663_v24 }
0x4160   :  { %15251 = vmatprep.subr.mxu1 %v17708_v48 }
0x41e6   :  { %v9377_v41 = vpop.xlane.xlu0 %9376 }
0x41e7   :  { %v9379_v46 = vmul.f32 0.03125, %v9377_v41  ;;  %v9374_v47 = vpop.xlane.xlu1 %9373 }
0x41e8   :  { %v9378_v49 = vmul.f32 0.03125, %v9374_v47 }
0x41e9   :  { %v9381_v50 = vsub.f32 %v9369_v16, %v9379_v46 }
0x41ea   :  { %v9380_v52 = vsub.f32 %v9368_v43, %v9378_v49 }
0x41eb   :  { %v9383_v22 = vmul.f32 %v9381_v50, %v9381_v50 }
0x41ec   :  { %v9382_v45 = vmul.f32 %v9380_v52, %v9380_v52 }
0x41ed   :  { %v9387_v53 = vsel %vm1204_vm2, %v9383_v22, 0.0 }
0x41ee   :  { %9388 = vadd.xlane.f32.xlu0 %v9387_v53  ;;  %v9384_v60 = vsel %vm1204_vm2, %v9382_v45, 0.0 }
0x41ef   :  { %9385 = vadd.xlane.f32.xlu1 %v9384_v60 }
0x427b   :  { %v9389_v55 = vpop.xlane.xlu0 %9388 }
0x427c   :  { %v9391_v56 = vmul.f32 0.03125, %v9389_v55  ;;  %v9386_v8 = vpop.xlane.xlu1 %9385 }
0x427d   :  { %v9390_v12 = vmul.f32 0.03125, %v9386_v8 }
0x427e   :  { %v9393_v13 = vadd.f32 1e-05, %v9391_v56 }
0x427f   :  { %v9392_v19 = vadd.f32 1e-05, %v9390_v12 }
0x4280   :  { %16128 = vrsqrt.f32 %v9393_v13 }
0x4281   :  { %16130 = vrsqrt.f32 %v9392_v19 }
0x428a   :  { %v16129_v6 = vpop.eup %16128 }
0x428b   :  { %v16131_v26 = vpop.eup %16130  ;;  %v9397_v14 = vmul.f32 %v16129_v6, %v9381_v50 }
0x428c   :  { %v9396_v44 = vmul.f32 %v16131_v26, %v9380_v52 }
0x428d   :  { %v9405_v2 = vmul.f32 %v14175_v25, %v9397_v14 }
0x428e   :  { %v9404_v42 = vmul.f32 %v14175_v25, %v9396_v44 }
0x428f   :  { %v19320_v54 = vadd.f32 %v14176_v20, %v9405_v2 }
0x4290   :  { %v19318_v58 = vadd.f32 %v14176_v20, %v9404_v42 }
0x4292   :  { %15248 = vmatprep.mubr.msk.f32.mxu1 %vm1204_vm2, %v19318_v58 }
0x4293   :  { %15249 = vmatmul.mubr.msk.f32.vlgmr.msra.gmra.mrb[94].mxu1 %vm1204_vm2, %v19320_v54 }
0x4294   :  { %15253 = vmatprep.mubr.msk.f32.mxu1 %vm17709_vm3, %v17708_v48 }
0x4366   :  { %v15250_v23 = vpop.f32.mrb[94].mxu1 }
0x4367   :  { %v19328_v27 = vadd.f32 %v15250_v23, %v14177_v28  ;;  %v9502_v29 = vpop.f32.mrb[95].mxu1 }
0x4368   :  { %v19330_v31 = vadd.f32 %v14177_v28, %v9502_v29 }
0x4369   :  { %9592 = vrot.lane.b32.xlu0 %v19328_v27, %s17710_s29  ;;  %v19347_v57 = vmul.f32 0.35355338, %v19328_v27 }
0x436a   :  { %9514 = vrot.lane.b32.xlu1 %v19330_v31, %s17710_s29  ;;  %v19338_v17 = vmul.f32 0.35355338, %v19330_v31 }
0x43db   :  { %v9593_v33 = vpop.permute.xlu0 %9592 }
0x43dc   :  { %v9515_v32 = vpop.permute.xlu1 %9514 }
0x43dd   :  { %15252 = vmatpush3.xpose.msk.msra.mxu1 %vm1458_vm4, %v9515_v32 }
0x43de   :  { %15256 = vmatprep.subr.mxu1 %v17708_v48 }
0x43e0   :  { %15254 = vmatmul.mubr.msk.f32.vlgmr.msra.gmra.mrb[96].mxu1 %vm1458_vm4, %v19338_v17 }
0x43e1   :  { %15257 = vmatpush3.xpose.msk.msra.mxu1 %vm1458_vm4, %v9593_v33  ;;  %15258 = vmatprep.mubr.msk.f32.mxu1 %vm17709_vm3, %v17708_v48 }
0x43e2   :  { %15266 = vmatprep.subr.mxu1 %v17708_v48 }
0x43e4   :  { %15259 = vmatmul.mubr.msk.f32.vlgmr.msra.gmra.mrb[98].mxu1 %vm1458_vm4, %v19347_v57 }
0x43e5   :  { %15268 = vmatprep.mubr.msk.f32.mxu1 %vm17709_vm3, %v17708_v48 }
0x44b3   :  { %v9587_v35 = vpop.f32.mrb[96].mxu1 }
0x44b4   :  { %v15255_v9 = vpop.f32.mrb[97].mxu1  ;;  %v9588_v21 = vadd.f32 %v9587_v35, %v18936_v40 }
0x44b6   :  { %v9669_v38 = vsel %vm1458_vm4, %v9588_v21, -inf }
0x44b7   :  { %v9665_v4 = vpop.f32.mrb[98].mxu1 }
0x44b8   :  { %v9666_v37 = vadd.f32 %v9665_v4, %v18922_v34  ;;  %v15260_v62 = vpop.f32.mrb[99].mxu1 }
0x44ba   :  { %v9672_v36 = vsel %vm1458_vm4, %v9666_v37, -inf }
0x44bb   :  { %9673 = vmax.xlane.f32.xlu1 %v9672_v36 }
0x44cc   :  { %9767 = vrot.lane.b32.xlu1 %v19328_v27, %s17716_s10 }
0x44d0   :  { %9921 = vrot.lane.b32.xlu1 %v19347_v57, %s17714_s6 }
0x44f4   :  { %9670 = vmax.xlane.f32.xlu1 %v9669_v38 }
0x4505   :  { %9845 = vrot.lane.b32.xlu1 %v19330_v31, %s17713_s2 }
0x4509   :  { %9843 = vrot.lane.b32.xlu1 %v19338_v17, %s17714_s6 }
0x4548   :  { %v9674_v39 = vpop.xlane.xlu1 %9673 }
0x4549   :  { %v9676_v7 = vsub.f32 %v9666_v37, %v9674_v39 }
0x454b   :  { %v9679_v11 = vmul.f32 1.442695, %v9676_v7 }
0x454c   :  { %v9768_v0 = vpop.permute.xlu1 %9767 }
0x454d   :  { %16132 = vpow2.f32 %v9679_v11  ;;  %15267 = vmatpush3.msra.mxu1 %v9768_v0 }
0x454e   :  { %15276 = vmatprep.subr.mxu1 %v17708_v48 }
0x4550   :  { %v9922_v51 = vpop.permute.xlu1 %9921 }
0x4557   :  { %v16133_v16 = vpop.eup %16132 }
0x4558   :  { %v9684_v43 = vsel %vm1458_vm4, %v16133_v16, 0.0 }
0x4559   :  { %9685 = vadd.xlane.f32.xlu0 %v9684_v43 }
0x456f   :  { %9923 = vrot.lane.b32.xlu0 %v19328_v27, %s17713_s2 }
0x4581   :  { %v9671_v5 = vpop.xlane.xlu1 %9670 }
0x4582   :  { %v9675_v41 = vsub.f32 %v9588_v21, %v9671_v5 }
0x4584   :  { %v9677_v46 = vmul.f32 1.442695, %v9675_v41 }
0x4585   :  { %v9846_v63 = vpop.permute.xlu1 %9845 }
0x4586   :  { %16134 = vpow2.f32 %v9677_v46 }
0x4589   :  { %v9844_v30 = vpop.permute.xlu1 %9843 }
0x4590   :  { %v16135_v47 = vpop.eup %16134 }
0x4591   :  { %v9681_v49 = vsel %vm1458_vm4, %v16135_v47, 0.0 }
0x4592   :  { %9682 = vadd.xlane.f32.xlu0 %v9681_v49 }
0x45a8   :  { %9691 = vrot.lane.b32.xlu0 %v19330_v31, %s17716_s10  ;;  %s19955_s10 = sld [smem:[#allocation132_spill]] }
0x45e6   :  { %v9686_v50 = vpop.xlane.xlu0 %9685 }
0x45e7   :  { %16136 = vrcp.f32 %v9686_v50 }
0x45ea   :  { %v9924_v45 = vpop.permute.xlu0 %9923 }
0x45f1   :  { %v16137_v52 = vpop.eup %16136 }
0x45f2   :  { %v9690_v22 = vmul.f32 %v16137_v52, %v16133_v16  ;;  %v9420_v52 = vld [vmem:[%s19947_s17 + $0x8] sm:$0xff] }
0x45f4   :  { %15269 = vmatmul.mubr.msk.f32.vlgmr.msra.gmra.mrb[100].mxu1 %vm1458_vm4, %v9690_v22  ;;  %v9419_v22 = vld [vmem:[%s19947_s17] sm:$0xff] }
0x45f5   :  { %15277 = vmatpush3.xpose.msk.msra.mxu1 %vm1458_vm4, %v9924_v45  ;;  %15278 = vmatprep.mubr.msk.f32.mxu1 %vm17709_vm3, %v17708_v48 }
0x45f6   :  { %15286 = vmatprep.subr.mxu1 %v17708_v48 }
0x45f8   :  { %15279 = vmatmul.mubr.msk.f32.vlgmr.msra.gmra.mrb[102].mxu1 %vm1458_vm4, %v9922_v51 }
0x45f9   :  { %15288 = vmatprep.mubr.msk.f32.mxu1 %vm17709_vm3, %v17708_v48 }
0x461f   :  { %v9683_v53 = vpop.xlane.xlu0 %9682 }
0x4620   :  { %16138 = vrcp.f32 %v9683_v53 }
0x4623   :  { %v9692_v60 = vpop.permute.xlu0 %9691 }
0x4624   :  { %15262 = vmatpush3.msra.mxu0 %v9692_v60 }
0x4625   :  { %15271 = vmatprep.subr.mxu0 %v17708_v48 }
0x462a   :  { %v16139_v61 = vpop.eup %16138 }
0x462b   :  { %v9689_v1 = vmul.f32 %v16139_v61, %v16135_v47 }
0x462d   :  { %15264 = vmatmul.mubr.msk.f32.vlgmr.msra.gmra.mrb[68].mxu0 %vm1458_vm4, %v9689_v1 }
0x462e   :  { %15272 = vmatpush3.xpose.msk.msra.mxu0 %vm1458_vm4, %v9846_v63  ;;  %15273 = vmatprep.mubr.msk.f32.mxu0 %vm17709_vm3, %v17708_v48 }
0x462f   :  { %15281 = vmatprep.subr.mxu0 %v17708_v48 }
0x4631   :  { %15274 = vmatmul.mubr.msk.f32.vlgmr.msra.gmra.mrb[70].mxu0 %vm1458_vm4, %v9844_v30 }
0x4632   :  { %15283 = vmatprep.mubr.msk.f32.mxu0 %vm17709_vm3, %v17708_v48 }
0x46c7   :  { %v19390_v15 = vpop.f32.mrb[100].mxu1 }
0x46c8   :  { %v15270_v24 = vpop.f32.mrb[101].mxu1 }
0x46cb   :  { %v9995_v55 = vpop.f32.mrb[102].mxu1 }
0x46cc   :  { %v9996_v56 = vadd.f32 %v9995_v55, %v18922_v34  ;;  %v15280_v8 = vpop.f32.mrb[103].mxu1 }
0x46ce   :  { %v10002_v12 = vsel %vm1458_vm4, %v9996_v56, -inf }
0x46cf   :  { %10003 = vmax.xlane.f32.xlu1 %v10002_v12 }
0x46e0   :  { %10337 = vrot.lane.b32.xlu1 %v19330_v31, %s17715_s7 }
0x46e4   :  { %10335 = vrot.lane.b32.xlu1 %v19338_v17, %s17718_s11 }
0x46e8   :  { %10413 = vrot.lane.b32.xlu1 %v19347_v57, %s17718_s11 }
0x4700   :  { %v19400_v13 = vpop.f32.mrb[68].mxu0 }
0x4701   :  { %v15265_v19 = vpop.f32.mrb[69].mxu0 }
0x4702   :  { %v9421_v19 = vld [vmem:[%s19947_s17 + $0x10] sm:$0xff] }
0x4704   :  { %v9917_v6 = vpop.f32.mrb[70].mxu0 }
0x4705   :  { %v15275_v25 = vpop.f32.mrb[71].mxu0  ;;  %v9918_v42 = vadd.f32 %v9917_v6, %v18936_v40 }
0x4707   :  { %v9999_v28 = vsel %vm1458_vm4, %v9918_v42, -inf }
0x475c   :  { %v10004_v26 = vpop.xlane.xlu1 %10003 }
0x475d   :  { %v10006_v14 = vsub.f32 %v9996_v56, %v10004_v26 }
0x475f   :  { %v10009_v44 = vmul.f32 1.442695, %v10006_v14 }
0x4760   :  { %v10338_v32 = vpop.permute.xlu1 %10337 }
0x4761   :  { %16140 = vpow2.f32 %v10009_v44 }
0x4764   :  { %v10336_v9 = vpop.permute.xlu1 %10335 }
0x476b   :  { %v16141_v20 = vpop.eup %16140 }
0x476c   :  { %v10014_v2 = vsel %vm1458_vm4, %v16141_v20, 0.0 }
0x476d   :  { %10015 = vadd.xlane.f32.xlu0 %v10014_v2 }
0x4783   :  { %10097 = vrot.lane.b32.xlu0 %v19328_v27, %s17717_s25 }
0x4787   :  { %10415 = vrot.lane.b32.xlu0 %v19328_v27, %s17715_s7 }
0x47a6   :  { %10000 = vmax.xlane.f32.xlu0 %v9999_v28 }
0x47bc   :  { %10021 = vrot.lane.b32.xlu0 %v19330_v31, %s17717_s25  ;;  %s17724_s25 = smov [#allocation89]  }
0x47c0   :  { %10513 = vrot.lane.b32.xlu0 %v19330_v31, %s17719_s20 }
0x47c4   :  { %10750 = vrot.lane.b32.xlu0 %v19330_v31, %s17720_s15 }
0x47c8   :  { %10828 = vrot.lane.b32.xlu0 %v19328_v27, %s17720_s15 }
0x47cc   :  { %10748 = vrot.lane.b32.xlu0 %v19338_v17, %s17721_s16 }
0x47d0   :  { %10826 = vrot.lane.b32.xlu0 %v19347_v57, %s17721_s16  ;;  %v10414_v57 = vpop.permute.xlu1 %10413 }
0x47fa   :  { %v10016_v23 = vpop.xlane.xlu0 %10015 }
0x47fb   :  { %16142 = vrcp.f32 %v10016_v23 }
0x47fe   :  { %v10098_v29 = vpop.permute.xlu0 %10097 }
0x47ff   :  { %15287 = vmatpush3.msra.mxu1 %v10098_v29 }
0x4800   :  { %15301 = vmatprep.subr.mxu1 %v17708_v48 }
0x4802   :  { %v10416_v17 = vpop.permute.xlu0 %10415 }
0x4805   :  { %v16143_v33 = vpop.eup %16142 }
0x4806   :  { %v10020_v35 = vmul.f32 %v16143_v33, %v16141_v20 }
0x4808   :  { %15289 = vmatmul.mubr.msk.f32.vlgmr.msra.gmra.mrb[104].mxu1 %vm1458_vm4, %v10020_v35 }
0x4809   :  { %15302 = vmatpush3.xpose.msk.msra.mxu1 %vm1458_vm4, %v10338_v32  ;;  %15303 = vmatprep.mubr.msk.f32.mxu1 %vm17709_vm3, %v17708_v48 }
0x480a   :  { %15306 = vmatprep.subr.mxu1 %v17708_v48 }
0x480c   :  { %15304 = vmatmul.mubr.msk.f32.vlgmr.msra.gmra.mrb[106].mxu1 %vm1458_vm4, %v10336_v9 }
0x480d   :  { %15307 = vmatpush3.xpose.msk.msra.mxu1 %vm1458_vm4, %v10416_v17  ;;  %15308 = vmatprep.mubr.msk.f32.mxu1 %vm17709_vm3, %v17708_v48 }
0x480e   :  { %15316 = vmatprep.subr.mxu1 %v17708_v48 }
0x4810   :  { %15309 = vmatmul.mubr.msk.f32.vlgmr.msra.gmra.mrb[108].mxu1 %vm1458_vm4, %v10414_v57 }
0x4811   :  { %15318 = vmatprep.mubr.msk.f32.mxu1 %vm17709_vm3, %v17708_v48 }
0x4833   :  { %v10001_v4 = vpop.xlane.xlu0 %10000 }
0x4834   :  { %v10005_v37 = vsub.f32 %v9918_v42, %v10001_v4 }
0x4836   :  { %v10007_v62 = vmul.f32 1.442695, %v10005_v37 }
0x4837   :  { %v10022_v36 = vpop.permute.xlu0 %10021 }
0x4838   :  { %16144 = vpow2.f32 %v10007_v62  ;;  %15282 = vmatpush3.msra.mxu0 %v10022_v36 }
0x4839   :  { %15291 = vmatprep.subr.mxu0 %v9420_v52 }
0x483b   :  { %v10514_v6 = vpop.permute.xlu0 %10513 }
0x483f   :  { %v10751_v44 = vpop.permute.xlu0 %10750 }
0x4842   :  { %v16145_v21 = vpop.eup %16144 }
0x4843   :  { %v10011_v38 = vsel %vm1458_vm4, %v16145_v21, 0.0 }
0x4844   :  { %10012 = vadd.xlane.f32.xlu1 %v10011_v38 }
0x48d1   :  { %v10013_v39 = vpop.xlane.xlu1 %10012 }
0x48d2   :  { %16146 = vrcp.f32 %v10013_v39 }
0x48db   :  { %v10169_v7 = vpop.f32.mrb[104].mxu1 }
0x48dc   :  { %v16147_v11 = vpop.eup %16146  ;;  %v15290_v0 = vpop.f32.mrb[105].mxu1 }
0x48dd   :  { %v10019_v16 = vmul.f32 %v16147_v11, %v16145_v21 }
0x48df   :  { %15284 = vmatmul.mubr.msk.f32.vlgmr.msra.gmra.mrb[72].mxu0 %vm1458_vm4, %v10019_v16  ;;  %v10409_v43 = vpop.f32.mrb[106].mxu1 }
0x48e0   :  { %v10410_v51 = vadd.f32 %v10409_v43, %v18936_v40  ;;  %v15305_v5 = vpop.f32.mrb[107].mxu1  ;;  %15292 = vmatpush3.msra.mxu0 %v9420_v52 }
0x48e1   :  { %15296 = vmatprep.subr.mxu0 %v9419_v22 }
0x48e2   :  { %v10491_v41 = vsel %vm1458_vm4, %v10410_v51, -inf }
0x48e3   :  { %10492 = vmax.xlane.f32.xlu1 %v10491_v41  ;;  %v10487_v46 = vpop.f32.mrb[108].mxu1 }
0x48e4   :  { %v10488_v47 = vadd.f32 %v10487_v46, %v18922_v34  ;;  %v15310_v49 = vpop.f32.mrb[109].mxu1 }
0x48e5   :  { %v9422_v49 = vld [vmem:[%s19947_s17 + $0x18] sm:$0xff] }
0x48e6   :  { %v10494_v50 = vsel %vm1458_vm4, %v10488_v47, -inf }
0x48e7   :  { %10495 = vmax.xlane.f32.xlu1 %v10494_v50 }
0x4970   :  { %v10493_v45 = vpop.xlane.xlu1 %10492 }
0x4971   :  { %v10497_v53 = vsub.f32 %v10410_v51, %v10493_v45 }
0x4973   :  { %v10499_v60 = vmul.f32 1.442695, %v10497_v53 }
0x4974   :  { %v10496_v61 = vpop.xlane.xlu1 %10495 }
0x4975   :  { %16148 = vpow2.f32 %v10499_v60  ;;  %v10498_v63 = vsub.f32 %v10488_v47, %v10496_v61 }
0x4977   :  { %v10501_v1 = vmul.f32 1.442695, %v10498_v63 }
0x4979   :  { %16150 = vpow2.f32 %v10501_v1 }
0x497f   :  { %v16149_v30 = vpop.eup %16148 }
0x4980   :  { %v10503_v24 = vsel %vm1458_vm4, %v16149_v30, 0.0 }
0x4981   :  { %10504 = vadd.xlane.f32.xlu1 %v10503_v24 }
0x4983   :  { %v16151_v55 = vpop.eup %16150 }
0x4984   :  { %v10506_v56 = vsel %vm1458_vm4, %v16151_v55, 0.0 }
0x4985   :  { %10507 = vadd.xlane.f32.xlu1 %v10506_v56 }
0x4996   :  { %10589 = vrot.lane.b32.xlu1 %v19328_v27, %s17719_s20 }
0x49b2   :  { %v10093_v8 = vpop.f32.mrb[72].mxu0 }
0x49b3   :  { %v15285_v12 = vpop.f32.mrb[73].mxu0  ;;  %15293 = vmatprep.mubr.msk.f32.mxu0 %vm1458_vm4, %v10093_v8 }
0x49b4   :  { %15294 = vmatmul.mubr.msk.f32.vlgmr.msra.gmra.mrb[74].mxu0 %vm1458_vm4, %v10169_v7 }
0x49b5   :  { %15298 = vmatprep.mubr.msk.f32.mxu0 %vm1458_vm4, %v19400_v13  ;;  %15297 = vmatpush3.msra.mxu0 %v9419_v22 }
0x49b6   :  { %15311 = vmatprep.subr.mxu0 %v17708_v48 }
0x49bc   :  { %15299 = vmatmul.mubr.msk.f32.vlgmr.msra.gmra.mrb[74].mxu0 %vm1458_vm4, %v19390_v15  ;;  %v10829_v15 = vpop.permute.xlu0 %10828 }
0x49bd   :  { %15312 = vmatpush3.msra.mxu0 %v10514_v6  ;;  %15313 = vmatprep.mubr.msk.f32.mxu0 %vm17709_vm3, %v17708_v48 }
0x49be   :  { %15321 = vmatprep.subr.mxu0 %v9421_v19 }
0x49c0   :  { %v10749_v28 = vpop.permute.xlu0 %10748 }
0x49c4   :  { %v10827_v35 = vpop.permute.xlu0 %10826 }
0x4a0e   :  { %v10505_v25 = vpop.xlane.xlu1 %10504 }
0x4a0f   :  { %16152 = vrcp.f32 %v10505_v25 }
0x4a12   :  { %v10508_v26 = vpop.xlane.xlu1 %10507 }
0x4a13   :  { %16154 = vrcp.f32 %v10508_v26 }
0x4a16   :  { %v10590_v14 = vpop.permute.xlu1 %10589 }
0x4a17   :  { %15317 = vmatpush3.msra.mxu1 %v10590_v14 }
0x4a18   :  { %15326 = vmatprep.subr.mxu1 %v17708_v48 }
0x4a19   :  { %v16153_v13 = vpop.eup %16152 }
0x4a1a   :  { %v10511_v20 = vmul.f32 %v16153_v13, %v16149_v30 }
0x4a1c   :  { %15314 = vmatmul.mubr.msk.f32.vlgmr.msra.gmra.mrb[76].mxu0 %vm1458_vm4, %v10511_v20  ;;  %v11215_v20 = vld [vmem:[%s19948_s1] sm:$0xff] }
0x4a1d   :  { %v16155_v2 = vpop.eup %16154  ;;  %15322 = vmatpush3.msra.mxu0 %v9421_v19 }
0x4a1e   :  { %v10512_v42 = vmul.f32 %v16155_v2, %v16151_v55  ;;  %15331 = vmatprep.subr.mxu0 %v17708_v48  ;;  %v11216_v2 = vld [vmem:[%s19948_s1 + $0x8] sm:$0xff] }
0x4a20   :  { %15319 = vmatmul.mubr.msk.f32.vlgmr.msra.gmra.mrb[110].mxu1 %vm1458_vm4, %v10512_v42  ;;  %v11217_v42 = vld [vmem:[%s19948_s1 + $0x10] sm:$0xff] }
0x4a21   :  { %15327 = vmatpush3.xpose.msk.msra.mxu1 %vm1458_vm4, %v10751_v44  ;;  %15328 = vmatprep.mubr.msk.f32.mxu1 %vm17709_vm3, %v17708_v48 }
0x4a22   :  { %15336 = vmatprep.subr.mxu1 %v17708_v48 }
0x4a24   :  { %15329 = vmatmul.mubr.msk.f32.vlgmr.msra.gmra.mrb[112].mxu1 %vm1458_vm4, %v10749_v28  ;;  %v11218_v28 = vld [vmem:[%s19948_s1 + $0x18] sm:$0xff] }
0x4a25   :  { %15338 = vmatprep.mubr.msk.f32.mxu1 %vm17709_vm3, %v17708_v48 }
0x4aef   :  { %v10585_v23 = vpop.f32.mrb[76].mxu0 }
0x4af0   :  { %v15315_v29 = vpop.f32.mrb[77].mxu0  ;;  %15323 = vmatprep.mubr.msk.f32.mxu0 %vm1458_vm4, %v10585_v23  ;;  %v15951_v23 = vpack.i.bf16 %v11218_v28, %v11217_v42 }
0x4af1   :  { %v15667_v29 = vpack.c.bf16 %v11216_v2, %v11215_v20 }
0x4af3   :  { %v10661_v32 = vpop.f32.mrb[110].mxu1 }
0x4af4   :  { %v15320_v33 = vpop.f32.mrb[111].mxu1  ;;  %15324 = vmatmul.mubr.msk.f32.vlgmr.msra.gmra.mrb[74].mxu0 %vm1458_vm4, %v10661_v32  ;;  %v15671_v32 = vpack.c.bf16 %v11218_v28, %v11217_v42 }
0x4af5   :  { %15332 = vmatpush3.xpose.msk.msra.mxu0 %vm1458_vm4, %v10829_v15  ;;  %15333 = vmatprep.mubr.msk.f32.mxu0 %vm17709_vm3, %v17708_v48  ;;  %v15946_v15 = vpack.i.bf16 %v11216_v2, %v11215_v20  ;;  %v14215_v33 = vld [vmem:[#allocation56] ss:$0 sm:$0xff] }
0x4af6   :  { %15341 = vmatprep.subr.mxu0 %v17708_v48 }
0x4af7   :  { %v10822_v9 = vpop.f32.mrb[112].mxu1 }
0x4af8   :  { %v10823_v17 = vadd.f32 %v10822_v9, %v18936_v40  ;;  %v15330_v57 = vpop.f32.mrb[113].mxu1  ;;  %15334 = vmatmul.mubr.msk.f32.vlgmr.msra.gmra.mrb[78].mxu0 %vm1458_vm4, %v10827_v35 }
0x4af9   :  { %15343 = vmatprep.mubr.msk.f32.mxu0 %vm17709_vm3, %v17708_v48 }
0x4afa   :  { %v10904_v4 = vsel %vm1458_vm4, %v10823_v17, -inf }
0x4afb   :  { %10905 = vmax.xlane.f32.xlu1 %v10904_v4 }
0x4b0c   :  { %10926 = vrot.lane.b32.xlu1 %v19330_v31, %s17722_s3 }
0x4b88   :  { %v10906_v37 = vpop.xlane.xlu1 %10905 }
0x4b89   :  { %v10910_v36 = vsub.f32 %v10823_v17, %v10906_v37 }
0x4b8b   :  { %v10912_v21 = vmul.f32 1.442695, %v10910_v36 }
0x4b8c   :  { %v10927_v62 = vpop.permute.xlu1 %10926 }
0x4b8d   :  { %15337 = vmatpush3.msra.mxu1 %v10927_v62  ;;  %16156 = vpow2.f32 %v10912_v21 }
0x4b8e   :  { %15668 = vmatprep.subr.bf16.mxu1 %v15667_v29 }
0x4b97   :  { %v16157_v11 = vpop.eup %16156 }
0x4b98   :  { %v10916_v0 = vsel %vm1458_vm4, %v16157_v11, 0.0 }
0x4bcb   :  { %v10900_v38 = vpop.f32.mrb[78].mxu0 }
0x4bcc   :  { %v10901_v40 = vadd.f32 %v10900_v38, %v18922_v34  ;;  %v15335_v39 = vpop.f32.mrb[79].mxu0 }
0x4bce   :  { %v10907_v7 = vsel %vm1458_vm4, %v10901_v40, -inf }
0x4bcf   :  { %10908 = vmax.xlane.f32.xlu0 %v10907_v7 }
0x4bd3   :  { %10917 = vadd.xlane.f32.xlu0 %v10916_v0 }
0x4c5c   :  { %v10909_v16 = vpop.xlane.xlu0 %10908 }
0x4c5d   :  { %v10911_v31 = vsub.f32 %v10901_v40, %v10909_v16  ;;  %v14213_v16 = vld [vmem:[#allocation34] ss:$0 sm:$0xff] }
0x4c5f   :  { %v10914_v43 = vmul.f32 1.442695, %v10911_v31 }
0x4c60   :  { %v10918_v51 = vpop.xlane.xlu0 %10917 }
0x4c61   :  { %16158 = vpow2.f32 %v10914_v43 }
0x4c62   :  { %16160 = vrcp.f32 %v10918_v51 }
0x4c6b   :  { %v16159_v5 = vpop.eup %16158 }
0x4c6c   :  { %v16161_v41 = vpop.eup %16160  ;;  %v10919_v46 = vsel %vm1458_vm4, %v16159_v5, 0.0 }
0x4c6d   :  { %v10924_v34 = vmul.f32 %v16161_v41, %v16157_v11  ;;  %10920 = vadd.xlane.f32.xlu0 %v10919_v46 }
0x4c6f   :  { %15339 = vmatmul.mubr.msk.f32.vlgmr.msra.gmra.mrb[114].mxu1 %vm1458_vm4, %v10924_v34 }
0x4c70   :  { %15670 = vmatpush3.bf16.msra.mxu1 %v15667_v29 }
0x4c71   :  { %15672 = vmatprep.subr.bf16.mxu1 %v15671_v32 }
0x4c74   :  { %15674 = vmatpush3.bf16.msra.mxu1 %v15671_v32 }
0x4c75   :  { %15373 = vmatprep.subr.mxu1 %v17708_v48 }
0x4c83   :  { %11002 = vrot.lane.b32.xlu0 %v19328_v27, %s17722_s3  ;;  %v14212_v27 = vld [vmem:[#allocation29] ss:$0 sm:$0xff] }
0x4cfa   :  { %v10921_v47 = vpop.xlane.xlu0 %10920 }
0x4cfb   :  { %16162 = vrcp.f32 %v10921_v47 }
0x4cfe   :  { %v11003_v50 = vpop.permute.xlu0 %11002 }
0x4cff   :  { %15342 = vmatpush3.msra.mxu0 %v11003_v50 }
0x4d00   :  { %15346 = vmatprep.subr.mxu0 %v9422_v49 }
0x4d05   :  { %v16163_v52 = vpop.eup %16162 }
0x4d06   :  { %v10925_v22 = vmul.f32 %v16163_v52, %v16159_v5  ;;  %v14214_v5 = vld [vmem:[#allocation32] ss:$0 sm:$0xff] }
0x4d08   :  { %15344 = vmatmul.mubr.msk.f32.vlgmr.msra.gmra.mrb[80].mxu0 %vm1458_vm4, %v10925_v22 }
0x4d09   :  { %15347 = vmatpush3.msra.mxu0 %v9422_v49 }
0x4d42   :  { %v10998_v45 = vpop.f32.mrb[114].mxu1 }
0x4d43   :  { %v15340_v53 = vpop.f32.mrb[115].mxu1  ;;  %15348 = vmatprep.mubr.msk.f32.mxu0 %vm1458_vm4, %v10998_v45 }
0x4ddb   :  { %v11074_v60 = vpop.f32.mrb[80].mxu0 }
0x4ddc   :  { %v15345_v61 = vpop.f32.mrb[81].mxu0  ;;  %15349 = vmatmul.mubr.msk.f32.vlgmr.msra.gmra.mrb[74].mxu0 %vm1458_vm4, %v11074_v60 }
0x4ddd   :  { %15370 = vmatprep.mubr.msk.f32.mxu0 %vm1204_vm2, %v19099_v59 }
0x4eaf   :  { %v15350_v63 = vpop.f32.mrb[74].mxu0 }
0x4eb0   :  { %v11168_v1 = vadd.f32 %v15350_v63, %v14212_v27  ;;  %v11150_v30 = vpop.f32.mrb[75].mxu0 }
0x4eb1   :  { %v11167_v24 = vadd.f32 %v14212_v27, %v11150_v30 }
0x4eb2   :  { %v11170_v55 = vadd.f32 %v11168_v1, %v19320_v54 }
0x4eb3   :  { %v11169_v56 = vadd.f32 %v11167_v24, %v19318_v58 }
0x4eb4   :  { %v11176_v8 = vsel %vm1204_vm2, %v11170_v55, 0.0 }
0x4eb5   :  { %11177 = vadd.xlane.f32.xlu0 %v11176_v8  ;;  %v11173_v12 = vsel %vm1204_vm2, %v11169_v56, 0.0 }
0x4eb6   :  { %11174 = vadd.xlane.f32.xlu1 %v11173_v12 }
0x4f42   :  { %v11178_v19 = vpop.xlane.xlu0 %11177 }
0x4f43   :  { %v11180_v59 = vmul.f32 0.03125, %v11178_v19  ;;  %v11175_v6 = vpop.xlane.xlu1 %11174 }
0x4f44   :  { %v11179_v25 = vmul.f32 0.03125, %v11175_v6 }
0x4f45   :  { %v11182_v26 = vsub.f32 %v11170_v55, %v11180_v59 }
0x4f46   :  { %v11181_v14 = vsub.f32 %v11169_v56, %v11179_v25 }
0x4f47   :  { %v11184_v44 = vmul.f32 %v11182_v26, %v11182_v26 }
0x4f48   :  { %v11183_v54 = vmul.f32 %v11181_v14, %v11181_v14 }
0x4f49   :  { %v11188_v58 = vsel %vm1204_vm2, %v11184_v44, 0.0 }
0x4f4a   :  { %11189 = vadd.xlane.f32.xlu0 %v11188_v58  ;;  %v11185_v13 = vsel %vm1204_vm2, %v11183_v54, 0.0 }
0x4f4b   :  { %11186 = vadd.xlane.f32.xlu1 %v11185_v13 }
0x4f5c   :  { %15947 = vrot.lane.b32.xlu1 %v15946_v15, %s17710_s29 }
0x4f60   :  { %15952 = vrot.lane.b32.xlu0 %v15951_v23, %s17710_s29  ;;  %11328 = vrot.lane.b32.xlu1 %v14215_v33, %s17710_s29 }
0x4fd7   :  { %v11190_v35 = vpop.xlane.xlu0 %11189 }
0x4fd8   :  { %v11192_v9 = vmul.f32 0.03125, %v11190_v35  ;;  %v11187_v17 = vpop.xlane.xlu1 %11186 }
0x4fd9   :  { %v11191_v57 = vmul.f32 0.03125, %v11187_v17 }
0x4fda   :  { %v11194_v4 = vadd.f32 1e-05, %v11192_v9 }
0x4fdb   :  { %v11193_v37 = vadd.f32 1e-05, %v11191_v57  ;;  %v15953_v62 = vpop.permute.xlu0 %15952 }
0x4fdc   :  { %16164 = vrsqrt.f32 %v11194_v4  ;;  %v15948_v36 = vpop.permute.xlu1 %15947  ;;  %v15955_v21 = vunpack.i.h.bf16 %v15953_v62  ;;  %v15954_v38 = vunpack.i.l.bf16 %v15953_v62 }
0x4fdd   :  { %16166 = vrsqrt.f32 %v11193_v37  ;;  %v15950_v40 = vunpack.i.h.bf16 %v15948_v36  ;;  %v15949_v39 = vunpack.i.l.bf16 %v15948_v36 }
0x4fde   :  { %v15679_v11 = vpack.c.bf16 %v15955_v21, %v15954_v38 }
0x4fdf   :  { %v15675_v7 = vpack.c.bf16 %v15950_v40, %v15949_v39 }
0x4fe1   :  { %15676 = vmatprep.subr.bf16.mxu0 %v15675_v7 }
0x4fe2   :  { %15678 = vmatpush3.bf16.msra.mxu0 %v15675_v7 }
0x4fe3   :  { %15680 = vmatprep.subr.bf16.mxu0 %v15679_v11 }
0x4fe6   :  { %v16165_v0 = vpop.eup %16164  ;;  %15682 = vmatpush3.bf16.msra.mxu0 %v15679_v11 }
0x4fe7   :  { %v16167_v31 = vpop.eup %16166  ;;  %v11198_v43 = vmul.f32 %v16165_v0, %v11182_v26  ;;  %15383 = vmatprep.subr.mxu0 %v17708_v48 }
0x4fe8   :  { %v11197_v51 = vmul.f32 %v16167_v31, %v11181_v14 }
0x4fe9   :  { %15371 = vmatmul.mubr.msk.f32.vlgmr.msra.gmra.mrb[82].mxu0 %vm1204_vm2, %v19095_v3  ;;  %v11206_v41 = vmul.f32 %v14213_v16, %v11198_v43  ;;  %v11329_v3 = vpop.permute.xlu1 %11328 }
0x4fea   :  { %v11205_v46 = vmul.f32 %v14213_v16, %v11197_v51  ;;  %15385 = vmatprep.mubr.msk.f32.mxu0 %vm17709_vm3, %v17708_v48 }
0x4feb   :  { %v19515_v47 = vadd.f32 %v14214_v5, %v11206_v41 }
0x4fec   :  { %v19513_v34 = vadd.f32 %v14214_v5, %v11205_v46 }
0x4fee   :  { %15359 = vmatprep.mubr.msk.f32.mxu1 %vm1204_vm2, %v19513_v34 }
0x4fef   :  { %15360 = vmatmul.mubr.msk.f32.vlgmr.msra.gmra.mrb[116].mxu1 %vm1204_vm2, %v19515_v47 }
0x4ff0   :  { %15375 = vmatprep.mubr.msk.f32.mxu1 %vm17709_vm3, %v17708_v48 }
0x50bc   :  { %v15372_v49 = vpop.f32.mrb[82].mxu0 }
0x50bd   :  { %v11397_v50 = vpop.f32.mrb[83].mxu0  ;;  %v19530_v27 = vadd.f32 %v15372_v49, %v11329_v3 }
0x50be   :  { %v19523_v52 = vadd.f32 %v11397_v50, %v11329_v3 }
0x50c0   :  { %15374 = vmatpush3.xpose.msk.msra.mxu1 %vm1458_vm4, %v19523_v52 }
0x50c1   :  { %15378 = vmatprep.subr.mxu1 %v17708_v48 }
0x50c2   :  { %v15361_v22 = vpop.f32.mrb[116].mxu1 }
0x50c3   :  { %v11303_v45 = vpop.f32.mrb[117].mxu1  ;;  %v11309_v60 = vadd.f32 %v15361_v22, %v14215_v33 }
0x50c4   :  { %v11304_v53 = vadd.f32 %v14215_v33, %v11303_v45 }
0x50c5   :  { %v19538_v63 = vmul.f32 0.35355338, %v11309_v60 }
0x50c6   :  { %v19528_v61 = vmul.f32 0.35355338, %v11304_v53 }
0x50c8   :  { %15376 = vmatmul.mubr.msk.f32.vlgmr.msra.gmra.mrb[118].mxu1 %vm1458_vm4, %v19528_v61 }
0x50c9   :  { %15379 = vmatpush3.xpose.msk.msra.mxu1 %vm1458_vm4, %v19530_v27  ;;  %15380 = vmatprep.mubr.msk.f32.mxu1 %vm17709_vm3, %v17708_v48 }
0x50ca   :  { %15388 = vmatprep.subr.mxu1 %v17708_v48 }
0x50cc   :  { %15381 = vmatmul.mubr.msk.f32.vlgmr.msra.gmra.mrb[120].mxu1 %vm1458_vm4, %v19538_v63 }
0x50cd   :  { %15390 = vmatprep.mubr.msk.f32.mxu1 %vm17709_vm3, %v17708_v48 }
0x519b   :  { %v11480_v1 = vpop.f32.mrb[118].mxu1 }
0x519c   :  { %v15377_v30 = vpop.f32.mrb[119].mxu1  ;;  %v11481_v12 = vadd.f32 %v11480_v1, %v18486_v18 }
0x519e   :  { %v11560_v19 = vsel %vm1458_vm4, %v11481_v12, -inf }
0x519f   :  { %v11556_v24 = vpop.f32.mrb[120].mxu1 }
0x51a0   :  { %v11557_v55 = vadd.f32 %v11556_v24, %v18470_v10  ;;  %v15382_v56 = vpop.f32.mrb[121].mxu1 }
0x51a2   :  { %v11563_v8 = vsel %vm1458_vm4, %v11557_v55, -inf }
0x51a3   :  { %11564 = vmax.xlane.f32.xlu1 %v11563_v8 }
0x51b4   :  { %11814 = vrot.lane.b32.xlu1 %v19530_v27, %s17714_s6 }
0x51b8   :  { %11812 = vrot.lane.b32.xlu1 %v19538_v63, %s17714_s6 }
0x51dc   :  { %11561 = vmax.xlane.f32.xlu1 %v11560_v19 }
0x51ed   :  { %11736 = vrot.lane.b32.xlu1 %v19523_v52, %s17714_s6 }
0x51f1   :  { %11734 = vrot.lane.b32.xlu1 %v19528_v61, %s17714_s6  ;;  %s19953_s6 = sld [smem:[#allocation128_spill]] }
0x51f5   :  { %12228 = vrot.lane.b32.xlu1 %v19523_v52, %s17718_s11 }
0x5230   :  { %v11565_v59 = vpop.xlane.xlu1 %11564 }
0x5231   :  { %v11567_v6 = vsub.f32 %v11557_v55, %v11565_v59 }
0x5233   :  { %v11570_v25 = vmul.f32 1.442695, %v11567_v6 }
0x5234   :  { %v11815_v44 = vpop.permute.xlu1 %11814 }
0x5235   :  { %16168 = vpow2.f32 %v11570_v25 }
0x5238   :  { %v11813_v54 = vpop.permute.xlu1 %11812 }
0x523f   :  { %v16169_v26 = vpop.eup %16168 }
0x5240   :  { %v11575_v14 = vsel %vm1458_vm4, %v16169_v26, 0.0 }
0x5241   :  { %11576 = vadd.xlane.f32.xlu0 %v11575_v14 }
0x5257   :  { %11658 = vrot.lane.b32.xlu0 %v19530_v27, %s17710_s29 }
0x5269   :  { %v11562_v58 = vpop.xlane.xlu1 %11561 }
0x526a   :  { %v11566_v13 = vsub.f32 %v11481_v12, %v11562_v58 }
0x526c   :  { %v11568_v20 = vmul.f32 1.442695, %v11566_v13 }
0x526d   :  { %v11737_v9 = vpop.permute.xlu1 %11736 }
0x526e   :  { %16170 = vpow2.f32 %v11568_v20 }
0x5271   :  { %v11735_v57 = vpop.permute.xlu1 %11734 }
0x5275   :  { %v12229_v3 = vpop.permute.xlu1 %12228 }
0x5278   :  { %v16171_v2 = vpop.eup %16170 }
0x5279   :  { %v11572_v15 = vsel %vm1458_vm4, %v16171_v2, 0.0 }
0x527a   :  { %11573 = vadd.xlane.f32.xlu0 %v11572_v15  ;;  %v11221_v15 = vld [vmem:[%s19949_s4 + $0x8] sm:$0xff] }
0x5290   :  { %11582 = vrot.lane.b32.xlu0 %v19523_v52, %s17710_s29  ;;  %s19951_s29 = sld [smem:[#allocation165_spill]] }
0x52ce   :  { %v11577_v42 = vpop.xlane.xlu0 %11576 }
0x52cf   :  { %16172 = vrcp.f32 %v11577_v42  ;;  %v11220_v42 = vld [vmem:[%s19949_s4] sm:$0xff] }
0x52d2   :  { %v11659_v28 = vpop.permute.xlu0 %11658 }
0x52d3   :  { %15389 = vmatpush3.msra.mxu1 %v11659_v28 }
0x52d4   :  { %15398 = vmatprep.subr.mxu1 %v17708_v48 }
0x52d9   :  { %v16173_v23 = vpop.eup %16172 }
0x52da   :  { %v11581_v29 = vmul.f32 %v16173_v23, %v16169_v26 }
0x52dc   :  { %15391 = vmatmul.mubr.msk.f32.vlgmr.msra.gmra.mrb[122].mxu1 %vm1458_vm4, %v11581_v29 }
0x52dd   :  { %15399 = vmatpush3.xpose.msk.msra.mxu1 %vm1458_vm4, %v11815_v44  ;;  %15400 = vmatprep.mubr.msk.f32.mxu1 %vm17709_vm3, %v17708_v48 }
0x52de   :  { %15408 = vmatprep.subr.mxu1 %v17708_v48 }
0x52e0   :  { %15401 = vmatmul.mubr.msk.f32.vlgmr.msra.gmra.mrb[124].mxu1 %vm1458_vm4, %v11813_v54 }
0x52e1   :  { %15410 = vmatprep.mubr.msk.f32.mxu1 %vm17709_vm3, %v17708_v48 }
0x5307   :  { %v11574_v32 = vpop.xlane.xlu0 %11573 }
0x5308   :  { %16174 = vrcp.f32 %v11574_v32 }
0x530b   :  { %v11583_v33 = vpop.permute.xlu0 %11582 }
0x530c   :  { %15384 = vmatpush3.msra.mxu0 %v11583_v33 }
0x530d   :  { %15393 = vmatprep.subr.mxu0 %v17708_v48 }
0x5312   :  { %v16175_v35 = vpop.eup %16174 }
0x5313   :  { %v11580_v17 = vmul.f32 %v16175_v35, %v16171_v2 }
0x5315   :  { %15386 = vmatmul.mubr.msk.f32.vlgmr.msra.gmra.mrb[84].mxu0 %vm1458_vm4, %v11580_v17 }
0x5316   :  { %15394 = vmatpush3.xpose.msk.msra.mxu0 %vm1458_vm4, %v11737_v9  ;;  %15395 = vmatprep.mubr.msk.f32.mxu0 %vm17709_vm3, %v17708_v48 }
0x5317   :  { %15403 = vmatprep.subr.mxu0 %v17708_v48 }
0x5319   :  { %15396 = vmatmul.mubr.msk.f32.vlgmr.msra.gmra.mrb[86].mxu0 %vm1458_vm4, %v11735_v57 }
0x531a   :  { %15405 = vmatprep.mubr.msk.f32.mxu0 %vm17709_vm3, %v17708_v48 }
0x53af   :  { %v19583_v4 = vpop.f32.mrb[122].mxu1 }
0x53b0   :  { %v15392_v37 = vpop.f32.mrb[123].mxu1 }
0x53b3   :  { %v11886_v62 = vpop.f32.mrb[124].mxu1 }
0x53b4   :  { %v11887_v36 = vadd.f32 %v11886_v62, %v18470_v10  ;;  %v15402_v21 = vpop.f32.mrb[125].mxu1 }
0x53b6   :  { %v11893_v38 = vsel %vm1458_vm4, %v11887_v36, -inf }
0x53b7   :  { %11894 = vmax.xlane.f32.xlu0 %v11893_v38  ;;  %v11222_v38 = vld [vmem:[%s19949_s4 + $0x10] sm:$0xff] }
0x53cd   :  { %11988 = vrot.lane.b32.xlu0 %v19530_v27, %s17713_s2 }
0x53d1   :  { %12226 = vrot.lane.b32.xlu0 %v19528_v61, %s17718_s11 }
0x53d5   :  { %12304 = vrot.lane.b32.xlu0 %v19538_v63, %s17718_s11 }
0x53e8   :  { %v19593_v40 = vpop.f32.mrb[84].mxu0 }
0x53e9   :  { %v15387_v39 = vpop.f32.mrb[85].mxu0 }
0x53ec   :  { %v11808_v7 = vpop.f32.mrb[86].mxu0 }
0x53ed   :  { %v15397_v11 = vpop.f32.mrb[87].mxu0  ;;  %v11809_v41 = vadd.f32 %v11808_v7, %v18486_v18 }
0x53ef   :  { %v11890_v46 = vsel %vm1458_vm4, %v11809_v41, -inf }
0x5444   :  { %v11895_v0 = vpop.xlane.xlu0 %11894 }
0x5445   :  { %v11897_v16 = vsub.f32 %v11887_v36, %v11895_v0 }
0x5447   :  { %v11900_v31 = vmul.f32 1.442695, %v11897_v16 }
0x5448   :  { %v11989_v43 = vpop.permute.xlu0 %11988 }
0x5449   :  { %16176 = vpow2.f32 %v11900_v31  ;;  %15409 = vmatpush3.msra.mxu1 %v11989_v43 }
0x544a   :  { %15423 = vmatprep.subr.mxu1 %v17708_v48 }
0x544c   :  { %v12227_v45 = vpop.permute.xlu0 %12226 }
0x5450   :  { %v12305_v60 = vpop.permute.xlu0 %12304 }
0x5453   :  { %v16177_v51 = vpop.eup %16176 }
0x5454   :  { %v11905_v5 = vsel %vm1458_vm4, %v16177_v51, 0.0 }
0x5455   :  { %11906 = vadd.xlane.f32.xlu1 %v11905_v5 }
0x5466   :  { %12306 = vrot.lane.b32.xlu1 %v19530_v27, %s17718_s11  ;;  %s13861_s11 = sshll.u32 %s17724_s25, 4  ;;  %s13862_s11 = int_to_ptr.vmem [resolvable:$true] %s13861_s11 }
0x5467   :  { %s17482_s20 = scalar_lea.vmem %s13862_s11, 256  ;;  %p17487_p9 = scmp.lt.s32.totalorder %s13862_s11, %s13862_s11 }
0x5468   :  { %p17483_p8 = scmp.ne.s32.totalorder %s13862_s11, %s17482_s20  ;;  %p17488_p10 = scmp.lt.s32.totalorder %s17482_s20, %s17482_s20 }
0x546a   :  { %p17489_p11 = por %p17488_p10, %p17487_p9 }
0x546c   :  { %p17490_p12 = pnand %p17489_p11, %p17483_p8 }
0x548a   :  { %11891 = vmax.xlane.f32.xlu1 %v11890_v46 }
0x54e2   :  { %v11907_v49 = vpop.xlane.xlu1 %11906 }
0x54e3   :  { %16178 = vrcp.f32 %v11907_v49 }
0x54e6   :  { %v12307_v53 = vpop.permute.xlu1 %12306 }
0x54ed   :  { %v16179_v50 = vpop.eup %16178 }
0x54ee   :  { %v11911_v22 = vmul.f32 %v16179_v50, %v16177_v51 }
0x54f0   :  { %15411 = vmatmul.mubr.msk.f32.vlgmr.msra.gmra.mrb[126].mxu1 %vm1458_vm4, %v11911_v22 }
0x54f1   :  { %15424 = vmatpush3.xpose.msk.msra.mxu1 %vm1458_vm4, %v12229_v3  ;;  %15425 = vmatprep.mubr.msk.f32.mxu1 %vm17709_vm3, %v17708_v48 }
0x54f2   :  { %15428 = vmatprep.subr.mxu1 %v17708_v48 }
0x54f4   :  { %15426 = vmatmul.mubr.msk.f32.vlgmr.msra.gmra.mrb[128].mxu1 %vm1458_vm4, %v12227_v45 }
0x54f5   :  { %15429 = vmatpush3.xpose.msk.msra.mxu1 %vm1458_vm4, %v12307_v53  ;;  %15430 = vmatprep.mubr.msk.f32.mxu1 %vm17709_vm3, %v17708_v48 }
0x54f6   :  { %15438 = vmatprep.subr.mxu1 %v17708_v48 }
0x54f8   :  { %15431 = vmatmul.mubr.msk.f32.vlgmr.msra.gmra.mrb[130].mxu1 %vm1458_vm4, %v12305_v60 }
0x54f9   :  { %15440 = vmatprep.mubr.msk.f32.mxu1 %vm17709_vm3, %v17708_v48 }
0x5517   :  { %v11892_v1 = vpop.xlane.xlu1 %11891 }
0x5518   :  { %v11896_v30 = vsub.f32 %v11809_v41, %v11892_v1 }
0x551a   :  { %v11898_v24 = vmul.f32 1.442695, %v11896_v30 }
0x551c   :  { %16180 = vpow2.f32 %v11898_v24 }
0x5526   :  { %v16181_v55 = vpop.eup %16180 }
0x5527   :  { %v11902_v56 = vsel %vm1458_vm4, %v16181_v55, 0.0 }
0x5528   :  { %11903 = vadd.xlane.f32.xlu0 %v11902_v56 }
0x553e   :  { %11912 = vrot.lane.b32.xlu0 %v19523_v52, %s17713_s2  ;;  %s19952_s2 = sld [smem:[#allocation127_spill]] }
0x5542   :  { %12480 = vrot.lane.b32.xlu0 %v19530_v27, %s17715_s7 }
0x5546   :  { %12641 = vrot.lane.b32.xlu0 %v19523_v52, %s17721_s16 }
0x554a   :  { %12719 = vrot.lane.b32.xlu0 %v19530_v27, %s17721_s16 }
0x554e   :  { %12639 = vrot.lane.b32.xlu0 %v19528_v61, %s17721_s16 }
0x55b5   :  { %v11904_v8 = vpop.xlane.xlu0 %11903 }
0x55b6   :  { %16182 = vrcp.f32 %v11904_v8 }
0x55b9   :  { %v11913_v12 = vpop.permute.xlu0 %11912 }
0x55ba   :  { %15404 = vmatpush3.msra.mxu0 %v11913_v12 }
0x55bb   :  { %15413 = vmatprep.subr.mxu0 %v11221_v15 }
0x55bd   :  { %v12481_v19 = vpop.permute.xlu0 %12480 }
0x55be   :  { %15439 = vmatpush3.msra.mxu1 %v12481_v19 }
0x55bf   :  { %15448 = vmatprep.subr.mxu1 %v17708_v48 }
0x55c0   :  { %v16183_v59 = vpop.eup %16182 }
0x55c1   :  { %v11910_v6 = vmul.f32 %v16183_v59, %v16181_v55  ;;  %v12642_v7 = vpop.permute.xlu0 %12641 }
0x55c3   :  { %15406 = vmatmul.mubr.msk.f32.vlgmr.msra.gmra.mrb[88].mxu0 %vm1458_vm4, %v11910_v6  ;;  %v12060_v25 = vpop.f32.mrb[126].mxu1 }
0x55c4   :  { %v15412_v26 = vpop.f32.mrb[127].mxu1  ;;  %15414 = vmatpush3.msra.mxu0 %v11221_v15 }
0x55c5   :  { %15418 = vmatprep.subr.mxu0 %v11220_v42  ;;  %v12720_v16 = vpop.permute.xlu0 %12719 }
0x55c7   :  { %v12300_v14 = vpop.f32.mrb[128].mxu1 }
0x55c8   :  { %v12301_v44 = vadd.f32 %v12300_v14, %v18486_v18  ;;  %v15427_v61 = vpop.f32.mrb[129].mxu1 }
0x55c9   :  { %v12640_v31 = vpop.permute.xlu0 %12639 }
0x55ca   :  { %v12382_v54 = vsel %vm1458_vm4, %v12301_v44, -inf }
0x55cb   :  { %12383 = vmax.xlane.f32.xlu1 %v12382_v54  ;;  %v12378_v58 = vpop.f32.mrb[130].mxu1  ;;  %v11223_v54 = vld [vmem:[%s19949_s4 + $0x18] sm:$0xff] }
0x55cc   :  { %v12379_v13 = vadd.f32 %v12378_v58, %v18470_v10  ;;  %v15432_v20 = vpop.f32.mrb[131].mxu1 }
0x55ce   :  { %v12385_v2 = vsel %vm1458_vm4, %v12379_v13, -inf }
0x55cf   :  { %12386 = vmax.xlane.f32.xlu1 %v12385_v2  ;;  %v14252_v2 = vld [vmem:[#allocation55] ss:$0 sm:$0xff] }
0x5658   :  { %v12384_v28 = vpop.xlane.xlu1 %12383 }
0x5659   :  { %v12388_v23 = vsub.f32 %v12301_v44, %v12384_v28 }
0x565b   :  { %v12390_v29 = vmul.f32 1.442695, %v12388_v23 }
0x565c   :  { %v12387_v32 = vpop.xlane.xlu1 %12386 }
0x565d   :  { %16184 = vpow2.f32 %v12390_v29  ;;  %v12389_v33 = vsub.f32 %v12379_v13, %v12387_v32 }
0x565f   :  { %v12392_v35 = vmul.f32 1.442695, %v12389_v33 }
0x5661   :  { %16186 = vpow2.f32 %v12392_v35 }
0x5667   :  { %v16185_v9 = vpop.eup %16184 }
0x5668   :  { %v12394_v17 = vsel %vm1458_vm4, %v16185_v9, 0.0 }
0x5669   :  { %12395 = vadd.xlane.f32.xlu1 %v12394_v17 }
0x566b   :  { %v16187_v57 = vpop.eup %16186 }
0x566c   :  { %v12397_v37 = vsel %vm1458_vm4, %v16187_v57, 0.0 }
0x566d   :  { %12398 = vadd.xlane.f32.xlu1 %v12397_v37 }
0x567e   :  { %12404 = vrot.lane.b32.xlu1 %v19523_v52, %s17715_s7  ;;  %s19954_s7 = sld [smem:[#allocation131_spill]] }
0x5682   :  { %12717 = vrot.lane.b32.xlu1 %v19538_v63, %s17721_s16 }
0x5696   :  { %v11984_v62 = vpop.f32.mrb[88].mxu0 }
0x5697   :  { %v15407_v36 = vpop.f32.mrb[89].mxu0  ;;  %15415 = vmatprep.mubr.msk.f32.mxu0 %vm1458_vm4, %v11984_v62 }
0x5698   :  { %15416 = vmatmul.mubr.msk.f32.vlgmr.msra.gmra.mrb[90].mxu0 %vm1458_vm4, %v12060_v25 }
0x5699   :  { %15420 = vmatprep.mubr.msk.f32.mxu0 %vm1458_vm4, %v19593_v40  ;;  %15419 = vmatpush3.msra.mxu0 %v11220_v42 }
0x569a   :  { %15433 = vmatprep.subr.mxu0 %v17708_v48 }
0x56a0   :  { %15421 = vmatmul.mubr.msk.f32.vlgmr.msra.gmra.mrb[90].mxu0 %vm1458_vm4, %v19583_v4 }
0x56a1   :  { %15435 = vmatprep.mubr.msk.f32.mxu0 %vm17709_vm3, %v17708_v48 }
0x56f6   :  { %v12396_v21 = vpop.xlane.xlu1 %12395 }
0x56f7   :  { %16188 = vrcp.f32 %v12396_v21 }
0x56fa   :  { %v12399_v63 = vpop.xlane.xlu1 %12398 }
0x56fb   :  { %16190 = vrcp.f32 %v12399_v63 }
0x56fe   :  { %v12405_v39 = vpop.permute.xlu1 %12404 }
0x56ff   :  { %15434 = vmatpush3.msra.mxu0 %v12405_v39  ;;  %v13107_v39 = vld [vmem:[%s19950_s9 + $0x8] sm:$0xff] }
0x5700   :  { %15443 = vmatprep.subr.mxu0 %v11222_v38 }
0x5701   :  { %v16189_v11 = vpop.eup %16188 }
0x5702   :  { %v12402_v40 = vmul.f32 %v16189_v11, %v16185_v9  ;;  %v12718_v46 = vpop.permute.xlu1 %12717  ;;  %v13108_v11 = vld [vmem:[%s19950_s9 + $0x10] sm:$0xff] }
0x5704   :  { %15436 = vmatmul.mubr.msk.f32.vlgmr.msra.gmra.mrb[92].mxu0 %vm1458_vm4, %v12402_v40  ;;  %v13109_v40 = vld [vmem:[%s19950_s9 + $0x18] sm:$0xff] }
0x5705   :  { %v16191_v0 = vpop.eup %16190  ;;  %15444 = vmatpush3.msra.mxu0 %v11222_v38  ;;  %v13106_v38 = vld [vmem:[%s19950_s9] sm:$0xff] }
0x5706   :  { %v12403_v4 = vmul.f32 %v16191_v0, %v16187_v57  ;;  %15453 = vmatprep.subr.mxu0 %v17708_v48  ;;  %v15687_v0 = vpack.c.bf16 %v13109_v40, %v13108_v11 }
0x5708   :  { %15441 = vmatmul.mubr.msk.f32.vlgmr.msra.gmra.mrb[132].mxu1 %vm1458_vm4, %v12403_v4 }
0x5709   :  { %15449 = vmatpush3.xpose.msk.msra.mxu1 %vm1458_vm4, %v12642_v7  ;;  %15450 = vmatprep.mubr.msk.f32.mxu1 %vm17709_vm3, %v17708_v48  ;;  %v15683_v7 = vpack.c.bf16 %v13107_v39, %v13106_v38 }
0x570a   :  { %15458 = vmatprep.subr.mxu1 %v17708_v48 }
0x570c   :  { %15451 = vmatmul.mubr.msk.f32.vlgmr.msra.gmra.mrb[134].mxu1 %vm1458_vm4, %v12640_v31 }
0x570d   :  { %15460 = vmatprep.mubr.msk.f32.mxu1 %vm17709_vm3, %v17708_v48 }
0x57d7   :  { %v12476_v43 = vpop.f32.mrb[92].mxu0 }
0x57d8   :  { %v15437_v51 = vpop.f32.mrb[93].mxu0  ;;  %15445 = vmatprep.mubr.msk.f32.mxu0 %vm1458_vm4, %v12476_v43 }
0x57db   :  { %v12552_v5 = vpop.f32.mrb[132].mxu1 }
0x57dc   :  { %v15442_v41 = vpop.f32.mrb[133].mxu1  ;;  %15446 = vmatmul.mubr.msk.f32.vlgmr.msra.gmra.mrb[90].mxu0 %vm1458_vm4, %v12552_v5 }
0x57dd   :  { %15454 = vmatpush3.xpose.msk.msra.mxu0 %vm1458_vm4, %v12720_v16  ;;  %15455 = vmatprep.mubr.msk.f32.mxu0 %vm17709_vm3, %v17708_v48 }
0x57de   :  { %15463 = vmatprep.subr.mxu0 %v17708_v48 }
0x57df   :  { %v12713_v3 = vpop.f32.mrb[134].mxu1 }
0x57e0   :  { %v12714_v49 = vadd.f32 %v12713_v3, %v18486_v18  ;;  %v15452_v50 = vpop.f32.mrb[135].mxu1  ;;  %15456 = vmatmul.mubr.msk.f32.vlgmr.msra.gmra.mrb[94].mxu0 %vm1458_vm4, %v12718_v46  ;;  %v14253_v46 = vld [vmem:[#allocation59] ss:$0 sm:$0xff] }
0x57e1   :  { %15465 = vmatprep.mubr.msk.f32.mxu0 %vm17709_vm3, %v17708_v48 }
0x57e2   :  { %v12795_v22 = vsel %vm1458_vm4, %v12714_v49, -inf }
0x57e3   :  { %12796 = vmax.xlane.f32.xlu0 %v12795_v22  ;;  %v14254_v22 = vld [vmem:[#allocation58] ss:$0 sm:$0xff] }
0x5870   :  { %v12797_v45 = vpop.xlane.xlu0 %12796 }
0x5871   :  { %v12801_v53 = vsub.f32 %v12714_v49, %v12797_v45 }
0x5873   :  { %v12803_v60 = vmul.f32 1.442695, %v12801_v53 }
0x5875   :  { %16192 = vpow2.f32 %v12803_v60 }
0x587f   :  { %v16193_v1 = vpop.eup %16192 }
0x5880   :  { %v12807_v30 = vsel %vm1458_vm4, %v16193_v1, 0.0 }
0x5881   :  { %12808 = vadd.xlane.f32.xlu0 %v12807_v30  ;;  %v13216_v30 = vld [vmem:[%s19951_s29] sm:$0xff] }
0x58b3   :  { %v12791_v24 = vpop.f32.mrb[94].mxu0 }
0x58b4   :  { %v12792_v18 = vadd.f32 %v12791_v24, %v18470_v10  ;;  %v15457_v55 = vpop.f32.mrb[95].mxu0  ;;  %v13217_v24 = vld [vmem:[%s19951_s29 + $0x8] sm:$0xff] }
0x58b5   :  { %v13218_v55 = vld [vmem:[%s19951_s29 + $0x10] sm:$0xff] }
0x58b6   :  { %v12798_v56 = vsel %vm1458_vm4, %v12792_v18, -inf }
0x58b7   :  { %12799 = vmax.xlane.f32.xlu1 %v12798_v56  ;;  %v13219_v56 = vld [vmem:[%s19951_s29 + $0x18] sm:$0xff] }
0x58c8   :  { %12893 = vrot.lane.b32.xlu1 %v19530_v27, %s17720_s15 }
0x590e   :  { %v12809_v10 = vpop.xlane.xlu0 %12808 }
0x5944   :  { %v12800_v48 = vpop.xlane.xlu1 %12799 }
0x5945   :  { %v12802_v8 = vsub.f32 %v12792_v18, %v12800_v48  ;;  %v15691_v18 = vpack.c.bf16 %v13217_v24, %v13216_v30  ;;  %v15695_v48 = vpack.c.bf16 %v13219_v56, %v13218_v55  ;;  %v14261_v55 = vld [vmem:[#allocation62] ss:$0 sm:$0xff] }
0x5947   :  { %v12805_v12 = vmul.f32 1.442695, %v12802_v8  ;;  %v13220_v8 = vld [vmem:[%s19951_s29 + $0x20] sm:$0xff] }
0x5948   :  { %v12894_v19 = vpop.permute.xlu1 %12893 }
0x5949   :  { %16194 = vpow2.f32 %v12805_v12  ;;  %15464 = vmatpush3.msra.mxu0 %v12894_v19  ;;  %v13221_v12 = vld [vmem:[%s19951_s29 + $0x28] sm:$0xff] }
0x594a   :  { %16196 = vrcp.f32 %v12809_v10  ;;  %15468 = vmatprep.subr.mxu0 %v11223_v54  ;;  %v15699_v19 = vpack.c.bf16 %v13221_v12, %v13220_v8  ;;  %v14262_v12 = vld [vmem:[#allocation61] ss:$0 sm:$0xff] }
0x5953   :  { %v16195_v59 = vpop.eup %16194 }
0x5954   :  { %v12810_v6 = vsel %vm1458_vm4, %v16195_v59, 0.0  ;;  %v16197_v26 = vpop.eup %16196 }
0x5955   :  { %12811 = vadd.xlane.f32.xlu0 %v12810_v6  ;;  %v12815_v27 = vmul.f32 %v16197_v26, %v16193_v1  ;;  %v13223_v6 = vld [vmem:[%s19951_s29 + $0x38] sm:$0xff] }
0x596b   :  { %12817 = vrot.lane.b32.xlu0 %v19523_v52, %s17720_s15 }
0x59e2   :  { %v12812_v25 = vpop.xlane.xlu0 %12811 }
0x59e3   :  { %16198 = vrcp.f32 %v12812_v25  ;;  %v14255_v25 = vld [vmem:[#allocation64] ss:$0 sm:$0xff] }
0x59e6   :  { %v12818_v14 = vpop.permute.xlu0 %12817 }
0x59e7   :  { %15459 = vmatpush3.msra.mxu1 %v12818_v14 }
0x59e8   :  { %15461 = vmatmul.mubr.msk.f32.vlgmr.msra.gmra.mrb[136].mxu1 %vm1458_vm4, %v12815_v27  ;;  %15684 = vmatprep.subr.bf16.mxu1 %v15683_v7 }
0x59e9   :  { %15686 = vmatpush3.bf16.msra.mxu1 %v15683_v7 }
0x59ea   :  { %15688 = vmatprep.subr.bf16.mxu1 %v15687_v0 }
0x59ed   :  { %v16199_v44 = vpop.eup %16198  ;;  %15690 = vmatpush3.bf16.msra.mxu1 %v15687_v0 }
0x59ee   :  { %v12816_v61 = vmul.f32 %v16199_v44, %v16195_v59  ;;  %v13222_v59 = vld [vmem:[%s19951_s29 + $0x30] sm:$0xff] }
0x59ef   :  { %v15703_v10 = vpack.c.bf16 %v13223_v6, %v13222_v59 }
0x59f0   :  { %15466 = vmatmul.mubr.msk.f32.vlgmr.msra.gmra.mrb[96].mxu0 %vm1458_vm4, %v12816_v61 }
0x59f1   :  { %15469 = vmatpush3.msra.mxu0 %v11223_v54 }
0x59f2   :  { %15692 = vmatprep.subr.bf16.mxu0 %v15691_v18 }
0x5abb   :  { %v12889_v58 = vpop.f32.mrb[136].mxu1 }
0x5abc   :  { %v15462_v13 = vpop.f32.mrb[137].mxu1  ;;  %15470 = vmatprep.mubr.msk.f32.mxu0 %vm1458_vm4, %v12889_v58 }
0x5ac3   :  { %v12965_v52 = vpop.f32.mrb[96].mxu0 }
0x5ac4   :  { %v15467_v20 = vpop.f32.mrb[97].mxu0  ;;  %15471 = vmatmul.mubr.msk.f32.vlgmr.msra.gmra.mrb[90].mxu0 %vm1458_vm4, %v12965_v52 }
0x5ac5   :  { %15694 = vmatpush3.bf16.msra.mxu0 %v15691_v18 }
0x5ac6   :  { %15696 = vmatprep.subr.bf16.mxu0 %v15695_v48 }
0x5ac9   :  { %15698 = vmatpush3.bf16.msra.mxu0 %v15695_v48 }
0x5aca   :  { %15700 = vmatprep.subr.bf16.mxu0 %v15699_v19 }
0x5acd   :  { %15702 = vmatpush3.bf16.msra.mxu0 %v15699_v19 }
0x5ace   :  { %15704 = vmatprep.subr.bf16.mxu0 %v15703_v10 }
0x5ad1   :  { %15706 = vmatpush3.bf16.msra.mxu0 %v15703_v10 }
0x5b97   :  { %v15472_v15 = vpop.f32.mrb[90].mxu0 }
0x5b98   :  { %v13059_v42 = vadd.f32 %v15472_v15, %v14252_v2  ;;  %v13041_v28 = vpop.f32.mrb[91].mxu0 }
0x5b99   :  { %v13058_v23 = vadd.f32 %v14252_v2, %v13041_v28 }
0x5b9a   :  { %v13061_v29 = vadd.f32 %v13059_v42, %v19515_v47 }
0x5b9b   :  { %v13060_v32 = vadd.f32 %v13058_v23, %v19513_v34 }
0x5b9c   :  { %v13067_v33 = vsel %vm1204_vm2, %v13061_v29, 0.0 }
0x5b9d   :  { %13068 = vadd.xlane.f32.xlu0 %v13067_v33  ;;  %v13064_v35 = vsel %vm1204_vm2, %v13060_v32, 0.0 }
0x5b9e   :  { %13065 = vadd.xlane.f32.xlu1 %v13064_v35 }
0x5c2a   :  { %v13069_v9 = vpop.xlane.xlu0 %13068 }
0x5c2b   :  { %v13071_v17 = vmul.f32 0.03125, %v13069_v9  ;;  %v13066_v57 = vpop.xlane.xlu1 %13065 }
0x5c2c   :  { %v13070_v37 = vmul.f32 0.03125, %v13066_v57 }
0x5c2d   :  { %v13073_v62 = vsub.f32 %v13061_v29, %v13071_v17 }
0x5c2e   :  { %v13072_v36 = vsub.f32 %v13060_v32, %v13070_v37  ;;  %v14258_v37 = vld [vmem:[#allocation65] ss:$0 sm:$0xff] }
0x5c2f   :  { %v13075_v21 = vmul.f32 %v13073_v62, %v13073_v62 }
0x5c30   :  { %v13074_v47 = vmul.f32 %v13072_v36, %v13072_v36 }
0x5c31   :  { %v13079_v34 = vsel %vm1204_vm2, %v13075_v21, 0.0 }
0x5c32   :  { %13080 = vadd.xlane.f32.xlu1 %v13079_v34  ;;  %v13076_v63 = vsel %vm1204_vm2, %v13074_v47, 0.0 }
0x5c33   :  { %13077 = vadd.xlane.f32.xlu0 %v13076_v63 }
0x5cbf   :  { %v13081_v16 = vpop.xlane.xlu1 %13080 }
0x5cc0   :  { %v13083_v4 = vmul.f32 0.03125, %v13081_v16  ;;  %v13078_v31 = vpop.xlane.xlu0 %13077 }
0x5cc1   :  { %v13082_v43 = vmul.f32 0.03125, %v13078_v31 }
0x5cc2   :  { %v13085_v51 = vadd.f32 1e-05, %v13083_v4 }
0x5cc3   :  { %v13084_v5 = vadd.f32 1e-05, %v13082_v43 }
0x5cc4   :  { %16200 = vrsqrt.f32 %v13085_v51 }
0x5cc5   :  { %16202 = vrsqrt.f32 %v13084_v5 }
0x5cce   :  { %v16201_v41 = vpop.eup %16200 }
0x5ccf   :  { %v16203_v3 = vpop.eup %16202  ;;  %v13089_v49 = vmul.f32 %v16201_v41, %v13073_v62  ;;  %v13358_v41 = vld [vmem:[%s19952_s2] sm:$0xff] }
0x5cd0   :  { %v13088_v50 = vmul.f32 %v16203_v3, %v13072_v36 }
0x5cd1   :  { %v13097_v45 = vmul.f32 %v14253_v46, %v13089_v49  ;;  %v13360_v49 = vld [vmem:[%s19952_s2 + $0x10] sm:$0xff] }
0x5cd2   :  { %v13096_v53 = vmul.f32 %v14253_v46, %v13088_v50  ;;  %v13359_v46 = vld [vmem:[%s19952_s2 + $0x8] sm:$0xff]  ;;  %v13361_v50 = vld [vmem:[%s19952_s2 + $0x18] sm:$0xff] }
0x5cd3   :  { %v13105_v1 = vadd.f32 %v14254_v22, %v13097_v45  ;;  %v15707_v3 = vpack.c.bf16 %v13359_v46, %v13358_v41 }
0x5cd4   :  { %v13104_v60 = vadd.f32 %v14254_v22, %v13096_v53  ;;  %v15711_v22 = vpack.c.bf16 %v13361_v50, %v13360_v49 }
0x5cd5   :  { %15708 = vmatprep.subr.bf16.mxu1 %v15707_v3 }
0x5cd6   :  { %15481 = vmatprep.mubr.msk.f32.mxu1 %vm1204_vm2, %v13104_v60 }
0x5cd7   :  { %15482 = vmatmul.mubr.msk.f32.vlgmr.msra.gmra.mrb[138].mxu1 %vm1204_vm2, %v13105_v1 }
0x5cd8   :  { %15710 = vmatpush3.bf16.msra.mxu1 %v15707_v3 }
0x5cd9   :  { %15712 = vmatprep.subr.bf16.mxu1 %v15711_v22 }
0x5cdc   :  { %15714 = vmatpush3.bf16.msra.mxu1 %v15711_v22 }
0x5daa   :  { %v15483_v26 = vpop.f32.mrb[138].mxu1 }
0x5dab   :  { %v13195_v27 = vadd.f32 %v15483_v26, %v14255_v25  ;;  %v13189_v14 = vpop.f32.mrb[139].mxu1  ;;  %v13469_v26 = vld [vmem:[%s19953_s6 + $0x8] sm:$0xff] }
0x5dac   :  { %v13190_v44 = vadd.f32 %v14255_v25, %v13189_v14  ;;  %v13468_v25 = vld [vmem:[%s19953_s6] sm:$0xff]  ;;  %v13470_v14 = vld [vmem:[%s19953_s6 + $0x10] sm:$0xff] }
0x5dad   :  { %v13199_v61 = vmul.f32 %v13195_v27, %v13195_v27 }
0x5dae   :  { %v13198_v54 = vmul.f32 %v13190_v44, %v13190_v44 }
0x5daf   :  { %v13201_v58 = vmul.f32 %v13199_v61, %v13195_v27 }
0x5db0   :  { %v13200_v13 = vmul.f32 %v13198_v54, %v13190_v44  ;;  %v14263_v54 = vld [vmem:[#allocation13] ss:$0 sm:$0xff] }
0x5db1   :  { %v13203_v52 = vmul.f32 0.044715, %v13201_v58 }
0x5db2   :  { %v13202_v20 = vmul.f32 0.044715, %v13200_v13 }
0x5db3   :  { %v13205_v2 = vadd.f32 %v13203_v52, %v13195_v27 }
0x5db4   :  { %v13204_v15 = vadd.f32 %v13202_v20, %v13190_v44 }
0x5db5   :  { %v13207_v42 = vmul.f32 0.7978846, %v13205_v2 }
0x5db6   :  { %v13206_v28 = vmul.f32 0.7978846, %v13204_v15 }
0x5db7   :  { %16204 = vtanh.f32 %v13207_v42 }
0x5db8   :  { %16206 = vtanh.f32 %v13206_v28 }
0x5dc1   :  { %v16205_v23 = vpop.eup %16204 }
0x5dc2   :  { %v16207_v29 = vpop.eup %16206  ;;  %v13211_v32 = vadd.f32 1.0, %v16205_v23 }
0x5dc3   :  { %v13210_v33 = vadd.f32 1.0, %v16207_v29 }
0x5dc4   :  { %v13213_v35 = vmul.f32 0.5, %v13211_v32 }
0x5dc5   :  { %v13212_v9 = vmul.f32 0.5, %v13210_v33 }
0x5dc6   :  { %v13215_v57 = vmul.f32 %v13213_v35, %v13195_v27  ;;  %v15715_v27 = vpack.c.bf16 %v13469_v26, %v13468_v25  ;;  %v14270_v26 = vld [vmem:[#allocation11] ss:$0 sm:$0xff] }
0x5dc7   :  { %v13214_v17 = vmul.f32 %v13212_v9, %v13190_v44  ;;  %v13471_v44 = vld [vmem:[%s19953_s6 + $0x18] sm:$0xff] }
0x5dc8   :  { %15716 = vmatprep.subr.bf16.mxu1 %v15715_v27  ;;  %v15719_v61 = vpack.c.bf16 %v13471_v44, %v13470_v14 }
0x5dc9   :  { %15500 = vmatprep.mubr.msk.f32.mxu0 %vm3283_vm7, %v13214_v17 }
0x5dca   :  { %15501 = vmatmul.mubr.msk.f32.vlgmr.msra.gmra.mrb[98].mxu0 %vm3283_vm7, %v13215_v57 }
0x5e9d   :  { %v15502_v62 = vpop.f32.mrb[98].mxu0 }
0x5e9e   :  { %v13309_v36 = vadd.f32 %v15502_v62, %v14258_v37  ;;  %v13303_v21 = vpop.f32.mrb[99].mxu0 }
0x5e9f   :  { %v13304_v47 = vadd.f32 %v14258_v37, %v13303_v21 }
0x5ea0   :  { %v13313_v34 = vadd.f32 %v13309_v36, %v13105_v1 }
0x5ea1   :  { %v13312_v63 = vadd.f32 %v13304_v47, %v13104_v60 }
0x5ea2   :  { %v13319_v38 = vsel %vm1204_vm2, %v13313_v34, 0.0 }
0x5ea3   :  { %13320 = vadd.xlane.f32.xlu1 %v13319_v38  ;;  %v13316_v39 = vsel %vm1204_vm2, %v13312_v63, 0.0 }
0x5ea4   :  { %13317 = vadd.xlane.f32.xlu0 %v13316_v39 }
0x5f30   :  { %v13321_v7 = vpop.xlane.xlu1 %13320 }
0x5f31   :  { %v13323_v11 = vmul.f32 0.03125, %v13321_v7  ;;  %v13318_v40 = vpop.xlane.xlu0 %13317 }
0x5f32   :  { %v13322_v0 = vmul.f32 0.03125, %v13318_v40 }
0x5f33   :  { %v13325_v16 = vsub.f32 %v13313_v34, %v13323_v11 }
0x5f34   :  { %v13324_v4 = vsub.f32 %v13312_v63, %v13322_v0  ;;  %v14266_v63 = vld [vmem:[#allocation14] ss:$0 sm:$0xff] }
0x5f35   :  { %v13327_v31 = vmul.f32 %v13325_v16, %v13325_v16 }
0x5f36   :  { %v13326_v43 = vmul.f32 %v13324_v4, %v13324_v4 }
0x5f37   :  { %v13331_v51 = vsel %vm1204_vm2, %v13327_v31, 0.0 }
0x5f38   :  { %13332 = vadd.xlane.f32.xlu1 %v13331_v51  ;;  %v13328_v5 = vsel %vm1204_vm2, %v13326_v43, 0.0 }
0x5f39   :  { %13329 = vadd.xlane.f32.xlu0 %v13328_v5 }
0x5fc5   :  { %v13333_v45 = vpop.xlane.xlu1 %13332 }
0x5fc6   :  { %v13335_v53 = vmul.f32 0.03125, %v13333_v45  ;;  %v13330_v60 = vpop.xlane.xlu0 %13329  ;;  %v13606_v45 = vld [vmem:[%s19954_s7] sm:$0xff] }
0x5fc7   :  { %v13334_v1 = vmul.f32 0.03125, %v13330_v60 }
0x5fc8   :  { %v13337_v30 = vadd.f32 1e-05, %v13335_v53  ;;  %v13607_v53 = vld [vmem:[%s19954_s7 + $0x8] sm:$0xff] }
0x5fc9   :  { %v13336_v24 = vadd.f32 1e-05, %v13334_v1  ;;  %v15723_v60 = vpack.c.bf16 %v13607_v53, %v13606_v45  ;;  %v13608_v1 = vld [vmem:[%s19954_s7 + $0x10] sm:$0xff] }
0x5fca   :  { %16208 = vrsqrt.f32 %v13337_v30  ;;  %v13609_v30 = vld [vmem:[%s19954_s7 + $0x18] sm:$0xff] }
0x5fcb   :  { %16210 = vrsqrt.f32 %v13336_v24  ;;  %15724 = vmatprep.subr.bf16.mxu0 %v15723_v60  ;;  %v15727_v24 = vpack.c.bf16 %v13609_v30, %v13608_v1 }
0x5fcc   :  { %15726 = vmatpush3.bf16.msra.mxu0 %v15723_v60 }
0x5fcd   :  { %15728 = vmatprep.subr.bf16.mxu0 %v15727_v24 }
0x5fd0   :  { %15730 = vmatpush3.bf16.msra.mxu0 %v15727_v24 }
0x5fd4   :  { %v16209_v18 = vpop.eup %16208 }
0x5fd5   :  { %v16211_v56 = vpop.eup %16210  ;;  %v13341_v48 = vmul.f32 %v16209_v18, %v13325_v16 }
0x5fd6   :  { %v13340_v8 = vmul.f32 %v16211_v56, %v13324_v4 }
0x5fd7   :  { %v13349_v19 = vmul.f32 %v14261_v55, %v13341_v48 }
0x5fd8   :  { %v13348_v59 = vmul.f32 %v14261_v55, %v13340_v8 }
0x5fd9   :  { %v13357_v10 = vadd.f32 %v14262_v12, %v13349_v19 }
0x5fda   :  { %v13356_v6 = vadd.f32 %v14262_v12, %v13348_v59  ;;  %v14269_v59 = vld [vmem:[#allocation16] ss:$0 sm:$0xff] }
0x5fdc   :  { %15511 = vmatprep.mubr.msk.f32.mxu1 %vm1204_vm2, %v13356_v6 }
0x5fdd   :  { %15512 = vmatmul.mubr.msk.f32.vlgmr.msra.gmra.mrb[140].mxu1 %vm1204_vm2, %v13357_v10 }
0x5fde   :  { %15718 = vmatpush3.bf16.msra.mxu1 %v15715_v27 }
0x5fdf   :  { %15720 = vmatprep.subr.bf16.mxu1 %v15719_v61 }
0x5fe2   :  { %15722 = vmatpush3.bf16.msra.mxu1 %v15719_v61 }
0x60b0   :  { %v15513_v58 = vpop.f32.mrb[140].mxu1 }
0x60b1   :  { %v13447_v13 = vadd.f32 %v15513_v58, %v14263_v54  ;;  %v13441_v52 = vpop.f32.mrb[141].mxu1  ;;  %v13717_v58 = vld [vmem:[%s19955_s10 + $0x8] sm:$0xff] }
0x60b2   :  { %v13442_v20 = vadd.f32 %v14263_v54, %v13441_v52  ;;  %v13716_v54 = vld [vmem:[%s19955_s10] sm:$0xff]  ;;  %v13718_v52 = vld [vmem:[%s19955_s10 + $0x10] sm:$0xff] }
0x60b3   :  { %v13451_v2 = vmul.f32 %v13447_v13, %v13447_v13 }
0x60b4   :  { %v13450_v15 = vmul.f32 %v13442_v20, %v13442_v20 }
0x60b5   :  { %v13453_v42 = vmul.f32 %v13451_v2, %v13447_v13 }
0x60b6   :  { %v13452_v28 = vmul.f32 %v13450_v15, %v13442_v20  ;;  %v14271_v15 = vld [vmem:[#allocation19] ss:$0 sm:$0xff] }
0x60b7   :  { %v13455_v23 = vmul.f32 0.044715, %v13453_v42 }
0x60b8   :  { %v13454_v29 = vmul.f32 0.044715, %v13452_v28 }
0x60b9   :  { %v13457_v32 = vadd.f32 %v13455_v23, %v13447_v13 }
0x60ba   :  { %v13456_v33 = vadd.f32 %v13454_v29, %v13442_v20 }
0x60bb   :  { %v13459_v35 = vmul.f32 0.7978846, %v13457_v32 }
0x60bc   :  { %v13458_v9 = vmul.f32 0.7978846, %v13456_v33 }
0x60bd   :  { %16212 = vtanh.f32 %v13459_v35 }
0x60be   :  { %16214 = vtanh.f32 %v13458_v9 }
0x60c7   :  { %v16213_v17 = vpop.eup %16212 }
0x60c8   :  { %v16215_v57 = vpop.eup %16214  ;;  %v13463_v37 = vadd.f32 1.0, %v16213_v17 }
0x60c9   :  { %v13462_v62 = vadd.f32 1.0, %v16215_v57 }
0x60ca   :  { %v13465_v36 = vmul.f32 0.5, %v13463_v37 }
0x60cb   :  { %v13464_v21 = vmul.f32 0.5, %v13462_v62 }
0x60cc   :  { %v13467_v34 = vmul.f32 %v13465_v36, %v13447_v13  ;;  %v15731_v13 = vpack.c.bf16 %v13717_v58, %v13716_v54 }
0x60cd   :  { %v13466_v47 = vmul.f32 %v13464_v21, %v13442_v20  ;;  %v13719_v20 = vld [vmem:[%s19955_s10 + $0x18] sm:$0xff] }
0x60ce   :  { %15732 = vmatprep.subr.bf16.mxu1 %v15731_v13  ;;  %v15735_v2 = vpack.c.bf16 %v13719_v20, %v13718_v52 }
0x60cf   :  { %15522 = vmatprep.mubr.msk.f32.mxu1 %vm1204_vm2, %v13466_v47 }
0x60d0   :  { %15523 = vmatmul.mubr.msk.f32.vlgmr.msra.gmra.mrb[142].mxu1 %vm1204_vm2, %v13467_v34 }
0x60d1   :  { %15734 = vmatpush3.bf16.msra.mxu1 %v15731_v13 }
0x60d2   :  { %15736 = vmatprep.subr.bf16.mxu1 %v15735_v2 }
0x60d5   :  { %15738 = vmatpush3.bf16.msra.mxu1 %v15735_v2 }
0x61a3   :  { %v15524_v38 = vpop.f32.mrb[142].mxu1 }
0x61a4   :  { %v13557_v39 = vadd.f32 %v15524_v38, %v14266_v63  ;;  %v13551_v7 = vpop.f32.mrb[143].mxu1 }
0x61a5   :  { %v13552_v11 = vadd.f32 %v14266_v63, %v13551_v7 }
0x61a6   :  { %v13561_v40 = vadd.f32 %v13557_v39, %v13357_v10 }
0x61a7   :  { %v13560_v0 = vadd.f32 %v13552_v11, %v13356_v6 }
0x61a8   :  { %v13567_v16 = vsel %vm1204_vm2, %v13561_v40, 0.0 }
0x61a9   :  { %13568 = vadd.xlane.f32.xlu1 %v13567_v16  ;;  %v13564_v4 = vsel %vm1204_vm2, %v13560_v0, 0.0 }
0x61aa   :  { %13565 = vadd.xlane.f32.xlu0 %v13564_v4 }
0x6236   :  { %v13569_v31 = vpop.xlane.xlu1 %13568 }
0x6237   :  { %v13571_v43 = vmul.f32 0.03125, %v13569_v31  ;;  %v13566_v51 = vpop.xlane.xlu0 %13565 }
0x6238   :  { %v13570_v5 = vmul.f32 0.03125, %v13566_v51 }
0x6239   :  { %v13573_v41 = vsub.f32 %v13561_v40, %v13571_v43 }
0x623a   :  { %v13572_v46 = vsub.f32 %v13560_v0, %v13570_v5  ;;  %v14274_v0 = vld [vmem:[#allocation20] ss:$0 sm:$0xff] }
0x623b   :  { %v13575_v3 = vmul.f32 %v13573_v41, %v13573_v41 }
0x623c   :  { %v13574_v49 = vmul.f32 %v13572_v46, %v13572_v46 }
0x623d   :  { %v13579_v50 = vsel %vm1204_vm2, %v13575_v3, 0.0 }
0x623e   :  { %13580 = vadd.xlane.f32.xlu1 %v13579_v50  ;;  %v13576_v22 = vsel %vm1204_vm2, %v13574_v49, 0.0 }
0x623f   :  { %13577 = vadd.xlane.f32.xlu0 %v13576_v22 }
0x62cb   :  { %v13581_v18 = vpop.xlane.xlu1 %13580 }
0x62cc   :  { %v13583_v55 = vmul.f32 0.03125, %v13581_v18  ;;  %v13578_v56 = vpop.xlane.xlu0 %13577 }
0x62cd   :  { %v13582_v48 = vmul.f32 0.03125, %v13578_v56 }
0x62ce   :  { %v13585_v8 = vadd.f32 1e-05, %v13583_v55 }
0x62cf   :  { %v13584_v12 = vadd.f32 1e-05, %v13582_v48 }
0x62d0   :  { %16216 = vrsqrt.f32 %v13585_v8 }
0x62d1   :  { %16218 = vrsqrt.f32 %v13584_v12 }
0x62da   :  { %v16217_v19 = vpop.eup %16216 }
0x62db   :  { %v16219_v6 = vpop.eup %16218  ;;  %v13589_v10 = vmul.f32 %v16217_v19, %v13573_v41 }
0x62dc   :  { %v13588_v25 = vmul.f32 %v16219_v6, %v13572_v46 }
0x62dd   :  { %v13597_v27 = vmul.f32 %v14269_v59, %v13589_v10 }
0x62de   :  { %v13596_v14 = vmul.f32 %v14269_v59, %v13588_v25  ;;  %v14277_v59 = vld [vmem:[#allocation22] ss:$0 sm:$0xff] }
0x62df   :  { %v13605_v61 = vadd.f32 %v14270_v26, %v13597_v27 }
0x62e0   :  { %v13604_v44 = vadd.f32 %v14270_v26, %v13596_v14  ;;  %v14278_v26 = vld [vmem:[#allocation17] ss:$0 sm:$0xff] }
0x62e2   :  { %15533 = vmatprep.mubr.msk.f32.mxu0 %vm1204_vm2, %v13604_v44 }
0x62e3   :  { %15534 = vmatmul.mubr.msk.f32.vlgmr.msra.gmra.mrb[100].mxu0 %vm1204_vm2, %v13605_v61 }
0x63b6   :  { %v15535_v42 = vpop.f32.mrb[100].mxu0 }
0x63b7   :  { %v13695_v28 = vadd.f32 %v15535_v42, %v14271_v15  ;;  %v13689_v23 = vpop.f32.mrb[101].mxu0 }
0x63b8   :  { %v13690_v29 = vadd.f32 %v14271_v15, %v13689_v23 }
0x63b9   :  { %v13699_v32 = vmul.f32 %v13695_v28, %v13695_v28 }
0x63ba   :  { %v13698_v33 = vmul.f32 %v13690_v29, %v13690_v29 }
0x63bb   :  { %v13701_v35 = vmul.f32 %v13699_v32, %v13695_v28 }
0x63bc   :  { %v13700_v9 = vmul.f32 %v13698_v33, %v13690_v29 }
0x63bd   :  { %v13703_v17 = vmul.f32 0.044715, %v13701_v35 }
0x63be   :  { %v13702_v57 = vmul.f32 0.044715, %v13700_v9 }
0x63bf   :  { %v13705_v37 = vadd.f32 %v13703_v17, %v13695_v28 }
0x63c0   :  { %v13704_v62 = vadd.f32 %v13702_v57, %v13690_v29 }
0x63c1   :  { %v13707_v36 = vmul.f32 0.7978846, %v13705_v37 }
0x63c2   :  { %v13706_v21 = vmul.f32 0.7978846, %v13704_v62 }
0x63c3   :  { %16220 = vtanh.f32 %v13707_v36 }
0x63c4   :  { %16222 = vtanh.f32 %v13706_v21 }
0x63cd   :  { %v16221_v47 = vpop.eup %16220 }
0x63ce   :  { %v16223_v34 = vpop.eup %16222  ;;  %v13711_v63 = vadd.f32 1.0, %v16221_v47 }
0x63cf   :  { %v13710_v38 = vadd.f32 1.0, %v16223_v34 }
0x63d0   :  { %v13713_v39 = vmul.f32 0.5, %v13711_v63 }
0x63d1   :  { %v13712_v7 = vmul.f32 0.5, %v13710_v38 }
0x63d2   :  { %v13715_v40 = vmul.f32 %v13713_v39, %v13695_v28 }
0x63d3   :  { %v13714_v11 = vmul.f32 %v13712_v7, %v13690_v29 }
0x63d5   :  { %15544 = vmatprep.mubr.msk.f32.mxu1 %vm1204_vm2, %v13714_v11 }
0x63d6   :  { %15545 = vmatmul.mubr.msk.f32.vlgmr.msra.gmra.mrb[144].mxu1 %vm1204_vm2, %v13715_v40 }
0x64a9   :  { %v15546_v16 = vpop.f32.mrb[144].mxu1 }
0x64aa   :  { %v13805_v4 = vadd.f32 %v15546_v16, %v14274_v0  ;;  %v13799_v31 = vpop.f32.mrb[145].mxu1 }
0x64ab   :  { %v13800_v43 = vadd.f32 %v14274_v0, %v13799_v31 }
0x64ac   :  { %v13809_v51 = vadd.f32 %v13805_v4, %v13605_v61 }
0x64ad   :  { %v13808_v5 = vadd.f32 %v13800_v43, %v13604_v44 }
0x64ae   :  { %v13815_v41 = vsel %vm1204_vm2, %v13809_v51, 0.0 }
0x64af   :  { %13816 = vadd.xlane.f32.xlu1 %v13815_v41  ;;  %v13812_v46 = vsel %vm1204_vm2, %v13808_v5, 0.0 }
0x64b0   :  { %13813 = vadd.xlane.f32.xlu0 %v13812_v46 }
0x653c   :  { %v13817_v3 = vpop.xlane.xlu1 %13816 }
0x653d   :  { %v13819_v49 = vmul.f32 0.03125, %v13817_v3  ;;  %v13814_v50 = vpop.xlane.xlu0 %13813 }
0x653e   :  { %v13818_v22 = vmul.f32 0.03125, %v13814_v50 }
0x653f   :  { %v13821_v45 = vsub.f32 %v13809_v51, %v13819_v49 }
0x6540   :  { %v13820_v53 = vsub.f32 %v13808_v5, %v13818_v22 }
0x6541   :  { %v13823_v60 = vmul.f32 %v13821_v45, %v13821_v45 }
0x6542   :  { %v13822_v1 = vmul.f32 %v13820_v53, %v13820_v53 }
0x6543   :  { %v13827_v30 = vsel %vm1204_vm2, %v13823_v60, 0.0 }
0x6544   :  { %13828 = vadd.xlane.f32.xlu1 %v13827_v30  ;;  %v13824_v24 = vsel %vm1204_vm2, %v13822_v1, 0.0 }
0x6545   :  { %13825 = vadd.xlane.f32.xlu0 %v13824_v24 }
0x65d1   :  { %v13829_v18 = vpop.xlane.xlu1 %13828 }
0x65d2   :  { %v13831_v55 = vmul.f32 0.03125, %v13829_v18  ;;  %v13826_v56 = vpop.xlane.xlu0 %13825 }
0x65d3   :  { %v13830_v48 = vmul.f32 0.03125, %v13826_v56 }
0x65d4   :  { %v13833_v8 = vadd.f32 1e-05, %v13831_v55 }
0x65d5   :  { %v13832_v12 = vadd.f32 1e-05, %v13830_v48 }
0x65d6   :  { %16224 = vrsqrt.f32 %v13833_v8 }
0x65d7   :  { %16226 = vrsqrt.f32 %v13832_v12 }
0x65e0   :  { %v16225_v19 = vpop.eup %16224 }
0x65e1   :  { %v16227_v6 = vpop.eup %16226  ;;  %v13837_v10 = vmul.f32 %v16225_v19, %v13821_v45 }
0x65e2   :  { %v13836_v25 = vmul.f32 %v16227_v6, %v13820_v53 }
0x65e3   :  { %v13845_v27 = vmul.f32 %v14277_v59, %v13837_v10 }
0x65e4   :  { %v13844_v14 = vmul.f32 %v14277_v59, %v13836_v25 }
0x65e5   :  { %v13853_v44 = vadd.f32 %v14278_v26, %v13845_v27 }
0x65e6   :  { %v13852_v61 = vadd.f32 %v14278_v26, %v13844_v14 }
0x65e7   :  { %13855 = vst.msk [vmem:[#allocation89 + $0x8] sm:$0xff] %vm1204_vm2, %v13853_v44 }
0x65e8   :  { %13854 = vst.msk [vmem:[#allocation89] sm:$0xff] %vm1204_vm2, %v13852_v61 }
0x65e9   :  { %17493 = shalt.err (!%p17490_p12)
}
0x65ea   :  { %s17494_s15 = scalar_lea.hbm %s18158_s13, 256 }
0x65eb   :  { %p17495_p13 = scmp.ne.s32.totalorder %s18158_s13, %s17494_s15  ;;  %p17498_p0 = scmp.lt.u32.totalorder %s17494_s15, %s18158_s13 }
0x65ed   :  { %p17500_p1 = pnand %p17498_p0, %p17495_p13 }
0x65ef   :  { %17503 = shalt.err (!%p17500_p1)
}
0x65f0   :  { %13867 = dma.vmem_to_hbm [thread:$0]  %s13862_s11, 256, %s18158_s13, [#allocation4], %s17660_s0, %s17660_s0, %s17661_s12  }
0x65f1   :  { %17562 = dma.done.wait [#allocation4], 256  }
0x65f2   :  { %17563 = vsyncadd [#allocation4], 4294967040 }
0x65f3   :  { %13871 = vsyncpa [#allocation3], 1 }
0x65f4   :  { %13872 = vsyncpa [#allocation6], 1 }
0x65f5   :  { %13873 = vsyncpa [#allocation9], 1 }
0x65f6   :  { %13874 = vsyncpa [#allocation12], 1 }
0x65f7   :  { %13875 = vsyncpa [#allocation15], 1 }
0x65f8   :  { %13876 = vsyncpa [#allocation18], 1 }
0x65f9   :  { %13877 = vsyncpa [#allocation21], 1 }
0x65fa   :  { %13878 = vsyncpa [#allocation24], 1 }
0x65fb   :  { %13879 = vsyncpa [#allocation27], 1 }
0x65fc   :  { %13880 = vsyncpa [#allocation30], 1 }
0x65fd   :  { %13881 = vsyncpa [#allocation33], 1 }
0x65fe   :  { %13882 = vsyncpa [#allocation36], 1 }
0x65ff   :  { %13883 = vsyncpa [#allocation39], 1 }
0x6600   :  { %13884 = vsyncpa [#allocation42], 1 }
0x6601   :  { %13885 = vsyncpa [#allocation45], 1 }
0x6602   :  { %13886 = vsyncpa [#allocation48], 1 }
0x6603   :  { %13887 = vsyncpa [#allocation51], 1 }
0x6604   :  { %13888 = vsyncpa [#allocation54], 1 }
0x6605   :  { %13889 = vsyncpa [#allocation57], 1 }
0x6606   :  { %13890 = vsyncpa [#allocation60], 1 }
0x6607   :  { %13891 = vsyncpa [#allocation63], 1 }
0x6608   :  { %13892 = vsyncpa [#allocation66], 1 }
0x6609   :  { %13893 = vsyncpa [#allocation69], 1 }
0x660a   :  { %13894 = vsyncpa [#allocation72], 1 }
0x660b   :  { %13895 = vsyncpa [#allocation75], 1 }
0x660c   :  { %13896 = vsyncpa [#allocation78], 1 }
0x660d   :  { %13897 = vsyncpa [#allocation81], 1 }
0x660e   :  { %13898 = vsyncpa [#allocation84], 1 }
0x660f   :  { %13899 = vsyncpa [#allocation87], 1 }
0x6610   :  { %13900 = vsyncpa [#allocation4], 1 }

</bundles_post_ra>
